<compile_context>
chip_gen: v5e
topology: v5e:2x2
jax: 0.10.0
libtpu: 0.0.40
codegen_flags: <defaults>
</compile_context>

<pallas_src>
import math

import jax
import jax.numpy as jnp
from jax.experimental import pallas as pl
from jax.experimental.pallas import tpu as pltpu


def make_siren_kernel(num_hidden_layers, dim_in, compute_dtype, first_layer_on_vpu):
    """Fused SIREN forward kernel in transposed (lane-dense) layout.

    Ref order: x_ref, W0, b0, W1, b1, ..., W_last, b_last, out_ref
      x_ref  : (dim_in, tile_n)       -- N points along the 128 lanes
      W_i    : (dim_out_i, dim_in_i)  -- PyTorch nn.Linear layout, w0 folded
      b_i    : (dim_out_i, 1)         -- always f32
      out_ref: (dim_out, tile_n)
    """
    total_layers = num_hidden_layers + 1  # hidden layers + last_layer

    def kernel(x_ref, *refs):
        out_ref = refs[-1]
        param_refs = refs[:-1]
        h = x_ref[...]                                     # (din, tile_n)
        for i in range(total_layers):
            w = param_refs[2 * i][...]                     # (dout, din)
            b = param_refs[2 * i + 1][...]                 # (dout, 1), f32
            if i == 0 and first_layer_on_vpu:
                # K = dim_in is tiny: do the first layer as dim_in broadcast
                # multiply-adds on the VPU (MXU has huge slack at these dims).
                z = b + (w[:, 0:1].astype(jnp.float32)
                         * h[0:1, :].astype(jnp.float32))
                for k in range(1, dim_in):
                    z = z + (w[:, k:k + 1].astype(jnp.float32)
                             * h[k:k + 1, :].astype(jnp.float32))
            else:
                z = jnp.dot(w, h, preferred_element_type=jnp.float32) + b
            if i < num_hidden_layers:
                h = jnp.sin(z)                             # w0 already folded
                if h.dtype != compute_dtype:
                    h = h.astype(compute_dtype)
            else:
                out_ref[...] = z.astype(out_ref.dtype)     # Identity final act

    return kernel


def siren_forward_pallas(x, params, w0s, *, tile_n=2048,
                         compute_dtype=jnp.float32, first_layer_on_vpu=None):
    """x: (N, dim_in).

    params: list of (W, b) in PyTorch layout, W:(dout, din), b:(dout,).
    w0s: tuple of w0 for the hidden layers (len(params) - 1 entries).
    compute_dtype: jnp.float32 (default, v5e / strict accuracy) or
        jnp.bfloat16 (v6e/v7x memory-bound speedup; matmuls still accumulate
        in f32, bias/sin/final store stay f32).
    """
    N, dim_in = x.shape
    num_hidden_layers = len(params) - 1
    dim_out = params[-1][0].shape[0]

    # Fold w0 into hidden-layer weights/biases (exact algebraic rewrite).
    folded = []
    for i, (W, b) in enumerate(params):
        if i < num_hidden_layers:
            folded.append((w0s[i] * W, w0s[i] * b))
        else:
            folded.append((W, b))

    # Tile choice: big tiles amortize per-grid-step overhead, but keep
    # grid_n >= 2 so the "parallel" axis can shard across v7x's 2 TensorCores.
    assert tile_n % 128 == 0, "tile_n must be a multiple of 128 (lane width)"
    while tile_n > 128 and pl.cdiv(N, tile_n) < 2:
        tile_n = max(128, ((tile_n // 2) + 127) // 128 * 128)
    grid_n = pl.cdiv(N, tile_n)

    # Lane-dense input layout: (dim_in, N).  No padding pass; ragged tail is
    # handled by Pallas' clipped boundary blocks.
    x_t = jnp.transpose(x).astype(compute_dtype)

    flat_params = []
    for W, b in folded:
        flat_params.append(W.astype(compute_dtype))
        flat_params.append(b.reshape(-1, 1).astype(jnp.float32))

    if first_layer_on_vpu is None:
        first_layer_on_vpu = dim_in <= 4

    kernel = make_siren_kernel(num_hidden_layers, dim_in, compute_dtype,
                               first_layer_on_vpu)

    in_specs = [pl.BlockSpec((dim_in, tile_n), lambda i: (0, i))]
    for p in flat_params:
        # Full (untiled) block, constant index -> resident, DMA'd once.
        in_specs.append(pl.BlockSpec(p.shape, lambda i: (0, 0)))
    out_spec = pl.BlockSpec((dim_out, tile_n), lambda i: (0, i))

    # Advisory cost estimate for XLA's scheduler.
    itemsize = jnp.dtype(compute_dtype).itemsize
    flops = 2 * N * sum(int(W.shape[0]) * int(W.shape[1]) for W, _ in folded)
    transcendentals = N * sum(int(W.shape[0])
                              for W, _ in folded[:num_hidden_layers])
    param_bytes = sum(int(W.size) * itemsize + int(W.shape[0]) * 4
                      for W, _ in folded)
    bytes_accessed = (dim_in * N * itemsize
                      + dim_out * N * jnp.dtype(x.dtype).itemsize
                      + param_bytes)
    cost = pl.CostEstimate(flops=flops, transcendentals=transcendentals,
                           bytes_accessed=bytes_accessed)

    f = pl.pallas_call(
        kernel,
        out_shape=jax.ShapeDtypeStruct((dim_out, N), x.dtype),
        grid_spec=pltpu.PrefetchScalarGridSpec(
            num_scalar_prefetch=0,
            grid=(grid_n,),
            in_specs=in_specs,
            out_specs=out_spec,
        ),
        compiler_params=pltpu.CompilerParams(
            dimension_semantics=("parallel",),
            vmem_limit_bytes=32 * 1024 * 1024,
        ),
        cost_estimate=cost,
    )
    out_t = f(x_t, *flat_params)          # (dim_out, N)
    return jnp.transpose(out_t)           # (N, dim_out)


def init_siren_params(key, dim_in, dim_hidden, dim_out, num_layers,
                      w0=30.0, w0_initial=30.0, c=6.0):
    """Init mirroring SirenLayer: uniform(-w_std, w_std), PyTorch layout."""
    params = []
    w0s = []
    layer_dims = []
    for ind in range(num_layers):                      # hidden SirenLayers
        is_first = ind == 0
        layer_w0 = w0_initial if is_first else w0
        layer_dim_in = dim_in if is_first else dim_hidden
        layer_dims.append((layer_dim_in, dim_hidden, layer_w0, is_first))
    layer_dims.append((dim_hidden, dim_out, w0, False))  # last layer (Identity)

    for (din, dout, layer_w0, is_first) in layer_dims:
        key, kw, kb = jax.random.split(key, 3)
        w_std = (1.0 / din) if is_first else (math.sqrt(c / din) / layer_w0)
        W = jax.random.uniform(kw, (dout, din), jnp.float32, -w_std, w_std)
        b = jax.random.uniform(kb, (dout,), jnp.float32, -w_std, w_std)
        params.append((W, b))
        w0s.append(layer_w0)

    # w0s used for the Sine activation of hidden layers only.
    return params, tuple(w0s[:num_layers])


def siren_forward_ref(x, params, w0s):
    """Plain-JAX reference: h = sin(w0 * (h @ W.T + b)), Identity on last."""
    num_hidden = len(params) - 1
    h = x.astype(jnp.float32)
    for i, (W, b) in enumerate(params):
        h = h @ W.T + b
        if i < num_hidden:
            h = jnp.sin(w0s[i] * h)
    return h.astype(x.dtype)


if __name__ == "__main__":
    # Small, deterministic example (exercises the ragged-tail path:
    # N % tile_n != 0, and the tile_n auto-halving that keeps grid_n >= 2).
    dim_in, dim_hidden, dim_out = 2, 32, 3
    num_layers = 3
    w0, w0_initial = 30.0, 30.0
    N = 1000  # number of coordinate points

    key = jax.random.PRNGKey(0)
    key, kx = jax.random.split(key)
    x = jax.random.uniform(kx, (N, dim_in), jnp.float32, -1.0, 1.0)

    params, w0s = init_siren_params(key, dim_in, dim_hidden, dim_out,
                                    num_layers, w0=w0, w0_initial=w0_initial)

    out = siren_forward_pallas(x, params, w0s, tile_n=2048)
    out = jax.block_until_ready(out)

    ref = siren_forward_ref(x, params, w0s)
    assert out.shape == (N, dim_out)
    assert jnp.allclose(out, ref, atol=1e-4, rtol=1e-4), "mismatch vs reference"

    print("KERNEL_OK")
</pallas_src>

<mosaic_0001>
module attributes {stable_mosaic.version = 11 : i64} {
  func.func @kernel(%arg0: i32, %arg1: memref<2x512xf32, #tpu.memory_space<vmem>>, %arg2: memref<32x2xf32, #tpu.memory_space<vmem>>, %arg3: memref<32x1xf32, #tpu.memory_space<vmem>>, %arg4: memref<32x32xf32, #tpu.memory_space<vmem>>, %arg5: memref<32x1xf32, #tpu.memory_space<vmem>>, %arg6: memref<32x32xf32, #tpu.memory_space<vmem>>, %arg7: memref<32x1xf32, #tpu.memory_space<vmem>>, %arg8: memref<3x32xf32, #tpu.memory_space<vmem>>, %arg9: memref<3x1xf32, #tpu.memory_space<vmem>>, %arg10: memref<3x512xf32, #tpu.memory_space<vmem>>) attributes {dimension_semantics = [#tpu.dimension_semantics<parallel>], iteration_bounds = array<i64: 2>, scalar_prefetch = 0 : i64, scratch_operands = 0 : i64, tpu.core_type = #tpu.core_type<tc>, window_params = [{transform_indices = @transform_0, window_bounds = array<i64: 2, 512>}, {pipeline_mode = #tpu.pipeline_mode<synchronous>, transform_indices = @transform_1, window_bounds = array<i64: 32, 2>}, {pipeline_mode = #tpu.pipeline_mode<synchronous>, transform_indices = @transform_2, window_bounds = array<i64: 32, 1>}, {pipeline_mode = #tpu.pipeline_mode<synchronous>, transform_indices = @transform_3, window_bounds = array<i64: 32, 32>}, {pipeline_mode = #tpu.pipeline_mode<synchronous>, transform_indices = @transform_4, window_bounds = array<i64: 32, 1>}, {pipeline_mode = #tpu.pipeline_mode<synchronous>, transform_indices = @transform_5, window_bounds = array<i64: 32, 32>}, {pipeline_mode = #tpu.pipeline_mode<synchronous>, transform_indices = @transform_6, window_bounds = array<i64: 32, 1>}, {pipeline_mode = #tpu.pipeline_mode<synchronous>, transform_indices = @transform_7, window_bounds = array<i64: 3, 32>}, {pipeline_mode = #tpu.pipeline_mode<synchronous>, transform_indices = @transform_8, window_bounds = array<i64: 3, 1>}, {transform_indices = @transform_9, window_bounds = array<i64: 3, 512>}]} {
    %c0 = arith.constant 0 : index
    %c0_0 = arith.constant 0 : index
    %0 = vector.load %arg1[%c0, %c0_0] : memref<2x512xf32, #tpu.memory_space<vmem>>, vector<2x512xf32>
    %c0_1 = arith.constant 0 : index
    %c0_2 = arith.constant 0 : index
    %1 = vector.load %arg2[%c0_1, %c0_2] : memref<32x2xf32, #tpu.memory_space<vmem>>, vector<32x2xf32>
    %c0_3 = arith.constant 0 : index
    %c0_4 = arith.constant 0 : index
    %2 = vector.load %arg3[%c0_3, %c0_4] : memref<32x1xf32, #tpu.memory_space<vmem>>, vector<32x1xf32>
    %3 = vector.extract_strided_slice %1 {offsets = [0, 0], sizes = [32, 1], strides = [1, 1]} : vector<32x2xf32> to vector<32x1xf32>
    %4 = vector.extract_strided_slice %0 {offsets = [0, 0], sizes = [1, 512], strides = [1, 1]} : vector<2x512xf32> to vector<1x512xf32>
    %5 = vector.broadcast %3 : vector<32x1xf32> to vector<32x512xf32>
    %6 = vector.broadcast %4 : vector<1x512xf32> to vector<32x512xf32>
    %7 = arith.mulf %5, %6 : vector<32x512xf32>
    %8 = vector.broadcast %2 : vector<32x1xf32> to vector<32x512xf32>
    %9 = arith.addf %8, %7 : vector<32x512xf32>
    %10 = vector.extract_strided_slice %1 {offsets = [0, 1], sizes = [32, 1], strides = [1, 1]} : vector<32x2xf32> to vector<32x1xf32>
    %11 = vector.extract_strided_slice %0 {offsets = [1, 0], sizes = [1, 512], strides = [1, 1]} : vector<2x512xf32> to vector<1x512xf32>
    %12 = vector.broadcast %10 : vector<32x1xf32> to vector<32x512xf32>
    %13 = vector.broadcast %11 : vector<1x512xf32> to vector<32x512xf32>
    %14 = arith.mulf %12, %13 : vector<32x512xf32>
    %15 = arith.addf %9, %14 : vector<32x512xf32>
    %16 = math.sin %15 : vector<32x512xf32>
    %c0_5 = arith.constant 0 : index
    %c0_6 = arith.constant 0 : index
    %17 = vector.load %arg4[%c0_5, %c0_6] : memref<32x32xf32, #tpu.memory_space<vmem>>, vector<32x32xf32>
    %c0_7 = arith.constant 0 : index
    %c0_8 = arith.constant 0 : index
    %18 = vector.load %arg5[%c0_7, %c0_8] : memref<32x1xf32, #tpu.memory_space<vmem>>, vector<32x1xf32>
    %cst = arith.constant dense<0.000000e+00> : vector<32x512xf32>
    %19 = tpu.matmul %17, %16, %cst {dimension_numbers = #tpu.dot_dimension_numbers<[1], [0], [0], [1], [0, 0, 1, 1], [], []>} : vector<32x32xf32>, vector<32x512xf32>, vector<32x512xf32> -> vector<32x512xf32>
    %20 = vector.broadcast %18 : vector<32x1xf32> to vector<32x512xf32>
    %21 = arith.addf %19, %20 : vector<32x512xf32>
    %22 = math.sin %21 : vector<32x512xf32>
    %c0_9 = arith.constant 0 : index
    %c0_10 = arith.constant 0 : index
    %23 = vector.load %arg6[%c0_9, %c0_10] : memref<32x32xf32, #tpu.memory_space<vmem>>, vector<32x32xf32>
    %c0_11 = arith.constant 0 : index
    %c0_12 = arith.constant 0 : index
    %24 = vector.load %arg7[%c0_11, %c0_12] : memref<32x1xf32, #tpu.memory_space<vmem>>, vector<32x1xf32>
    %cst_13 = arith.constant dense<0.000000e+00> : vector<32x512xf32>
    %25 = tpu.matmul %23, %22, %cst_13 {dimension_numbers = #tpu.dot_dimension_numbers<[1], [0], [0], [1], [0, 0, 1, 1], [], []>} : vector<32x32xf32>, vector<32x512xf32>, vector<32x512xf32> -> vector<32x512xf32>
    %26 = vector.broadcast %24 : vector<32x1xf32> to vector<32x512xf32>
    %27 = arith.addf %25, %26 : vector<32x512xf32>
    %28 = math.sin %27 : vector<32x512xf32>
    %c0_14 = arith.constant 0 : index
    %c0_15 = arith.constant 0 : index
    %29 = vector.load %arg8[%c0_14, %c0_15] : memref<3x32xf32, #tpu.memory_space<vmem>>, vector<3x32xf32>
    %c0_16 = arith.constant 0 : index
    %c0_17 = arith.constant 0 : index
    %30 = vector.load %arg9[%c0_16, %c0_17] : memref<3x1xf32, #tpu.memory_space<vmem>>, vector<3x1xf32>
    %cst_18 = arith.constant dense<0.000000e+00> : vector<3x512xf32>
    %31 = tpu.matmul %29, %28, %cst_18 {dimension_numbers = #tpu.dot_dimension_numbers<[1], [0], [0], [1], [0, 0, 1, 1], [], []>} : vector<3x32xf32>, vector<32x512xf32>, vector<3x512xf32> -> vector<3x512xf32>
    %32 = vector.broadcast %30 : vector<3x1xf32> to vector<3x512xf32>
    %33 = arith.addf %31, %32 : vector<3x512xf32>
    %c0_19 = arith.constant 0 : index
    %c0_20 = arith.constant 0 : index
    %34 = vector.load %arg10[%c0_19, %c0_20] : memref<3x512xf32, #tpu.memory_space<vmem>>, vector<3x512xf32>
    tpu.vector_store %arg10[%c0_19, %c0_20], %33 {strides = array<i32>} : memref<3x512xf32, #tpu.memory_space<vmem>>, vector<3x512xf32>,
    return
  }
  func.func @transform_0(%arg0: i32) -> (i32, i32) {
    %c0_i32 = arith.constant 0 : i32
    %c0_i32_0 = arith.constant 0 : i32
    return %c0_i32, %arg0 : i32, i32
  }
  func.func @transform_1(%arg0: i32) -> (i32, i32) {
    %c0_i32 = arith.constant 0 : i32
    %c0_i32_0 = arith.constant 0 : i32
    %c0_i32_1 = arith.constant 0 : i32
    return %c0_i32, %c0_i32_0 : i32, i32
  }
  func.func @transform_2(%arg0: i32) -> (i32, i32) {
    %c0_i32 = arith.constant 0 : i32
    %c0_i32_0 = arith.constant 0 : i32
    %c0_i32_1 = arith.constant 0 : i32
    return %c0_i32, %c0_i32_0 : i32, i32
  }
  func.func @transform_3(%arg0: i32) -> (i32, i32) {
    %c0_i32 = arith.constant 0 : i32
    %c0_i32_0 = arith.constant 0 : i32
    %c0_i32_1 = arith.constant 0 : i32
    return %c0_i32, %c0_i32_0 : i32, i32
  }
  func.func @transform_4(%arg0: i32) -> (i32, i32) {
    %c0_i32 = arith.constant 0 : i32
    %c0_i32_0 = arith.constant 0 : i32
    %c0_i32_1 = arith.constant 0 : i32
    return %c0_i32, %c0_i32_0 : i32, i32
  }
  func.func @transform_5(%arg0: i32) -> (i32, i32) {
    %c0_i32 = arith.constant 0 : i32
    %c0_i32_0 = arith.constant 0 : i32
    %c0_i32_1 = arith.constant 0 : i32
    return %c0_i32, %c0_i32_0 : i32, i32
  }
  func.func @transform_6(%arg0: i32) -> (i32, i32) {
    %c0_i32 = arith.constant 0 : i32
    %c0_i32_0 = arith.constant 0 : i32
    %c0_i32_1 = arith.constant 0 : i32
    return %c0_i32, %c0_i32_0 : i32, i32
  }
  func.func @transform_7(%arg0: i32) -> (i32, i32) {
    %c0_i32 = arith.constant 0 : i32
    %c0_i32_0 = arith.constant 0 : i32
    %c0_i32_1 = arith.constant 0 : i32
    return %c0_i32, %c0_i32_0 : i32, i32
  }
  func.func @transform_8(%arg0: i32) -> (i32, i32) {
    %c0_i32 = arith.constant 0 : i32
    %c0_i32_0 = arith.constant 0 : i32
    %c0_i32_1 = arith.constant 0 : i32
    return %c0_i32, %c0_i32_0 : i32, i32
  }
  func.func @transform_9(%arg0: i32) -> (i32, i32) {
    %c0_i32 = arith.constant 0 : i32
    %c0_i32_0 = arith.constant 0 : i32
    return %c0_i32, %arg0 : i32, i32
  }
}

</mosaic_0001>

<bundles_post_ra>
// kernel: tpu_custom_call.1
= control target key start
LH: loop header
LB: loop body
LE: loop exit
PB: predicated region body
PF: predicated region fallthrough
CT: control target
= control target key end

     0   :  { %14 = vsyncpa [#allocation3], 0  ;;  %s16417_s0 = inlined_call_operand.vmem [shape: f32[2,1000], index: 0, kind: input, shape index: {}]   ;;  %s16418_s1 = inlined_call_operand.vmem [shape: f32[32,2], index: 1, kind: input, shape index: {}]   ;;  %s16419_s2 = inlined_call_operand.vmem [shape: f32[32,1], index: 2, kind: input, shape index: {}]   ;;  %s16420_s3 = inlined_call_operand.vmem [shape: f32[32,32], index: 3, kind: input, shape index: {}]   ;;  %s16421_s4 = inlined_call_operand.vmem [shape: f32[32,1], index: 4, kind: input, shape index: {}]   ;;  %s16422_s5 = inlined_call_operand.vmem [shape: f32[32,32], index: 5, kind: input, shape index: {}]   ;;  %s16423_s6 = inlined_call_operand.vmem [shape: f32[32,1], index: 6, kind: input, shape index: {}]   ;;  %s16424_s7 = inlined_call_operand.vmem [shape: f32[3,32], index: 7, kind: input, shape index: {}]   ;;  %s16425_s8 = inlined_call_operand.vmem [shape: f32[3,1], index: 8, kind: input, shape index: {}]   ;;  %s16426_s9 = inlined_call_operand.hbm [shape: f32[3,1000], index: 9, kind: output, shape index: {}]  }
   0x1   :  { %16 = vsyncpa [#allocation3 + $0x1], 0  ;;  %s8793_s30 = smov 0   ;;  %s8795_s10 = smov 0  }
   0x2   :  { %s8797_s11 = smov 0   ;;  %s8799_s12 = smov 0  }
   0x3 LB: > { %s8814_s13 = sadd.s32 4294967295, %s8733_s12   ;;  %s8420_s14 = sadd.s32 4294967294, %s8733_s12   ;;  %s8733_s12 = sphi %s8799_s12, %s17396_s12   ;;  %s8729_s11 = sphi %s8797_s11, %s17395_s11   ;;  %s8725_s10 = sphi %s8795_s10, %s17394_s10   ;;  %s8721_s30 = sphi %s8793_s30, %s17393_s30  }
   0x4   : > { %s8818_s15 = sadd.s32 1, %s8733_s12   ;;  %s223_s16 = sadd.s32 1, %s8729_s11 }
   0x5   : > { %s220_s17 = ssub.s32 %s8733_s12, %s8818_s15  ;;  %p233_p0 = scmp.ne.s32.totalorder %s8729_s11, %s8725_s10 }
   0x6   : > { %p221_p1 = scmp.eq.s32.totalorder %s220_s17, 0  ;;  %p234_p2 = scmp.eq.s32.totalorder %s8814_s13, 1 }
   0x7   : > { %p239_p3 = scmp.ne.s32.totalorder %s8725_s10, %s8721_s30  ;;  %p240_p4 = scmp.eq.s32.totalorder %s8420_s14, 1 }
   0x8   : > { %s8829_s18 = scalar_select %p221_p1, %s8729_s11, %s223_s16  }
   0x9   : > { %p8831_p5 = por %p234_p2, %p233_p0  ;;  %p8835_p6 = por %p240_p4, %p239_p3 }
   0xa   : > { %p8423_p7 = scmp.ge.s32.totalorder %s8733_s12, 1  ;;  %p291_p8 = scmp.lt.s32.totalorder %s8733_s12, 3 }
   0xc   : > { %p292_p9 = pnand %p8423_p7, %p291_p8 }
   0xe   : > { %295 = sbr.rel (%p292_p9) target bundleno = 2427 (0x97b), region = 56 }
  0x13   : > { %v342_v0 = vld [vmem:[%s16419_s2 + $0x18] sm:$0xff]  ;;  %v336_v2 = vld [vmem:[%s16418_s1 + $0x8] sm:$0xff]  ;;  %v16440_v3 = vmov 0   ;;  %v337_v4 = vld [vmem:[%s16418_s1 + $0x10] sm:$0xff]  ;;  %v8736_v6 = vmov 1   ;;  %s8425_s16 = sshll.u32 %s8814_s13, 2 }
  0x14   : > { %v338_v1 = vld [vmem:[%s16418_s1 + $0x18] sm:$0xff]  ;;  %8663 = vset.pattern.permute.xlu2 %v16440_v3  ;;  %8661 = vset.pattern.permute.xlu1 %v16440_v3  ;;  %v341_v5 = vld [vmem:[%s16419_s2 + $0x10] sm:$0xff]  ;;  %v340_v7 = vld [vmem:[%s16419_s2 + $0x8] sm:$0xff]  ;;  %p328_p10 = scmp.lt.s32.totalorder %s8425_s16, 7  ;;  %s324_s22 = sand.u32 1, %s8725_s10  }
  0x15   : > { %8660 = vset.pattern.permute.xlu0 %v16440_v3  ;;  %409 = vperm.xlu1 %8661, %v342_v0   ;;  %v335_v8 = vld [vmem:[%s16418_s1] sm:$0xff]  ;;  %v2974_v10 = vld [vmem:[%s16421_s4 + $0x10] sm:$0xff]  ;;  %v5612_v11 = vld [vmem:[%s16423_s6 + $0x18] sm:$0xff]  ;;  %s8612_s25 = sshll.u32 %s8814_s13, 4 }
  0x16   : > { %360 = vperm.xlu0 %8660, %v338_v1   ;;  %350 = vperm.xlu2 %8663, %v336_v2   ;;  %v339_v9 = vld [vmem:[%s16419_s2] sm:$0xff]  ;;  %v5610_v12 = vld [vmem:[%s16423_s6 + $0x8] sm:$0xff]  ;;  %s17398_s16 = smov (!%p328_p10, %s8425_s16), 7  ;;  %s8356_s28 = scalar_lea.hbm %s16426_s9, %s8612_s25 }
  0x17   : > { %s8426_s17 = sshll.u32 %s17398_s16, 1  ;;  %s8360_s14 = sshll.u32 %s8356_s28, 4  ;;  %s8361_s14 = int_to_ptr.hbm [resolvable:$true] %s8360_s14 }
  0x18   : > { %s331_s23 = scalar_lea.vmem %s16417_s0, %s8426_s17  ;;  %s8345_s16 = scalar_lea.sflag [#allocation3], %s324_s22 }
  0x19   : > { %v334_v13 = vld [vmem:[%s331_s23] sm:$0xff]  ;;  %s8424_s23 = sshll.u32 %s324_s22, 4  ;;  %s8685_s17 = sshra.s32 %s8361_s14, 4  ;;  %s8686_s17 = int_to_ptr.hbm [resolvable:$true] %s8685_s17 }
  0x1a   : > { %v364_v14 = vperm.slane %v334_v13, 0  ;;  %v365_v15 = vperm.slane %v334_v13, 2  ;;  %v366_v16 = vperm.slane %v334_v13, 4  ;;  %v367_v17 = vperm.slane %v334_v13, 6  ;;  %s326_s24 = scalar_lea.vmem [#allocation2], %s8424_s23  ;;  %s8687_s13 = scalar_lea.hbm %s8686_s17, 16 }
  0x1b   : > { %v446_v34 = vperm.slane %v334_v13, 5  ;;  %v447_v35 = vperm.slane %v334_v13, 7  ;;  %v444_v45 = vperm.slane %v334_v13, 1  ;;  %v445_v50 = vperm.slane %v334_v13, 3  ;;  %s8358_s29 = sshll.u32 %s326_s24, 4  ;;  %p8688_p11 = scmp.ne.s32.totalorder %s8686_s17, %s8687_s13  ;;  %s8359_s29 = int_to_ptr.vmem [resolvable:$true] %s8358_s29 }
  0x1c   : > { %v372_v18 = vperm.slane %v364_v14, 0  ;;  %v373_v19 = vperm.slane %v365_v15, 0  ;;  %v374_v20 = vperm.slane %v366_v16, 0  ;;  %v375_v21 = vperm.slane %v367_v17, 0  ;;  %s8691_s25 = scalar_lea.hbm %s16426_s9, 32  ;;  %p8692_p0 = scmp.lt.s32.totalorder %s8686_s17, %s16426_s9 }
  0x1d   : > { %8662 = vset.pattern.permute.xlu1 %v8736_v6  ;;  %v8896_v38 = vperm.slane %v446_v34, 1  ;;  %v8898_v39 = vperm.slane %v447_v35, 1  ;;  %v452_v55 = vperm.slane %v444_v45, 1  ;;  %v453_v57 = vperm.slane %v445_v50, 1  ;;  %p8689_p12 = pnand %p8688_p11, %p8831_p5  ;;  %p8693_p1 = scmp.lt.s32.totalorder %s8691_s25, %s8687_s13 }
  0x1e   : > { %355 = vperm.xlu0 %8660, %v337_v4   ;;  %404 = vperm.xlu2 %8663, %v341_v5  }
  0x1f   : > { %441 = vperm.xlu1 %8662, %v338_v1   ;;  %p8690_p13 = pneg %p8689_p12  ;;  %p8694_p2 = por %p8693_p1, %p8692_p0 }
  0x21   : > { %p8695_p3 = pnand %p8694_p2, %p8690_p13 }
  0x26   : > { %8664 = vset.pattern.permute.xlu0 %v8736_v6  ;;  %399 = vperm.xlu2 %8663, %v340_v7  }
  0x27   : > { %8665 = vset.pattern.permute.xlu1 %v16440_v3  ;;  %437 = vperm.xlu0 %8664, %v337_v4  }
  0x28   : > { %345 = vperm.xlu1 %8665, %v335_v8  }
  0x2e   : > { %394 = vperm.xlu2 %8663, %v339_v9  }
  0x2f   : > { %429 = vperm.xlu0 %8664, %v335_v8  }
  0x30   : > { %8666 = vset.pattern.permute.xlu1 %v8736_v6 }
  0x31   : > { %433 = vperm.xlu1 %8666, %v336_v2  }
  0x36   : > { %2988 = vperm.xlu2 %8663, %v2974_v10  }
  0x37   : > { %8668 = vset.pattern.permute.xlu0 %v16440_v3 }
  0x39   : > { %8667 = vset.pattern.permute.xlu1 %v16440_v3 }
  0x3e   : > { %5630 = vperm.xlu2 %8663, %v5612_v11  }
  0x46   : > { %5620 = vperm.xlu2 %8663, %v5610_v12  }
  0x70   : > { %v351_v22 = vpop.permute.xlu2 %350 }
  0x71   : > { %v8884_v23 = vmul.f32 %v372_v18, %v351_v22  ;;  %v8886_v24 = vmul.f32 %v373_v19, %v351_v22  ;;  %v382_v25 = vmul.f32 %v374_v20, %v351_v22  ;;  %v383_v26 = vmul.f32 %v375_v21, %v351_v22 }
  0x78   : > { %v405_v27 = vpop.permute.xlu2 %404 }
  0x80   : > { %v8888_v28 = vpop.permute.xlu2 %399 }
  0x81   : > { %v8891_v29 = vadd.f32 %v8888_v28, %v382_v25  ;;  %v8894_v30 = vadd.f32 %v8888_v28, %v383_v26 }
  0x87   : > { %v410_v31 = vpop.permute.xlu1 %409 }
  0x88   : > { %v361_v32 = vpop.permute.xlu0 %360 }
  0x89   : > { %v391_v33 = vmul.f32 %v375_v21, %v361_v32  ;;  %v390_v37 = vmul.f32 %v374_v20, %v361_v32  ;;  %v388_v56 = vmul.f32 %v372_v18, %v361_v32  ;;  %v389_v59 = vmul.f32 %v373_v19, %v361_v32 }
  0x8b   : > { %v427_v36 = vadd.f32 %v410_v31, %v391_v33  ;;  %v426_v44 = vadd.f32 %v410_v31, %v390_v37  ;;  %v424_v4 = vadd.f32 %v410_v31, %v388_v56  ;;  %v425_v10 = vadd.f32 %v410_v31, %v389_v59 }
  0x8c   : > { %v416_v56 = vadd.f32 %v8888_v28, %v8884_v23 }
  0x90   : > { %v356_v40 = vpop.permute.xlu0 %355 }
  0x91   : > { %v386_v41 = vmul.f32 %v374_v20, %v356_v40  ;;  %v387_v42 = vmul.f32 %v375_v21, %v356_v40  ;;  %v442_v43 = vpop.permute.xlu1 %441  ;;  %v384_v53 = vmul.f32 %v372_v18, %v356_v40  ;;  %v385_v54 = vmul.f32 %v373_v19, %v356_v40 }
  0x92   : > { %v470_v46 = vmul.f32 %v8896_v38, %v442_v43  ;;  %v471_v47 = vmul.f32 %v8898_v39, %v442_v43  ;;  %v468_v62 = vmul.f32 %v452_v55, %v442_v43  ;;  %v469_v5 = vmul.f32 %v453_v57, %v442_v43 }
  0x93   : > { %v422_v48 = vadd.f32 %v405_v27, %v386_v41  ;;  %v423_v49 = vadd.f32 %v405_v27, %v387_v42  ;;  %v420_v60 = vadd.f32 %v405_v27, %v384_v53  ;;  %v421_v61 = vadd.f32 %v405_v27, %v385_v54  ;;  %v395_v27 = vpop.permute.xlu2 %394 }
  0x94   : > { %v8902_v51 = vadd.f32 %v470_v46, %v426_v44  ;;  %v8904_v52 = vadd.f32 %v471_v47, %v427_v36  ;;  %v8916_v11 = vadd.f32 %v468_v62, %v424_v4  ;;  %v8918_v12 = vadd.f32 %v469_v5, %v425_v10 }
  0x96   : > { %v2351_v14 = vand.u32 2139095040, %v8916_v11  ;;  %v2506_v17 = vand.u32 2139095040, %v8918_v12  ;;  %v2661_v32 = vand.u32 2139095040, %v8902_v51  ;;  %v2816_v42 = vand.u32 2139095040, %v8904_v52 }
  0x98   : > { %v2352_v33 = vshrl.u32 %v2351_v14, 23  ;;  %v2507_v41 = vshrl.u32 %v2506_v17, 23  ;;  %v2817_v46 = vshrl.u32 %v2816_v42, 23 }
  0x99   : > { %v438_v58 = vpop.permute.xlu0 %437 }
  0x9a   : > { %v464_v63 = vmul.f32 %v452_v55, %v438_v58  ;;  %v465_v0 = vmul.f32 %v453_v57, %v438_v58  ;;  %v466_v1 = vmul.f32 %v8896_v38, %v438_v58  ;;  %v467_v2 = vmul.f32 %v8898_v39, %v438_v58  ;;  %v346_v13 = vpop.permute.xlu1 %345 }
  0x9b   : > { %v376_v15 = vmul.f32 %v372_v18, %v346_v13  ;;  %v377_v16 = vmul.f32 %v373_v19, %v346_v13  ;;  %v378_v22 = vmul.f32 %v374_v20, %v346_v13  ;;  %v379_v25 = vmul.f32 %v375_v21, %v346_v13 }
  0x9c   : > { %v8908_v6 = vadd.f32 %v464_v63, %v420_v60  ;;  %v8910_v7 = vadd.f32 %v465_v0, %v421_v61  ;;  %v8912_v8 = vadd.f32 %v466_v1, %v422_v48  ;;  %v8914_v9 = vadd.f32 %v467_v2, %v423_v49 }
  0x9d   : > { %v414_v34 = vadd.f32 %v395_v27, %v378_v22  ;;  %v415_v31 = vadd.f32 %v395_v27, %v379_v25  ;;  %v412_v35 = vadd.f32 %v395_v27, %v376_v15  ;;  %v413_v36 = vadd.f32 %v395_v27, %v377_v16 }
  0x9e   : > { %16737 = vst [vmem:[#allocation5_spill] sm:$0xff] %v8910_v7  ;;  %v2662_v20 = vshrl.u32 %v2661_v32, 23  ;;  %v8463_v44 = vadd.s32 4294967169, %v2352_v33  ;;  %v8466_v45 = vadd.s32 4294967169, %v2507_v41  ;;  %v1731_v53 = vand.u32 2139095040, %v8908_v6 }
  0x9f   : > { %16738 = vst [vmem:[#allocation6_spill] sm:$0xff] %v8912_v8  ;;  %v1886_v54 = vand.u32 2139095040, %v8910_v7  ;;  %v417_v60 = vadd.f32 %v8888_v28, %v8886_v24  ;;  %v8472_v62 = vadd.s32 4294967169, %v2817_v46  ;;  %v2041_v1 = vand.u32 2139095040, %v8912_v8 }
  0xa0   : > { %16739 = vst [vmem:[#allocation7_spill] sm:$0xff] %v8914_v9  ;;  %v8469_v50 = vadd.s32 4294967169, %v2662_v20  ;;  %v2358_v58 = vadd.s32 1, %v8463_v44  ;;  %v2513_v61 = vadd.s32 1, %v8466_v45  ;;  %v1732_v5 = vshrl.u32 %v1731_v53, 23 }
  0xa1   : > { %v430_v26 = vpop.permute.xlu0 %429  ;;  %v1887_v10 = vshrl.u32 %v1886_v54, 23  ;;  %v2042_v15 = vshrl.u32 %v2041_v1, 23  ;;  %v16436_v46 = vmov 2475754826  }
  0xa2   : > { %v456_v37 = vmul.f32 %v452_v55, %v430_v26  ;;  %v457_v40 = vmul.f32 %v453_v57, %v430_v26  ;;  %v458_v18 = vmul.f32 %v8896_v38, %v430_v26  ;;  %v459_v19 = vmul.f32 %v8898_v39, %v430_v26 }
  0xa3   : > { %v434_v49 = vpop.permute.xlu1 %433  ;;  %v2668_v0 = vadd.s32 1, %v8469_v50  ;;  %vm2359_vm0 = vcmp.gt.s32.totalorder %v2358_v58, 0  ;;  %vm2514_vm1 = vcmp.gt.s32.totalorder %v2513_v61, 0  ;;  %v8451_v14 = vadd.s32 4294967169, %v1732_v5 }
  0xa4   : > { %v8926_v21 = vadd.f32 %v456_v37, %v412_v35  ;;  %v8928_v43 = vadd.f32 %v457_v40, %v413_v36  ;;  %v8930_v47 = vadd.f32 %v458_v18, %v414_v34  ;;  %v8932_v48 = vadd.f32 %v459_v19, %v415_v31 }
  0xa5   : > { %v460_v59 = vmul.f32 %v452_v55, %v434_v49  ;;  %v461_v63 = vmul.f32 %v453_v57, %v434_v49  ;;  %v462_v2 = vmul.f32 %v8896_v38, %v434_v49  ;;  %v463_v4 = vmul.f32 %v8898_v39, %v434_v49 }
  0xa6   : > { %16740 = vst [vmem:[#allocation8_spill] sm:$0xff] %v8926_v21  ;;  %v2196_v55 = vand.u32 2139095040, %v8914_v9  ;;  %v2823_v57 = vadd.s32 1, %v8472_v62  ;;  %v2360_v38 = vsel %vm2359_vm0, %v2358_v58, 0  ;;  %v8454_v39 = vadd.s32 4294967169, %v1887_v10 }
  0xa7   : > { %16741 = vst [vmem:[#allocation9_spill] sm:$0xff] %v8928_v43  ;;  %v8943_v13 = vadd.f32 %v460_v59, %v416_v56  ;;  %v8945_v23 = vadd.f32 %v461_v63, %v417_v60  ;;  %v8949_v24 = vadd.f32 %v462_v2, %v8891_v29  ;;  %v8952_v28 = vadd.f32 %v463_v4, %v8894_v30 }
  0xa8   : > { %16742 = vst [vmem:[#allocation10_spill] sm:$0xff] %v8930_v47  ;;  %vm2669_vm2 = vcmp.gt.s32.totalorder %v2668_v0, 0  ;;  %v2197_v16 = vshrl.u32 %v2196_v55, 23  ;;  %vm2824_vm3 = vcmp.gt.s32.totalorder %v2823_v57, 0  ;;  %v2362_v17 = vand.u32 31, %v2360_v38 }
  0xa9   : > { %16743 = vst [vmem:[#allocation11_spill] sm:$0xff] %v8932_v48  ;;  %v2515_v22 = vsel %vm2514_vm1, %v2513_v61, 0  ;;  %v2670_v25 = vsel %vm2669_vm2, %v2668_v0, 0  ;;  %v1738_v26 = vadd.s32 1, %v8451_v14  ;;  %v1893_v27 = vadd.s32 1, %v8454_v39 }
  0xaa   : > { %v8457_v32 = vadd.s32 4294967169, %v2042_v15  ;;  %v2825_v29 = vsel %vm2824_vm3, %v2823_v57, 0  ;;  %v8460_v33 = vadd.s32 4294967169, %v2197_v16  ;;  %v2363_v34 = vsub.s32 32, %v2362_v17 }
  0xab   : > { %v8954_v30 = vand.u32 31, %v2515_v22  ;;  %v8956_v31 = vand.u32 31, %v2670_v25  ;;  %v16427_v35 = vand.u32 2147483647, %v8916_v11  ;;  %v8959_v36 = vand.u32 31, %v2825_v29 }
  0xac   : > { %vm1739_vm4 = vcmp.gt.s32.totalorder %v1738_v26, 0  ;;  %vm1894_vm5 = vcmp.gt.s32.totalorder %v1893_v27, 0  ;;  %v2048_v37 = vadd.s32 1, %v8457_v32  ;;  %v2203_v40 = vadd.s32 1, %v8460_v33 }
  0xad   : > { %v8961_v41 = vshrl.u32 %v2360_v38, 5  ;;  %v8963_v42 = vshrl.u32 %v2515_v22, 5  ;;  %v8965_v18 = vshrl.u32 %v2670_v25, 5  ;;  %v8967_v19 = vshrl.u32 %v2825_v29, 5 }
  0xae   : > { %v8970_v20 = vsub.s32 32, %v8954_v30  ;;  %v1740_v44 = vsel %vm1739_vm4, %v1738_v26, 0  ;;  %v1895_v45 = vsel %vm1894_vm5, %v1893_v27, 0  ;;  %v2366_v49 = vshrl.u32 %v16436_v46, %v2363_v34 }
  0xaf   : > { %v8974_v50 = vsub.s32 32, %v8956_v31  ;;  %v8977_v53 = vsub.s32 32, %v8959_v36  ;;  %vm2049_vm6 = vcmp.gt.s32.totalorder %v2048_v37, 0  ;;  %v2355_v54 = vand.u32 8388607, %v16427_v35 }
  0xb0   : > { %vm2204_vm7 = vcmp.gt.s32.totalorder %v2203_v40, 0  ;;  %v16438_v56 = vmov 683565275   ;;  %v2368_v59 = vshll.u32 %v16436_v46, %v2362_v17  ;;  %v16434_v60 = vmov 2131351028  }
  0xb1   : > { %v2365_v58 = vshll.u32 %v16438_v56, %v2362_v17  ;;  %v2369_v61 = vshrl.u32 %v16434_v60, %v2363_v34  ;;  %v8984_v62 = vshrl.u32 %v1740_v44, 5  ;;  %v8986_v63 = vand.u32 31, %v1740_v44 }
  0xb2   : > { %v8988_v0 = vshrl.u32 %v1895_v45, 5  ;;  %v8990_v1 = vand.u32 31, %v1895_v45  ;;  %v2371_v5 = vshll.u32 %v16434_v60, %v2362_v17  ;;  %v16432_v10 = vmov 2102212464  }
  0xb3   : > { %v2367_v2 = vor.u32 %v2366_v49, %v2365_v58  ;;  %v2370_v4 = vor.u32 %v2369_v61, %v2368_v59  ;;  %v2372_v55 = vshrl.u32 %v16432_v10, %v2363_v34  ;;  %v2050_v57 = vsel %vm2049_vm6, %v2048_v37, 0 }
  0xb4   : > { %16744 = vst [vmem:[#allocation12_spill] sm:$0xff] %v8988_v0  ;;  %v2356_v38 = vor.u32 8388608, %v2355_v54  ;;  %v2374_v14 = vshll.u32 %v16432_v10, %v2362_v17  ;;  %v16430_v39 = vmov 920167782   ;;  %v8998_v16 = vsel %vm2204_vm7, %v2203_v40, 0 }
  0xb5   : > { %16745 = vst [vmem:[#allocation13_spill] sm:$0xff] %v8990_v1  ;;  %v2375_v15 = vshrl.u32 %v16430_v39, %v2363_v34  ;;  %v2373_v22 = vor.u32 %v2372_v55, %v2371_v5  ;;  %v2377_v25 = vshll.u32 %v16430_v39, %v2362_v17  ;;  %v16428_v26 = vmov 1326507024  }
  0xb6   : > { %v2378_v27 = vshrl.u32 %v16428_v26, %v2363_v34  ;;  %v9003_v32 = vsub.s32 32, %v8986_v63  ;;  %vm2380_vm8 = vcmp.lt.s32.totalorder %v8961_v41, 1  ;;  %vm2383_vm9 = vcmp.lt.s32.totalorder %v8961_v41, 4 }
  0xb7   : > { %v2376_v29 = vor.u32 %v2375_v15, %v2374_v14  ;;  %v2364_v33 = vshrl.u32 %v16438_v56, %v2363_v34  ;;  %v2385_v44 = vsel %vm2383_vm9, %v2373_v22, 2102212464  ;;  %v2388_v40 = vsel %vm2380_vm8, %v2367_v2, %v2370_v4 }
  0xb8   : > { %v2379_v37 = vor.u32 %v2378_v27, %v2377_v25  ;;  %vm2382_vm10 = vcmp.lt.s32.totalorder %v8961_v41, 3  ;;  %v2392_v17 = vsel %vm2380_vm8, %v2370_v4, %v2373_v22  ;;  %v9009_v49 = vshll.u32 %v2356_v38, 8 }
  0xb9   : > { %v2389_v45 = vsel %vm2383_vm9, %v2376_v29, 920167782  ;;  %vm2381_vm11 = vcmp.lt.s32.totalorder %v8961_v41, 2  ;;  %v2384_v54 = vsel %vm2380_vm8, %v2364_v33, %v2367_v2  ;;  %v2386_v61 = vsel %vm2382_vm10, %v2370_v4, %v2385_v44 }
  0xba   : > { %v2390_v58 = vsel %vm2382_vm10, %v2373_v22, %v2389_v45  ;;  %v2393_v59 = vsel %vm2383_vm9, %v2379_v37, 1326507024  ;;  %v2397_v34 = vand.u32 65535, %v9009_v49  ;;  %v2398_v15 = vshrl.u32 %v9009_v49, 16 }
  0xbb   : > { %v2391_v5 = vsel %vm2381_vm11, %v2388_v40, %v2390_v58  ;;  %v2394_v55 = vsel %vm2382_vm10, %v2376_v29, %v2393_v59  ;;  %v9019_v27 = vsub.s32 32, %v8990_v1  ;;  %v9021_v2 = vshrl.u32 %v2050_v57, 5 }
  0xbc   : > { %v2395_v14 = vsel %vm2381_vm11, %v2392_v17, %v2394_v55  ;;  %v2421_v25 = vand.u32 65535, %v2391_v5  ;;  %v2422_v38 = vshrl.u32 %v2391_v5, 16  ;;  %v9023_v33 = vand.u32 31, %v2050_v57 }
  0xbd   : > { %16746 = vst [vmem:[#allocation14_spill] sm:$0xff] %v9019_v27  ;;  %v2399_v22 = vand.u32 65535, %v2395_v14  ;;  %v2400_v4 = vshrl.u32 %v2395_v14, 16  ;;  %v9026_v29 = vshrl.u32 %v8998_v16, 5  ;;  %v9030_v40 = vsel %vm2381_vm11, %v2384_v54, %v2386_v61 }
  0xbe   : > { %16747 = vst [vmem:[#allocation15_spill] sm:$0xff] %v9021_v2  ;;  %v2424_v37 = vmul.u32 %v2422_v38, %v2397_v34  ;;  %v2425_v44 = vmul.u32 %v2421_v25, %v2398_v15  ;;  %v2423_v5 = vmul.u32 %v2421_v25, %v2397_v34  ;;  %v2426_v55 = vmul.u32 %v2422_v38, %v2398_v15 }
  0xbf   : > { %16748 = vst [vmem:[#allocation16_spill] sm:$0xff] %v9023_v33  ;;  %v2402_v45 = vmul.u32 %v2400_v4, %v2397_v34  ;;  %v2403_v17 = vmul.u32 %v2399_v22, %v2398_v15  ;;  %v2401_v59 = vmul.u32 %v2399_v22, %v2397_v34  ;;  %v2404_v14 = vmul.u32 %v2400_v4, %v2398_v15 }
  0xc0   : > { %16749 = vst [vmem:[#allocation17_spill] sm:$0xff] %v9026_v29  ;;  %v2427_v35 = vshll.u32 %v2424_v37, 16  ;;  %v2428_v26 = vshrl.u32 %v2424_v37, 16  ;;  %v2429_v39 = vshll.u32 %v2425_v44, 16  ;;  %v2430_v60 = vshrl.u32 %v2425_v44, 16 }
  0xc1   : > { %v2405_v57 = vshll.u32 %v2402_v45, 16  ;;  %v2406_v10 = vshrl.u32 %v2402_v45, 16  ;;  %v2407_v56 = vshll.u32 %v2403_v17, 16  ;;  %v16750_v34 = vand.u32 2147483647, %v8918_v12 }
  0xc2   : > { %vm2431_vm12 = vc.u32 %v2423_v5, %v2427_v35  ;;  %v2433_v46 = vadd.s32 %v2427_v35, %v2423_v5  ;;  %v16751_v22 = vmov 683565275   ;;  %v16752_v44 = vmov 2475754826  }
  0xc3   : > { %vm2409_vm13 = vc.u32 %v2401_v59, %v2405_v57  ;;  %v2411_v41 = vadd.s32 %v2405_v57, %v2401_v59  ;;  %v2432_v54 = vsel %vm2431_vm12, 1, %v16440_v3  ;;  %v2510_v25 = vand.u32 8388607, %v16750_v34 }
  0xc4   : > { %v2410_v61 = vsel %vm2409_vm13, 1, %v16440_v3  ;;  %v2434_v58 = vadd.s32 %v2432_v54, %v2426_v55  ;;  %vm2435_vm14 = vc.u32 %v2433_v46, %v2429_v39  ;;  %v2520_v4 = vshll.u32 %v16751_v22, %v8954_v30 }
  0xc5   : > { %v2412_v15 = vadd.s32 %v2410_v61, %v2404_v14  ;;  %vm2413_vm15 = vc.u32 %v2411_v41, %v2407_v56  ;;  %v2436_v38 = vsel %vm2435_vm14, 1, %v16440_v3  ;;  %v2521_v45 = vshrl.u32 %v16752_v44, %v8970_v20 }
  0xc6   : > { %v2414_v35 = vsel %vm2413_vm15, 1, %v16440_v3  ;;  %v2438_v37 = vadd.s32 %v2436_v38, %v2434_v58  ;;  %v2523_v59 = vshll.u32 %v16752_v44, %v8954_v30  ;;  %v16753_v55 = vmov 2131351028  }
  0xc7   : > { %v2416_v5 = vadd.s32 %v2414_v35, %v2412_v15  ;;  %v2524_v57 = vshrl.u32 %v16753_v55, %v8970_v20  ;;  %v2526_v56 = vshll.u32 %v16753_v55, %v8954_v30  ;;  %v16754_v14 = vmov 2102212464  }
  0xc8   : > { %v2527_v41 = vshrl.u32 %v16754_v14, %v8970_v20  ;;  %v2408_v54 = vshrl.u32 %v2403_v17, 16  ;;  %v2439_v61 = vadd.s32 %v2438_v37, %v2428_v26  ;;  %v2529_v58 = vshll.u32 %v16754_v14, %v8954_v30 }
  0xc9   : > { %v16755_v34 = vmov 920167782   ;;  %v2417_v3 = vadd.s32 %v2416_v5, %v2406_v10  ;;  %v2522_v29 = vor.u32 %v2521_v45, %v2520_v4  ;;  %v2525_v15 = vor.u32 %v2524_v57, %v2523_v59 }
  0xca   : > { %v2530_v38 = vshrl.u32 %v16755_v34, %v8970_v20  ;;  %v2528_v35 = vor.u32 %v2527_v41, %v2526_v56  ;;  %v2440_v9 = vadd.s32 %v2439_v61, %v2430_v60  ;;  %v2532_v8 = vshll.u32 %v16755_v34, %v8954_v30 }
  0xcb   : > { %v16756_v0 = vmov 1326507024   ;;  %v9060_v26 = vand.u32 31, %v8998_v16  ;;  %v9062_v17 = vadd.s32 %v2417_v3, %v2408_v54  ;;  %v9064_v37 = vadd.s32 %v2433_v46, %v2429_v39 }
  0xcc   : > { %v2531_v2 = vor.u32 %v2530_v38, %v2529_v58  ;;  %v2533_v1 = vshrl.u32 %v16756_v0, %v8970_v20  ;;  %v2511_v27 = vor.u32 8388608, %v2510_v25  ;;  %v2441_v10 = vmul.u32 %v9009_v49, %v9030_v40 }
  0xcd   : > { %16757 = vst [vmem:[#allocation18_spill] sm:$0xff] %v9060_v26  ;;  %v2444_v4 = vadd.s32 1, %v2440_v9  ;;  %vm2535_vm0 = vcmp.lt.s32.totalorder %v8963_v42, 1  ;;  %vm2443_vm1 = vc.u32 %v9062_v17, %v9064_v37  ;;  %vm2536_vm2 = vcmp.lt.s32.totalorder %v8963_v42, 2 }
  0xce   : > { %v2534_v60 = vor.u32 %v2533_v1, %v2532_v8  ;;  %vm2538_vm3 = vcmp.lt.s32.totalorder %v8963_v42, 4  ;;  %v2543_v3 = vsel %vm2535_vm0, %v2522_v29, %v2525_v15  ;;  %vm2537_vm4 = vcmp.lt.s32.totalorder %v8963_v42, 3 }
  0xcf   : > { %v2445_v30 = vsel %vm2443_vm1, %v2444_v4, %v2440_v9  ;;  %v2544_v46 = vsel %vm2538_vm3, %v2531_v2, 920167782  ;;  %v2547_v39 = vsel %vm2535_vm0, %v2525_v15, %v2528_v35  ;;  %v9080_v49 = vshll.u32 %v2511_v27, 8 }
  0xd0   : > { %v2446_v8 = vadd.s32 %v2445_v30, %v2441_v10  ;;  %v2545_v1 = vsel %vm2537_vm4, %v2528_v35, %v2544_v46  ;;  %v2548_v16 = vsel %vm2538_vm3, %v2534_v60, 1326507024  ;;  %v491_v40 = vand.u32 2139095040, %v8926_v21 }
  0xd1   : > { %v2519_v25 = vshrl.u32 %v16751_v22, %v8970_v20  ;;  %v2546_v9 = vsel %vm2536_vm2, %v2543_v3, %v2545_v1  ;;  %v2549_v45 = vsel %vm2537_vm4, %v2531_v2, %v2548_v16  ;;  %v2540_v5 = vsel %vm2538_vm3, %v2528_v35, 2102212464 }
  0xd2   : > { %v2447_v59 = vadd.s32 536870912, %v2446_v8  ;;  %v2550_v57 = vsel %vm2536_vm2, %v2547_v39, %v2549_v45  ;;  %v2552_v56 = vand.u32 65535, %v9080_v49  ;;  %v2553_v27 = vshrl.u32 %v9080_v49, 16 }
  0xd3   : > { %v2554_v41 = vand.u32 65535, %v2550_v57  ;;  %v2555_v54 = vshrl.u32 %v2550_v57, 16  ;;  %v2577_v61 = vshrl.u32 %v2546_v9, 16  ;;  %v9094_v20 = vsub.s32 32, %v9023_v33 }
  0xd4   : > { %v2448_v38 = vshrl.u32 %v2447_v59, 30  ;;  %v2576_v10 = vand.u32 65535, %v2546_v9  ;;  %v2539_v2 = vsel %vm2535_vm0, %v2519_v25, %v2522_v29  ;;  %v2541_v35 = vsel %vm2537_vm4, %v2525_v15, %v2540_v5 }
  0xd5   : > { %16758 = vst [vmem:[#allocation19_spill] sm:$0xff] %v9094_v20  ;;  %v2557_v4 = vmul.u32 %v2555_v54, %v2552_v56  ;;  %v2558_v60 = vmul.u32 %v2554_v41, %v2553_v27  ;;  %v2579_v39 = vmul.u32 %v2577_v61, %v2552_v56  ;;  %v9104_v1 = vsub.s32 32, %v9060_v26 }
  0xd6   : > { %v2449_v46 = vshll.u32 %v2448_v38, 30  ;;  %v9106_v16 = vshrl.u32 %v491_v40, 23  ;;  %v2556_v9 = vmul.u32 %v2554_v41, %v2552_v56  ;;  %v9110_v29 = vsel %vm2536_vm2, %v2539_v2, %v2541_v35 }
  0xd7   : > { %16759 = vst [vmem:[#allocation20_spill] sm:$0xff] %v9104_v1  ;;  %v2560_v45 = vshll.u32 %v2557_v4, 16  ;;  %v2559_v15 = vmul.u32 %v2555_v54, %v2553_v27  ;;  %v2580_v25 = vmul.u32 %v2576_v10, %v2553_v27  ;;  %v2562_v5 = vshll.u32 %v2558_v60, 16 }
  0xd8   : > { %v2450_v59 = vsub.s32 %v2446_v8, %v2449_v46  ;;  %v2582_v30 = vshll.u32 %v2579_v39, 16  ;;  %v2472_v58 = vsub.s32 4, %v2448_v38  ;;  %v16760_v21 = vmov 0  }
  0xd9   : > { %vm2564_vm5 = vc.u32 %v2556_v9, %v2560_v45  ;;  %v2566_v57 = vadd.s32 %v2560_v45, %v2556_v9  ;;  %v2561_v40 = vshrl.u32 %v2557_v4, 16  ;;  %v2578_v41 = vmul.u32 %v2576_v10, %v2552_v56 }
  0xda   : > { %vm2451_vm6 = vcmp.lt.s32.totalorder %v2450_v59, 0  ;;  %v2452_v3 = vsub.s32 0, %v2450_v59  ;;  %v2565_v26 = vsel %vm2564_vm5, 1, %v16760_v21  ;;  %v2581_v2 = vmul.u32 %v2577_v61, %v2553_v27 }
  0xdb   : > { %v2567_v1 = vadd.s32 %v2565_v26, %v2559_v15  ;;  %vm2568_vm7 = vc.u32 %v2566_v57, %v2562_v5  ;;  %v2584_v35 = vshll.u32 %v2580_v25, 16  ;;  %vm2586_vm8 = vc.u32 %v2578_v41, %v2582_v30 }
  0xdc   : > { %v2453_v8 = vsel %vm2451_vm6, %v2452_v3, %v2450_v59  ;;  %v2569_v42 = vsel %vm2568_vm7, 1, %v16760_v21  ;;  %v2588_v33 = vadd.s32 %v2582_v30, %v2578_v41  ;;  %vm2350_vm9 = vcmp.lt.s32.totalorder %v8916_v11, 0 }
  0xdd   : > { %v2454_v54 = vclz %v2453_v8  ;;  %v2571_v46 = vadd.s32 %v2569_v42, %v2567_v1  ;;  %v2563_v9 = vshrl.u32 %v2558_v60, 16  ;;  %v2587_v45 = vsel %vm2586_vm8, 1, %v16760_v21 }
  0xde   : > { %v16460_v20 = vand.u32 2147483647, %v8902_v51  ;;  %v2589_v15 = vadd.s32 %v2587_v45, %v2581_v2  ;;  %vm2590_vm10 = vc.u32 %v2588_v33, %v2584_v35  ;;  %v16761_v56 = vand.u32 2147483647, %v8916_v11 }
  0xdf   : > { %v8464_v4 = vadd.s32 4294967294, %v2454_v54  ;;  %v2572_v26 = vadd.s32 %v2571_v46, %v2561_v40  ;;  %v2442_v61 = vadd.s32 %v9064_v37, %v9062_v17  ;;  %v2473_v10 = vsel %vm2350_vm9, %v2472_v58, %v2448_v38 }
  0xe0   : > { %vm9119_vm11 = vcmp.le.f32.partialorder %v16761_v56, 0.7853982  ;;  %v2591_v60 = vsel %vm2590_vm10, 1, %v16760_v21  ;;  %v2596_v3 = vmul.u32 %v9080_v49, %v9110_v29  ;;  %v2583_v1 = vshrl.u32 %v2579_v39, 16 }
  0xe1   : > { %vm8465_vm12 = vcmp.lt.s32.totalorder %v8464_v4, 0  ;;  %v9130_v30 = vadd.s32 %v2572_v26, %v2563_v9  ;;  %v2593_v5 = vadd.s32 %v2591_v60, %v2589_v15  ;;  %v2585_v40 = vshrl.u32 %v2580_v25, 16 }
  0xe2   : > { %v2457_v57 = vsel %vm8465_vm12, 0, %v8464_v4  ;;  %v9132_v41 = vadd.s32 %v2588_v33, %v2584_v35  ;;  %v2665_v17 = vand.u32 8388607, %v16460_v20  ;;  %v2675_v38 = vshll.u32 %v16751_v22, %v8956_v31 }
  0xe3   : > { %v2458_v37 = vsub.s32 32, %v2457_v57  ;;  %v2462_v8 = vsub.s32 4294967266, %v2457_v57  ;;  %v2594_v58 = vadd.s32 %v2593_v5, %v2583_v1  ;;  %v2459_v42 = vshll.u32 %v2450_v59, %v2457_v57 }
  0xe4   : > { %v2676_v49 = vshrl.u32 %v16752_v44, %v8974_v50  ;;  %v2678_v39 = vshll.u32 %v16752_v44, %v8956_v31  ;;  %v2679_v33 = vshrl.u32 %v16753_v55, %v8974_v50  ;;  %vm2598_vm13 = vc.u32 %v9130_v30, %v9132_v41 }
  0xe5   : > { %v2460_v29 = vshrl.u32 %v2442_v61, %v2458_v37  ;;  %v2463_v25 = vadd.s32 127, %v2462_v8  ;;  %v2595_v2 = vadd.s32 %v2594_v58, %v2585_v40  ;;  %v2681_v35 = vshll.u32 %v16753_v55, %v8956_v31 }
  0xe6   : > { %v2682_v59 = vshrl.u32 %v16754_v14, %v8974_v50  ;;  %v2684_v54 = vshll.u32 %v16754_v14, %v8956_v31  ;;  %v2685_v46 = vshrl.u32 %v16755_v34, %v8974_v50  ;;  %v9154_v26 = vor.u32 %v2679_v33, %v2678_v39 }
  0xe7   : > { %v2461_v9 = vor.u32 %v2460_v29, %v2459_v42  ;;  %v2464_v45 = vshll.u32 %v2463_v25, 23  ;;  %v2599_v4 = vadd.s32 1, %v2595_v2  ;;  %v2687_v61 = vshll.u32 %v16755_v34, %v8956_v31 }
  0xe8   : > { %v2683_v15 = vor.u32 %v2682_v59, %v2681_v35  ;;  %v2686_v56 = vor.u32 %v2685_v46, %v2684_v54  ;;  %v2688_v60 = vshrl.u32 %v16756_v0, %v8974_v50  ;;  %v16764_v1 = vand.u32 2139095040, %v8928_v43 }
  0xe9   : > { %v2465_v57 = vor.u32 4788187, %v2464_v45  ;;  %v2475_v40 = vsel %vm9119_vm11, 0, %v2473_v10  ;;  %v2600_v37 = vsel %vm2598_vm13, %v2599_v4, %v2595_v2  ;;  %v2666_v58 = vor.u32 8388608, %v2665_v17 }
  0xea   : > { %v9162_v5 = vshrl.u32 %v16764_v1, 23  ;;  %v2601_v8 = vadd.s32 %v2600_v37, %v2596_v3  ;;  %v2677_v42 = vor.u32 %v2676_v49, %v2675_v38  ;;  %v2689_v39 = vor.u32 %v2688_v60, %v2687_v61 }
  0xeb   : > { %v2466_v31 = vand.u32 2147483647, %v2465_v57  ;;  %v2468_v33 = vcvt.s32.f32 %v2461_v9  ;;  %vm2690_vm14 = vcmp.lt.s32.totalorder %v8965_v18, 1  ;;  %vm2693_vm15 = vcmp.lt.s32.totalorder %v8965_v18, 4 }
  0xec   : > { %v2492_v29 = vadd.s32 3, %v2475_v40  ;;  %v2602_v25 = vadd.s32 536870912, %v2601_v8  ;;  %v2699_v35 = vsel %vm2693_vm15, %v2686_v56, 920167782  ;;  %v2702_v10 = vsel %vm2690_vm14, %v9154_v26, %v2683_v15 }
  0xed   : > { %v16765_v3 = vand.u32 2139095040, %v8930_v47  ;;  %v2469_v38 = vmul.f32 %v2468_v33, %v2466_v31  ;;  %vm2692_vm0 = vcmp.lt.s32.totalorder %v8965_v18, 3  ;;  %v2703_v49 = vsel %vm2693_vm15, %v2689_v39, 1326507024 }
  0xee   : > { %v2603_v2 = vshrl.u32 %v2602_v25, 30  ;;  %vm2691_vm1 = vcmp.lt.s32.totalorder %v8965_v18, 2  ;;  %v2704_v59 = vsel %vm2692_vm0, %v2686_v56, %v2703_v49  ;;  %v9186_v54 = vshll.u32 %v2666_v58, 8 }
  0xef   : > { %v9178_v17 = vshrl.u32 %v16765_v3, 23  ;;  %v2470_v46 = vxor.u32 2147483648, %v2469_v38  ;;  %v2698_v9 = vsel %vm2690_vm14, %v2677_v42, %v9154_v26  ;;  %v2700_v45 = vsel %vm2692_vm0, %v2683_v15, %v2699_v35 }
  0xf0   : > { %v2705_v4 = vsel %vm2691_vm1, %v2702_v10, %v2704_v59  ;;  %v16767_v61 = vand.u32 2139095040, %v8932_v48  ;;  %v9199_v1 = vand.u32 3, %v2492_v29  ;;  %vm2505_vm2 = vcmp.lt.s32.totalorder %v8918_v12, 0 }
  0xf1   : > { %16766 = vst [vmem:[#allocation21_spill] sm:$0xff] %v9178_v17  ;;  %v2604_v56 = vshll.u32 %v2603_v2, 30  ;;  %v2471_v57 = vsel %vm2350_vm9, %v2470_v46, %v2469_v38  ;;  %v2674_v40 = vshrl.u32 %v16751_v22, %v8974_v50  ;;  %v2707_v37 = vand.u32 65535, %v9186_v54 }
  0xf2   : > { %v9197_v60 = vshrl.u32 %v16767_v61, 23  ;;  %v2710_v58 = vshrl.u32 %v2705_v4, 16  ;;  %v9210_v39 = vsel %vm9119_vm11, %v8916_v11, %v2471_v57  ;;  %v9216_v33 = vsel %vm2691_vm1, %v2698_v9, %v2700_v45 }
  0xf3   : > { %v9212_v31 = vsub.s32 %v2601_v8, %v2604_v56  ;;  %v2709_v29 = vand.u32 65535, %v2705_v4  ;;  %v2476_v25 = vmul.f32 %v9210_v39, %v9210_v39  ;;  %v2597_v50 = vadd.s32 %v9132_v41, %v9130_v30 }
  0xf4   : > { %16768 = vst [vmem:[#allocation22_spill] sm:$0xff] %v9197_v60  ;;  %v2695_v35 = vsel %vm2693_vm15, %v2683_v15, 2102212464  ;;  %v2712_v10 = vmul.u32 %v2710_v58, %v2707_v37  ;;  %v16769_v27 = vand.u32 2147483647, %v8918_v12  ;;  %v2627_v38 = vsub.s32 4, %v2603_v2 }
  0xf5   : > { %vm2606_vm4 = vcmp.lt.s32.totalorder %v9212_v31, 0  ;;  %v2607_v3 = vsub.s32 0, %v9212_v31  ;;  %v2708_v49 = vshrl.u32 %v9186_v54, 16  ;;  %v2477_v59 = vmul.f32 -0.001358992, %v2476_v25 }
  0xf6   : > { %vm9226_vm3 = vcmp.le.f32.partialorder %v16769_v27, 0.7853982  ;;  %v2484_v46 = vmul.f32 -0.00019511016, %v2476_v25  ;;  %v2715_v30 = vshll.u32 %v2712_v10, 16  ;;  %v2731_v41 = vand.u32 65535, %v9216_v33 }
  0xf7   : > { %v2608_v15 = vsel %vm2606_vm4, %v2607_v3, %v9212_v31  ;;  %v2711_v9 = vmul.u32 %v2709_v29, %v2707_v37  ;;  %v9235_v45 = vmul.u32 %v2709_v29, %v2708_v49  ;;  %v2732_v4 = vshrl.u32 %v9216_v33, 16 }
  0xf8   : > { %v2478_v61 = vadd.f32 0.041655596, %v2477_v59  ;;  %v2485_v56 = vadd.f32 0.008332121, %v2484_v46  ;;  %v2609_v57 = vclz %v2608_v15  ;;  %v2694_v27 = vsel %vm2690_vm14, %v2674_v40, %v2677_v42 }
  0xf9   : > { %v2628_v20 = vsel %vm2505_vm2, %v2627_v38, %v2603_v2  ;;  %v2696_v48 = vsel %vm2692_vm0, %v9154_v26, %v2695_v35  ;;  %v2714_v47 = vmul.u32 %v2710_v58, %v2708_v49  ;;  %vm2719_vm5 = vc.u32 %v2711_v9, %v2715_v30 }
  0xfa   : > { %v2479_v3 = vmul.f32 %v2478_v61, %v2476_v25  ;;  %v2486_v29 = vmul.f32 %v2485_v56, %v2476_v25  ;;  %v8467_v43 = vadd.s32 4294967294, %v2609_v57  ;;  %v2720_v33 = vsel %vm2719_vm5, 1, %v16760_v21 }
  0xfb   : > { %v2717_v59 = vshll.u32 %v9235_v45, 16  ;;  %v2721_v46 = vadd.s32 %v2715_v30, %v2711_v9  ;;  %v2733_v15 = vmul.u32 %v2731_v41, %v2707_v37  ;;  %v2734_v60 = vmul.u32 %v2732_v4, %v2707_v37 }
  0xfc   : > { %v2480_v42 = vadd.f32 -0.4999988, %v2479_v3  ;;  %v2487_v40 = vadd.f32 -0.16666654, %v2486_v29  ;;  %vm8468_vm6 = vcmp.lt.s32.totalorder %v8467_v43, 0  ;;  %v2722_v2 = vadd.s32 %v2720_v33, %v2714_v47 }
  0xfd   : > { %vm2495_vm7 = vcmp.eq.s32.totalorder %v9199_v1, 0  ;;  %vm2498_vm8 = vcmp.eq.s32.totalorder %v9199_v1, 2  ;;  %v2612_v26 = vsel %vm8468_vm6, 0, %v8467_v43  ;;  %vm2723_vm9 = vc.u32 %v2721_v46, %v2717_v59 }
  0xfe   : > { %v2735_v58 = vmul.u32 %v2731_v41, %v2708_v49  ;;  %v2737_v35 = vshll.u32 %v2734_v60, 16  ;;  %v2481_v38 = vmul.f32 %v2480_v42, %v2476_v25  ;;  %v2488_v61 = vmul.f32 %v2487_v40, %v2476_v25 }
  0xff   : > { %vm2494_vm10 = vcmp.lt.s32.totalorder %v9199_v1, 2  ;;  %v2613_v56 = vsub.s32 32, %v2612_v26  ;;  %v2630_v37 = vsel %vm9226_vm3, 0, %v2628_v20  ;;  %vm2491_vm11 = vweird.f32 %v8916_v11 }
 0x100   : > { %v2614_v47 = vshll.u32 %v9212_v31, %v2612_v26  ;;  %v2617_v30 = vsub.s32 4294967266, %v2612_v26  ;;  %v2716_v9 = vshrl.u32 %v2712_v10, 16  ;;  %v2724_v57 = vsel %vm2723_vm9, 1, %v16760_v21 }
 0x101   : > { %v2482_v43 = vadd.f32 1.0, %v2481_v38  ;;  %v2489_v3 = vadd.f32 1.0, %v2488_v61  ;;  %v2615_v41 = vshrl.u32 %v2597_v50, %v2613_v56  ;;  %v2726_v29 = vadd.s32 %v2724_v57, %v2722_v2 }
 0x102   : > { %v2618_v33 = vadd.s32 127, %v2617_v30  ;;  %v2739_v25 = vshll.u32 %v2735_v58, 16  ;;  %vm2741_vm12 = vc.u32 %v2733_v15, %v2737_v35  ;;  %v2743_v59 = vadd.s32 %v2737_v35, %v2733_v15 }
 0x103   : > { %v2490_v46 = vmul.f32 %v2489_v3, %v9210_v39  ;;  %v2499_v42 = vxor.u32 2147483648, %v2482_v43  ;;  %v2616_v20 = vor.u32 %v2615_v41, %v2614_v47  ;;  %v2727_v40 = vadd.s32 %v2726_v29, %v2716_v9 }
 0x104   : > { %v2619_v17 = vshll.u32 %v2618_v33, 23  ;;  %v2736_v7 = vmul.u32 %v2732_v4, %v2708_v49  ;;  %v2742_v31 = vsel %vm2741_vm12, 1, %v16760_v21  ;;  %vm2745_vm13 = vc.u32 %v2743_v59, %v2739_v25 }
 0x105   : > { %v2496_v10 = vxor.u32 2147483648, %v2490_v46  ;;  %v2647_v26 = vadd.s32 3, %v2630_v37  ;;  %v2697_v50 = vsel %vm2691_vm1, %v2694_v27, %v2696_v48  ;;  %v2718_v2 = vshrl.u32 %v9235_v45, 16 }
 0x106   : > { %v2620_v38 = vor.u32 4788187, %v2619_v17  ;;  %v2738_v61 = vshrl.u32 %v2734_v60, 16  ;;  %v2744_v15 = vadd.s32 %v2742_v31, %v2736_v7  ;;  %v2746_v39 = vsel %vm2745_vm13, 1, %v16760_v21 }
 0x107   : > { %v2497_v35 = vsel %vm2495_vm7, %v2482_v43, %v2496_v10  ;;  %v2500_v49 = vsel %vm2498_vm8, %v2499_v42, %v2490_v46  ;;  %v2623_v4 = vcvt.s32.f32 %v2616_v20  ;;  %v9265_v56 = vadd.s32 %v2727_v40, %v2718_v2 }
 0x108   : > { %v2501_v18 = vsel %vm2494_vm10, %v2497_v35, %v2500_v49  ;;  %v2621_v48 = vand.u32 2147483647, %v2620_v38  ;;  %v2748_v27 = vadd.s32 %v2746_v39, %v2744_v15  ;;  %v2813_v17 = vand.u32 2147483647, %v8904_v52 }
 0x109   : > { %v2502_v7 = vsel %vm2491_vm11, nan, %v2501_v18  ;;  %v9272_v60 = vand.u32 3, %v2647_v26  ;;  %v9274_v45 = vadd.s32 %v2743_v59, %v2739_v25  ;;  %v2751_v37 = vmul.u32 %v9186_v54, %v2697_v50 }
 0x10a   : > { %3021 = vmatpush.msra.mxu0 %v2502_v7  ;;  %v2624_v47 = vmul.f32 %v2623_v4, %v2621_v48  ;;  %v2740_v30 = vshrl.u32 %v2735_v58, 16  ;;  %v2749_v9 = vadd.s32 %v2748_v27, %v2738_v61  ;;  %v2831_v1 = vshrl.u32 %v16752_v44, %v8977_v53 }
 0x10b   : > { %vm2753_vm14 = vc.u32 %v9265_v56, %v9274_v45  ;;  %v2830_v11 = vshll.u32 %v16751_v22, %v8959_v36  ;;  %v2834_v57 = vshrl.u32 %v16753_v55, %v8977_v53  ;;  %v2837_v43 = vshrl.u32 %v16754_v14, %v8977_v53 }
 0x10c   : > { %v2625_v54 = vxor.u32 2147483648, %v2624_v47  ;;  %v2750_v3 = vadd.s32 %v2749_v9, %v2740_v30  ;;  %v2820_v58 = vand.u32 8388607, %v2813_v17  ;;  %v2833_v41 = vshll.u32 %v16752_v44, %v8959_v36 }
 0x10d   : > { %v9291_v29 = vor.u32 %v2831_v1, %v2830_v11  ;;  %v2836_v33 = vshll.u32 %v16753_v55, %v8959_v36  ;;  %v2839_v25 = vshll.u32 %v16754_v14, %v8959_v36  ;;  %v2840_v59 = vshrl.u32 %v16755_v34, %v8977_v53 }
 0x10e   : > { %v2626_v46 = vsel %vm2505_vm2, %v2625_v54, %v2624_v47  ;;  %v2754_v42 = vadd.s32 1, %v2750_v3  ;;  %v2842_v20 = vshll.u32 %v16755_v34, %v8959_v36  ;;  %v2843_v40 = vshrl.u32 %v16756_v0, %v8977_v53 }
 0x10f   : > { %v2629_v31 = vsel %vm9226_vm3, %v8918_v12, %v2626_v46  ;;  %v9308_v10 = vor.u32 %v2834_v57, %v2833_v41  ;;  %v9310_v26 = vor.u32 %v2837_v43, %v2836_v33  ;;  %v2841_v50 = vor.u32 %v2840_v59, %v2839_v25 }
 0x110   : > { %v2631_v2 = vmul.f32 %v2629_v31, %v2629_v31  ;;  %v2755_v38 = vsel %vm2753_vm14, %v2754_v42, %v2750_v3  ;;  %v2821_v61 = vor.u32 8388608, %v2820_v58  ;;  %v2844_v15 = vor.u32 %v2843_v40, %v2842_v20 }
 0x111   : > { %v2756_v36 = vadd.s32 %v2755_v38, %v2751_v37  ;;  %vm2845_vm15 = vcmp.lt.s32.totalorder %v8967_v19, 1  ;;  %vm2847_vm0 = vcmp.lt.s32.totalorder %v8967_v19, 3  ;;  %vm2848_vm1 = vcmp.lt.s32.totalorder %v8967_v19, 4 }
 0x112   : > { %v2632_v8 = vmul.f32 -0.001358992, %v2631_v2  ;;  %v2639_v39 = vmul.f32 -0.00019511016, %v2631_v2  ;;  %v2854_v35 = vsel %vm2848_vm1, %v2841_v50, 920167782  ;;  %v2853_v4 = vsel %vm2845_vm15, %v9291_v29, %v9308_v10 }
 0x113   : > { %v2757_v49 = vadd.s32 536870912, %v2756_v36  ;;  %v2855_v18 = vsel %vm2847_vm0, %v9310_v26, %v2854_v35  ;;  %v2857_v48 = vsel %vm2845_vm15, %v9308_v10, %v9310_v26  ;;  %v2858_v37 = vsel %vm2848_vm1, %v2844_v15, 1326507024 }
 0x114   : > { %v2633_v27 = vadd.f32 0.041655596, %v2632_v8  ;;  %v2640_v7 = vadd.f32 0.008332121, %v2639_v39  ;;  %vm2846_vm2 = vcmp.lt.s32.totalorder %v8967_v19, 2  ;;  %v2859_v30 = vsel %vm2847_vm0, %v2841_v50, %v2858_v37 }
 0x115   : > { %v2758_v47 = vshrl.u32 %v2757_v49, 30  ;;  %v9336_v9 = vshll.u32 %v2821_v61, 8  ;;  %v9340_v57 = vsel %vm2846_vm2, %v2853_v4, %v2855_v18  ;;  %v2860_v43 = vsel %vm2846_vm2, %v2857_v48, %v2859_v30 }
 0x116   : > { %v2634_v1 = vmul.f32 %v2633_v27, %v2631_v2  ;;  %v2641_v11 = vmul.f32 %v2640_v7, %v2631_v2  ;;  %v9345_v54 = vadd.s32 4294967169, %v9106_v16  ;;  %v9348_v3 = vadd.s32 4294967169, %v9162_v5 }
 0x117   : > { %vm2660_vm3 = vcmp.lt.s32.totalorder %v8902_v51, 0  ;;  %v2759_v58 = vshll.u32 %v2758_v47, 30  ;;  %vm2653_vm4 = vcmp.eq.s32.totalorder %v9272_v60, 2  ;;  %v2865_v25 = vshrl.u32 %v2860_v43, 16 }
 0x118   : > { %v2635_v41 = vadd.f32 -0.4999988, %v2634_v1  ;;  %v2642_v33 = vadd.f32 -0.16666654, %v2641_v11  ;;  %vm2650_vm5 = vcmp.eq.s32.totalorder %v9272_v60, 0  ;;  %v2862_v46 = vand.u32 65535, %v9336_v9 }
 0x119   : > { %v9353_v59 = vsub.s32 %v2756_v36, %v2759_v58  ;;  %v2864_v42 = vand.u32 65535, %v2860_v43  ;;  %v2887_v16 = vshrl.u32 %v9340_v57, 16  ;;  %vm2649_vm6 = vcmp.lt.s32.totalorder %v9272_v60, 2 }
 0x11a   : > { %v2636_v20 = vmul.f32 %v2635_v41, %v2631_v2  ;;  %v2643_v5 = vmul.f32 %v2642_v33, %v2631_v2  ;;  %v2782_v40 = vsub.s32 4, %v2758_v47  ;;  %v2886_v50 = vand.u32 65535, %v9340_v57 }
 0x11b   : > { %vm2646_vm7 = vweird.f32 %v8918_v12  ;;  %vm2761_vm8 = vcmp.lt.s32.totalorder %v9353_v59, 0  ;;  %v2762_v38 = vsub.s32 0, %v9353_v59  ;;  %v2863_v61 = vshrl.u32 %v9336_v9, 16 }
 0x11c   : > { %v2867_v15 = vmul.u32 %v2865_v25, %v2862_v46  ;;  %v2637_v36 = vadd.f32 1.0, %v2636_v20  ;;  %v2644_v8 = vadd.f32 1.0, %v2643_v5  ;;  %v2752_v39 = vadd.s32 %v9274_v45, %v9265_v56 }
 0x11d   : > { %v2829_v2 = vshrl.u32 %v16751_v22, %v8977_v53  ;;  %v2763_v35 = vsel %vm2761_vm8, %v2762_v38, %v9353_v59  ;;  %v9368_v49 = vmul.u32 %v2864_v42, %v2863_v61  ;;  %v9370_v18 = vmul.u32 %v2887_v16, %v2862_v46 }
 0x11e   : > { %v2870_v4 = vshll.u32 %v2867_v15, 16  ;;  %v2645_v48 = vmul.f32 %v2644_v8, %v2629_v31  ;;  %v2654_v27 = vxor.u32 2147483648, %v2637_v36  ;;  %v2764_v7 = vclz %v2763_v35 }
 0x11f   : > { %v2866_v37 = vmul.u32 %v2864_v42, %v2862_v46  ;;  %v16772_v30 = vand.u32 2147483647, %v8902_v51  ;;  %v2783_v53 = vsel %vm2660_vm3, %v2782_v40, %v2758_v47  ;;  %v2849_v56 = vsel %vm2845_vm15, %v2829_v2, %v9291_v29 }
 0x120   : > { %v2850_v45 = vsel %vm2848_vm1, %v9310_v26, 2102212464  ;;  %v2888_v31 = vmul.u32 %v2886_v50, %v2862_v46  ;;  %v2651_v11 = vxor.u32 2147483648, %v2645_v48  ;;  %v8470_v57 = vadd.s32 4294967294, %v2764_v7 }
 0x121   : > { %vm9374_vm9 = vcmp.le.f32.partialorder %v16772_v30, 0.7853982  ;;  %v2869_v43 = vmul.u32 %v2865_v25, %v2863_v61  ;;  %vm2874_vm10 = vc.u32 %v2866_v37, %v2870_v4  ;;  %v2655_v58 = vsel %vm2653_vm4, %v2654_v27, %v2645_v48 }
 0x122   : > { %v2872_v41 = vshll.u32 %v9368_v49, 16  ;;  %v2875_v47 = vsel %vm2874_vm10, 1, %v16760_v21  ;;  %v2876_v33 = vadd.s32 %v2870_v4, %v2866_v37  ;;  %v2652_v29 = vsel %vm2650_vm5, %v2637_v36, %v2651_v11 }
 0x123   : > { %vm8471_vm11 = vcmp.lt.s32.totalorder %v8470_v57, 0  ;;  %v2877_v42 = vadd.s32 %v2875_v47, %v2869_v43  ;;  %v2892_v26 = vshll.u32 %v9370_v18, 16  ;;  %v2656_v46 = vsel %vm2649_vm6, %v2652_v29, %v2655_v58 }
 0x124   : > { %v2767_v25 = vsel %vm8471_vm11, 0, %v8470_v57  ;;  %vm2878_vm12 = vc.u32 %v2876_v33, %v2872_v41  ;;  %v2890_v20 = vmul.u32 %v2886_v50, %v2863_v61  ;;  %v2657_v5 = vsel %vm2646_vm7, nan, %v2656_v46 }
 0x125   : > { %v2768_v40 = vsub.s32 32, %v2767_v25  ;;  %v2772_v38 = vsub.s32 4294967266, %v2767_v25  ;;  %v2871_v8 = vshrl.u32 %v2867_v15, 16  ;;  %3050 = vmatpush.msra.mxu1 %v2657_v5  ;;  %v2769_v2 = vshll.u32 %v9353_v59, %v2767_v25 }
 0x126   : > { %v2879_v36 = vsel %vm2878_vm12, 1, %v16760_v21  ;;  %v2891_v35 = vmul.u32 %v2887_v16, %v2863_v61  ;;  %vm2896_vm13 = vc.u32 %v2888_v31, %v2892_v26  ;;  %v2851_v12 = vsel %vm2847_vm0, %v9308_v10, %v2850_v45 }
 0x127   : > { %v2770_v4 = vshrl.u32 %v2752_v39, %v2768_v40  ;;  %v2773_v48 = vadd.s32 127, %v2772_v38  ;;  %v2881_v60 = vadd.s32 %v2879_v36, %v2877_v42  ;;  %v2897_v27 = vsel %vm2896_vm13, 1, %v16760_v21 }
 0x128   : > { %v2894_v50 = vshll.u32 %v2890_v20, 16  ;;  %v2898_v7 = vadd.s32 %v2892_v26, %v2888_v31  ;;  %v2899_v37 = vadd.s32 %v2897_v27, %v2891_v35  ;;  %v2785_v59 = vsel %vm9374_vm9, 0, %v2783_v53 }
 0x129   : > { %v2771_v15 = vor.u32 %v2770_v4, %v2769_v2  ;;  %v2774_v30 = vshll.u32 %v2773_v48, 23  ;;  %v2882_v11 = vadd.s32 %v2881_v60, %v2871_v8  ;;  %v9406_v16 = vadd.s32 1, %v9345_v54 }
 0x12a   : > { %v9409_v61 = vadd.s32 1, %v9348_v3  ;;  %vm2900_vm14 = vc.u32 %v2898_v7, %v2894_v50  ;;  %v1728_v39 = vand.u32 2147483647, %v8908_v6  ;;  %v1111_v10 = vand.u32 2139095040, %v8943_v13 }
 0x12b   : > { %v2775_v45 = vor.u32 4788187, %v2774_v30  ;;  %v2873_v31 = vshrl.u32 %v9368_v49, 16  ;;  %v2901_v57 = vsel %vm2900_vm14, 1, %v16760_v21  ;;  %v2802_v43 = vadd.s32 3, %v2785_v59 }
 0x12c   : > { %v2852_v53 = vsel %vm2846_vm2, %v2849_v56, %v2851_v12  ;;  %v2893_v54 = vshrl.u32 %v9370_v18, 16  ;;  %v2903_v58 = vadd.s32 %v2901_v57, %v2899_v37  ;;  %v2778_v3 = vcvt.s32.f32 %v2771_v15 }
 0x12d   : > { %v2776_v41 = vand.u32 2147483647, %v2775_v45  ;;  %v9418_v47 = vadd.s32 %v2882_v11, %v2873_v31  ;;  %v2895_v33 = vshrl.u32 %v2890_v20, 16  ;;  %v9420_v29 = vadd.s32 %v2898_v7, %v2894_v50 }
 0x12e   : > { %v2904_v42 = vadd.s32 %v2903_v58, %v2893_v54  ;;  %v1735_v49 = vand.u32 8388607, %v1728_v39  ;;  %v1749_v26 = vshrl.u32 %v16753_v55, %v9003_v32  ;;  %v1745_v19 = vshll.u32 %v16751_v22, %v8986_v63 }
 0x12f   : > { %v2779_v46 = vmul.f32 %v2778_v3, %v2776_v41  ;;  %v1746_v18 = vshrl.u32 %v16752_v44, %v9003_v32  ;;  %v1752_v56 = vshrl.u32 %v16754_v14, %v9003_v32  ;;  %v1748_v20 = vshll.u32 %v16752_v44, %v8986_v63 }
 0x130   : > { %v2905_v25 = vadd.s32 %v2904_v42, %v2895_v33  ;;  %v1751_v5 = vshll.u32 %v16753_v55, %v8986_v63  ;;  %v1755_v40 = vshrl.u32 %v16755_v34, %v9003_v32  ;;  %vm2908_vm15 = vc.u32 %v9418_v47, %v9420_v29 }
 0x131   : > { %v2780_v38 = vxor.u32 2147483648, %v2779_v46  ;;  %v1757_v8 = vshll.u32 %v16755_v34, %v8986_v63  ;;  %v1758_v2 = vshrl.u32 %v16756_v0, %v9003_v32  ;;  %v9444_v35 = vor.u32 %v1749_v26, %v1748_v20 }
 0x132   : > { %v2909_v36 = vadd.s32 1, %v2905_v25  ;;  %v9446_v4 = vor.u32 %v1752_v56, %v1751_v5  ;;  %v1754_v48 = vshll.u32 %v16754_v14, %v8986_v63  ;;  %v2906_v27 = vmul.u32 %v9336_v9, %v2852_v53 }
 0x133   : > { %v2781_v60 = vsel %vm2660_vm3, %v2780_v38, %v2779_v46  ;;  %v1736_v12 = vor.u32 8388608, %v1735_v49  ;;  %v1759_v50 = vor.u32 %v1758_v2, %v1757_v8  ;;  %v9458_v15 = vor.u32 %v1746_v18, %v1745_v19 }
 0x134   : > { %v9456_v7 = vsel %vm9374_vm9, %v8902_v51, %v2781_v60  ;;  %v2910_v37 = vsel %vm2908_vm15, %v2909_v36, %v2905_v25  ;;  %v1756_v30 = vor.u32 %v1755_v40, %v1754_v48  ;;  %vm1760_vm0 = vcmp.lt.s32.totalorder %v8984_v62, 1 }
 0x135   : > { %v2786_v59 = vmul.f32 %v9456_v7, %v9456_v7  ;;  %v2911_v63 = vadd.s32 %v2910_v37, %v2906_v27  ;;  %vm1763_vm1 = vcmp.lt.s32.totalorder %v8984_v62, 4  ;;  %v9464_v9 = vand.u32 3, %v2802_v43 }
 0x136   : > { %vm1761_vm2 = vcmp.lt.s32.totalorder %v8984_v62, 2  ;;  %v1772_v1 = vsel %vm1760_vm0, %v9444_v35, %v9446_v4  ;;  %v1773_v11 = vsel %vm1763_vm1, %v1759_v50, 1326507024  ;;  %vm1762_vm3 = vcmp.lt.s32.totalorder %v8984_v62, 3 }
 0x137   : > { %v2787_v45 = vmul.f32 -0.001358992, %v2786_v59  ;;  %v2794_v31 = vmul.f32 -0.00019511016, %v2786_v59  ;;  %v2912_v57 = vadd.s32 536870912, %v2911_v63  ;;  %v1768_v43 = vsel %vm1760_vm0, %v9458_v15, %v9444_v35 }
 0x138   : > { %v1769_v53 = vsel %vm1763_vm1, %v1756_v30, 920167782  ;;  %v1774_v54 = vsel %vm1762_vm3, %v1756_v30, %v1773_v11  ;;  %v9482_v58 = vshll.u32 %v1736_v12, 8  ;;  %v1266_v5 = vand.u32 2139095040, %v8945_v23 }
 0x139   : > { %v2788_v41 = vadd.f32 0.041655596, %v2787_v45  ;;  %v2795_v3 = vadd.f32 0.008332121, %v2794_v31  ;;  %v9484_v33 = vshrl.u32 %v2912_v57, 30  ;;  %v1775_v42 = vsel %vm1761_vm2, %v1772_v1, %v1774_v54 }
 0x13a   : > { %v9489_v49 = vand.u32 65535, %v9482_v58  ;;  %v9492_v26 = vshrl.u32 %v9482_v58, 16  ;;  %v1779_v46 = vand.u32 65535, %v1775_v42  ;;  %v1780_v19 = vshrl.u32 %v1775_v42, 16 }
 0x13b   : > { %v2789_v18 = vmul.f32 %v2788_v41, %v2786_v59  ;;  %v2796_v56 = vmul.f32 %v2795_v3, %v2786_v59  ;;  %v2914_v25 = vshll.u32 %v9484_v33, 30  ;;  %v1770_v20 = vsel %vm1762_vm3, %v9446_v4, %v1769_v53 }
 0x13c   : > { %v1421_v40 = vand.u32 2139095040, %v8949_v24  ;;  %v1782_v38 = vmul.u32 %v1780_v19, %v9489_v49  ;;  %v9502_v8 = vmul.u32 %v1779_v46, %v9492_v26  ;;  %v1576_v2 = vand.u32 2139095040, %v8952_v28 }
 0x13d   : > { %v2790_v36 = vadd.f32 -0.4999988, %v2789_v18  ;;  %v2797_v48 = vadd.f32 -0.16666654, %v2796_v56  ;;  %v9505_v60 = vsub.s32 %v2911_v63, %v2914_v25  ;;  %vm2805_vm4 = vcmp.eq.s32.totalorder %v9464_v9, 0 }
 0x13e   : > { %v1744_v27 = vshrl.u32 %v16751_v22, %v9003_v32  ;;  %v1771_v12 = vsel %vm1761_vm2, %v1768_v43, %v1770_v20  ;;  %v1781_v50 = vmul.u32 %v1779_v46, %v9489_v49  ;;  %v1785_v37 = vshll.u32 %v1782_v38, 16 }
 0x13f   : > { %v2791_v30 = vmul.f32 %v2790_v36, %v2786_v59  ;;  %v2798_v1 = vmul.f32 %v2797_v48, %v2786_v59  ;;  %vm2804_vm5 = vcmp.lt.s32.totalorder %v9464_v9, 2  ;;  %vm2815_vm6 = vcmp.lt.s32.totalorder %v8904_v52, 0 }
 0x140   : > { %vm2916_vm7 = vcmp.lt.s32.totalorder %v9505_v60, 0  ;;  %v2917_v63 = vsub.s32 0, %v9505_v60  ;;  %vm2801_vm8 = vweird.f32 %v8902_v51  ;;  %v1784_v32 = vmul.u32 %v1780_v19, %v9492_v26 }
 0x141   : > { %v1787_v11 = vshll.u32 %v9502_v8, 16  ;;  %vm1789_vm9 = vc.u32 %v1781_v50, %v1785_v37  ;;  %v1791_v45 = vadd.s32 %v1785_v37, %v1781_v50  ;;  %v2792_v31 = vadd.f32 1.0, %v2791_v30 }
 0x142   : > { %v2799_v57 = vadd.f32 1.0, %v2798_v1  ;;  %v2918_v59 = vsel %vm2916_vm7, %v2917_v63, %v9505_v60  ;;  %v1790_v43 = vsel %vm1789_vm9, 1, %v16760_v21  ;;  %v1765_v54 = vsel %vm1763_vm1, %v9446_v4, 2102212464 }
 0x143   : > { %v2919_v53 = vclz %v2918_v59  ;;  %v1792_v41 = vadd.s32 %v1790_v43, %v1784_v32  ;;  %vm1793_vm10 = vc.u32 %v1791_v45, %v1787_v11  ;;  %v2809_v42 = vxor.u32 2147483648, %v2792_v31 }
 0x144   : > { %v2800_v3 = vmul.f32 %v2799_v57, %v9456_v7  ;;  %vm9528_vm11 = vcmp.le.f32.partialorder %v2813_v17, 0.7853982  ;;  %v1794_v19 = vsel %vm1793_vm10, 1, %v16760_v21  ;;  %v1801_v18 = vand.u32 65535, %v1771_v12 }
 0x145   : > { %vm2808_vm12 = vcmp.eq.s32.totalorder %v9464_v9, 2  ;;  %v2907_v56 = vadd.s32 %v9420_v29, %v9418_v47  ;;  %v8473_v4 = vadd.s32 4294967294, %v2919_v53  ;;  %v2937_v25 = vsub.s32 4, %v9484_v33 }
 0x146   : > { %v2806_v20 = vxor.u32 2147483648, %v2800_v3  ;;  %v1764_v7 = vsel %vm1760_vm0, %v1744_v27, %v9458_v15  ;;  %v1796_v17 = vadd.s32 %v1794_v19, %v1792_v41  ;;  %v1802_v36 = vshrl.u32 %v1771_v12, 16 }
 0x147   : > { %v2810_v48 = vsel %vm2808_vm12, %v2809_v42, %v2800_v3  ;;  %vm8474_vm13 = vcmp.lt.s32.totalorder %v8473_v4, 0  ;;  %v1766_v50 = vsel %vm1762_vm3, %v9444_v35, %v1765_v54  ;;  %v1786_v37 = vshrl.u32 %v1782_v38, 16 }
 0x148   : > { %v2807_v47 = vsel %vm2805_vm4, %v2792_v31, %v2806_v20  ;;  %v2922_v29 = vsel %vm8474_vm13, 0, %v8473_v4  ;;  %v1804_v30 = vmul.u32 %v1802_v36, %v9489_v49  ;;  %v1805_v1 = vmul.u32 %v1801_v18, %v9492_v26 }
 0x149   : > { %v2811_v15 = vsel %vm2804_vm5, %v2807_v47, %v2810_v48  ;;  %v2923_v27 = vsub.s32 32, %v2922_v29  ;;  %v2927_v12 = vsub.s32 4294967266, %v2922_v29  ;;  %v2938_v63 = vsel %vm2815_vm6, %v2937_v25, %v9484_v33  ;;  %v16778_v47 = vld [vmem:[#allocation14_spill] sm:$0xff] }
 0x14a   : > { %v2812_v35 = vsel %vm2801_vm8, nan, %v2811_v15  ;;  %v1797_v38 = vadd.s32 %v1796_v17, %v1786_v37  ;;  %v1803_v32 = vmul.u32 %v1801_v18, %v9489_v49  ;;  %v1807_v11 = vshll.u32 %v1804_v30, 16 }
 0x14b   : > { %3079 = vmatpush.msra.mxu2 %v2812_v35  ;;  %v2924_v45 = vshll.u32 %v9505_v60, %v2922_v29  ;;  %v2925_v31 = vshrl.u32 %v2907_v56, %v2923_v27  ;;  %v2928_v57 = vadd.s32 127, %v2927_v12  ;;  %v1788_v9 = vshrl.u32 %v9502_v8, 16  ;;  %v16777_v60 = vld [vmem:[#allocation5_spill] sm:$0xff] }
 0x14c   : > { %v1806_v59 = vmul.u32 %v1802_v36, %v9492_v26  ;;  %v1809_v43 = vshll.u32 %v1805_v1, 16  ;;  %vm1811_vm14 = vc.u32 %v1803_v32, %v1807_v11  ;;  %v1813_v53 = vadd.s32 %v1807_v11, %v1803_v32 }
 0x14d   : > { %v2926_v33 = vor.u32 %v2925_v31, %v2924_v45  ;;  %v2929_v54 = vshll.u32 %v2928_v57, 23  ;;  %v2940_v51 = vsel %vm9528_vm11, 0, %v2938_v63  ;;  %v1812_v49 = vsel %vm1811_vm14, 1, %v16760_v21 }
 0x14e   : > { %v9561_v41 = vadd.s32 %v1797_v38, %v1788_v9  ;;  %v1814_v3 = vadd.s32 %v1812_v49, %v1806_v59  ;;  %vm1815_vm15 = vc.u32 %v1813_v53, %v1809_v43  ;;  %v1883_v42 = vand.u32 2147483647, %v16777_v60 }
 0x14f   : > { %v9566_v8 = vshrl.u32 %v1111_v10, 23  ;;  %v9570_v26 = vshrl.u32 %v1266_v5, 23  ;;  %v2930_v19 = vor.u32 4788187, %v2929_v54  ;;  %v1816_v18 = vsel %vm1815_vm15, 1, %v16760_v21 }
 0x150   : > { %v1767_v56 = vsel %vm1761_vm2, %v1764_v7, %v1766_v50  ;;  %v1808_v4 = vshrl.u32 %v1804_v30, 16  ;;  %v9575_v25 = vadd.s32 %v1813_v53, %v1809_v43  ;;  %v1818_v20 = vadd.s32 %v1816_v18, %v1814_v3  ;;  %v16779_v50 = vld [vmem:[#allocation13_spill] sm:$0xff]  ;;  %v16780_v3 = vld [vmem:[#allocation12_spill] sm:$0xff] }
 0x151   : > { %v2931_v17 = vand.u32 2147483647, %v2930_v19  ;;  %v2933_v36 = vcvt.s32.f32 %v2926_v33  ;;  %v2957_v48 = vadd.s32 3, %v2940_v51  ;;  %v1810_v37 = vshrl.u32 %v1805_v1, 16 }
 0x152   : > { %v1819_v10 = vadd.s32 %v1818_v20, %v1808_v4  ;;  %vm1823_vm0 = vc.u32 %v9561_v41, %v9575_v25  ;;  %v1890_v5 = vand.u32 8388607, %v1883_v42  ;;  %v1904_v29 = vshrl.u32 %v16753_v55, %v16778_v47 }
 0x153   : > { %v2934_v62 = vmul.f32 %v2933_v36, %v2931_v17  ;;  %v1901_v7 = vshrl.u32 %v16752_v44, %v16778_v47  ;;  %v1903_v30 = vshll.u32 %v16752_v44, %v16779_v50  ;;  %v1907_v1 = vshrl.u32 %v16754_v14, %v16778_v47 }
 0x154   : > { %v1820_v15 = vadd.s32 %v1819_v10, %v1810_v37  ;;  %v1906_v27 = vshll.u32 %v16753_v55, %v16779_v50  ;;  %v1909_v12 = vshll.u32 %v16754_v14, %v16779_v50  ;;  %v1910_v63 = vshrl.u32 %v16755_v34, %v16778_v47 }
 0x155   : > { %vm499_vm1 = vcmp.gt.s32.totalorder %v9406_v16, 0  ;;  %v2935_v35 = vxor.u32 2147483648, %v2934_v62  ;;  %v1900_v38 = vshll.u32 %v16751_v22, %v16779_v50  ;;  %v1912_v32 = vshll.u32 %v16755_v34, %v16779_v50 }
 0x156   : > { %v1913_v11 = vshrl.u32 %v16756_v0, %v16778_v47  ;;  %v1824_v45 = vadd.s32 1, %v1820_v15  ;;  %v9602_v31 = vor.u32 %v1904_v29, %v1903_v30  ;;  %v9604_v57 = vor.u32 %v1907_v1, %v1906_v27 }
 0x157   : > { %v1911_v9 = vor.u32 %v1910_v63, %v1909_v12  ;;  %v2936_v59 = vsel %vm2815_vm6, %v2935_v35, %v2934_v62  ;;  %v1821_v43 = vmul.u32 %v9482_v58, %v1767_v56  ;;  %v1891_v53 = vor.u32 8388608, %v1890_v5 }
 0x158   : > { %v1914_v33 = vor.u32 %v1913_v11, %v1912_v32  ;;  %v9612_v54 = vsel %vm9528_vm11, %v8904_v52, %v2936_v59  ;;  %v1825_v51 = vsel %vm1823_vm0, %v1824_v45, %v1820_v15  ;;  %v9617_v49 = vor.u32 %v1901_v7, %v1900_v38 }
 0x159   : > { %vm1918_vm2 = vcmp.lt.s32.totalorder %v16780_v3, 4  ;;  %v2941_v19 = vmul.f32 %v9612_v54, %v9612_v54  ;;  %v1826_v18 = vadd.s32 %v1825_v51, %v1821_v43  ;;  %vm1915_vm3 = vcmp.lt.s32.totalorder %v16780_v3, 1 }
 0x15a   : > { %v1924_v58 = vsel %vm1918_vm2, %v1911_v9, 920167782  ;;  %v9625_v46 = vand.u32 3, %v2957_v48  ;;  %vm1916_vm4 = vcmp.lt.s32.totalorder %v16780_v3, 2  ;;  %v1927_v56 = vsel %vm1915_vm3, %v9602_v31, %v9604_v57 }
 0x15b   : > { %v1928_v4 = vsel %vm1918_vm2, %v1914_v33, 1326507024  ;;  %v2942_v20 = vmul.f32 -0.001358992, %v2941_v19  ;;  %v2949_v17 = vmul.f32 -0.00019511016, %v2941_v19  ;;  %v1923_v48 = vsel %vm1915_vm3, %v9617_v49, %v9602_v31 }
 0x15c   : > { %v1827_v36 = vadd.s32 536870912, %v1826_v18  ;;  %vm1917_vm5 = vcmp.lt.s32.totalorder %v16780_v3, 3  ;;  %v9644_v5 = vshll.u32 %v1891_v53, 8  ;;  %v9659_v32 = vsel %vm499_vm1, %v9406_v16, 0 }
 0x15d   : > { %v1925_v37 = vsel %vm1917_vm5, %v9604_v57, %v1924_v58  ;;  %v1929_v10 = vsel %vm1917_vm5, %v1911_v9, %v1928_v4  ;;  %v2943_v29 = vadd.f32 0.041655596, %v2942_v20  ;;  %v2950_v62 = vadd.f32 0.008332121, %v2949_v17 }
 0x15e   : > { %v1828_v7 = vshrl.u32 %v1827_v36, 30  ;;  %v1930_v50 = vsel %vm1916_vm4, %v1927_v56, %v1929_v10  ;;  %v9649_v30 = vand.u32 65535, %v9644_v5  ;;  %v9652_v1 = vshrl.u32 %v9644_v5, 16 }
 0x15f   : > { %v1934_v15 = vand.u32 65535, %v1930_v50  ;;  %v1935_v27 = vshrl.u32 %v1930_v50, 16  ;;  %v2944_v12 = vmul.f32 %v2943_v29, %v2941_v19  ;;  %v2951_v63 = vmul.f32 %v2950_v62, %v2941_v19 }
 0x160   : > { %v1829_v35 = vshll.u32 %v1828_v7, 30  ;;  %v1926_v38 = vsel %vm1916_vm4, %v1923_v48, %v1925_v37  ;;  %v9662_v11 = vadd.s32 4294967169, %v9566_v8  ;;  %vm1730_vm6 = vcmp.lt.s32.totalorder %v8908_v6, 0 }
 0x161   : > { %v1937_v45 = vmul.u32 %v1935_v27, %v9649_v30  ;;  %v9666_v9 = vmul.u32 %v1934_v15, %v9652_v1  ;;  %v2945_v59 = vadd.f32 -0.4999988, %v2944_v12  ;;  %v2952_v43 = vadd.f32 -0.16666654, %v2951_v63 }
 0x162   : > { %v9669_v53 = vsub.s32 %v1826_v18, %v1829_v35  ;;  %vm2960_vm7 = vcmp.eq.s32.totalorder %v9625_v46, 0  ;;  %v1899_v16 = vshrl.u32 %v16751_v22, %v16778_v47  ;;  %v1936_v33 = vmul.u32 %v1934_v15, %v9649_v30 }
 0x163   : > { %v1940_v8 = vshll.u32 %v1937_v45, 16  ;;  %v1957_v51 = vshrl.u32 %v1926_v38, 16  ;;  %v2946_v58 = vmul.f32 %v2945_v59, %v2941_v19  ;;  %v2953_v56 = vmul.f32 %v2952_v43, %v2941_v19 }
 0x164   : > { %vm2959_vm8 = vcmp.lt.s32.totalorder %v9625_v46, 2  ;;  %vm1831_vm9 = vcmp.lt.s32.totalorder %v9669_v53, 0  ;;  %v1832_v4 = vsub.s32 0, %v9669_v53  ;;  %vm2956_vm10 = vweird.f32 %v8904_v52 }
 0x165   : > { %v1939_v18 = vmul.u32 %v1935_v27, %v9652_v1  ;;  %v1942_v20 = vshll.u32 %v9666_v9, 16  ;;  %vm1944_vm11 = vc.u32 %v1936_v33, %v1940_v8  ;;  %v1946_v47 = vadd.s32 %v1940_v8, %v1936_v33 }
 0x166   : > { %v2947_v17 = vadd.f32 1.0, %v2946_v58  ;;  %v2954_v36 = vadd.f32 1.0, %v2953_v56  ;;  %v1833_v48 = vsel %vm1831_vm9, %v1832_v4, %v9669_v53  ;;  %v1945_v19 = vsel %vm1944_vm11, 1, %v16760_v21 }
 0x167   : > { %v1834_v37 = vclz %v1833_v48  ;;  %v1852_v10 = vsub.s32 4, %v1828_v7  ;;  %v1947_v29 = vadd.s32 %v1945_v19, %v1939_v18  ;;  %vm1948_vm12 = vc.u32 %v1946_v47, %v1942_v20 }
 0x168   : > { %v2955_v62 = vmul.f32 %v2954_v36, %v9612_v54  ;;  %v2964_v50 = vxor.u32 2147483648, %v2947_v17  ;;  %v1949_v15 = vsel %vm1948_vm12, 1, %v16760_v21  ;;  %v1956_v27 = vand.u32 65535, %v1926_v38 }
 0x169   : > { %vm2963_vm13 = vcmp.eq.s32.totalorder %v9625_v46, 2  ;;  %vm9688_vm14 = vcmp.le.f32.partialorder %v1728_v39, 0.7853982  ;;  %v1822_v63 = vadd.s32 %v9575_v25, %v9561_v41  ;;  %v8452_v35 = vadd.s32 4294967294, %v1834_v37 }
 0x16a   : > { %v1919_v54 = vsel %vm1915_vm3, %v1899_v16, %v9617_v49  ;;  %v2961_v59 = vxor.u32 2147483648, %v2955_v62  ;;  %v1920_v38 = vsel %vm1918_vm2, %v9604_v57, 2102212464  ;;  %v1951_v43 = vadd.s32 %v1949_v15, %v1947_v29 }
 0x16b   : > { %v1959_v33 = vmul.u32 %v1957_v51, %v9649_v30  ;;  %v2965_v39 = vsel %vm2963_vm13, %v2964_v50, %v2955_v62  ;;  %vm8453_vm15 = vcmp.lt.s32.totalorder %v8452_v35, 0  ;;  %v1853_v8 = vsel %vm1730_vm6, %v1852_v10, %v1828_v7  ;;  %v16783_v10 = vld [vmem:[#allocation6_spill] sm:$0xff] }
 0x16c   : > { %v1941_v58 = vshrl.u32 %v1937_v45, 16  ;;  %v2962_v41 = vsel %vm2960_vm7, %v2947_v17, %v2961_v59  ;;  %v1837_v25 = vsel %vm8453_vm15, 0, %v8452_v35  ;;  %v1960_v49 = vmul.u32 %v1956_v27, %v9652_v1 }
 0x16d   : > { %v1962_v16 = vshll.u32 %v1959_v33, 16  ;;  %v2966_v56 = vsel %vm2959_vm8, %v2962_v41, %v2965_v39  ;;  %v1838_v57 = vsub.s32 32, %v1837_v25  ;;  %v1842_v4 = vsub.s32 4294967266, %v1837_v25 }
 0x16e   : > { %v1958_v18 = vmul.u32 %v1956_v27, %v9649_v30  ;;  %v2967_v20 = vsel %vm2956_vm10, nan, %v2966_v56  ;;  %v1943_v7 = vshrl.u32 %v9666_v9, 16  ;;  %v1952_v45 = vadd.s32 %v1951_v43, %v1941_v58 }
 0x16f   : > { %v1961_v47 = vmul.u32 %v1957_v51, %v9652_v1  ;;  %3108 = vmatpush.msra.mxu3 %v2967_v20  ;;  %v1839_v17 = vshll.u32 %v9669_v53, %v1837_v25  ;;  %v1840_v36 = vshrl.u32 %v1822_v63, %v1838_v57  ;;  %v1843_v48 = vadd.s32 127, %v1842_v4 }
 0x170   : > { %vm1966_vm0 = vc.u32 %v1958_v18, %v1962_v16  ;;  %v1964_v46 = vshll.u32 %v1960_v49, 16  ;;  %v1968_v37 = vadd.s32 %v1962_v16, %v1958_v18  ;;  %v2038_v30 = vand.u32 2147483647, %v16783_v10 }
 0x171   : > { %v1967_v19 = vsel %vm1966_vm0, 1, %v16760_v21  ;;  %v1841_v29 = vor.u32 %v1840_v36, %v1839_v17  ;;  %v1844_v52 = vshll.u32 %v1843_v48, 23  ;;  %v1921_v9 = vsel %vm1917_vm5, %v9602_v31, %v1920_v38 }
 0x172   : > { %v1969_v62 = vadd.s32 %v1967_v19, %v1961_v47  ;;  %v8442_v1 = vadd.s32 4294967169, %v9570_v26  ;;  %v1855_v53 = vsel %vm9688_vm14, 0, %v1853_v8  ;;  %v9722_v51 = vadd.s32 %v1952_v45, %v1943_v7 }
 0x173   : > { %vm1970_vm1 = vc.u32 %v1968_v37, %v1964_v46  ;;  %v9725_v50 = vadd.s32 1, %v9662_v11  ;;  %v1845_v15 = vor.u32 4788187, %v1844_v52  ;;  %v2045_v63 = vand.u32 8388607, %v2038_v30  ;;  %v16784_v11 = vld [vmem:[#allocation19_spill] sm:$0xff] }
 0x174   : > { %v1971_v27 = vsel %vm1970_vm1, 1, %v16760_v21  ;;  %v1922_v31 = vsel %vm1916_vm4, %v1919_v54, %v1921_v9  ;;  %v1963_v35 = vshrl.u32 %v1959_v33, 16  ;;  %v9732_v26 = vadd.s32 %v1968_v37, %v1964_v46  ;;  %v16785_v33 = vld [vmem:[#allocation16_spill] sm:$0xff] }
 0x175   : > { %v1973_v59 = vadd.s32 %v1971_v27, %v1969_v62  ;;  %v1846_v38 = vand.u32 2147483647, %v1845_v15  ;;  %v1848_v43 = vcvt.s32.f32 %v1841_v29  ;;  %v1872_v39 = vadd.s32 3, %v1855_v53  ;;  %v16786_v15 = vld [vmem:[#allocation15_spill] sm:$0xff] }
 0x176   : > { %v1965_v8 = vshrl.u32 %v1960_v49, 16  ;;  %vm1978_vm2 = vc.u32 %v9722_v51, %v9732_v26  ;;  %v2059_v41 = vshrl.u32 %v16753_v55, %v16784_v11  ;;  %v2062_v25 = vshrl.u32 %v16754_v14, %v16784_v11 }
 0x177   : > { %v1974_v58 = vadd.s32 %v1973_v59, %v1963_v35  ;;  %v1849_v3 = vmul.f32 %v1848_v43, %v1846_v38  ;;  %v2046_v54 = vor.u32 8388608, %v2045_v63  ;;  %v2064_v16 = vshll.u32 %v16754_v14, %v16785_v33 }
 0x178   : > { %v2065_v56 = vshrl.u32 %v16755_v34, %v16784_v11  ;;  %v2056_v49 = vshrl.u32 %v16752_v44, %v16784_v11  ;;  %v2058_v4 = vshll.u32 %v16752_v44, %v16785_v33  ;;  %v2061_v18 = vshll.u32 %v16753_v55, %v16785_v33 }
 0x179   : > { %v1975_v57 = vadd.s32 %v1974_v58, %v1965_v8  ;;  %v1850_v20 = vxor.u32 2147483648, %v1849_v3  ;;  %v2067_v45 = vshll.u32 %v16755_v34, %v16785_v33  ;;  %v2068_v47 = vshrl.u32 %v16756_v0, %v16784_v11 }
 0x17a   : > { %v2066_v7 = vor.u32 %v2065_v56, %v2064_v16  ;;  %v2055_v36 = vshll.u32 %v16751_v22, %v16785_v33  ;;  %v9756_v48 = vor.u32 %v2059_v41, %v2058_v4  ;;  %v2063_v46 = vor.u32 %v2062_v25, %v2061_v18 }
 0x17b   : > { %v1979_v17 = vadd.s32 1, %v1975_v57  ;;  %v9758_v19 = vadd.s32 1, %v8442_v1  ;;  %v1851_v37 = vsel %vm1730_vm6, %v1850_v20, %v1849_v3  ;;  %v1976_v29 = vmul.u32 %v9644_v5, %v1922_v31 }
 0x17c   : > { %v2069_v52 = vor.u32 %v2068_v47, %v2067_v45  ;;  %v9766_v9 = vsel %vm9688_vm14, %v8908_v6, %v1851_v37  ;;  %v9771_v53 = vor.u32 %v2056_v49, %v2055_v36  ;;  %vm2073_vm3 = vcmp.lt.s32.totalorder %v16786_v15, 4 }
 0x17d   : > { %v1980_v62 = vsel %vm1978_vm2, %v1979_v17, %v1975_v57  ;;  %v1856_v1 = vmul.f32 %v9766_v9, %v9766_v9  ;;  %vm2070_vm4 = vcmp.lt.s32.totalorder %v16786_v15, 1  ;;  %v2079_v5 = vsel %vm2073_vm3, %v2066_v7, 920167782 }
 0x17e   : > { %v1981_v27 = vadd.s32 %v1980_v62, %v1976_v29  ;;  %v9779_v12 = vand.u32 3, %v1872_v39  ;;  %v2082_v63 = vsel %vm2070_vm4, %v9756_v48, %v2063_v46  ;;  %v2083_v31 = vsel %vm2073_vm3, %v2069_v52, 1326507024 }
 0x17f   : > { %v9786_v35 = vshll.u32 %v2046_v54, 8  ;;  %v1857_v59 = vmul.f32 -0.001358992, %v1856_v1  ;;  %v1864_v38 = vmul.f32 -0.00019511016, %v1856_v1  ;;  %vm2072_vm5 = vcmp.lt.s32.totalorder %v16786_v15, 3 }
 0x180   : > { %v1982_v43 = vadd.s32 536870912, %v1981_v27  ;;  %vm2071_vm6 = vcmp.lt.s32.totalorder %v16786_v15, 2  ;;  %v2078_v39 = vsel %vm2070_vm4, %v9771_v53, %v9756_v48  ;;  %v2080_v8 = vsel %vm2072_vm5, %v2063_v46, %v2079_v5  ;;  %v16790_v15 = vld [vmem:[#allocation20_spill] sm:$0xff] }
 0x181   : > { %v2084_v58 = vsel %vm2072_vm5, %v2066_v7, %v2083_v31  ;;  %v1858_v41 = vadd.f32 0.041655596, %v1857_v59  ;;  %v1865_v25 = vadd.f32 0.008332121, %v1864_v38  ;;  %v2087_v33 = vand.u32 65535, %v9786_v35 }
 0x182   : > { %v9798_v3 = vshrl.u32 %v1982_v43, 30  ;;  %v2085_v54 = vsel %vm2071_vm6, %v2082_v63, %v2084_v58  ;;  %v2088_v16 = vshrl.u32 %v9786_v35, 16  ;;  %v2081_v20 = vsel %vm2071_vm6, %v2078_v39, %v2080_v8 }
 0x183   : > { %v2089_v56 = vand.u32 65535, %v2085_v54  ;;  %v2090_v57 = vshrl.u32 %v2085_v54, 16  ;;  %v1859_v49 = vmul.f32 %v1858_v41, %v1856_v1  ;;  %v1866_v4 = vmul.f32 %v1865_v25, %v1856_v1 }
 0x184   : > { %v1984_v18 = vshll.u32 %v9798_v3, 30  ;;  %v9809_v7 = vshrl.u32 %v1421_v40, 23  ;;  %v2054_v45 = vshrl.u32 %v16751_v22, %v16784_v11  ;;  %v2075_v52 = vsel %vm2073_vm3, %v2063_v46, 2102212464 }
 0x185   : > { %v2092_v47 = vmul.u32 %v2090_v57, %v2087_v33  ;;  %v9813_v17 = vmul.u32 %v2089_v56, %v2088_v16  ;;  %v1860_v36 = vadd.f32 -0.4999988, %v1859_v49  ;;  %v1867_v37 = vadd.f32 -0.16666654, %v1866_v4 }
 0x186   : > { %v9815_v29 = vsub.s32 %v1981_v27, %v1984_v18  ;;  %vm1875_vm7 = vcmp.eq.s32.totalorder %v9779_v12, 0  ;;  %vm1878_vm8 = vcmp.eq.s32.totalorder %v9779_v12, 2  ;;  %v2091_v62 = vmul.u32 %v2089_v56, %v2087_v33 }
 0x187   : > { %v2095_v40 = vshll.u32 %v2092_v47, 16  ;;  %v2111_v5 = vand.u32 65535, %v2081_v20  ;;  %v2112_v63 = vshrl.u32 %v2081_v20, 16  ;;  %v1861_v31 = vmul.f32 %v1860_v36, %v1856_v1 }
 0x188   : > { %v1868_v11 = vmul.f32 %v1867_v37, %v1856_v1  ;;  %vm1874_vm9 = vcmp.lt.s32.totalorder %v9779_v12, 2  ;;  %vm1986_vm10 = vcmp.lt.s32.totalorder %v9815_v29, 0  ;;  %v1987_v27 = vsub.s32 0, %v9815_v29 }
 0x189   : > { %vm1871_vm11 = vweird.f32 %v8908_v6  ;;  %v2094_v59 = vmul.u32 %v2090_v57, %v2088_v16  ;;  %v2097_v46 = vshll.u32 %v9813_v17, 16  ;;  %vm2099_vm12 = vc.u32 %v2091_v62, %v2095_v40 }
 0x18a   : > { %v2101_v38 = vadd.s32 %v2095_v40, %v2091_v62  ;;  %v1862_v43 = vadd.f32 1.0, %v1861_v31  ;;  %v1869_v39 = vadd.f32 1.0, %v1868_v11  ;;  %v1988_v8 = vsel %vm1986_vm10, %v1987_v27, %v9815_v29 }
 0x18b   : > { %v2100_v58 = vsel %vm2099_vm12, 1, %v16760_v21  ;;  %vm1119_vm13 = vcmp.gt.s32.totalorder %v9725_v50, 0  ;;  %vm1885_vm14 = vcmp.lt.s32.totalorder %v16777_v60, 0  ;;  %v1977_v1 = vadd.s32 %v9732_v26, %v9722_v51 }
 0x18c   : > { %v1989_v41 = vclz %v1988_v8  ;;  %v2102_v25 = vadd.s32 %v2100_v58, %v2094_v59  ;;  %vm2103_vm15 = vc.u32 %v2101_v38, %v2097_v46  ;;  %v1870_v54 = vmul.f32 %v1869_v39, %v9766_v9 }
 0x18d   : > { %v1879_v56 = vxor.u32 2147483648, %v1862_v43  ;;  %v2104_v57 = vsel %vm2103_vm15, 1, %v16760_v21  ;;  %v2114_v49 = vmul.u32 %v2112_v63, %v2087_v33  ;;  %v2074_v18 = vsel %vm2070_vm4, %v2054_v45, %v9771_v53 }
 0x18e   : > { %v8455_v4 = vadd.s32 4294967294, %v1989_v41  ;;  %v2076_v20 = vsel %vm2072_vm5, %v9756_v48, %v2075_v52  ;;  %v2113_v36 = vmul.u32 %v2111_v5, %v2087_v33  ;;  %v1876_v51 = vxor.u32 2147483648, %v1870_v54 }
 0x18f   : > { %v2007_v26 = vsub.s32 4, %v9798_v3  ;;  %v2106_v37 = vadd.s32 %v2104_v57, %v2102_v25  ;;  %v2115_v62 = vmul.u32 %v2111_v5, %v2088_v16  ;;  %v2096_v9 = vshrl.u32 %v2092_v47, 16 }
 0x190   : > { %vm8456_vm0 = vcmp.lt.s32.totalorder %v8455_v4, 0  ;;  %v2098_v40 = vshrl.u32 %v9813_v17, 16  ;;  %v2117_v31 = vshll.u32 %v2114_v49, 16  ;;  %v1877_v11 = vsel %vm1875_vm7, %v1862_v43, %v1876_v51 }
 0x191   : > { %v1880_v53 = vsel %vm1878_vm8, %v1879_v56, %v1870_v54  ;;  %v1992_v45 = vsel %vm8456_vm0, 0, %v8455_v4  ;;  %v2116_v27 = vmul.u32 %v2112_v63, %v2088_v16  ;;  %v2107_v59 = vadd.s32 %v2106_v37, %v2096_v9  ;;  %v16787_v63 = vld [vmem:[#allocation7_spill] sm:$0xff] }
 0x192   : > { %v1881_v48 = vsel %vm1874_vm9, %v1877_v11, %v1880_v53  ;;  %v1993_v33 = vsub.s32 32, %v1992_v45  ;;  %v1997_v52 = vsub.s32 4294967266, %v1992_v45  ;;  %v1994_v17 = vshll.u32 %v9815_v29, %v1992_v45 }
 0x193   : > { %v1882_v47 = vsel %vm1871_vm11, nan, %v1881_v48  ;;  %v2119_v5 = vshll.u32 %v2115_v62, 16  ;;  %vm2121_vm1 = vc.u32 %v2113_v36, %v2117_v31  ;;  %v2123_v39 = vadd.s32 %v2117_v31, %v2113_v36 }
 0x194   : > { %3022 = vmatpush.msra.mxu0 %v1882_v47  ;;  %v1995_v46 = vshrl.u32 %v1977_v1, %v1993_v33  ;;  %v1998_v38 = vadd.s32 127, %v1997_v52  ;;  %v2122_v43 = vsel %vm2121_vm1, 1, %v16760_v21  ;;  %v9854_v12 = vshrl.u32 %v1576_v2, 23 }
 0x195   : > { %v2008_v16 = vsel %vm1885_vm14, %v2007_v26, %v9798_v3  ;;  %v2124_v6 = vadd.s32 %v2122_v43, %v2116_v27  ;;  %v2193_v8 = vand.u32 2147483647, %v16787_v63  ;;  %v9860_v41 = vadd.s32 %v2107_v59, %v2098_v40 }
 0x196   : > { %v1996_v29 = vor.u32 %v1995_v46, %v1994_v17  ;;  %v1999_v58 = vshll.u32 %v1998_v38, 23  ;;  %vm2125_vm2 = vc.u32 %v2123_v39, %v2119_v5  ;;  %v9865_v1 = vsel %vm1119_vm13, %v9725_v50, 0 }
 0x197   : > { %vm9869_vm3 = vcmp.le.f32.partialorder %v1883_v42, 0.7853982  ;;  %v2077_v3 = vsel %vm2071_vm6, %v2074_v18, %v2076_v20  ;;  %v2126_v25 = vsel %vm2125_vm2, 1, %v16760_v21  ;;  %v2118_v56 = vshrl.u32 %v2114_v49, 16  ;;  %v16791_v49 = vld [vmem:[#allocation18_spill] sm:$0xff] }
 0x198   : > { %v2000_v54 = vor.u32 4788187, %v1999_v58  ;;  %v9876_v57 = vadd.s32 %v2123_v39, %v2119_v5  ;;  %v2128_v4 = vadd.s32 %v2126_v25, %v2124_v6  ;;  %v2003_v36 = vcvt.s32.f32 %v1996_v29 }
 0x199   : > { %v2010_v50 = vsel %vm9869_vm3, 0, %v2008_v16  ;;  %v2120_v51 = vshrl.u32 %v2115_v62, 16  ;;  %v2200_v42 = vand.u32 8388607, %v2193_v8  ;;  %v2211_v18 = vshrl.u32 %v16752_v44, %v16790_v15 }
 0x19a   : > { %v2001_v26 = vand.u32 2147483647, %v2000_v54  ;;  %v2129_v37 = vadd.s32 %v2128_v4, %v2118_v56  ;;  %vm2133_vm4 = vc.u32 %v9860_v41, %v9876_v57  ;;  %v2213_v20 = vshll.u32 %v16752_v44, %v16791_v49  ;;  %v16792_v56 = vld [vmem:[#allocation17_spill] sm:$0xff] }
 0x19b   : > { %v2214_v9 = vshrl.u32 %v16753_v55, %v16790_v15  ;;  %v2216_v62 = vshll.u32 %v16753_v55, %v16791_v49  ;;  %v2217_v40 = vshrl.u32 %v16754_v14, %v16790_v15  ;;  %vm1274_vm5 = vcmp.gt.s32.totalorder %v9758_v19, 0 }
 0x19c   : > { %v2004_v31 = vmul.f32 %v2003_v36, %v2001_v26  ;;  %v2130_v11 = vadd.s32 %v2129_v37, %v2120_v51  ;;  %v2219_v53 = vshll.u32 %v16754_v14, %v16791_v49  ;;  %v2220_v45 = vshrl.u32 %v16755_v34, %v16790_v15 }
 0x19d   : > { %v2210_v27 = vshll.u32 %v16751_v22, %v16791_v49  ;;  %v9901_v48 = vor.u32 %v2214_v9, %v2213_v20  ;;  %v2222_v33 = vshll.u32 %v16755_v34, %v16791_v49  ;;  %v2223_v52 = vshrl.u32 %v16756_v0, %v16790_v15 }
 0x19e   : > { %v2005_v59 = vxor.u32 2147483648, %v2004_v31  ;;  %v2134_v47 = vadd.s32 1, %v2130_v11  ;;  %v9907_v17 = vor.u32 %v2217_v40, %v2216_v62  ;;  %v2221_v5 = vor.u32 %v2220_v45, %v2219_v53 }
 0x19f   : > { %v9910_v46 = vand.u32 31, %v9865_v1  ;;  %v2131_v38 = vmul.u32 %v9786_v35, %v2077_v3  ;;  %v2201_v43 = vor.u32 8388608, %v2200_v42  ;;  %v2224_v39 = vor.u32 %v2223_v52, %v2222_v33 }
 0x1a0   : > { %v2006_v16 = vsel %vm1885_vm14, %v2005_v59, %v2004_v31  ;;  %v2027_v6 = vadd.s32 3, %v2010_v50  ;;  %v2135_v29 = vsel %vm2133_vm4, %v2134_v47, %v2130_v11  ;;  %v9918_v58 = vor.u32 %v2211_v18, %v2210_v27 }
 0x1a1   : > { %v9923_v25 = vsel %vm9869_vm3, %v16777_v60, %v2006_v16  ;;  %v2136_v54 = vadd.s32 %v2135_v29, %v2131_v38  ;;  %vm2225_vm6 = vcmp.lt.s32.totalorder %v16792_v56, 1  ;;  %vm2228_vm7 = vcmp.lt.s32.totalorder %v16792_v56, 4 }
 0x1a2   : > { %v2011_v35 = vmul.f32 %v9923_v25, %v9923_v25  ;;  %vm2226_vm8 = vcmp.lt.s32.totalorder %v16792_v56, 2  ;;  %v2234_v3 = vsel %vm2228_vm7, %v2221_v5, 920167782  ;;  %v2237_v2 = vsel %vm2225_vm6, %v9901_v48, %v9907_v17 }
 0x1a3   : > { %v2137_v4 = vadd.s32 536870912, %v2136_v54  ;;  %vm2227_vm9 = vcmp.lt.s32.totalorder %v16792_v56, 3  ;;  %v2238_v36 = vsel %vm2228_vm7, %v2224_v39, 1326507024  ;;  %v9939_v50 = vshll.u32 %v2201_v43, 8 }
 0x1a4   : > { %v2012_v51 = vmul.f32 -0.001358992, %v2011_v35  ;;  %v2019_v42 = vmul.f32 -0.00019511016, %v2011_v35  ;;  %v2233_v26 = vsel %vm2225_vm6, %v9918_v58, %v9901_v48  ;;  %v2239_v37 = vsel %vm2227_vm9, %v2221_v5, %v2238_v36 }
 0x1a5   : > { %v2138_v18 = vshrl.u32 %v2137_v4, 30  ;;  %v2235_v49 = vsel %vm2227_vm9, %v9907_v17, %v2234_v3  ;;  %v2240_v20 = vsel %vm2226_vm8, %v2237_v2, %v2239_v37  ;;  %v2242_v9 = vand.u32 65535, %v9939_v50 }
 0x1a6   : > { %v2013_v62 = vadd.f32 0.041655596, %v2012_v51  ;;  %v2020_v40 = vadd.f32 0.008332121, %v2019_v42  ;;  %v2244_v31 = vand.u32 65535, %v2240_v20  ;;  %v2245_v11 = vshrl.u32 %v2240_v20, 16 }
 0x1a7   : > { %v9956_v53 = vsel %vm1274_vm5, %v9758_v19, 0  ;;  %v2028_v45 = vand.u32 3, %v2027_v6  ;;  %v2139_v27 = vshll.u32 %v2138_v18, 30  ;;  %v2243_v33 = vshrl.u32 %v9939_v50, 16 }
 0x1a8   : > { %v9960_v52 = vadd.s32 4294967169, %v9809_v7  ;;  %v2014_v59 = vmul.f32 %v2013_v62, %v2011_v35  ;;  %v2021_v47 = vmul.f32 %v2020_v40, %v2011_v35  ;;  %v2247_v5 = vmul.u32 %v2245_v11, %v2242_v9 }
 0x1a9   : > { %v9963_v38 = vsub.s32 32, %v9910_v46  ;;  %v9965_v43 = vsub.s32 %v2136_v54, %v2139_v27  ;;  %v2236_v39 = vsel %vm2226_vm8, %v2233_v26, %v2235_v49  ;;  %v9969_v19 = vmul.u32 %v2244_v31, %v2243_v33 }
 0x1aa   : > { %v2015_v16 = vadd.f32 -0.4999988, %v2014_v59  ;;  %v2022_v6 = vadd.f32 -0.16666654, %v2021_v47  ;;  %vm2040_vm10 = vcmp.lt.s32.totalorder %v16783_v10, 0  ;;  %v2250_v29 = vshll.u32 %v2247_v5, 16 }
 0x1ab   : > { %vm2030_vm11 = vcmp.eq.s32.totalorder %v2028_v45, 0  ;;  %vm2033_vm12 = vcmp.eq.s32.totalorder %v2028_v45, 2  ;;  %vm2141_vm13 = vcmp.lt.s32.totalorder %v9965_v43, 0  ;;  %v2142_v7 = vsub.s32 0, %v9965_v43 }
 0x1ac   : > { %v2162_v3 = vsub.s32 4, %v2138_v18  ;;  %v2246_v2 = vmul.u32 %v2244_v31, %v2242_v9  ;;  %v2016_v54 = vmul.f32 %v2015_v16, %v2011_v35  ;;  %v2023_v4 = vmul.f32 %v2022_v6, %v2011_v35 }
 0x1ad   : > { %vm2029_vm14 = vcmp.lt.s32.totalorder %v2028_v45, 2  ;;  %v2249_v36 = vmul.u32 %v2245_v11, %v2243_v33  ;;  %v2267_v51 = vshrl.u32 %v2236_v39, 16  ;;  %vm2026_vm15 = vweird.f32 %v16777_v60 }
 0x1ae   : > { %v2143_v42 = vsel %vm2141_vm13, %v2142_v7, %v9965_v43  ;;  %v2252_v26 = vshll.u32 %v9969_v19, 16  ;;  %vm2254_vm0 = vc.u32 %v2246_v2, %v2250_v29  ;;  %v2256_v37 = vadd.s32 %v2250_v29, %v2246_v2 }
 0x1af   : > { %v2017_v49 = vadd.f32 1.0, %v2016_v54  ;;  %v2024_v20 = vadd.f32 1.0, %v2023_v4  ;;  %v2144_v62 = vclz %v2143_v42  ;;  %v2255_v40 = vsel %vm2254_vm0, 1, %v16760_v21 }
 0x1b0   : > { %v2132_v31 = vadd.s32 %v9876_v57, %v9860_v41  ;;  %v2209_v35 = vshrl.u32 %v16751_v22, %v16790_v15  ;;  %v2257_v11 = vadd.s32 %v2255_v40, %v2249_v36  ;;  %v2266_v27 = vand.u32 65535, %v2236_v39 }
 0x1b1   : > { %v2025_v59 = vmul.f32 %v2024_v20, %v9923_v25  ;;  %v2034_v47 = vxor.u32 2147483648, %v2017_v49  ;;  %vm9985_vm1 = vcmp.le.f32.partialorder %v2038_v30, 0.7853982  ;;  %v8458_v6 = vadd.s32 4294967294, %v2144_v62 }
 0x1b2   : > { %vm2258_vm2 = vc.u32 %v2256_v37, %v2252_v26  ;;  %v2163_v29 = vsel %vm2040_vm10, %v2162_v3, %v2138_v18  ;;  %v2230_v41 = vsel %vm2228_vm7, %v9907_v17, 2102212464  ;;  %v2269_v15 = vmul.u32 %v2267_v51, %v2242_v9 }
 0x1b3   : > { %v2259_v57 = vsel %vm2258_vm2, 1, %v16760_v21  ;;  %v2031_v25 = vxor.u32 2147483648, %v2025_v59  ;;  %vm8459_vm3 = vcmp.lt.s32.totalorder %v8458_v6, 0  ;;  %v2251_v39 = vshrl.u32 %v2247_v5, 16 }
 0x1b4   : > { %v2261_v7 = vadd.s32 %v2259_v57, %v2257_v11  ;;  %v2147_v30 = vsel %vm8459_vm3, 0, %v8458_v6  ;;  %v2268_v2 = vmul.u32 %v2266_v27, %v2242_v9  ;;  %v2270_v54 = vmul.u32 %v2266_v27, %v2243_v33 }
 0x1b5   : > { %v2272_v4 = vshll.u32 %v2269_v15, 16  ;;  %v2032_v36 = vsel %vm2030_vm11, %v2017_v49, %v2031_v25  ;;  %v2035_v42 = vsel %vm2033_vm12, %v2034_v47, %v2025_v59  ;;  %v2148_v18 = vsub.s32 32, %v2147_v30 }
 0x1b6   : > { %v2152_v3 = vsub.s32 4294967266, %v2147_v30  ;;  %v2036_v26 = vsel %vm2029_vm14, %v2032_v36, %v2035_v42  ;;  %v2149_v17 = vshll.u32 %v9965_v43, %v2147_v30  ;;  %v2262_v37 = vadd.s32 %v2261_v7, %v2251_v39 }
 0x1b7   : > { %v2271_v20 = vmul.u32 %v2267_v51, %v2243_v33  ;;  %v2037_v5 = vsel %vm2026_vm15, nan, %v2036_v26  ;;  %v2150_v62 = vshrl.u32 %v2132_v31, %v2148_v18  ;;  %vm2276_vm4 = vc.u32 %v2268_v2, %v2272_v4 }
 0x1b8   : > { %v2153_v40 = vadd.s32 127, %v2152_v3  ;;  %3051 = vmatpush.msra.mxu1 %v2037_v5  ;;  %v2253_v9 = vshrl.u32 %v9969_v19, 16  ;;  %v2274_v49 = vshll.u32 %v2270_v54, 16  ;;  %v2277_v11 = vsel %vm2276_vm4, 1, %v16760_v21 }
 0x1b9   : > { %v2278_v27 = vadd.s32 %v2272_v4, %v2268_v2  ;;  %v2151_v59 = vor.u32 %v2150_v62, %v2149_v17  ;;  %v2229_v43 = vsel %vm2225_vm6, %v2209_v35, %v9918_v58  ;;  %v2279_v33 = vadd.s32 %v2277_v11, %v2271_v20 }
 0x1ba   : > { %v2154_v45 = vshll.u32 %v2153_v40, 23  ;;  %v2165_v60 = vsel %vm9985_vm1, 0, %v2163_v29  ;;  %v2231_v51 = vsel %vm2227_vm9, %v9901_v48, %v2230_v41  ;;  %v10011_v31 = vadd.s32 %v2262_v37, %v2253_v9 }
 0x1bb   : > { %vm2280_vm5 = vc.u32 %v2278_v27, %v2274_v49  ;;  %v10014_v19 = vshrl.u32 %v9865_v1, 5  ;;  %v1108_v57 = vand.u32 2147483647, %v8943_v13  ;;  %v10019_v58 = vand.u32 31, %v9956_v53 }
 0x1bc   : > { %v2155_v47 = vor.u32 4788187, %v2154_v45  ;;  %v2281_v6 = vsel %vm2280_vm5, 1, %v16760_v21  ;;  %v2273_v35 = vshrl.u32 %v2269_v15, 16  ;;  %v10021_v29 = vadd.s32 %v2278_v27, %v2274_v49 }
 0x1bd   : > { %v2283_v25 = vadd.s32 %v2281_v6, %v2279_v33  ;;  %v2158_v48 = vcvt.s32.f32 %v2151_v59  ;;  %v2182_v41 = vadd.s32 3, %v2165_v60  ;;  %v2232_v7 = vsel %vm2226_vm8, %v2229_v43, %v2231_v51 }
 0x1be   : > { %v2156_v39 = vand.u32 2147483647, %v2155_v47  ;;  %v2275_v1 = vshrl.u32 %v2270_v54, 16  ;;  %vm2288_vm6 = vc.u32 %v10011_v31, %v10021_v29  ;;  %v1129_v2 = vshrl.u32 %v16753_v55, %v9963_v38 }
 0x1bf   : > { %v2284_v30 = vadd.s32 %v2283_v25, %v2273_v35  ;;  %v1115_v15 = vand.u32 8388607, %v1108_v57  ;;  %v1126_v36 = vshrl.u32 %v16752_v44, %v9963_v38  ;;  %v1132_v42 = vshrl.u32 %v16754_v14, %v9963_v38 }
 0x1c0   : > { %v2159_v4 = vmul.f32 %v2158_v48, %v2156_v39  ;;  %v1128_v54 = vshll.u32 %v16752_v44, %v9910_v46  ;;  %v1131_v18 = vshll.u32 %v16753_v55, %v9910_v46  ;;  %v1135_v3 = vshrl.u32 %v16755_v34, %v9963_v38 }
 0x1c1   : > { %v2285_v56 = vadd.s32 %v2284_v30, %v2275_v1  ;;  %v1125_v17 = vshll.u32 %v16751_v22, %v9910_v46  ;;  %v1137_v37 = vshll.u32 %v16755_v34, %v9910_v46  ;;  %v1138_v20 = vshrl.u32 %v16756_v0, %v9963_v38 }
 0x1c2   : > { %v2160_v26 = vxor.u32 2147483648, %v2159_v4  ;;  %v10047_v62 = vor.u32 %v1129_v2, %v1128_v54  ;;  %v10049_v40 = vor.u32 %v1132_v42, %v1131_v18  ;;  %v1134_v9 = vshll.u32 %v16754_v14, %v9910_v46 }
 0x1c3   : > { %v2289_v5 = vadd.s32 1, %v2285_v56  ;;  %v2286_v11 = vmul.u32 %v9939_v50, %v2232_v7  ;;  %v1116_v27 = vor.u32 8388608, %v1115_v15  ;;  %v1139_v59 = vor.u32 %v1138_v20, %v1137_v37 }
 0x1c4   : > { %v2161_v49 = vsel %vm2040_vm10, %v2160_v26, %v2159_v4  ;;  %v10064_v33 = vor.u32 %v1126_v36, %v1125_v17  ;;  %v1136_v60 = vor.u32 %v1135_v3, %v1134_v9  ;;  %vm1140_vm7 = vcmp.lt.s32.totalorder %v10014_v19, 1 }
 0x1c5   : > { %v10059_v45 = vsel %vm9985_vm1, %v16783_v10, %v2161_v49  ;;  %v2290_v43 = vsel %vm2288_vm6, %v2289_v5, %v2285_v56  ;;  %vm1143_vm8 = vcmp.lt.s32.totalorder %v10014_v19, 4  ;;  %v10070_v50 = vand.u32 3, %v2182_v41 }
 0x1c6   : > { %v2166_v46 = vmul.f32 %v10059_v45, %v10059_v45  ;;  %v2291_v51 = vadd.s32 %v2290_v43, %v2286_v11  ;;  %vm1141_vm9 = vcmp.lt.s32.totalorder %v10014_v19, 2  ;;  %v1152_v16 = vsel %vm1140_vm7, %v10047_v62, %v10049_v40 }
 0x1c7   : > { %v1153_v47 = vsel %vm1143_vm8, %v1139_v59, 1326507024  ;;  %vm1142_vm10 = vcmp.lt.s32.totalorder %v10014_v19, 3  ;;  %v1148_v39 = vsel %vm1140_vm7, %v10064_v33, %v10047_v62  ;;  %v1149_v48 = vsel %vm1143_vm8, %v1136_v60, 920167782 }
 0x1c8   : > { %v2167_v6 = vmul.f32 -0.001358992, %v2166_v46  ;;  %v2174_v35 = vmul.f32 -0.00019511016, %v2166_v46  ;;  %v2292_v25 = vadd.s32 536870912, %v2291_v51  ;;  %v1154_v41 = vsel %vm1142_vm10, %v1136_v60, %v1153_v47 }
 0x1c9   : > { %v10088_v7 = vshll.u32 %v1116_v27, 8  ;;  %v1155_v4 = vsel %vm1141_vm9, %v1152_v16, %v1154_v41  ;;  %v1150_v26 = vsel %vm1142_vm10, %v10049_v40, %v1149_v48  ;;  %v10105_v17 = vadd.s32 1, %v9960_v52 }
 0x1ca   : > { %v2168_v1 = vadd.f32 0.041655596, %v2167_v6  ;;  %v2175_v30 = vadd.f32 0.008332121, %v2174_v35  ;;  %v10090_v2 = vshrl.u32 %v2292_v25, 30  ;;  %v1159_v42 = vand.u32 65535, %v1155_v4 }
 0x1cb   : > { %v10095_v15 = vand.u32 65535, %v10088_v7  ;;  %v10098_v36 = vshrl.u32 %v10088_v7, 16  ;;  %v1160_v56 = vshrl.u32 %v1155_v4, 16  ;;  %v10108_v37 = vadd.s32 4294967169, %v9854_v12 }
 0x1cc   : > { %v2169_v54 = vmul.f32 %v2168_v1, %v2166_v46  ;;  %v2176_v18 = vmul.f32 %v2175_v30, %v2166_v46  ;;  %v2294_v3 = vshll.u32 %v10090_v2, 30  ;;  %v10115_v9 = vsub.s32 32, %v10019_v58 }
 0x1cd   : > { %v1162_v20 = vmul.u32 %v1160_v56, %v10095_v15  ;;  %v10112_v5 = vmul.u32 %v1159_v42, %v10098_v36  ;;  %vm2185_vm11 = vcmp.eq.s32.totalorder %v10070_v50, 0  ;;  %v1124_v52 = vshrl.u32 %v16751_v22, %v9963_v38 }
 0x1ce   : > { %v2170_v49 = vadd.f32 -0.4999988, %v2169_v54  ;;  %v2177_v11 = vadd.f32 -0.16666654, %v2176_v18  ;;  %v10117_v27 = vsub.s32 %v2291_v51, %v2294_v3  ;;  %v1151_v12 = vsel %vm1141_vm9, %v1148_v39, %v1150_v26 }
 0x1cf   : > { %v1161_v59 = vmul.u32 %v1159_v42, %v10095_v15  ;;  %v1165_v43 = vshll.u32 %v1162_v20, 16  ;;  %vm2184_vm12 = vcmp.lt.s32.totalorder %v10070_v50, 2  ;;  %vm2195_vm13 = vcmp.lt.s32.totalorder %v16787_v63, 0 }
 0x1d0   : > { %v2171_v60 = vmul.f32 %v2170_v49, %v2166_v46  ;;  %v2178_v16 = vmul.f32 %v2177_v11, %v2166_v46  ;;  %vm2296_vm14 = vcmp.lt.s32.totalorder %v10117_v27, 0  ;;  %v2297_v51 = vsub.s32 0, %v10117_v27 }
 0x1d1   : > { %vm2181_vm15 = vweird.f32 %v16783_v10  ;;  %v1164_v38 = vmul.u32 %v1160_v56, %v10098_v36  ;;  %v1167_v47 = vshll.u32 %v10112_v5, 16  ;;  %vm1169_vm0 = vc.u32 %v1161_v59, %v1165_v43 }
 0x1d2   : > { %v1171_v6 = vadd.s32 %v1165_v43, %v1161_v59  ;;  %v2172_v35 = vadd.f32 1.0, %v2171_v60  ;;  %v2179_v25 = vadd.f32 1.0, %v2178_v16  ;;  %v2298_v46 = vsel %vm2296_vm14, %v2297_v51, %v10117_v27 }
 0x1d3   : > { %v1170_v39 = vsel %vm1169_vm0, 1, %v16760_v21  ;;  %v2299_v48 = vclz %v2298_v46  ;;  %v1145_v41 = vsel %vm1143_vm8, %v10049_v40, 2102212464  ;;  %vm1429_vm2 = vcmp.gt.s32.totalorder %v10105_v17, 0 }
 0x1d4   : > { %v1172_v1 = vadd.s32 %v1170_v39, %v1164_v38  ;;  %vm1173_vm1 = vc.u32 %v1171_v6, %v1167_v47  ;;  %v2180_v30 = vmul.f32 %v2179_v25, %v10059_v45  ;;  %v2189_v4 = vxor.u32 2147483648, %v2172_v35 }
 0x1d5   : > { %vm10141_vm3 = vcmp.le.f32.partialorder %v2193_v8, 0.7853982  ;;  %v1174_v56 = vsel %vm1173_vm1, 1, %v16760_v21  ;;  %v1181_v54 = vand.u32 65535, %v1151_v12  ;;  %vm2188_vm4 = vcmp.eq.s32.totalorder %v10070_v50, 2 }
 0x1d6   : > { %v2287_v40 = vadd.s32 %v10021_v29, %v10011_v31  ;;  %v8461_v18 = vadd.s32 4294967294, %v2299_v48  ;;  %v2317_v3 = vsub.s32 4, %v10090_v2  ;;  %v2186_v26 = vxor.u32 2147483648, %v2180_v30 }
 0x1d7   : > { %v1144_v45 = vsel %vm1140_vm7, %v1124_v52, %v10064_v33  ;;  %v1176_v8 = vadd.s32 %v1174_v56, %v1172_v1  ;;  %v1182_v49 = vshrl.u32 %v1151_v12, 16  ;;  %v2190_v11 = vsel %vm2188_vm4, %v2189_v4, %v2180_v30 }
 0x1d8   : > { %vm8462_vm5 = vcmp.lt.s32.totalorder %v8461_v18, 0  ;;  %v1146_v59 = vsel %vm1142_vm10, %v10047_v62, %v1145_v41  ;;  %v1166_v43 = vshrl.u32 %v1162_v20, 16  ;;  %v2187_v31 = vsel %vm2185_vm11, %v2172_v35, %v2186_v26 }
 0x1d9   : > { %v2302_v29 = vsel %vm8462_vm5, 0, %v8461_v18  ;;  %v1184_v60 = vmul.u32 %v1182_v49, %v10095_v15  ;;  %v1185_v16 = vmul.u32 %v1181_v54, %v10098_v36  ;;  %v2191_v33 = vsel %vm2184_vm12, %v2187_v31, %v2190_v11 }
 0x1da   : > { %v2303_v52 = vsub.s32 32, %v2302_v29  ;;  %v2307_v12 = vsub.s32 4294967266, %v2302_v29  ;;  %v2318_v51 = vsel %vm2195_vm13, %v2317_v3, %v10090_v2  ;;  %v2192_v62 = vsel %vm2181_vm15, nan, %v2191_v33 }
 0x1db   : > { %v1177_v20 = vadd.s32 %v1176_v8, %v1166_v43  ;;  %v1183_v38 = vmul.u32 %v1181_v54, %v10095_v15  ;;  %v1187_v47 = vshll.u32 %v1184_v60, 16  ;;  %3080 = vmatpush.msra.mxu2 %v2192_v62  ;;  %v2304_v6 = vshll.u32 %v10117_v27, %v2302_v29 }
 0x1dc   : > { %v2305_v35 = vshrl.u32 %v2287_v40, %v2303_v52  ;;  %v2308_v25 = vadd.s32 127, %v2307_v12  ;;  %v1168_v50 = vshrl.u32 %v10112_v5, 16  ;;  %v1186_v46 = vmul.u32 %v1182_v49, %v10098_v36 }
 0x1dd   : > { %v1189_v39 = vshll.u32 %v1185_v16, 16  ;;  %vm1191_vm6 = vc.u32 %v1183_v38, %v1187_v47  ;;  %v1193_v48 = vadd.s32 %v1187_v47, %v1183_v38  ;;  %v2320_v10 = vsel %vm10141_vm3, 0, %v2318_v51 }
 0x1de   : > { %v2306_v2 = vor.u32 %v2305_v35, %v2304_v6  ;;  %v2309_v41 = vshll.u32 %v2308_v25, 23  ;;  %v1192_v15 = vsel %vm1191_vm6, 1, %v16760_v21  ;;  %v10174_v1 = vadd.s32 %v1177_v20, %v1168_v50 }
 0x1df   : > { %v1194_v30 = vadd.s32 %v1192_v15, %v1186_v46  ;;  %vm1195_vm7 = vc.u32 %v1193_v48, %v1189_v39  ;;  %v1263_v27 = vand.u32 2147483647, %v8945_v23  ;;  %v10178_v5 = vshrl.u32 %v9956_v53, 5 }
 0x1e0   : > { %v10183_v36 = vsel %vm1429_vm2, %v10105_v17, 0  ;;  %v2310_v4 = vor.u32 4788187, %v2309_v41  ;;  %v1196_v56 = vsel %vm1195_vm7, 1, %v16760_v21  ;;  %v1147_v54 = vsel %vm1141_vm9, %v1144_v45, %v1146_v59 }
 0x1e1   : > { %v1188_v40 = vshrl.u32 %v1184_v60, 16  ;;  %v10188_v18 = vadd.s32 %v1193_v48, %v1189_v39  ;;  %v1198_v3 = vadd.s32 %v1196_v56, %v1194_v30  ;;  %v2313_v8 = vcvt.s32.f32 %v2306_v2 }
 0x1e2   : > { %v2311_v26 = vand.u32 2147483647, %v2310_v4  ;;  %v2337_v49 = vadd.s32 3, %v2320_v10  ;;  %v1190_v53 = vshrl.u32 %v1185_v16, 16  ;;  %v1270_v17 = vand.u32 8388607, %v1263_v27 }
 0x1e3   : > { %v1199_v11 = vadd.s32 %v1198_v3, %v1188_v40  ;;  %vm1203_vm8 = vc.u32 %v10174_v1, %v10188_v18  ;;  %v1284_v43 = vshrl.u32 %v16753_v55, %v10115_v9  ;;  %v1281_v45 = vshrl.u32 %v16752_v44, %v10115_v9 }
 0x1e4   : > { %v2314_v19 = vmul.f32 %v2313_v8, %v2311_v26  ;;  %v1283_v59 = vshll.u32 %v16752_v44, %v10019_v58  ;;  %v1287_v31 = vshrl.u32 %v16754_v14, %v10115_v9  ;;  %v1286_v60 = vshll.u32 %v16753_v55, %v10019_v58 }
 0x1e5   : > { %v1200_v29 = vadd.s32 %v1199_v11, %v1190_v53  ;;  %v1289_v16 = vshll.u32 %v16754_v14, %v10019_v58  ;;  %v1290_v33 = vshrl.u32 %v16755_v34, %v10115_v9  ;;  %v1280_v12 = vshll.u32 %v16751_v22, %v10019_v58 }
 0x1e6   : > { %v2315_v52 = vxor.u32 2147483648, %v2314_v19  ;;  %v1292_v51 = vshll.u32 %v16755_v34, %v10019_v58  ;;  %v1293_v62 = vshrl.u32 %v16756_v0, %v10115_v9  ;;  %v10214_v38 = vor.u32 %v1284_v43, %v1283_v59 }
 0x1e7   : > { %v1204_v20 = vadd.s32 1, %v1200_v29  ;;  %v10216_v47 = vor.u32 %v1287_v31, %v1286_v60  ;;  %v1291_v6 = vor.u32 %v1290_v33, %v1289_v16  ;;  %v1201_v25 = vmul.u32 %v10088_v7, %v1147_v54 }
 0x1e8   : > { %v2316_v35 = vsel %vm2195_vm13, %v2315_v52, %v2314_v19  ;;  %v1271_v50 = vor.u32 8388608, %v1270_v17  ;;  %v1294_v46 = vor.u32 %v1293_v62, %v1292_v51  ;;  %v10229_v48 = vor.u32 %v1281_v45, %v1280_v12 }
 0x1e9   : > { %v10224_v58 = vsel %vm10141_vm3, %v16787_v63, %v2316_v35  ;;  %v1205_v39 = vsel %vm1203_vm8, %v1204_v20, %v1200_v29  ;;  %vm1298_vm9 = vcmp.lt.s32.totalorder %v10178_v5, 4  ;;  %vm1295_vm10 = vcmp.lt.s32.totalorder %v10178_v5, 1 }
 0x1ea   : > { %v2321_v2 = vmul.f32 %v10224_v58, %v10224_v58  ;;  %v1206_v41 = vadd.s32 %v1205_v39, %v1201_v25  ;;  %v1304_v7 = vsel %vm1298_vm9, %v1291_v6, 920167782  ;;  %v10237_v42 = vand.u32 3, %v2337_v49 }
 0x1eb   : > { %vm1296_vm11 = vcmp.lt.s32.totalorder %v10178_v5, 2  ;;  %v1307_v10 = vsel %vm1295_vm10, %v10214_v38, %v10216_v47  ;;  %v1308_v15 = vsel %vm1298_vm9, %v1294_v46, 1326507024  ;;  %vm1297_vm12 = vcmp.lt.s32.totalorder %v10178_v5, 3 }
 0x1ec   : > { %v2322_v30 = vmul.f32 -0.001358992, %v2321_v2  ;;  %v2329_v4 = vmul.f32 -0.00019511016, %v2321_v2  ;;  %v1207_v56 = vadd.s32 536870912, %v1206_v41  ;;  %v1303_v54 = vsel %vm1295_vm10, %v10229_v48, %v10214_v38 }
 0x1ed   : > { %v1305_v40 = vsel %vm1297_vm12, %v10216_v47, %v1304_v7  ;;  %v1309_v3 = vsel %vm1297_vm12, %v1291_v6, %v1308_v15  ;;  %v10256_v26 = vshll.u32 %v1271_v50, 8  ;;  %v10269_v16 = vand.u32 31, %v10183_v36 }
 0x1ee   : > { %v2323_v8 = vadd.f32 0.041655596, %v2322_v30  ;;  %v2330_v49 = vadd.f32 0.008332121, %v2329_v4  ;;  %v1208_v53 = vshrl.u32 %v1207_v56, 30  ;;  %v1310_v11 = vsel %vm1296_vm11, %v1307_v10, %v1309_v3 }
 0x1ef   : > { %v10261_v17 = vand.u32 65535, %v10256_v26  ;;  %v10264_v43 = vshrl.u32 %v10256_v26, 16  ;;  %v1314_v19 = vand.u32 65535, %v1310_v11  ;;  %v1315_v45 = vshrl.u32 %v1310_v11, 16 }
 0x1f0   : > { %v2324_v59 = vmul.f32 %v2323_v8, %v2321_v2  ;;  %v2331_v31 = vmul.f32 %v2330_v49, %v2321_v2  ;;  %v1209_v29 = vshll.u32 %v1208_v53, 30  ;;  %v1306_v60 = vsel %vm1296_vm11, %v1303_v54, %v1305_v40 }
 0x1f1   : > { %v10272_v33 = vadd.s32 1, %v10108_v37  ;;  %v1317_v52 = vmul.u32 %v1315_v45, %v10261_v17  ;;  %v10276_v12 = vmul.u32 %v1314_v19, %v10264_v43  ;;  %vm1110_vm13 = vcmp.lt.s32.totalorder %v8943_v13, 0 }
 0x1f2   : > { %v2325_v51 = vadd.f32 -0.4999988, %v2324_v59  ;;  %v2332_v62 = vadd.f32 -0.16666654, %v2331_v31  ;;  %v10279_v20 = vsub.s32 %v1206_v41, %v1209_v29  ;;  %vm2340_vm14 = vcmp.eq.s32.totalorder %v10237_v42, 0 }
 0x1f3   : > { %v1279_v6 = vshrl.u32 %v16751_v22, %v10115_v9  ;;  %v1316_v35 = vmul.u32 %v1314_v19, %v10261_v17  ;;  %v1320_v37 = vshll.u32 %v1317_v52, 16  ;;  %v1337_v25 = vshrl.u32 %v1306_v60, 16 }
 0x1f4   : > { %v2326_v50 = vmul.f32 %v2325_v51, %v2321_v2  ;;  %v2333_v46 = vmul.f32 %v2332_v62, %v2321_v2  ;;  %vm2339_vm15 = vcmp.lt.s32.totalorder %v10237_v42, 2  ;;  %vm1211_vm0 = vcmp.lt.s32.totalorder %v10279_v20, 0 }
 0x1f5   : > { %v1212_v39 = vsub.s32 0, %v10279_v20  ;;  %vm2336_vm1 = vweird.f32 %v16787_v63  ;;  %v1319_v41 = vmul.u32 %v1315_v45, %v10264_v43  ;;  %v1322_v7 = vshll.u32 %v10276_v12, 16 }
 0x1f6   : > { %vm1324_vm2 = vc.u32 %v1316_v35, %v1320_v37  ;;  %v1326_v9 = vadd.s32 %v1320_v37, %v1316_v35  ;;  %v2327_v10 = vadd.f32 1.0, %v2326_v50  ;;  %v2334_v15 = vadd.f32 1.0, %v2333_v46 }
 0x1f7   : > { %v1213_v30 = vsel %vm1211_vm0, %v1212_v39, %v10279_v20  ;;  %v1325_v2 = vsel %vm1324_vm2, 1, %v16760_v21  ;;  %v1232_v56 = vsub.s32 4, %v1208_v53  ;;  %v1336_v49 = vand.u32 65535, %v1306_v60 }
 0x1f8   : > { %v1214_v4 = vclz %v1213_v30  ;;  %v1327_v54 = vadd.s32 %v1325_v2, %v1319_v41  ;;  %vm1328_vm3 = vc.u32 %v1326_v9, %v1322_v7  ;;  %v2335_v40 = vmul.f32 %v2334_v15, %v10224_v58 }
 0x1f9   : > { %v2344_v3 = vxor.u32 2147483648, %v2327_v10  ;;  %v1329_v8 = vsel %vm1328_vm3, 1, %v16760_v21  ;;  %vm2343_vm4 = vcmp.eq.s32.totalorder %v10237_v42, 2  ;;  %vm10298_vm5 = vcmp.le.f32.partialorder %v1108_v57, 0.7853982 }
 0x1fa   : > { %v1202_v19 = vadd.s32 %v10188_v18, %v10174_v1  ;;  %v8440_v45 = vadd.s32 4294967294, %v1214_v4  ;;  %v1299_v58 = vsel %vm1295_vm10, %v1279_v6, %v10229_v48  ;;  %v2341_v59 = vxor.u32 2147483648, %v2335_v40 }
 0x1fb   : > { %v1300_v31 = vsel %vm1298_vm9, %v10216_v47, 2102212464  ;;  %v1331_v29 = vadd.s32 %v1329_v8, %v1327_v54  ;;  %v1339_v60 = vmul.u32 %v1337_v25, %v10261_v17  ;;  %v2345_v57 = vsel %vm2343_vm4, %v2344_v3, %v2335_v40 }
 0x1fc   : > { %vm8441_vm6 = vcmp.lt.s32.totalorder %v8440_v45, 0  ;;  %v1233_v51 = vsel %vm1110_vm13, %v1232_v56, %v1208_v53  ;;  %v1321_v62 = vshrl.u32 %v1317_v52, 16  ;;  %v2342_v1 = vsel %vm2340_vm14, %v2327_v10, %v2341_v59 }
 0x1fd   : > { %v1217_v18 = vsel %vm8441_vm6, 0, %v8440_v45  ;;  %v1340_v48 = vmul.u32 %v1336_v49, %v10264_v43  ;;  %v1342_v6 = vshll.u32 %v1339_v60, 16  ;;  %v2346_v35 = vsel %vm2339_vm15, %v2342_v1, %v2345_v57 }
 0x1fe   : > { %v1218_v47 = vsub.s32 32, %v1217_v18  ;;  %v1222_v37 = vsub.s32 4294967266, %v1217_v18  ;;  %v1338_v50 = vmul.u32 %v1336_v49, %v10261_v17  ;;  %v2347_v46 = vsel %vm2336_vm1, nan, %v2346_v35 }
 0x1ff   : > { %v1323_v53 = vshrl.u32 %v10276_v12, 16  ;;  %v1332_v52 = vadd.s32 %v1331_v29, %v1321_v62  ;;  %v1341_v39 = vmul.u32 %v1337_v25, %v10264_v43  ;;  %3109 = vmatpush.msra.mxu3 %v2347_v46  ;;  %v1219_v41 = vshll.u32 %v10279_v20, %v1217_v18 }
 0x200   : > { %v1220_v7 = vshrl.u32 %v1202_v19, %v1218_v47  ;;  %v1223_v9 = vadd.s32 127, %v1222_v37  ;;  %vm1346_vm7 = vc.u32 %v1338_v50, %v1342_v6  ;;  %vm1584_vm8 = vcmp.gt.s32.totalorder %v10272_v33, 0 }
 0x201   : > { %v1344_v42 = vshll.u32 %v1340_v48, 16  ;;  %v1347_v10 = vsel %vm1346_vm7, 1, %v16760_v21  ;;  %v1348_v17 = vadd.s32 %v1342_v6, %v1338_v50  ;;  %v1418_v63 = vand.u32 2147483647, %v8949_v24 }
 0x202   : > { %v1221_v15 = vor.u32 %v1220_v7, %v1219_v41  ;;  %v1224_v30 = vshll.u32 %v1223_v9, 23  ;;  %v1301_v43 = vsel %vm1297_vm12, %v10214_v38, %v1300_v31  ;;  %v1349_v12 = vadd.s32 %v1347_v10, %v1341_v39 }
 0x203   : > { %v10331_v20 = vsub.s32 32, %v10269_v16  ;;  %v1235_v25 = vsel %vm10298_vm5, 0, %v1233_v51  ;;  %v10335_v2 = vadd.s32 %v1332_v52, %v1323_v53  ;;  %vm1350_vm9 = vc.u32 %v1348_v17, %v1344_v42 }
 0x204   : > { %v10338_v4 = vshrl.u32 %v10183_v36, 5  ;;  %v1225_v56 = vor.u32 4788187, %v1224_v30  ;;  %v1351_v54 = vsel %vm1350_vm9, 1, %v16760_v21  ;;  %v1425_v40 = vand.u32 8388607, %v1418_v63 }
 0x205   : > { %v1302_v38 = vsel %vm1296_vm11, %v1299_v58, %v1301_v43  ;;  %v1343_v3 = vshrl.u32 %v1339_v60, 16  ;;  %v10345_v8 = vadd.s32 %v1348_v17, %v1344_v42  ;;  %v1353_v49 = vadd.s32 %v1351_v54, %v1349_v12 }
 0x206   : > { %v1226_v19 = vand.u32 2147483647, %v1225_v56  ;;  %v1228_v45 = vcvt.s32.f32 %v1221_v15  ;;  %v1252_v59 = vadd.s32 3, %v1235_v25  ;;  %v1345_v31 = vshrl.u32 %v1340_v48, 16 }
 0x207   : > { %v1354_v29 = vadd.s32 %v1353_v49, %v1343_v3  ;;  %vm1358_vm10 = vc.u32 %v10335_v2, %v10345_v8  ;;  %v1439_v36 = vshrl.u32 %v16753_v55, %v10331_v20  ;;  %v1442_v57 = vshrl.u32 %v16754_v14, %v10331_v20 }
 0x208   : > { %v1229_v5 = vmul.f32 %v1228_v45, %v1226_v19  ;;  %v1426_v58 = vor.u32 8388608, %v1425_v40  ;;  %v1444_v60 = vshll.u32 %v16754_v14, %v10269_v16  ;;  %v1445_v51 = vshrl.u32 %v16755_v34, %v10331_v20 }
 0x209   : > { %v1355_v62 = vadd.s32 %v1354_v29, %v1345_v31  ;;  %v1436_v1 = vshrl.u32 %v16752_v44, %v10331_v20  ;;  %v1438_v18 = vshll.u32 %v16752_v44, %v10269_v16  ;;  %v1441_v48 = vshll.u32 %v16753_v55, %v10269_v16 }
 0x20a   : > { %v1230_v6 = vxor.u32 2147483648, %v1229_v5  ;;  %v1446_v35 = vor.u32 %v1445_v51, %v1444_v60  ;;  %v1447_v47 = vshll.u32 %v16755_v34, %v10269_v16  ;;  %v1448_v37 = vshrl.u32 %v16756_v0, %v10331_v20 }
 0x20b   : > { %v1359_v50 = vadd.s32 1, %v1355_v62  ;;  %v1435_v46 = vshll.u32 %v16751_v22, %v10269_v16  ;;  %v10369_v53 = vor.u32 %v1439_v36, %v1438_v18  ;;  %v1443_v52 = vor.u32 %v1442_v57, %v1441_v48 }
 0x20c   : > { %v10374_v39 = vsel %vm1584_vm8, %v10272_v33, 0  ;;  %v1231_v41 = vsel %vm1110_vm13, %v1230_v6, %v1229_v5  ;;  %v1356_v7 = vmul.u32 %v10256_v26, %v1302_v38  ;;  %v1449_v9 = vor.u32 %v1448_v37, %v1447_v47 }
 0x20d   : > { %v10382_v42 = vsel %vm10298_vm5, %v8943_v13, %v1231_v41  ;;  %v1360_v16 = vsel %vm1358_vm10, %v1359_v50, %v1355_v62  ;;  %v10387_v10 = vor.u32 %v1436_v1, %v1435_v46  ;;  %vm1453_vm11 = vcmp.lt.s32.totalorder %v10338_v4, 4 }
 0x20e   : > { %v1236_v33 = vmul.f32 %v10382_v42, %v10382_v42  ;;  %v1361_v17 = vadd.s32 %v1360_v16, %v1356_v7  ;;  %vm1450_vm12 = vcmp.lt.s32.totalorder %v10338_v4, 1  ;;  %v1459_v26 = vsel %vm1453_vm11, %v1446_v35, 920167782 }
 0x20f   : > { %v10395_v11 = vand.u32 3, %v1252_v59  ;;  %v1462_v15 = vsel %vm1450_vm12, %v10369_v53, %v1443_v52  ;;  %v1463_v30 = vsel %vm1453_vm11, %v1449_v9, 1326507024  ;;  %v10402_v43 = vshll.u32 %v1426_v58, 8 }
 0x210   : > { %v1237_v12 = vmul.f32 -0.001358992, %v1236_v33  ;;  %v1244_v25 = vmul.f32 -0.00019511016, %v1236_v33  ;;  %v1362_v56 = vadd.s32 536870912, %v1361_v17  ;;  %vm1452_vm13 = vcmp.lt.s32.totalorder %v10338_v4, 3 }
 0x211   : > { %vm1451_vm14 = vcmp.lt.s32.totalorder %v10338_v4, 2  ;;  %v1458_v54 = vsel %vm1450_vm12, %v10387_v10, %v10369_v53  ;;  %v1460_v40 = vsel %vm1452_vm13, %v1443_v52, %v1459_v26  ;;  %v1464_v38 = vsel %vm1452_vm13, %v1446_v35, %v1463_v30 }
 0x212   : > { %v1238_v3 = vadd.f32 0.041655596, %v1237_v12  ;;  %v1245_v49 = vadd.f32 0.008332121, %v1244_v25  ;;  %v10414_v19 = vshrl.u32 %v1362_v56, 30  ;;  %v1465_v45 = vsel %vm1451_vm14, %v1462_v15, %v1464_v38 }
 0x213   : > { %v1467_v59 = vand.u32 65535, %v10402_v43  ;;  %v1468_v31 = vshrl.u32 %v10402_v43, 16  ;;  %v1469_v29 = vand.u32 65535, %v1465_v45  ;;  %v1470_v36 = vshrl.u32 %v1465_v45, 16 }
 0x214   : > { %v1239_v57 = vmul.f32 %v1238_v3, %v1236_v33  ;;  %v1246_v5 = vmul.f32 %v1245_v49, %v1236_v33  ;;  %v1364_v58 = vshll.u32 %v10414_v19, 30  ;;  %v1461_v60 = vsel %vm1451_vm14, %v1458_v54, %v1460_v40 }
 0x215   : > { %v10424_v51 = vand.u32 31, %v10374_v39  ;;  %v1434_v62 = vshrl.u32 %v16751_v22, %v10331_v20  ;;  %v1472_v1 = vmul.u32 %v1470_v36, %v1467_v59  ;;  %v10428_v18 = vmul.u32 %v1469_v29, %v1468_v31 }
 0x216   : > { %v1240_v48 = vadd.f32 -0.4999988, %v1239_v57  ;;  %v1247_v6 = vadd.f32 -0.16666654, %v1246_v5  ;;  %v10430_v35 = vsub.s32 %v1361_v17, %v1364_v58  ;;  %v1455_v47 = vsel %vm1453_vm11, %v1443_v52, 2102212464 }
 0x217   : > { %vm1255_vm15 = vcmp.eq.s32.totalorder %v10395_v11, 0  ;;  %vm1258_vm0 = vcmp.eq.s32.totalorder %v10395_v11, 2  ;;  %v1471_v37 = vmul.u32 %v1469_v29, %v1467_v59  ;;  %v1475_v50 = vshll.u32 %v1472_v1, 16 }
 0x218   : > { %v1491_v46 = vand.u32 65535, %v1461_v60  ;;  %v1492_v41 = vshrl.u32 %v1461_v60, 16  ;;  %v1241_v7 = vmul.f32 %v1240_v48, %v1236_v33  ;;  %v1248_v20 = vmul.f32 %v1247_v6, %v1236_v33 }
 0x219   : > { %vm1254_vm1 = vcmp.lt.s32.totalorder %v10395_v11, 2  ;;  %vm1366_vm2 = vcmp.lt.s32.totalorder %v10430_v35, 0  ;;  %v1367_v9 = vsub.s32 0, %v10430_v35  ;;  %vm1251_vm3 = vweird.f32 %v8943_v13 }
 0x21a   : > { %v1474_v16 = vmul.u32 %v1470_v36, %v1468_v31  ;;  %v1477_v52 = vshll.u32 %v10428_v18, 16  ;;  %vm1479_vm4 = vc.u32 %v1471_v37, %v1475_v50  ;;  %v1481_v17 = vadd.s32 %v1475_v50, %v1471_v37 }
 0x21b   : > { %v1242_v26 = vadd.f32 1.0, %v1241_v7  ;;  %v1249_v15 = vadd.f32 1.0, %v1248_v20  ;;  %v1368_v30 = vsel %vm1366_vm2, %v1367_v9, %v10430_v35  ;;  %v1480_v12 = vsel %vm1479_vm4, 1, %v16760_v21 }
 0x21c   : > { %vm1265_vm5 = vcmp.lt.s32.totalorder %v8945_v23, 0  ;;  %v1357_v33 = vadd.s32 %v10345_v8, %v10335_v2  ;;  %v1369_v25 = vclz %v1368_v30  ;;  %v1482_v56 = vadd.s32 %v1480_v12, %v1474_v16 }
 0x21d   : > { %vm1483_vm6 = vc.u32 %v1481_v17, %v1477_v52  ;;  %v1250_v54 = vmul.f32 %v1249_v15, %v10382_v42  ;;  %v1259_v40 = vxor.u32 2147483648, %v1242_v26  ;;  %v1494_v3 = vmul.u32 %v1492_v41, %v1467_v59 }
 0x21e   : > { %v1484_v38 = vsel %vm1483_vm6, 1, %v16760_v21  ;;  %v8443_v49 = vadd.s32 4294967294, %v1369_v25  ;;  %v1454_v45 = vsel %vm1450_vm12, %v1434_v62, %v10387_v10  ;;  %v1456_v29 = vsel %vm1452_vm13, %v10369_v53, %v1455_v47 }
 0x21f   : > { %v1493_v36 = vmul.u32 %v1491_v46, %v1467_v59  ;;  %v1256_v2 = vxor.u32 2147483648, %v1250_v54  ;;  %v1387_v8 = vsub.s32 4, %v10414_v19  ;;  %v1486_v57 = vadd.s32 %v1484_v38, %v1482_v56 }
 0x220   : > { %v1495_v5 = vmul.u32 %v1491_v46, %v1468_v31  ;;  %vm8444_vm7 = vcmp.lt.s32.totalorder %v8443_v49, 0  ;;  %v1476_v42 = vshrl.u32 %v1472_v1, 16  ;;  %v1478_v58 = vshrl.u32 %v10428_v18, 16 }
 0x221   : > { %v1497_v60 = vshll.u32 %v1494_v3, 16  ;;  %v1257_v48 = vsel %vm1255_vm15, %v1242_v26, %v1256_v2  ;;  %v1260_v10 = vsel %vm1258_vm0, %v1259_v40, %v1250_v54  ;;  %v1372_v62 = vsel %vm8444_vm7, 0, %v8443_v49 }
 0x222   : > { %v1496_v6 = vmul.u32 %v1492_v41, %v1468_v31  ;;  %v1261_v53 = vsel %vm1254_vm1, %v1257_v48, %v1260_v10  ;;  %v1373_v59 = vsub.s32 32, %v1372_v62  ;;  %v1377_v47 = vsub.s32 4294967266, %v1372_v62 }
 0x223   : > { %v1487_v37 = vadd.s32 %v1486_v57, %v1476_v42  ;;  %v1262_v1 = vsel %vm1251_vm3, nan, %v1261_v53  ;;  %v1374_v18 = vshll.u32 %v10430_v35, %v1372_v62  ;;  %v1499_v50 = vshll.u32 %v1495_v5, 16 }
 0x224   : > { %vm1501_vm8 = vc.u32 %v1493_v36, %v1497_v60  ;;  %3023 = vmatpush.msra.mxu0 %v1262_v1  ;;  %v1375_v46 = vshrl.u32 %v1357_v33, %v1373_v59  ;;  %v1378_v7 = vadd.s32 127, %v1377_v47  ;;  %v1503_v9 = vadd.s32 %v1497_v60, %v1493_v36 }
 0x225   : > { %v1502_v20 = vsel %vm1501_vm8, 1, %v16760_v21  ;;  %v10467_v31 = vsub.s32 32, %v10424_v51  ;;  %v1388_v11 = vsel %vm1265_vm5, %v1387_v8, %v10414_v19  ;;  %v1573_v13 = vand.u32 2147483647, %v8952_v28 }
 0x226   : > { %v1504_v41 = vadd.s32 %v1502_v20, %v1496_v6  ;;  %v1376_v16 = vor.u32 %v1375_v46, %v1374_v18  ;;  %v1379_v35 = vshll.u32 %v1378_v7, 23  ;;  %v10473_v52 = vadd.s32 %v1487_v37, %v1478_v58 }
 0x227   : > { %vm1505_vm9 = vc.u32 %v1503_v9, %v1499_v50  ;;  %v10476_v17 = vshrl.u32 %v10374_v39, 5  ;;  %vm10480_vm10 = vcmp.le.f32.partialorder %v1263_v27, 0.7853982  ;;  %v1457_v19 = vsel %vm1451_vm14, %v1454_v45, %v1456_v29 }
 0x228   : > { %v1506_v15 = vsel %vm1505_vm9, 1, %v16760_v21  ;;  %v1380_v30 = vor.u32 4788187, %v1379_v35  ;;  %v1498_v12 = vshrl.u32 %v1494_v3, 16  ;;  %v10487_v33 = vadd.s32 %v1503_v9, %v1499_v50 }
 0x229   : > { %v1508_v25 = vadd.s32 %v1506_v15, %v1504_v41  ;;  %v1383_v56 = vcvt.s32.f32 %v1376_v16  ;;  %v1390_v39 = vsel %vm10480_vm10, 0, %v1388_v11  ;;  %v1500_v54 = vshrl.u32 %v1495_v5, 16 }
 0x22a   : > { %v1580_v27 = vand.u32 8388607, %v1573_v13  ;;  %v1381_v40 = vand.u32 2147483647, %v1380_v30  ;;  %vm1513_vm11 = vc.u32 %v10473_v52, %v10487_v33  ;;  %v1591_v4 = vshrl.u32 %v16752_v44, %v10467_v31 }
 0x22b   : > { %v1509_v38 = vadd.s32 %v1508_v25, %v1498_v12  ;;  %v1593_v3 = vshll.u32 %v16752_v44, %v10424_v51  ;;  %v1594_v49 = vshrl.u32 %v16753_v55, %v10467_v31  ;;  %v1596_v45 = vshll.u32 %v16753_v55, %v10424_v51 }
 0x22c   : > { %v1597_v29 = vshrl.u32 %v16754_v14, %v10467_v31  ;;  %v1384_v36 = vmul.f32 %v1383_v56, %v1381_v40  ;;  %v1599_v8 = vshll.u32 %v16754_v14, %v10424_v51  ;;  %v1600_v57 = vshrl.u32 %v16755_v34, %v10467_v31 }
 0x22d   : > { %v1510_v2 = vadd.s32 %v1509_v38, %v1500_v54  ;;  %vm654_vm12 = vcmp.gt.s32.totalorder %v9409_v61, 0  ;;  %v1590_v5 = vshll.u32 %v16751_v22, %v10424_v51  ;;  %v10512_v42 = vor.u32 %v1594_v49, %v1593_v3  ;;  %v16801_v38 = vld [vmem:[#allocation21_spill] sm:$0xff] }
 0x22e   : > { %v1602_v58 = vshll.u32 %v16755_v34, %v10424_v51  ;;  %v1603_v60 = vshrl.u32 %v16756_v0, %v10467_v31  ;;  %v1385_v48 = vxor.u32 2147483648, %v1384_v36  ;;  %v10518_v62 = vor.u32 %v1597_v29, %v1596_v45 }
 0x22f   : > { %v1514_v10 = vadd.s32 1, %v1510_v2  ;;  %v1601_v6 = vor.u32 %v1600_v57, %v1599_v8  ;;  %v10521_v53 = vand.u32 31, %v9659_v32  ;;  %v1511_v59 = vmul.u32 %v10402_v43, %v1457_v19 }
 0x230   : > { %v1581_v47 = vor.u32 8388608, %v1580_v27  ;;  %v1604_v37 = vor.u32 %v1603_v60, %v1602_v58  ;;  %v1386_v1 = vsel %vm1265_vm5, %v1385_v48, %v1384_v36  ;;  %v1407_v18 = vadd.s32 3, %v1390_v39 }
 0x231   : > { %v1515_v51 = vsel %vm1513_vm11, %v1514_v10, %v1510_v2  ;;  %v10529_v50 = vor.u32 %v1591_v4, %v1590_v5  ;;  %v10534_v46 = vsel %vm10480_vm10, %v8945_v23, %v1386_v1  ;;  %vm1605_vm13 = vcmp.lt.s32.totalorder %v10476_v17, 1 }
 0x232   : > { %v1516_v7 = vadd.s32 %v1515_v51, %v1511_v59  ;;  %vm1608_vm14 = vcmp.lt.s32.totalorder %v10476_v17, 4  ;;  %v1391_v43 = vmul.f32 %v10534_v46, %v10534_v46  ;;  %vm1606_vm15 = vcmp.lt.s32.totalorder %v10476_v17, 2 }
 0x233   : > { %v1614_v20 = vsel %vm1608_vm14, %v1601_v6, 920167782  ;;  %v1617_v9 = vsel %vm1605_vm13, %v10512_v42, %v10518_v62  ;;  %vm1607_vm0 = vcmp.lt.s32.totalorder %v10476_v17, 3  ;;  %v1618_v41 = vsel %vm1608_vm14, %v1604_v37, 1326507024 }
 0x234   : > { %v1517_v11 = vadd.s32 536870912, %v1516_v7  ;;  %v10550_v16 = vshll.u32 %v1581_v47, 8  ;;  %v1392_v35 = vmul.f32 -0.001358992, %v1391_v43  ;;  %v1399_v26 = vmul.f32 -0.00019511016, %v1391_v43 }
 0x235   : > { %v1613_v19 = vsel %vm1605_vm13, %v10529_v50, %v10512_v42  ;;  %v1619_v15 = vsel %vm1607_vm0, %v1601_v6, %v1618_v41  ;;  %v1615_v12 = vsel %vm1607_vm0, %v10518_v62, %v1614_v20  ;;  %v10565_v4 = vadd.s32 4294967169, %v16801_v38 }
 0x236   : > { %v1518_v30 = vshrl.u32 %v1517_v11, 30  ;;  %v1620_v25 = vsel %vm1606_vm15, %v1617_v9, %v1619_v15  ;;  %v1622_v56 = vand.u32 65535, %v10550_v16  ;;  %v1393_v39 = vadd.f32 0.041655596, %v1392_v35 }
 0x237   : > { %v1400_v54 = vadd.f32 0.008332121, %v1399_v26  ;;  %v1624_v27 = vand.u32 65535, %v1620_v25  ;;  %v1625_v40 = vshrl.u32 %v1620_v25, 16  ;;  %v1408_v3 = vand.u32 3, %v1407_v18 }
 0x238   : > { %v1519_v49 = vshll.u32 %v1518_v30, 30  ;;  %v1623_v45 = vshrl.u32 %v10550_v16, 16  ;;  %v10571_v29 = vsel %vm654_vm12, %v9409_v61, 0  ;;  %v1394_v36 = vmul.f32 %v1393_v39, %v1391_v43 }
 0x239   : > { %v1401_v2 = vmul.f32 %v1400_v54, %v1391_v43  ;;  %v1627_v8 = vmul.u32 %v1625_v40, %v1622_v56  ;;  %v10574_v57 = vsub.s32 32, %v10521_v53  ;;  %v1616_v58 = vsel %vm1606_vm15, %v1613_v19, %v1615_v12 }
 0x23a   : > { %v10576_v5 = vsub.s32 %v1516_v7, %v1519_v49  ;;  %v10580_v60 = vmul.u32 %v1624_v27, %v1623_v45  ;;  %v1395_v48 = vadd.f32 -0.4999988, %v1394_v36  ;;  %vm1420_vm1 = vcmp.lt.s32.totalorder %v8949_v24, 0 }
 0x23b   : > { %v1402_v10 = vadd.f32 -0.16666654, %v1401_v2  ;;  %v1630_v6 = vshll.u32 %v1627_v8, 16  ;;  %vm1410_vm2 = vcmp.eq.s32.totalorder %v1408_v3, 0  ;;  %vm1413_vm3 = vcmp.eq.s32.totalorder %v1408_v3, 2 }
 0x23c   : > { %vm1521_vm4 = vcmp.lt.s32.totalorder %v10576_v5, 0  ;;  %v1522_v61 = vsub.s32 0, %v10576_v5  ;;  %v1542_v59 = vsub.s32 4, %v1518_v30  ;;  %v1626_v47 = vmul.u32 %v1624_v27, %v1622_v56 }
 0x23d   : > { %v1396_v37 = vmul.f32 %v1395_v48, %v1391_v43  ;;  %v1403_v1 = vmul.f32 %v1402_v10, %v1391_v43  ;;  %vm1409_vm5 = vcmp.lt.s32.totalorder %v1408_v3, 2  ;;  %v1629_v18 = vmul.u32 %v1625_v40, %v1623_v45 }
 0x23e   : > { %v1647_v51 = vshrl.u32 %v1616_v58, 16  ;;  %vm1406_vm6 = vweird.f32 %v8945_v23  ;;  %v1523_v7 = vsel %vm1521_vm4, %v1522_v61, %v10576_v5  ;;  %v1632_v20 = vshll.u32 %v10580_v60, 16 }
 0x23f   : > { %vm1634_vm7 = vc.u32 %v1626_v47, %v1630_v6  ;;  %v1636_v9 = vadd.s32 %v1630_v6, %v1626_v47  ;;  %v1397_v11 = vadd.f32 1.0, %v1396_v37  ;;  %v1404_v41 = vadd.f32 1.0, %v1403_v1 }
 0x240   : > { %v1524_v35 = vclz %v1523_v7  ;;  %v1635_v26 = vsel %vm1634_vm7, 1, %v16760_v21  ;;  %v1512_v19 = vadd.s32 %v10487_v33, %v10473_v52  ;;  %v1589_v43 = vshrl.u32 %v16751_v22, %v10467_v31 }
 0x241   : > { %v1637_v15 = vadd.s32 %v1635_v26, %v1629_v18  ;;  %v1646_v12 = vand.u32 65535, %v1616_v58  ;;  %v1405_v25 = vmul.f32 %v1404_v41, %v10534_v46  ;;  %v1414_v39 = vxor.u32 2147483648, %v1397_v11  ;;  %v16804_v26 = vld [vmem:[#allocation8_spill] sm:$0xff] }
 0x242   : > { %vm10596_vm8 = vcmp.le.f32.partialorder %v1418_v63, 0.7853982  ;;  %v8446_v27 = vadd.s32 4294967294, %v1524_v35  ;;  %vm1638_vm9 = vc.u32 %v1636_v9, %v1632_v20  ;;  %v1543_v40 = vsel %vm1420_vm1, %v1542_v59, %v1518_v30 }
 0x243   : > { %v1610_v31 = vsel %vm1608_vm14, %v10518_v62, 2102212464  ;;  %v1639_v52 = vsel %vm1638_vm9, 1, %v16760_v21  ;;  %v1649_v33 = vmul.u32 %v1647_v51, %v1622_v56  ;;  %v1411_v46 = vxor.u32 2147483648, %v1405_v25 }
 0x244   : > { %vm8447_vm10 = vcmp.lt.s32.totalorder %v8446_v27, 0  ;;  %v1631_v38 = vshrl.u32 %v1627_v8, 16  ;;  %v1641_v49 = vadd.s32 %v1639_v52, %v1637_v15  ;;  %v1648_v36 = vmul.u32 %v1646_v12, %v1622_v56 }
 0x245   : > { %v1527_v63 = vsel %vm8447_vm10, 0, %v8446_v27  ;;  %v1650_v2 = vmul.u32 %v1646_v12, %v1623_v45  ;;  %v1652_v58 = vshll.u32 %v1649_v33, 16  ;;  %v1412_v48 = vsel %vm1410_vm2, %v1397_v11, %v1411_v46 }
 0x246   : > { %v1415_v10 = vsel %vm1413_vm3, %v1414_v39, %v1405_v25  ;;  %v1528_v30 = vsub.s32 32, %v1527_v63  ;;  %v1532_v6 = vsub.s32 4294967266, %v1527_v63  ;;  %v1529_v62 = vshll.u32 %v10576_v5, %v1527_v63 }
 0x247   : > { %v1416_v61 = vsel %vm1409_vm5, %v1412_v48, %v1415_v10  ;;  %v1642_v59 = vadd.s32 %v1641_v49, %v1631_v38  ;;  %v1651_v47 = vmul.u32 %v1647_v51, %v1623_v45  ;;  %vm1656_vm11 = vc.u32 %v1648_v36, %v1652_v58 }
 0x248   : > { %v1417_v8 = vsel %vm1406_vm6, nan, %v1416_v61  ;;  %v1530_v37 = vshrl.u32 %v1512_v19, %v1528_v30  ;;  %v1533_v1 = vadd.s32 127, %v1532_v6  ;;  %v1633_v56 = vshrl.u32 %v10580_v60, 16 }
 0x249   : > { %3052 = vmatpush.msra.mxu1 %v1417_v8  ;;  %v1654_v18 = vshll.u32 %v1650_v2, 16  ;;  %v1657_v7 = vsel %vm1656_vm11, 1, %v16760_v21  ;;  %v1658_v20 = vadd.s32 %v1652_v58, %v1648_v36  ;;  %v1609_v5 = vsel %vm1605_vm13, %v1589_v43, %v10529_v50 }
 0x24a   : > { %v1531_v9 = vor.u32 %v1530_v37, %v1529_v62  ;;  %v1534_v3 = vshll.u32 %v1533_v1, 23  ;;  %v1659_v45 = vadd.s32 %v1657_v7, %v1651_v47  ;;  %v1545_v23 = vsel %vm10596_vm8, 0, %v1543_v40 }
 0x24b   : > { %v1611_v51 = vsel %vm1607_vm0, %v10512_v42, %v1610_v31  ;;  %v10622_v11 = vadd.s32 %v1642_v59, %v1633_v56  ;;  %vm1660_vm12 = vc.u32 %v1658_v20, %v1654_v18  ;;  %v10625_v60 = vshrl.u32 %v9659_v32, 5 }
 0x24c   : > { %v1535_v41 = vor.u32 4788187, %v1534_v3  ;;  %v1661_v35 = vsel %vm1660_vm12, 1, %v16760_v21  ;;  %v488_v19 = vand.u32 2147483647, %v16804_v26  ;;  %v10630_v50 = vand.u32 31, %v10571_v29 }
 0x24d   : > { %v1653_v43 = vshrl.u32 %v1649_v33, 16  ;;  %v10632_v15 = vadd.s32 %v1658_v20, %v1654_v18  ;;  %v1663_v12 = vadd.s32 %v1661_v35, %v1659_v45  ;;  %v1538_v42 = vcvt.s32.f32 %v1531_v9 }
 0x24e   : > { %v1536_v25 = vand.u32 2147483647, %v1535_v41  ;;  %v1562_v39 = vadd.s32 3, %v1545_v23  ;;  %v1612_v27 = vsel %vm1606_vm15, %v1609_v5, %v1611_v51  ;;  %v1655_v32 = vshrl.u32 %v1650_v2, 16 }
 0x24f   : > { %v1664_v40 = vadd.s32 %v1663_v12, %v1653_v43  ;;  %vm1668_vm13 = vc.u32 %v10622_v11, %v10632_v15  ;;  %v509_v31 = vshrl.u32 %v16753_v55, %v10574_v57  ;;  %v495_v33 = vand.u32 8388607, %v488_v19 }
 0x250   : > { %v1539_v52 = vmul.f32 %v1538_v42, %v1536_v25  ;;  %v506_v46 = vshrl.u32 %v16752_v44, %v10574_v57  ;;  %v512_v38 = vshrl.u32 %v16754_v14, %v10574_v57  ;;  %v508_v49 = vshll.u32 %v16752_v44, %v10521_v53 }
 0x251   : > { %v1665_v17 = vadd.s32 %v1664_v40, %v1655_v32  ;;  %v511_v63 = vshll.u32 %v16753_v55, %v10521_v53  ;;  %v515_v36 = vshrl.u32 %v16755_v34, %v10574_v57  ;;  %v505_v58 = vshll.u32 %v16751_v22, %v10521_v53 }
 0x252   : > { %v1540_v2 = vxor.u32 2147483648, %v1539_v52  ;;  %v517_v48 = vshll.u32 %v16755_v34, %v10521_v53  ;;  %v518_v10 = vshrl.u32 %v16756_v0, %v10574_v57  ;;  %v10658_v6 = vor.u32 %v509_v31, %v508_v49 }
 0x253   : > { %v1669_v30 = vadd.s32 1, %v1665_v17  ;;  %v10660_v61 = vor.u32 %v512_v38, %v511_v63  ;;  %v514_v62 = vshll.u32 %v16754_v14, %v10521_v53  ;;  %v1666_v47 = vmul.u32 %v10550_v16, %v1612_v27 }
 0x254   : > { %v1541_v59 = vsel %vm1420_vm1, %v1540_v2, %v1539_v52  ;;  %v496_v8 = vor.u32 8388608, %v495_v33  ;;  %v519_v37 = vor.u32 %v518_v10, %v517_v48  ;;  %v10675_v18 = vor.u32 %v506_v46, %v505_v58 }
 0x255   : > { %v10670_v1 = vsel %vm10596_vm8, %v8949_v24, %v1541_v59  ;;  %v1670_v56 = vsel %vm1668_vm13, %v1669_v30, %v1665_v17  ;;  %v516_v7 = vor.u32 %v515_v36, %v514_v62  ;;  %vm520_vm14 = vcmp.lt.s32.totalorder %v10625_v60, 1  ;;  %v16805_v17 = vld [vmem:[#allocation22_spill] sm:$0xff] }
 0x256   : > { %v1546_v53 = vmul.f32 %v10670_v1, %v10670_v1  ;;  %v1671_v20 = vadd.s32 %v1670_v56, %v1666_v47  ;;  %vm523_vm15 = vcmp.lt.s32.totalorder %v10625_v60, 4  ;;  %v10681_v16 = vand.u32 3, %v1562_v39 }
 0x257   : > { %vm521_vm0 = vcmp.lt.s32.totalorder %v10625_v60, 2  ;;  %v532_v54 = vsel %vm520_vm14, %v10658_v6, %v10660_v61  ;;  %v533_v9 = vsel %vm523_vm15, %v519_v37, 1326507024  ;;  %vm522_vm1 = vcmp.lt.s32.totalorder %v10625_v60, 3 }
 0x258   : > { %v1547_v3 = vmul.f32 -0.001358992, %v1546_v53  ;;  %v1554_v5 = vmul.f32 -0.00019511016, %v1546_v53  ;;  %v1672_v45 = vadd.s32 536870912, %v1671_v20  ;;  %v528_v23 = vsel %vm520_vm14, %v10675_v18, %v10658_v6 }
 0x259   : > { %v529_v51 = vsel %vm523_vm15, %v516_v7, 920167782  ;;  %v534_v41 = vsel %vm522_vm1, %v516_v7, %v533_v9  ;;  %v10699_v35 = vshll.u32 %v496_v8, 8  ;;  %v10716_v38 = vadd.s32 1, %v10565_v4 }
 0x25a   : > { %v1548_v43 = vadd.f32 0.041655596, %v1547_v3  ;;  %v1555_v12 = vadd.f32 0.008332121, %v1554_v5  ;;  %v10701_v25 = vshrl.u32 %v1672_v45, 30  ;;  %v535_v42 = vsel %vm521_vm0, %v532_v54, %v534_v41 }
 0x25b   : > { %v10706_v39 = vand.u32 65535, %v10699_v35  ;;  %v10709_v27 = vshrl.u32 %v10699_v35, 16  ;;  %v539_v32 = vand.u32 65535, %v535_v42  ;;  %v540_v40 = vshrl.u32 %v535_v42, 16 }
 0x25c   : > { %v1549_v31 = vmul.f32 %v1548_v43, %v1546_v53  ;;  %v1556_v52 = vmul.f32 %v1555_v12, %v1546_v53  ;;  %v1674_v33 = vshll.u32 %v10701_v25, 30  ;;  %v530_v46 = vsel %vm522_vm1, %v10660_v61, %v529_v51 }
 0x25d   : > { %v10719_v49 = vadd.s32 4294967169, %v16805_v17  ;;  %v542_v63 = vmul.u32 %v540_v40, %v10706_v39  ;;  %v10723_v36 = vmul.u32 %v539_v32, %v10709_v27  ;;  %v10726_v2 = vsub.s32 32, %v10630_v50 }
 0x25e   : > { %v1550_v58 = vadd.f32 -0.4999988, %v1549_v31  ;;  %v1557_v48 = vadd.f32 -0.16666654, %v1556_v52  ;;  %v10728_v10 = vsub.s32 %v1671_v20, %v1674_v33  ;;  %vm1565_vm2 = vcmp.eq.s32.totalorder %v10681_v16, 0 }
 0x25f   : > { %v504_v4 = vshrl.u32 %v16751_v22, %v10574_v57  ;;  %v531_v30 = vsel %vm521_vm0, %v528_v23, %v530_v46  ;;  %v541_v62 = vmul.u32 %v539_v32, %v10706_v39  ;;  %v545_v59 = vshll.u32 %v542_v63, 16 }
 0x260   : > { %v1551_v47 = vmul.f32 %v1550_v58, %v1546_v53  ;;  %v1558_v8 = vmul.f32 %v1557_v48, %v1546_v53  ;;  %vm1564_vm3 = vcmp.lt.s32.totalorder %v10681_v16, 2  ;;  %vm1575_vm4 = vcmp.lt.s32.totalorder %v8952_v28, 0 }
 0x261   : > { %vm1676_vm5 = vcmp.lt.s32.totalorder %v10728_v10, 0  ;;  %v1677_v37 = vsub.s32 0, %v10728_v10  ;;  %vm1561_vm6 = vweird.f32 %v8949_v24  ;;  %v544_v57 = vmul.u32 %v540_v40, %v10709_v27 }
 0x262   : > { %v547_v56 = vshll.u32 %v10723_v36, 16  ;;  %vm549_vm7 = vc.u32 %v541_v62, %v545_v59  ;;  %v551_v7 = vadd.s32 %v545_v59, %v541_v62  ;;  %v1552_v20 = vadd.f32 1.0, %v1551_v47 }
 0x263   : > { %v1559_v54 = vadd.f32 1.0, %v1558_v8  ;;  %v1678_v53 = vsel %vm1676_vm5, %v1677_v37, %v10728_v10  ;;  %v550_v9 = vsel %vm549_vm7, 1, %v16760_v21  ;;  %v525_v5 = vsel %vm523_vm15, %v10660_v61, 2102212464 }
 0x264   : > { %v1679_v3 = vclz %v1678_v53  ;;  %v552_v45 = vadd.s32 %v550_v9, %v544_v57  ;;  %vm553_vm8 = vc.u32 %v551_v7, %v547_v56  ;;  %vm809_vm9 = vcmp.gt.s32.totalorder %v10716_v38, 0 }
 0x265   : > { %v1560_v23 = vmul.f32 %v1559_v54, %v10670_v1  ;;  %v1569_v51 = vxor.u32 2147483648, %v1552_v20  ;;  %vm10752_vm10 = vcmp.le.f32.partialorder %v1573_v13, 0.7853982  ;;  %v554_v43 = vsel %vm553_vm8, 1, %v16760_v21 }
 0x266   : > { %v561_v12 = vand.u32 65535, %v531_v30  ;;  %vm1568_vm11 = vcmp.eq.s32.totalorder %v10681_v16, 2  ;;  %v1667_v61 = vadd.s32 %v10632_v15, %v10622_v11  ;;  %v8449_v42 = vadd.s32 4294967294, %v1679_v3 }
 0x267   : > { %v1697_v32 = vsub.s32 4, %v10701_v25  ;;  %v1566_v40 = vxor.u32 2147483648, %v1560_v23  ;;  %v524_v1 = vsel %vm520_vm14, %v504_v4, %v10675_v18  ;;  %v556_v13 = vadd.s32 %v554_v43, %v552_v45 }
 0x268   : > { %v562_v31 = vshrl.u32 %v531_v30, 16  ;;  %v1570_v52 = vsel %vm1568_vm11, %v1569_v51, %v1560_v23  ;;  %vm8450_vm12 = vcmp.lt.s32.totalorder %v8449_v42, 0  ;;  %v526_v33 = vsel %vm522_vm1, %v10658_v6, %v525_v5 }
 0x269   : > { %v546_v46 = vshrl.u32 %v542_v63, 16  ;;  %v1567_v11 = vsel %vm1565_vm2, %v1552_v20, %v1566_v40  ;;  %v1682_v15 = vsel %vm8450_vm12, 0, %v8449_v42  ;;  %v565_v58 = vmul.u32 %v561_v12, %v10709_v27 }
 0x26a   : > { %v564_v17 = vmul.u32 %v562_v31, %v10706_v39  ;;  %v1571_v18 = vsel %vm1564_vm3, %v1567_v11, %v1570_v52  ;;  %v1683_v48 = vsub.s32 32, %v1682_v15  ;;  %v1687_v4 = vsub.s32 4294967266, %v1682_v15 }
 0x26b   : > { %v1698_v30 = vsel %vm1575_vm4, %v1697_v32, %v10701_v25  ;;  %v1572_v6 = vsel %vm1561_vm6, nan, %v1571_v18  ;;  %v557_v63 = vadd.s32 %v556_v13, %v546_v46  ;;  %v563_v62 = vmul.u32 %v561_v12, %v10706_v39 }
 0x26c   : > { %v567_v59 = vshll.u32 %v564_v17, 16  ;;  %3081 = vmatpush.msra.mxu2 %v1572_v6  ;;  %v1684_v47 = vshll.u32 %v10728_v10, %v1682_v15  ;;  %v1685_v8 = vshrl.u32 %v1667_v61, %v1683_v48  ;;  %v1688_v37 = vadd.s32 127, %v1687_v4  ;;  %v16808_v10 = vld [vmem:[#allocation9_spill] sm:$0xff] }
 0x26d   : > { %v548_v16 = vshrl.u32 %v10723_v36, 16  ;;  %v566_v57 = vmul.u32 %v562_v31, %v10709_v27  ;;  %v569_v56 = vshll.u32 %v565_v58, 16  ;;  %v1700_v24 = vsel %vm10752_vm10, 0, %v1698_v30 }
 0x26e   : > { %vm571_vm13 = vc.u32 %v563_v62, %v567_v59  ;;  %v573_v7 = vadd.s32 %v567_v59, %v563_v62  ;;  %v1686_v25 = vor.u32 %v1685_v8, %v1684_v47  ;;  %v1689_v20 = vshll.u32 %v1688_v37, 23 }
 0x26f   : > { %v572_v39 = vsel %vm571_vm13, 1, %v16760_v21  ;;  %v10785_v54 = vadd.s32 %v557_v63, %v548_v16  ;;  %v643_v9 = vand.u32 2147483647, %v16808_v10  ;;  %v10789_v36 = vshrl.u32 %v10571_v29, 5 }
 0x270   : > { %v574_v53 = vadd.s32 %v572_v39, %v566_v57  ;;  %vm575_vm14 = vc.u32 %v573_v7, %v569_v56  ;;  %v10794_v27 = vsel %vm809_vm9, %v10716_v38, 0  ;;  %v1690_v3 = vor.u32 4788187, %v1689_v20 }
 0x271   : > { %v576_v5 = vsel %vm575_vm14, 1, %v16760_v21  ;;  %v527_v45 = vsel %vm521_vm0, %v524_v1, %v526_v33  ;;  %v568_v23 = vshrl.u32 %v564_v17, 16  ;;  %v10799_v51 = vadd.s32 %v573_v7, %v569_v56 }
 0x272   : > { %v578_v43 = vadd.s32 %v576_v5, %v574_v53  ;;  %v1691_v12 = vand.u32 2147483647, %v1690_v3  ;;  %v1693_v61 = vcvt.s32.f32 %v1686_v25  ;;  %v1717_v42 = vadd.s32 3, %v1700_v24 }
 0x273   : > { %v570_v29 = vshrl.u32 %v565_v58, 16  ;;  %vm583_vm15 = vc.u32 %v10785_v54, %v10799_v51  ;;  %v650_v38 = vand.u32 8388607, %v643_v9  ;;  %v664_v40 = vshrl.u32 %v16753_v55, %v10726_v2 }
 0x274   : > { %v579_v32 = vadd.s32 %v578_v43, %v568_v23  ;;  %v1694_v60 = vmul.f32 %v1693_v61, %v1691_v12  ;;  %v661_v1 = vshrl.u32 %v16752_v44, %v10726_v2  ;;  %v663_v13 = vshll.u32 %v16752_v44, %v10630_v50 }
 0x275   : > { %v667_v31 = vshrl.u32 %v16754_v14, %v10726_v2  ;;  %v666_v33 = vshll.u32 %v16753_v55, %v10630_v50  ;;  %v669_v46 = vshll.u32 %v16754_v14, %v10630_v50  ;;  %v670_v11 = vshrl.u32 %v16755_v34, %v10726_v2 }
 0x276   : > { %v580_v52 = vadd.s32 %v579_v32, %v570_v29  ;;  %v1695_v15 = vxor.u32 2147483648, %v1694_v60  ;;  %v660_v17 = vshll.u32 %v16751_v22, %v10630_v50  ;;  %v672_v58 = vshll.u32 %v16755_v34, %v10630_v50 }
 0x277   : > { %v673_v18 = vshrl.u32 %v16756_v0, %v10726_v2  ;;  %v10825_v4 = vor.u32 %v664_v40, %v663_v13  ;;  %v10827_v30 = vor.u32 %v667_v31, %v666_v33  ;;  %v671_v6 = vor.u32 %v670_v11, %v669_v46 }
 0x278   : > { %v584_v48 = vadd.s32 1, %v580_v52  ;;  %v1696_v63 = vsel %vm1575_vm4, %v1695_v15, %v1694_v60  ;;  %v581_v62 = vmul.u32 %v10699_v35, %v527_v45  ;;  %v651_v59 = vor.u32 8388608, %v650_v38 }
 0x279   : > { %v674_v47 = vor.u32 %v673_v18, %v672_v58  ;;  %v10835_v50 = vsel %vm10752_vm10, %v8952_v28, %v1696_v63  ;;  %v10840_v37 = vor.u32 %v661_v1, %v660_v17  ;;  %vm678_vm0 = vcmp.lt.s32.totalorder %v10789_v36, 4 }
 0x27a   : > { %v585_v8 = vsel %vm583_vm15, %v584_v48, %v580_v52  ;;  %v1701_v16 = vmul.f32 %v10835_v50, %v10835_v50  ;;  %vm675_vm1 = vcmp.lt.s32.totalorder %v10789_v36, 1  ;;  %v684_v35 = vsel %vm678_vm0, %v671_v6, 920167782 }
 0x27b   : > { %v586_v57 = vadd.s32 %v585_v8, %v581_v62  ;;  %v10848_v41 = vand.u32 3, %v1717_v42  ;;  %vm676_vm2 = vcmp.lt.s32.totalorder %v10789_v36, 2  ;;  %v687_v56 = vsel %vm675_vm1, %v10825_v4, %v10827_v30 }
 0x27c   : > { %v688_v7 = vsel %vm678_vm0, %v674_v47, 1326507024  ;;  %v1702_v25 = vmul.f32 -0.001358992, %v1701_v16  ;;  %v1709_v20 = vmul.f32 -0.00019511016, %v1701_v16  ;;  %v683_v39 = vsel %vm675_vm1, %v10840_v37, %v10825_v4 }
 0x27d   : > { %v587_v24 = vadd.s32 536870912, %v586_v57  ;;  %vm677_vm3 = vcmp.lt.s32.totalorder %v10789_v36, 3  ;;  %v10867_v5 = vshll.u32 %v651_v59, 8  ;;  %v10880_v13 = vand.u32 31, %v10794_v27 }
 0x27e   : > { %v685_v53 = vsel %vm677_vm3, %v10827_v30, %v684_v35  ;;  %v689_v3 = vsel %vm677_vm3, %v671_v6, %v688_v7  ;;  %v1703_v45 = vadd.f32 0.041655596, %v1702_v25  ;;  %v1710_v23 = vadd.f32 0.008332121, %v1709_v20 }
 0x27f   : > { %v588_v43 = vshrl.u32 %v587_v24, 30  ;;  %v690_v12 = vsel %vm676_vm2, %v687_v56, %v689_v3  ;;  %v10872_v61 = vand.u32 65535, %v10867_v5  ;;  %v10875_v42 = vshrl.u32 %v10867_v5, 16 }
 0x280   : > { %v694_v29 = vand.u32 65535, %v690_v12  ;;  %v695_v32 = vshrl.u32 %v690_v12, 16  ;;  %v1704_v38 = vmul.f32 %v1703_v45, %v1701_v16  ;;  %v1711_v40 = vmul.f32 %v1710_v23, %v1701_v16 }
 0x281   : > { %v589_v60 = vshll.u32 %v588_v43, 30  ;;  %v686_v1 = vsel %vm676_vm2, %v683_v39, %v685_v53  ;;  %v10883_v31 = vadd.s32 1, %v10719_v49  ;;  %vm490_vm4 = vcmp.lt.s32.totalorder %v16804_v26, 0 }
 0x282   : > { %v697_v52 = vmul.u32 %v695_v32, %v10872_v61  ;;  %v10887_v33 = vmul.u32 %v694_v29, %v10875_v42  ;;  %v1705_v46 = vadd.f32 -0.4999988, %v1704_v38  ;;  %v1712_v11 = vadd.f32 -0.16666654, %v1711_v40 }
 0x283   : > { %v10890_v15 = vsub.s32 %v586_v57, %v589_v60  ;;  %vm1720_vm5 = vcmp.eq.s32.totalorder %v10848_v41, 0  ;;  %v659_v17 = vshrl.u32 %v16751_v22, %v10726_v2  ;;  %v696_v58 = vmul.u32 %v694_v29, %v10872_v61 }
 0x284   : > { %v700_v49 = vshll.u32 %v697_v52, 16  ;;  %v717_v18 = vshrl.u32 %v686_v1, 16  ;;  %v1706_v48 = vmul.f32 %v1705_v46, %v1701_v16  ;;  %v1713_v6 = vmul.f32 %v1712_v11, %v1701_v16 }
 0x285   : > { %vm1719_vm6 = vcmp.lt.s32.totalorder %v10848_v41, 2  ;;  %vm591_vm7 = vcmp.lt.s32.totalorder %v10890_v15, 0  ;;  %v592_v63 = vsub.s32 0, %v10890_v15  ;;  %vm1716_vm8 = vweird.f32 %v8952_v28 }
 0x286   : > { %v699_v62 = vmul.u32 %v695_v32, %v10875_v42  ;;  %v702_v59 = vshll.u32 %v10887_v33, 16  ;;  %vm704_vm9 = vc.u32 %v696_v58, %v700_v49  ;;  %v706_v2 = vadd.s32 %v700_v49, %v696_v58 }
 0x287   : > { %v1707_v47 = vadd.f32 1.0, %v1706_v48  ;;  %v1714_v8 = vadd.f32 1.0, %v1713_v6  ;;  %v593_v57 = vsel %vm591_vm7, %v592_v63, %v10890_v15  ;;  %v705_v16 = vsel %vm704_vm9, 1, %v16760_v21 }
 0x288   : > { %v594_v35 = vclz %v593_v57  ;;  %v612_v56 = vsub.s32 4, %v588_v43  ;;  %v707_v7 = vadd.s32 %v705_v16, %v699_v62  ;;  %vm708_vm10 = vc.u32 %v706_v2, %v702_v59  ;;  %v16811_v62 = vld [vmem:[#allocation10_spill] sm:$0xff] }
 0x289   : > { %v1715_v25 = vmul.f32 %v1714_v8, %v10835_v50  ;;  %v1724_v20 = vxor.u32 2147483648, %v1707_v47  ;;  %v709_v24 = vsel %vm708_vm10, 1, %v16760_v21  ;;  %v716_v39 = vand.u32 65535, %v686_v1 }
 0x28a   : > { %vm1723_vm11 = vcmp.eq.s32.totalorder %v10848_v41, 2  ;;  %vm10909_vm12 = vcmp.le.f32.partialorder %v488_v19, 0.7853982  ;;  %v582_v3 = vadd.s32 %v10799_v51, %v10785_v54  ;;  %v8428_v45 = vadd.s32 4294967294, %v594_v35 }
 0x28b   : > { %v679_v50 = vsel %vm675_vm1, %v659_v17, %v10840_v37  ;;  %v1721_v23 = vxor.u32 2147483648, %v1715_v25  ;;  %v680_v12 = vsel %vm678_vm0, %v10827_v30, 2102212464  ;;  %v711_v29 = vadd.s32 %v709_v24, %v707_v7 }
 0x28c   : > { %v719_v32 = vmul.u32 %v717_v18, %v10872_v61  ;;  %v1725_v19 = vsel %vm1723_vm11, %v1724_v20, %v1715_v25  ;;  %vm8429_vm13 = vcmp.lt.s32.totalorder %v8428_v45, 0  ;;  %v613_v38 = vsel %vm490_vm4, %v612_v56, %v588_v43 }
 0x28d   : > { %v701_v40 = vshrl.u32 %v697_v52, 16  ;;  %v1722_v54 = vsel %vm1720_vm5, %v1707_v47, %v1721_v23  ;;  %v597_v51 = vsel %vm8429_vm13, 0, %v8428_v45  ;;  %v720_v37 = vmul.u32 %v716_v39, %v10875_v42 }
 0x28e   : > { %v722_v60 = vshll.u32 %v719_v32, 16  ;;  %v1726_v1 = vsel %vm1719_vm6, %v1722_v54, %v1725_v19  ;;  %v598_v30 = vsub.s32 32, %v597_v51  ;;  %v602_v46 = vsub.s32 4294967266, %v597_v51 }
 0x28f   : > { %v718_v11 = vmul.u32 %v716_v39, %v10872_v61  ;;  %v1727_v17 = vsel %vm1716_vm8, nan, %v1726_v1  ;;  %v703_v43 = vshrl.u32 %v10887_v33, 16  ;;  %v712_v52 = vadd.s32 %v711_v29, %v701_v40 }
 0x290   : > { %v721_v58 = vmul.u32 %v717_v18, %v10875_v42  ;;  %3110 = vmatpush.msra.mxu3 %v1727_v17  ;;  %v599_v49 = vshll.u32 %v10890_v15, %v597_v51  ;;  %v600_v48 = vshrl.u32 %v582_v3, %v598_v30  ;;  %v603_v6 = vadd.s32 127, %v602_v46 }
 0x291   : > { %vm726_vm14 = vc.u32 %v718_v11, %v722_v60  ;;  %vm964_vm15 = vcmp.gt.s32.totalorder %v10883_v31, 0  ;;  %v724_v41 = vshll.u32 %v720_v37, 16  ;;  %v728_v61 = vadd.s32 %v722_v60, %v718_v11 }
 0x292   : > { %v727_v63 = vsel %vm726_vm14, 1, %v16760_v21  ;;  %v798_v28 = vand.u32 2147483647, %v16811_v62  ;;  %v601_v59 = vor.u32 %v600_v48, %v599_v49  ;;  %v604_v2 = vshll.u32 %v603_v6, 23 }
 0x293   : > { %v681_v42 = vsel %vm677_vm3, %v10825_v4, %v680_v12  ;;  %v729_v33 = vadd.s32 %v727_v63, %v721_v58  ;;  %v10942_v15 = vsub.s32 32, %v10880_v13  ;;  %v615_v18 = vsel %vm10909_vm12, 0, %v613_v38 }
 0x294   : > { %v10946_v47 = vadd.s32 %v712_v52, %v703_v43  ;;  %vm730_vm0 = vc.u32 %v728_v61, %v724_v41  ;;  %v10949_v8 = vshrl.u32 %v10794_v27, 5  ;;  %v605_v57 = vor.u32 4788187, %v604_v2 }
 0x295   : > { %v731_v16 = vsel %vm730_vm0, 1, %v16760_v21  ;;  %v805_v35 = vand.u32 8388607, %v798_v28  ;;  %v682_v4 = vsel %vm676_vm2, %v679_v50, %v681_v42  ;;  %v723_v56 = vshrl.u32 %v719_v32, 16 }
 0x296   : > { %v10956_v7 = vadd.s32 %v728_v61, %v724_v41  ;;  %v733_v25 = vadd.s32 %v731_v16, %v729_v33  ;;  %v606_v20 = vand.u32 2147483647, %v605_v57  ;;  %v608_v24 = vcvt.s32.f32 %v601_v59 }
 0x297   : > { %v632_v39 = vadd.s32 3, %v615_v18  ;;  %v725_v3 = vshrl.u32 %v720_v37, 16  ;;  %v819_v27 = vshrl.u32 %v16753_v55, %v10942_v15  ;;  %v822_v23 = vshrl.u32 %v16754_v14, %v10942_v15 }
 0x298   : > { %v734_v45 = vadd.s32 %v733_v25, %v723_v56  ;;  %vm738_vm1 = vc.u32 %v10946_v47, %v10956_v7  ;;  %v609_v36 = vmul.f32 %v608_v24, %v606_v20  ;;  %v806_v50 = vor.u32 8388608, %v805_v35 }
 0x299   : > { %v824_v12 = vshll.u32 %v16754_v14, %v10880_v13  ;;  %v825_v29 = vshrl.u32 %v16755_v34, %v10942_v15  ;;  %v816_v19 = vshrl.u32 %v16752_v44, %v10942_v15  ;;  %v818_v38 = vshll.u32 %v16752_v44, %v10880_v13 }
 0x29a   : > { %v735_v32 = vadd.s32 %v734_v45, %v725_v3  ;;  %v821_v40 = vshll.u32 %v16753_v55, %v10880_v13  ;;  %v610_v54 = vxor.u32 2147483648, %v609_v36  ;;  %v827_v37 = vshll.u32 %v16755_v34, %v10880_v13 }
 0x29b   : > { %v826_v51 = vor.u32 %v825_v29, %v824_v12  ;;  %v828_v60 = vshrl.u32 %v16756_v0, %v10942_v15  ;;  %v815_v30 = vshll.u32 %v16751_v22, %v10880_v13  ;;  %v10980_v46 = vor.u32 %v819_v27, %v818_v38 }
 0x29c   : > { %v739_v1 = vadd.s32 1, %v735_v32  ;;  %v823_v11 = vor.u32 %v822_v23, %v821_v40  ;;  %v10985_v17 = vsel %vm964_vm15, %v10883_v31, 0  ;;  %v611_v43 = vsel %vm490_vm4, %v610_v54, %v609_v36 }
 0x29d   : > { %v736_v52 = vmul.u32 %v10867_v5, %v682_v4  ;;  %v829_v58 = vor.u32 %v828_v60, %v827_v37  ;;  %v10993_v49 = vsel %vm10909_vm12, %v16804_v26, %v611_v43  ;;  %v10998_v48 = vor.u32 %v816_v19, %v815_v30 }
 0x29e   : > { %v740_v13 = vsel %vm738_vm1, %v739_v1, %v735_v32  ;;  %vm833_vm2 = vcmp.lt.s32.totalorder %v10949_v8, 4  ;;  %v616_v31 = vmul.f32 %v10993_v49, %v10993_v49  ;;  %vm830_vm3 = vcmp.lt.s32.totalorder %v10949_v8, 1 }
 0x29f   : > { %v741_v6 = vadd.s32 %v740_v13, %v736_v52  ;;  %v839_v5 = vsel %vm833_vm2, %v826_v51, 920167782  ;;  %v11006_v53 = vand.u32 3, %v632_v39  ;;  %v842_v41 = vsel %vm830_vm3, %v10980_v46, %v823_v11 }
 0x2a0   : > { %v843_v63 = vsel %vm833_vm2, %v829_v58, 1326507024  ;;  %v11013_v61 = vshll.u32 %v806_v50, 8  ;;  %v617_v59 = vmul.f32 -0.001358992, %v616_v31  ;;  %vm832_vm4 = vcmp.lt.s32.totalorder %v10949_v8, 3 }
 0x2a1   : > { %v624_v2 = vmul.f32 -0.00019511016, %v616_v31  ;;  %v742_v42 = vadd.s32 536870912, %v741_v6  ;;  %vm831_vm5 = vcmp.lt.s32.totalorder %v10949_v8, 2  ;;  %v838_v33 = vsel %vm830_vm3, %v10998_v48, %v10980_v46 }
 0x2a2   : > { %v840_v18 = vsel %vm832_vm4, %v823_v11, %v839_v5  ;;  %v844_v57 = vsel %vm832_vm4, %v826_v51, %v843_v63  ;;  %v618_v16 = vadd.f32 0.041655596, %v617_v59  ;;  %v847_v25 = vand.u32 65535, %v11013_v61 }
 0x2a3   : > { %v625_v35 = vadd.f32 0.008332121, %v624_v2  ;;  %v11025_v4 = vshrl.u32 %v742_v42, 30  ;;  %v845_v56 = vsel %vm831_vm5, %v842_v41, %v844_v57  ;;  %v848_v20 = vshrl.u32 %v11013_v61, 16 }
 0x2a4   : > { %v849_v24 = vand.u32 65535, %v845_v56  ;;  %v850_v39 = vshrl.u32 %v845_v56, 16  ;;  %v619_v3 = vmul.f32 %v618_v16, %v616_v31  ;;  %v841_v23 = vsel %vm831_vm5, %v838_v33, %v840_v18 }
 0x2a5   : > { %v626_v45 = vmul.f32 %v625_v35, %v616_v31  ;;  %v744_v27 = vshll.u32 %v11025_v4, 30  ;;  %v11035_v36 = vand.u32 31, %v10985_v17  ;;  %v814_v50 = vshrl.u32 %v16751_v22, %v10942_v15 }
 0x2a6   : > { %v852_v12 = vmul.u32 %v850_v39, %v847_v25  ;;  %v11039_v29 = vmul.u32 %v849_v24, %v848_v20  ;;  %v620_v32 = vadd.f32 -0.4999988, %v619_v3  ;;  %v835_v40 = vsel %vm833_vm2, %v823_v11, 2102212464 }
 0x2a7   : > { %v627_v19 = vadd.f32 -0.16666654, %v626_v45  ;;  %v11041_v38 = vsub.s32 %v741_v6, %v744_v27  ;;  %vm635_vm6 = vcmp.eq.s32.totalorder %v11006_v53, 0  ;;  %vm638_vm7 = vcmp.eq.s32.totalorder %v11006_v53, 2 }
 0x2a8   : > { %v851_v54 = vmul.u32 %v849_v24, %v847_v25  ;;  %v855_v51 = vshll.u32 %v852_v12, 16  ;;  %v871_v37 = vand.u32 65535, %v841_v23  ;;  %v872_v60 = vshrl.u32 %v841_v23, 16 }
 0x2a9   : > { %v621_v1 = vmul.f32 %v620_v32, %v616_v31  ;;  %v628_v15 = vmul.f32 %v627_v19, %v616_v31  ;;  %vm634_vm8 = vcmp.lt.s32.totalorder %v11006_v53, 2  ;;  %vm746_vm9 = vcmp.lt.s32.totalorder %v11041_v38, 0 }
 0x2aa   : > { %v747_v30 = vsub.s32 0, %v11041_v38  ;;  %vm631_vm10 = vweird.f32 %v16804_v26  ;;  %v854_v43 = vmul.u32 %v850_v39, %v848_v20  ;;  %v857_v11 = vshll.u32 %v11039_v29, 16  ;;  %v16812_v26 = vld [vmem:[#allocation11_spill] sm:$0xff] }
 0x2ab   : > { %vm859_vm11 = vc.u32 %v851_v54, %v855_v51  ;;  %v861_v52 = vadd.s32 %v855_v51, %v851_v54  ;;  %v622_v58 = vadd.f32 1.0, %v621_v1  ;;  %v629_v13 = vadd.f32 1.0, %v628_v15 }
 0x2ac   : > { %v748_v6 = vsel %vm746_vm9, %v747_v30, %v11041_v38  ;;  %v860_v5 = vsel %vm859_vm11, 1, %v16760_v21  ;;  %vm645_vm12 = vcmp.lt.s32.totalorder %v16808_v10, 0  ;;  %v737_v31 = vadd.s32 %v10956_v7, %v10946_v47 }
 0x2ad   : > { %v749_v41 = vclz %v748_v6  ;;  %v862_v63 = vadd.s32 %v860_v5, %v854_v43  ;;  %vm863_vm13 = vc.u32 %v861_v52, %v857_v11  ;;  %v630_v59 = vmul.f32 %v629_v13, %v10993_v49 }
 0x2ae   : > { %v639_v2 = vxor.u32 2147483648, %v622_v58  ;;  %v864_v42 = vsel %vm863_vm13, 1, %v16760_v21  ;;  %v874_v33 = vmul.u32 %v872_v60, %v847_v25  ;;  %v834_v57 = vsel %vm830_vm3, %v814_v50, %v10998_v48 }
 0x2af   : > { %v8431_v18 = vadd.s32 4294967294, %v749_v41  ;;  %v836_v16 = vsel %vm832_vm4, %v10980_v46, %v835_v40  ;;  %v873_v35 = vmul.u32 %v871_v37, %v847_v25  ;;  %v636_v47 = vxor.u32 2147483648, %v630_v59 }
 0x2b0   : > { %v767_v7 = vsub.s32 4, %v11025_v4  ;;  %v866_v56 = vadd.s32 %v864_v42, %v862_v63  ;;  %v875_v24 = vmul.u32 %v871_v37, %v848_v20  ;;  %v856_v49 = vshrl.u32 %v852_v12, 16 }
 0x2b1   : > { %vm8432_vm14 = vcmp.lt.s32.totalorder %v8431_v18, 0  ;;  %v858_v39 = vshrl.u32 %v11039_v29, 16  ;;  %v877_v3 = vshll.u32 %v874_v33, 16  ;;  %v637_v45 = vsel %vm635_vm6, %v622_v58, %v636_v47 }
 0x2b2   : > { %v640_v48 = vsel %vm638_vm7, %v639_v2, %v630_v59  ;;  %v752_v27 = vsel %vm8432_vm14, 0, %v8431_v18  ;;  %v876_v23 = vmul.u32 %v872_v60, %v848_v20  ;;  %v867_v32 = vadd.s32 %v866_v56, %v856_v49 }
 0x2b3   : > { %v641_v46 = vsel %vm634_vm8, %v637_v45, %v640_v48  ;;  %v753_v25 = vsub.s32 32, %v752_v27  ;;  %v757_v50 = vsub.s32 4294967266, %v752_v27  ;;  %v754_v29 = vshll.u32 %v11041_v38, %v752_v27 }
 0x2b4   : > { %v642_v12 = vsel %vm631_vm10, nan, %v641_v46  ;;  %v879_v19 = vshll.u32 %v875_v24, 16  ;;  %vm881_vm15 = vc.u32 %v873_v35, %v877_v3  ;;  %v883_v37 = vadd.s32 %v877_v3, %v873_v35 }
 0x2b5   : > { %3024 = vmatpush.msra.mxu0 %v642_v12  ;;  %v755_v40 = vshrl.u32 %v737_v31, %v753_v25  ;;  %v758_v54 = vadd.s32 127, %v757_v50  ;;  %v882_v51 = vsel %vm881_vm15, 1, %v16760_v21  ;;  %v11078_v20 = vsub.s32 32, %v11035_v36 }
 0x2b6   : > { %v768_v53 = vsel %vm645_vm12, %v767_v7, %v11025_v4  ;;  %v884_v60 = vadd.s32 %v882_v51, %v876_v23  ;;  %v953_v1 = vand.u32 2147483647, %v16812_v26  ;;  %v11084_v30 = vadd.s32 %v867_v32, %v858_v39 }
 0x2b7   : > { %v756_v15 = vor.u32 %v755_v40, %v754_v29  ;;  %v759_v38 = vshll.u32 %v758_v54, 23  ;;  %vm885_vm0 = vc.u32 %v883_v37, %v879_v19  ;;  %v11087_v43 = vshrl.u32 %v10985_v17, 5 }
 0x2b8   : > { %vm11091_vm1 = vcmp.le.f32.partialorder %v643_v9, 0.7853982  ;;  %v837_v4 = vsel %vm831_vm5, %v834_v57, %v836_v16  ;;  %v886_v52 = vsel %vm885_vm0, 1, %v16760_v21  ;;  %v878_v13 = vshrl.u32 %v874_v33, 16 }
 0x2b9   : > { %v760_v58 = vor.u32 4788187, %v759_v38  ;;  %v11098_v6 = vadd.s32 %v883_v37, %v879_v19  ;;  %v888_v5 = vadd.s32 %v886_v52, %v884_v60  ;;  %v763_v31 = vcvt.s32.f32 %v756_v15 }
 0x2ba   : > { %v770_v17 = vsel %vm11091_vm1, 0, %v768_v53  ;;  %v880_v41 = vshrl.u32 %v875_v24, 16  ;;  %v960_v9 = vand.u32 8388607, %v953_v1  ;;  %v971_v8 = vshrl.u32 %v16752_v44, %v11078_v20 }
 0x2bb   : > { %v761_v63 = vand.u32 2147483647, %v760_v58  ;;  %v889_v59 = vadd.s32 %v888_v5, %v878_v13  ;;  %vm893_vm2 = vc.u32 %v11084_v30, %v11098_v6  ;;  %v973_v2 = vshll.u32 %v16752_v44, %v11035_v36 }
 0x2bc   : > { %v974_v42 = vshrl.u32 %v16753_v55, %v11078_v20  ;;  %v976_v33 = vshll.u32 %v16753_v55, %v11035_v36  ;;  %v977_v18 = vshrl.u32 %v16754_v14, %v11078_v20  ;;  %v979_v35 = vshll.u32 %v16754_v14, %v11035_v36 }
 0x2bd   : > { %v764_v57 = vmul.f32 %v763_v31, %v761_v63  ;;  %v890_v16 = vadd.s32 %v889_v59, %v880_v41  ;;  %v980_v47 = vshrl.u32 %v16755_v34, %v11078_v20  ;;  %v970_v7 = vshll.u32 %v16751_v22, %v11035_v36 }
 0x2be   : > { %v11122_v56 = vor.u32 %v974_v42, %v973_v2  ;;  %v982_v24 = vshll.u32 %v16755_v34, %v11035_v36  ;;  %v983_v49 = vshrl.u32 %v16756_v0, %v11078_v20  ;;  %v11128_v45 = vor.u32 %v977_v18, %v976_v33 }
 0x2bf   : > { %v765_v39 = vxor.u32 2147483648, %v764_v57  ;;  %v894_v3 = vadd.s32 1, %v890_v16  ;;  %v981_v48 = vor.u32 %v980_v47, %v979_v35  ;;  %v891_v27 = vmul.u32 %v11013_v61, %v837_v4 }
 0x2c0   : > { %v961_v23 = vor.u32 8388608, %v960_v9  ;;  %v984_v46 = vor.u32 %v983_v49, %v982_v24  ;;  %v787_v50 = vadd.s32 3, %v770_v17  ;;  %v11136_v32 = vor.u32 %v971_v8, %v970_v7 }
 0x2c1   : > { %v766_v25 = vsel %vm645_vm12, %v765_v39, %v764_v57  ;;  %v895_v36 = vsel %vm893_vm2, %v894_v3, %v890_v16  ;;  %vm985_vm3 = vcmp.lt.s32.totalorder %v11087_v43, 1  ;;  %vm988_vm4 = vcmp.lt.s32.totalorder %v11087_v43, 4 }
 0x2c2   : > { %v769_v12 = vsel %vm11091_vm1, %v16808_v10, %v766_v25  ;;  %v896_v29 = vadd.s32 %v895_v36, %v891_v27  ;;  %vm986_vm5 = vcmp.lt.s32.totalorder %v11087_v43, 2  ;;  %v994_v19 = vsel %vm988_vm4, %v981_v48, 920167782 }
 0x2c3   : > { %v771_v61 = vmul.f32 %v769_v12, %v769_v12  ;;  %v997_v40 = vsel %vm985_vm3, %v11122_v56, %v11128_v45  ;;  %vm987_vm6 = vcmp.lt.s32.totalorder %v11087_v43, 3  ;;  %v998_v51 = vsel %vm988_vm4, %v984_v46, 1326507024 }
 0x2c4   : > { %v897_v54 = vadd.s32 536870912, %v896_v29  ;;  %v11153_v37 = vshll.u32 %v961_v23, 8  ;;  %v993_v15 = vsel %vm985_vm3, %v11136_v32, %v11122_v56  ;;  %v999_v38 = vsel %vm987_vm6, %v981_v48, %v998_v51 }
 0x2c5   : > { %v772_v53 = vmul.f32 -0.001358992, %v771_v61  ;;  %v779_v60 = vmul.f32 -0.00019511016, %v771_v61  ;;  %v995_v4 = vsel %vm987_vm6, %v11128_v45, %v994_v19  ;;  %v1000_v52 = vsel %vm986_vm5, %v997_v40, %v999_v38 }
 0x2c6   : > { %v11161_v11 = vshrl.u32 %v897_v54, 30  ;;  %v1002_v58 = vand.u32 65535, %v11153_v37  ;;  %v1004_v31 = vand.u32 65535, %v1000_v52  ;;  %v1005_v17 = vshrl.u32 %v1000_v52, 16 }
 0x2c7   : > { %v773_v13 = vadd.f32 0.041655596, %v772_v53  ;;  %v780_v5 = vadd.f32 0.008332121, %v779_v60  ;;  %v1003_v9 = vshrl.u32 %v11153_v37, 16  ;;  %v996_v8 = vsel %vm986_vm5, %v993_v15, %v995_v4 }
 0x2c8   : > { %v899_v41 = vshll.u32 %v11161_v11, 30  ;;  %v1007_v2 = vmul.u32 %v1005_v17, %v1002_v58  ;;  %v788_v16 = vand.u32 3, %v787_v50  ;;  %v1006_v7 = vmul.u32 %v1004_v31, %v1002_v58 }
 0x2c9   : > { %v774_v63 = vmul.f32 %v773_v13, %v771_v61  ;;  %v781_v59 = vmul.f32 %v780_v5, %v771_v61  ;;  %v11173_v33 = vmul.u32 %v1004_v31, %v1003_v9  ;;  %v1026_v24 = vand.u32 65535, %v996_v8 }
 0x2ca   : > { %v900_v42 = vsub.s32 %v896_v29, %v899_v41  ;;  %v1010_v35 = vshll.u32 %v1007_v2, 16  ;;  %v1009_v3 = vmul.u32 %v1005_v17, %v1003_v9  ;;  %v1027_v48 = vshrl.u32 %v996_v8, 16 }
 0x2cb   : > { %v775_v18 = vadd.f32 -0.4999988, %v774_v63  ;;  %v782_v57 = vadd.f32 -0.16666654, %v781_v59  ;;  %v1012_v23 = vshll.u32 %v11173_v33, 16  ;;  %vm786_vm9 = vweird.f32 %v16808_v10 }
 0x2cc   : > { %vm901_vm7 = vcmp.lt.s32.totalorder %v900_v42, 0  ;;  %v902_v47 = vsub.s32 0, %v900_v42  ;;  %vm1014_vm8 = vc.u32 %v1006_v7, %v1010_v35  ;;  %v1016_v46 = vadd.s32 %v1010_v35, %v1006_v7 }
 0x2cd   : > { %v776_v49 = vmul.f32 %v775_v18, %v771_v61  ;;  %v783_v39 = vmul.f32 %v782_v57, %v771_v61  ;;  %v1015_v19 = vsel %vm1014_vm8, 1, %v16760_v21  ;;  %vm789_vm10 = vcmp.lt.s32.totalorder %v788_v16, 2 }
 0x2ce   : > { %v903_v27 = vsel %vm901_vm7, %v902_v47, %v900_v42  ;;  %v1017_v50 = vadd.s32 %v1015_v19, %v1009_v3  ;;  %vm1018_vm11 = vc.u32 %v1016_v46, %v1012_v23  ;;  %vm790_vm12 = vcmp.eq.s32.totalorder %v788_v16, 0 }
 0x2cf   : > { %v777_v25 = vadd.f32 1.0, %v776_v49  ;;  %v784_v36 = vadd.f32 1.0, %v783_v39  ;;  %v904_v29 = vclz %v903_v27  ;;  %vm793_vm13 = vcmp.eq.s32.totalorder %v788_v16, 2 }
 0x2d0   : > { %v1019_v61 = vsel %vm1018_vm11, 1, %v16760_v21  ;;  %v1029_v53 = vmul.u32 %v1027_v48, %v1002_v58  ;;  %v892_v15 = vadd.s32 %v11098_v6, %v11084_v30  ;;  %v1028_v38 = vmul.u32 %v1026_v24, %v1002_v58 }
 0x2d1   : > { %v785_v40 = vmul.f32 %v784_v36, %v769_v12  ;;  %v794_v54 = vxor.u32 2147483648, %v777_v25  ;;  %v8434_v51 = vadd.s32 4294967294, %v904_v29  ;;  %v1030_v13 = vmul.u32 %v1026_v24, %v1003_v9 }
 0x2d2   : > { %v1032_v5 = vshll.u32 %v1029_v53, 16  ;;  %v1021_v41 = vadd.s32 %v1019_v61, %v1017_v50  ;;  %v1011_v8 = vshrl.u32 %v1007_v2, 16  ;;  %v1031_v18 = vmul.u32 %v1027_v48, %v1003_v9 }
 0x2d3   : > { %v791_v60 = vxor.u32 2147483648, %v785_v40  ;;  %vm8435_vm14 = vcmp.lt.s32.totalorder %v8434_v51, 0  ;;  %v795_v4 = vsel %vm793_vm13, %v794_v54, %v785_v40  ;;  %v1034_v6 = vshll.u32 %v1030_v13, 16 }
 0x2d4   : > { %v907_v52 = vsel %vm8435_vm14, 0, %v8434_v51  ;;  %vm1036_vm15 = vc.u32 %v1028_v38, %v1032_v5  ;;  %v1038_v47 = vadd.s32 %v1032_v5, %v1028_v38  ;;  %v1022_v49 = vadd.s32 %v1021_v41, %v1011_v8 }
 0x2d5   : > { %v792_v31 = vsel %vm790_vm12, %v777_v25, %v791_v60  ;;  %v908_v12 = vsub.s32 32, %v907_v52  ;;  %v912_v17 = vsub.s32 4294967266, %v907_v52  ;;  %v909_v59 = vshll.u32 %v900_v42, %v907_v52 }
 0x2d6   : > { %v796_v63 = vsel %vm789_vm10, %v792_v31, %v795_v4  ;;  %v1037_v58 = vsel %vm1036_vm15, 1, %v16760_v21  ;;  %v969_v42 = vshrl.u32 %v16751_v22, %v11078_v20  ;;  %v990_v10 = vsel %vm988_vm4, %v11128_v45, 2102212464 }
 0x2d7   : > { %v797_v57 = vsel %vm786_vm9, nan, %v796_v63  ;;  %v910_v35 = vshrl.u32 %v892_v15, %v908_v12  ;;  %v913_v30 = vadd.s32 127, %v912_v17  ;;  %v1039_v39 = vadd.s32 %v1037_v58, %v1031_v18 }
 0x2d8   : > { %3053 = vmatpush.msra.mxu1 %v797_v57  ;;  %vm1040_vm0 = vc.u32 %v1038_v47, %v1034_v6  ;;  %v1013_v2 = vshrl.u32 %v11173_v33, 16  ;;  %v989_v3 = vsel %vm985_vm3, %v969_v42, %v11136_v32  ;;  %v1033_v48 = vshrl.u32 %v1029_v53, 16 }
 0x2d9   : > { %v911_v7 = vor.u32 %v910_v35, %v909_v59  ;;  %v914_v24 = vshll.u32 %v913_v30, 23  ;;  %v1041_v16 = vsel %vm1040_vm0, 1, %v16760_v21  ;;  %v991_v20 = vsel %vm987_vm6, %v11122_v56, %v990_v10 }
 0x2da   : > { %v1043_v27 = vadd.s32 %v1041_v16, %v1039_v39  ;;  %v1023_v25 = vadd.s32 %v1022_v49, %v1013_v2  ;;  %v1035_v45 = vshrl.u32 %v1030_v13, 16  ;;  %v1042_v19 = vadd.s32 %v1038_v47, %v1034_v6 }
 0x2db   : > { %v915_v9 = vor.u32 4788187, %v914_v24  ;;  %v918_v46 = vcvt.s32.f32 %v911_v7  ;;  %v992_v33 = vsel %vm986_vm5, %v989_v3, %v991_v20  ;;  %vm800_vm2 = vcmp.lt.s32.totalorder %v16811_v62, 0 }
 0x2dc   : > { %v1044_v36 = vadd.s32 %v1043_v27, %v1033_v48  ;;  %vm1048_vm1 = vc.u32 %v1023_v25, %v1042_v19  ;;  %vm11203_vm3 = vcmp.le.f32.partialorder %v798_v28, 0.7853982  ;;  %v1046_v51 = vmul.u32 %v11153_v37, %v992_v33 }
 0x2dd   : > { %v916_v23 = vand.u32 2147483647, %v915_v9  ;;  %v922_v61 = vsub.s32 4, %v11161_v11  ;;  %vm941_vm5 = vweird.f32 %v16811_v62  ;;  %v1047_v3 = vadd.s32 %v1042_v19, %v1023_v25  ;;  %v2975_v25 = vld [vmem:[%s16421_s4 + $0x18] sm:$0xff] }
 0x2de   : > { %v1045_v50 = vadd.s32 %v1044_v36, %v1035_v45  ;;  %vm16588_vm10 = vcmask 261120   ;;  %2993 = vperm.xlu1 %8667, %v2975_v25   ;;  %vm955_vm11 = vcmp.lt.s32.totalorder %v16812_v26, 0  ;;  %vm11239_vm12 = vcmp.le.f32.partialorder %v953_v1, 0.7853982 }
 0x2df   : > { %v919_v29 = vmul.f32 %v918_v46, %v916_v23  ;;  %v923_v28 = vsel %vm800_vm2, %v922_v61, %v11161_v11  ;;  %v2972_v61 = vld [vmem:[%s16421_s4] sm:$0xff]  ;;  %vm1096_vm0 = vweird.f32 %v16812_v26 }
 0x2e0   : > { %v1049_v32 = vadd.s32 1, %v1045_v50  ;;  %v925_v37 = vsel %vm11203_vm3, 0, %v923_v28 }
 0x2e1   : > { %v920_v40 = vxor.u32 2147483648, %v919_v29  ;;  %v942_v18 = vadd.s32 3, %v925_v37 }
 0x2e2   : > { %v1050_v53 = vsel %vm1048_vm1, %v1049_v32, %v1045_v50  ;;  %v2969_v32 = vld [vmem:[%s16420_s3 + $0x8] sm:$0xff] }
 0x2e3   : > { %v921_v56 = vsel %vm800_vm2, %v920_v40, %v919_v29  ;;  %v1051_v15 = vadd.s32 %v1050_v53, %v1046_v51  ;;  %v943_v47 = vand.u32 3, %v942_v18 }
 0x2e4   : > { %v924_v43 = vsel %vm11203_vm3, %v16811_v62, %v921_v56  ;;  %v11222_v62 = vld [vmem:[%s16420_s3] sm:$0xff] }
 0x2e5   : > { %v926_v60 = vmul.f32 %v924_v43, %v924_v43  ;;  %v1052_v52 = vadd.s32 536870912, %v1051_v15  ;;  %vm945_vm6 = vcmp.eq.s32.totalorder %v943_v47, 0  ;;  %vm948_vm7 = vcmp.eq.s32.totalorder %v943_v47, 2  ;;  %8475 = vmatmul.msk.f32.vlgmr.msra.gmra.mxu0 %vm16588_vm10, %v11222_v62  ;;  %8479 = vmatmul.msk.f32.vlgmr.msra.gmra.mxu1 %vm16588_vm10, %v11222_v62 }
 0x2e6   : > { %vm944_vm9 = vcmp.lt.s32.totalorder %v943_v47, 2  ;;  %2978 = vperm.xlu1 %8667, %v2972_v61  }
 0x2e7   : > { %v927_v38 = vmul.f32 -0.001358992, %v926_v60  ;;  %v934_v4 = vmul.f32 -0.00019511016, %v926_v60  ;;  %v11213_v31 = vshrl.u32 %v1052_v52, 30 }
 0x2e9   : > { %v928_v13 = vadd.f32 0.041655596, %v927_v38  ;;  %v935_v5 = vadd.f32 0.008332121, %v934_v4  ;;  %v1054_v41 = vshll.u32 %v11213_v31, 30  ;;  %v2970_v4 = vld [vmem:[%s16420_s3 + $0x10] sm:$0xff] }
 0x2eb   : > { %v929_v12 = vmul.f32 %v928_v13, %v926_v60  ;;  %v936_v17 = vmul.f32 %v935_v5, %v926_v60  ;;  %v1055_v8 = vsub.s32 %v1051_v15, %v1054_v41 }
 0x2ed   : > { %v930_v63 = vadd.f32 -0.4999988, %v929_v12  ;;  %v937_v59 = vadd.f32 -0.16666654, %v936_v17  ;;  %vm1056_vm4 = vcmp.lt.s32.totalorder %v1055_v8, 0  ;;  %v1057_v30 = vsub.s32 0, %v1055_v8  ;;  %8476 = vmatmul.msk.f32.gmra.mxu0 %vm16588_vm10, %v2969_v32  ;;  %8480 = vmatmul.msk.f32.gmra.mxu1 %vm16588_vm10, %v2969_v32 }
 0x2ee   : > { %v2973_v12 = vld [vmem:[%s16421_s4 + $0x8] sm:$0xff] }
 0x2ef   : > { %v931_v57 = vmul.f32 %v930_v63, %v926_v60  ;;  %v938_v35 = vmul.f32 %v937_v59, %v926_v60  ;;  %v1058_v58 = vsel %vm1056_vm4, %v1057_v30, %v1055_v8  ;;  %2983 = vperm.xlu0 %8668, %v2973_v12  }
 0x2f0   : > { %v1059_v7 = vclz %v1058_v58  ;;  %v5609_v58 = vld [vmem:[%s16423_s6] sm:$0xff] }
 0x2f1   : > { %v932_v11 = vadd.f32 1.0, %v931_v57  ;;  %v939_v6 = vadd.f32 1.0, %v938_v35 }
 0x2f2   : > { %v8437_v39 = vadd.s32 4294967294, %v1059_v7 }
 0x2f3   : > { %v940_v24 = vmul.f32 %v939_v6, %v924_v43  ;;  %v949_v49 = vxor.u32 2147483648, %v932_v11  ;;  %v1077_v43 = vsub.s32 4, %v11213_v31  ;;  %v5611_v6 = vld [vmem:[%s16423_s6 + $0x10] sm:$0xff] }
 0x2f4   : > { %vm8438_vm8 = vcmp.lt.s32.totalorder %v8437_v39, 0  ;;  %5625 = vperm.xlu1 %8667, %v5611_v6  }
 0x2f5   : > { %v946_v42 = vxor.u32 2147483648, %v940_v24  ;;  %v950_v9 = vsel %vm948_vm7, %v949_v49, %v940_v24  ;;  %v1062_v2 = vsel %vm8438_vm8, 0, %v8437_v39  ;;  %v1078_v38 = vsel %vm955_vm11, %v1077_v43, %v11213_v31  ;;  %8477 = vmatmul.msk.f32.gmra.mxu0 %vm16588_vm10, %v2970_v4  ;;  %8481 = vmatmul.msk.f32.gmra.mxu1 %vm16588_vm10, %v2970_v4 }
 0x2f6   : > { %v1063_v48 = vsub.s32 32, %v1062_v2  ;;  %v1067_v27 = vsub.s32 4294967266, %v1062_v2  ;;  %v1064_v46 = vshll.u32 %v1055_v8, %v1062_v2  ;;  %v1080_v13 = vsel %vm11239_vm12, 0, %v1078_v38  ;;  %v2971_v8 = vld [vmem:[%s16420_s3 + $0x18] sm:$0xff] }
 0x2f7   : > { %v947_v10 = vsel %vm945_vm6, %v932_v11, %v946_v42  ;;  %v1097_v41 = vadd.s32 3, %v1080_v13  ;;  %5615 = vperm.xlu0 %8668, %v5609_v58   ;;  %v8242_v42 = vld [vmem:[%s16425_s8] sm:$0x7] }
 0x2f8   : > { %v951_v16 = vsel %vm944_vm9, %v947_v10, %v950_v9  ;;  %v1065_v20 = vshrl.u32 %v1047_v3, %v1063_v48  ;;  %v1068_v45 = vadd.s32 127, %v1067_v27 }
 0x2f9   : > { %v952_v23 = vsel %vm941_vm5, nan, %v951_v16  ;;  %v1098_v35 = vand.u32 3, %v1097_v41 }
 0x2fa   : > { %3082 = vmatpush.msra.mxu2 %v952_v23  ;;  %v1066_v36 = vor.u32 %v1065_v20, %v1064_v46  ;;  %v1069_v29 = vshll.u32 %v1068_v45, 23 }
 0x2fb   : > { %8483 = vmatmul.msk.f32.vlgmr.msra.gmra.mxu2 %vm16588_vm10, %v11222_v62  ;;  %vm1100_vm13 = vcmp.eq.s32.totalorder %v1098_v35, 0  ;;  %vm1103_vm14 = vcmp.eq.s32.totalorder %v1098_v35, 2  ;;  %vm1099_vm15 = vcmp.lt.s32.totalorder %v1098_v35, 2 }
 0x2fc   : > { %v1070_v33 = vor.u32 4788187, %v1069_v29  ;;  %v1073_v50 = vcvt.s32.f32 %v1066_v36  ;;  %8245 = vperm.xlu1 %8667, %v8242_v42  }
 0x2fd   : > { %8478 = vmatmul.msk.f32.gmra.mxu0 %vm16588_vm10, %v2971_v8  ;;  %8482 = vmatmul.msk.f32.gmra.mxu1 %vm16588_vm10, %v2971_v8 }
 0x2fe   : > { %v1071_v19 = vand.u32 2147483647, %v1070_v33 }
 0x300   : > { %v1074_v40 = vmul.f32 %v1073_v50, %v1071_v19 }
 0x302   : > { %v1075_v54 = vxor.u32 2147483648, %v1074_v40 }
 0x303   : > { %8484 = vmatmul.msk.f32.gmra.mxu2 %vm16588_vm10, %v2969_v32 }
 0x304   : > { %v1076_v51 = vsel %vm955_vm11, %v1075_v54, %v1074_v40 }
 0x305   : > { %v1079_v53 = vsel %vm11239_vm12, %v16812_v26, %v1076_v51 }
 0x306   : > { %v1081_v1 = vmul.f32 %v1079_v53, %v1079_v53 }
 0x308   : > { %v1082_v60 = vmul.f32 -0.001358992, %v1081_v1  ;;  %v1089_v15 = vmul.f32 -0.00019511016, %v1081_v1 }
 0x30a   : > { %v1083_v52 = vadd.f32 0.041655596, %v1082_v60  ;;  %v1090_v28 = vadd.f32 0.008332121, %v1089_v15 }
 0x30b   : > { %8485 = vmatmul.msk.f32.gmra.mxu2 %vm16588_vm10, %v2970_v4 }
 0x30c   : > { %v1084_v5 = vmul.f32 %v1083_v52, %v1081_v1  ;;  %v1091_v37 = vmul.f32 %v1090_v28, %v1081_v1 }
 0x30e   : > { %v1085_v31 = vadd.f32 -0.4999988, %v1084_v5  ;;  %v1092_v17 = vadd.f32 -0.16666654, %v1091_v37 }
 0x310   : > { %v1086_v63 = vmul.f32 %v1085_v31, %v1081_v1  ;;  %v1093_v59 = vmul.f32 %v1092_v17, %v1081_v1 }
 0x312   : > { %v1087_v18 = vadd.f32 1.0, %v1086_v63  ;;  %v1094_v57 = vadd.f32 1.0, %v1093_v59 }
 0x313   : > { %8486 = vmatmul.msk.f32.gmra.mxu2 %vm16588_vm10, %v2971_v8 }
 0x314   : > { %v1095_v30 = vmul.f32 %v1094_v57, %v1079_v53  ;;  %v1104_v11 = vxor.u32 2147483648, %v1087_v18 }
 0x316   : > { %v1101_v47 = vxor.u32 2147483648, %v1095_v30  ;;  %v1105_v24 = vsel %vm1103_vm14, %v1104_v11, %v1095_v30  ;;  %v11319_v30 = vpop.permute.xlu2 %2988 }
 0x318   : > { %v1102_v7 = vsel %vm1100_vm13, %v1087_v18, %v1101_v47 }
 0x319   : > { %v1106_v49 = vsel %vm1099_vm15, %v1102_v7, %v1105_v24 }
 0x31a   : > { %v1107_v39 = vsel %vm1096_vm0, nan, %v1106_v49 }
 0x31b   : > { %3111 = vmatpush.msra.mxu3 %v1107_v39 }
 0x31c   : > { %8487 = vmatmul.msk.f32.vlgmr.msra.gmra.mxu3 %vm16588_vm10, %v11222_v62 }
 0x324   : > { %8488 = vmatmul.msk.f32.gmra.mxu3 %vm16588_vm10, %v2969_v32 }
 0x32c   : > { %8489 = vmatmul.msk.f32.gmra.mxu3 %vm16588_vm10, %v2970_v4 }
 0x334   : > { %8490 = vmatmul.msk.f32.gmra.mxu3 %vm16588_vm10, %v2971_v8 }
 0x350   : > { %v11286_v10 = vpop.permute.xlu1 %2993 }
 0x358   : > { %v2979_v26 = vpop.permute.xlu1 %2978 }
 0x361   : > { %v2984_v62 = vpop.permute.xlu0 %2983 }
 0x362   : > { %v3026_v16 = vpop.f32.mrf.mxu0  ;;  %v3055_v48 = vpop.f32.mrf.mxu1 }
 0x363   : > { %v11290_v3 = vadd.f32 %v3026_v16, %v2979_v26  ;;  %v11292_v27 = vadd.f32 %v3055_v48, %v2979_v26 }
 0x365   : > { %16820 = vst [vmem:[#allocation14_spill] sm:$0xff] %v11290_v3  ;;  %v3128_v23 = vand.u32 2139095040, %v11290_v3  ;;  %v3283_v46 = vand.u32 2139095040, %v11292_v27 }
 0x366   : > { %16821 = vst [vmem:[#allocation13_spill] sm:$0xff] %v11292_v27 }
 0x367   : > { %v3129_v20 = vshrl.u32 %v3128_v23, 23  ;;  %v3284_v36 = vshrl.u32 %v3283_v46, 23 }
 0x369   : > { %v8491_v29 = vadd.s32 4294967169, %v3129_v20  ;;  %v8494_v40 = vadd.s32 4294967169, %v3284_v36 }
 0x36a   : > { %v3029_v50 = vpop.f32.mrf.mxu0  ;;  %v3058_v51 = vpop.f32.mrf.mxu1 }
 0x36b   : > { %v3135_v32 = vadd.s32 1, %v8491_v29  ;;  %v11299_v56 = vadd.f32 %v3029_v50, %v2984_v62  ;;  %v3290_v61 = vadd.s32 1, %v8494_v40  ;;  %v11301_v43 = vadd.f32 %v3058_v51, %v2984_v62 }
 0x36d   : > { %vm3136_vm1 = vcmp.gt.s32.totalorder %v3135_v32, 0  ;;  %16823 = vst [vmem:[#allocation6_spill] sm:$0xff] %v11301_v43  ;;  %v3748_v1 = vand.u32 2139095040, %v11299_v56  ;;  %vm3291_vm2 = vcmp.gt.s32.totalorder %v3290_v61, 0  ;;  %v3903_v4 = vand.u32 2139095040, %v11301_v43 }
 0x36e   : > { %v3137_v15 = vsel %vm3136_vm1, %v3135_v32, 0  ;;  %v3292_v5 = vsel %vm3291_vm2, %v3290_v61, 0 }
 0x36f   : > { %v3749_v52 = vshrl.u32 %v3748_v1, 23  ;;  %v11308_v13 = vand.u32 31, %v3137_v15  ;;  %v3904_v31 = vshrl.u32 %v3903_v4, 23  ;;  %v11310_v17 = vand.u32 31, %v3292_v5 }
 0x370   : > { %v11315_v18 = vshrl.u32 %v3137_v15, 5  ;;  %v11330_v49 = vshrl.u32 %v3292_v5, 5 }
 0x371   : > { %16825 = vst [vmem:[#allocation16_spill] sm:$0xff] %v11308_v13  ;;  %v8503_v41 = vadd.s32 4294967169, %v3749_v52  ;;  %v11313_v59 = vsub.s32 32, %v11308_v13  ;;  %v8506_v35 = vadd.s32 4294967169, %v3904_v31  ;;  %v11322_v11 = vsub.s32 32, %v11310_v17 }
 0x372   : > { %v3032_v37 = vpop.f32.mrf.mxu0  ;;  %16826 = vst [vmem:[#allocation15_spill] sm:$0xff] %v11310_v17  ;;  %v3151_v7 = vshll.u32 %v16754_v14, %v11308_v13  ;;  %v3061_v42 = vpop.f32.mrf.mxu1  ;;  %vm3160_vm4 = vcmp.lt.s32.totalorder %v11315_v18, 4  ;;  %v3309_v23 = vshll.u32 %v16755_v34, %v11310_v17  ;;  %vm3315_vm8 = vcmp.lt.s32.totalorder %v11330_v49, 4 }
 0x373   : > { %16827 = vst [vmem:[#allocation7_spill] sm:$0xff] %v11313_v59  ;;  %v3755_v6 = vadd.s32 1, %v8503_v41  ;;  %v3152_v24 = vshrl.u32 %v16755_v34, %v11313_v59  ;;  %v11333_v39 = vadd.f32 %v3032_v37, %v11319_v30  ;;  %v3155_v48 = vshrl.u32 %v16756_v0, %v11313_v59 }
 0x374   : > { %16828 = vst [vmem:[#allocation20_spill] sm:$0xff] %v11315_v18  ;;  %v3910_v46 = vadd.s32 1, %v8506_v35  ;;  %v3307_v36 = vshrl.u32 %v16755_v34, %v11322_v11 }
 0x375   : > { %16830 = vst [vmem:[#allocation17_spill] sm:$0xff] %v11322_v11  ;;  %v4368_v20 = vand.u32 2139095040, %v11333_v39  ;;  %vm3756_vm5 = vcmp.gt.s32.totalorder %v3755_v6, 0 }
 0x376   : > { %16832 = vst [vmem:[#allocation8_spill] sm:$0xff] %v11330_v49  ;;  %v3757_v1 = vsel %vm3756_vm5, %v3755_v6, 0  ;;  %vm3911_vm6 = vcmp.gt.s32.totalorder %v3910_v46, 0 }
 0x377   : > { %v4369_v40 = vshrl.u32 %v4368_v20, 23 }
 0x37e   : > { %v3084_v9 = vpop.f32.mrf.mxu2 }
 0x37f   : > { %v11288_v2 = vadd.f32 %v3084_v9, %v2979_v26  ;;  %v3306_v9 = vshll.u32 %v16754_v14, %v11310_v17 }
 0x381   : > { %16819 = vst [vmem:[#allocation5_spill] sm:$0xff] %v11288_v2  ;;  %v3438_v45 = vand.u32 2139095040, %v11288_v2  ;;  %v11371_v5 = vor.u32 %v3307_v36, %v3306_v9 }
 0x383   : > { %v3439_v25 = vshrl.u32 %v3438_v45, 23  ;;  %v3035_v45 = vpop.f32.mrf.mxu0  ;;  %16835 = vst [vmem:[#allocation10_spill] sm:$0xff] %v11371_v5 }
 0x384   : > { %v11365_v61 = vadd.f32 %v3035_v45, %v11286_v10 }
 0x385   : > { %v8497_v54 = vadd.s32 4294967169, %v3439_v25  ;;  %v3310_v25 = vshrl.u32 %v16756_v0, %v11322_v11 }
 0x386   : > { %v3087_v33 = vpop.f32.mrf.mxu2 }
 0x387   : > { %v11297_v19 = vadd.f32 %v3087_v33, %v2984_v62  ;;  %v3445_v53 = vadd.s32 1, %v8497_v54  ;;  %v11353_v33 = vor.u32 %v3152_v24, %v3151_v7  ;;  %v3311_v37 = vor.u32 %v3310_v25, %v3309_v23 }
 0x389   : > { %16822 = vst [vmem:[#allocation12_spill] sm:$0xff] %v11297_v19  ;;  %vm3446_vm3 = vcmp.gt.s32.totalorder %v3445_v53, 0  ;;  %v4058_v28 = vand.u32 2139095040, %v11297_v19  ;;  %v11399_v23 = vsel %vm3315_vm8, %v3311_v37, 1326507024 }
 0x38a   : > { %v3447_v12 = vsel %vm3446_vm3, %v3445_v53, 0  ;;  %16834 = vst [vmem:[#allocation9_spill] sm:$0xff] %v11353_v33 }
 0x38b   : > { %v4059_v63 = vshrl.u32 %v4058_v28, 23  ;;  %v11317_v57 = vand.u32 31, %v3447_v12  ;;  %v4988_v28 = vand.u32 2139095040, %v11365_v61  ;;  %v11374_v41 = vshrl.u32 %v3447_v12, 5  ;;  %16842 = vst [vmem:[#allocation28_spill] sm:$0xff] %v11399_v23 }
 0x38d   : > { %16829 = vst [vmem:[#allocation18_spill] sm:$0xff] %v11317_v57  ;;  %v8509_v58 = vadd.s32 4294967169, %v4059_v63  ;;  %v11341_v16 = vsub.s32 32, %v11317_v57  ;;  %v3461_v32 = vshll.u32 %v16754_v14, %v11317_v57  ;;  %v3464_v51 = vshll.u32 %v16755_v34, %v11317_v57 }
 0x38e   : > { %v3090_v15 = vpop.f32.mrf.mxu2  ;;  %16836 = vst [vmem:[#allocation11_spill] sm:$0xff] %v11374_v41  ;;  %v11376_v63 = vand.u32 31, %v3757_v1  ;;  %v4989_v9 = vshrl.u32 %v4988_v28, 23  ;;  %vm16547_vm9 = vcmp.lt.s32.totalorder %v11374_v41, 4 }
 0x38f   : > { %16833 = vst [vmem:[#allocation22_spill] sm:$0xff] %v11341_v16  ;;  %v4065_v29 = vadd.s32 1, %v8509_v58  ;;  %v3462_v54 = vshrl.u32 %v16755_v34, %v11341_v16  ;;  %v3465_v53 = vshrl.u32 %v16756_v0, %v11341_v16  ;;  %v11379_v35 = vadd.f32 %v3090_v15, %v11319_v30 }
 0x390   : > { %v11405_v45 = vsub.s32 32, %v11376_v63 }
 0x391   : > { %vm4066_vm7 = vcmp.gt.s32.totalorder %v4065_v29, 0  ;;  %16837 = vst [vmem:[#allocation23_spill] sm:$0xff] %v11379_v35  ;;  %v11381_v6 = vor.u32 %v3462_v54, %v3461_v32  ;;  %v3466_v58 = vor.u32 %v3465_v53, %v3464_v51 }
 0x392   : > { %v4067_v7 = vsel %vm4066_vm7, %v4065_v29, 0  ;;  %v4678_v29 = vand.u32 2139095040, %v11379_v35 }
 0x393   : > { %16838 = vst [vmem:[#allocation24_spill] sm:$0xff] %v11381_v6  ;;  %v11407_v36 = vand.u32 31, %v4067_v7  ;;  %v11413_v25 = vsel %vm16547_vm9, %v11381_v6, 920167782  ;;  %v11429_v28 = vshrl.u32 %v4067_v7, 5 }
 0x394   : > { %16845 = vst [vmem:[#allocation31_spill] sm:$0xff] %v11413_v25 }
 0x395   : > { %16844 = vst [vmem:[#allocation30_spill] sm:$0xff] %v11407_v36  ;;  %v11434_v37 = vsub.s32 32, %v11407_v36  ;;  %vm16549_vm1 = vcmp.lt.s32.totalorder %v11429_v28, 4 }
 0x396   : > { %16849 = vst [vmem:[#allocation35_spill] sm:$0xff] %v11429_v28 }
 0x397   : > { %16850 = vst [vmem:[#allocation36_spill] sm:$0xff] %v11434_v37  ;;  %v4085_v16 = vshrl.u32 %v16756_v0, %v11434_v37 }
 0x39f   : > { %v3113_v60 = vpop.f32.mrf.mxu3 }
 0x3a0   : > { %v11304_v38 = vadd.f32 %v3113_v60, %v2979_v26  ;;  %v3154_v26 = vshll.u32 %v16755_v34, %v11308_v13  ;;  %v8515_v60 = vadd.s32 4294967169, %v4369_v40  ;;  %v11419_v40 = vshrl.u32 %v3757_v1, 5 }
 0x3a1   : > { %v3772_v1 = vshrl.u32 %v16755_v34, %v11405_v45 }
 0x3a2   : > { %16824 = vst [vmem:[#allocation19_spill] sm:$0xff] %v11304_v38  ;;  %v3593_v50 = vand.u32 2139095040, %v11304_v38  ;;  %v3156_v4 = vor.u32 %v3155_v48, %v3154_v26  ;;  %v4375_v24 = vadd.s32 1, %v8515_v60  ;;  %v11395_v48 = vsel %vm3315_vm8, %v11371_v5, 920167782 }
 0x3a3   : > { %16841 = vst [vmem:[#allocation27_spill] sm:$0xff] %v11395_v48  ;;  %v8527_v60 = vadd.s32 4294967169, %v4989_v9  ;;  %vm3780_vm15 = vcmp.lt.s32.totalorder %v11419_v40, 4 }
 0x3a4   : > { %v3594_v31 = vshrl.u32 %v3593_v50, 23  ;;  %v11390_v12 = vsel %vm3160_vm4, %v3156_v4, 1326507024  ;;  %v11417_v50 = vsel %vm16547_vm9, %v3466_v58, 1326507024  ;;  %vm4376_vm11 = vcmp.gt.s32.totalorder %v4375_v24, 0 }
 0x3a5   : > { %16840 = vst [vmem:[#allocation26_spill] sm:$0xff] %v11390_v12  ;;  %v3771_v4 = vshll.u32 %v16754_v14, %v11376_v63  ;;  %v3774_v58 = vshll.u32 %v16755_v34, %v11376_v63  ;;  %v4995_v6 = vadd.s32 1, %v8527_v60  ;;  %v4084_v60 = vshll.u32 %v16755_v34, %v11407_v36 }
 0x3a6   : > { %16846 = vst [vmem:[#allocation32_spill] sm:$0xff] %v11417_v50  ;;  %v16520_v12 = vand.u32 2147483647, %v11365_v61 }
 0x3a7   : > { %v3116_v8 = vpop.f32.mrf.mxu3  ;;  %v11453_v41 = vor.u32 %v3772_v1, %v3771_v4  ;;  %vm4996_vm14 = vcmp.gt.s32.totalorder %v4995_v6, 0 }
 0x3a8   : > { %v11324_v47 = vadd.f32 %v3116_v8, %v2984_v62  ;;  %v11351_v62 = vadd.f32 %v3061_v42, %v11319_v30  ;;  %v3912_v8 = vsel %vm3911_vm6, %v3910_v46, 0  ;;  %v11386_v42 = vsel %vm3160_vm4, %v11353_v33, 920167782 }
 0x3a9   : > { %16839 = vst [vmem:[#allocation25_spill] sm:$0xff] %v11386_v42  ;;  %v8500_v46 = vadd.s32 4294967169, %v3594_v31  ;;  %v11401_v20 = vand.u32 31, %v3912_v8  ;;  %v11421_v32 = vshrl.u32 %v3912_v8, 5  ;;  %v4377_v31 = vsel %vm4376_vm11, %v4375_v24, 0 }
 0x3aa   : > { %16831 = vst [vmem:[#allocation21_spill] sm:$0xff] %v11324_v47  ;;  %v4523_v52 = vand.u32 2139095040, %v11351_v62  ;;  %v4213_v54 = vand.u32 2139095040, %v11324_v47  ;;  %v4679_v8 = vshrl.u32 %v4678_v29, 23  ;;  %v11451_v50 = vand.u32 31, %v4377_v31 }
 0x3ab   : > { %16843 = vst [vmem:[#allocation29_spill] sm:$0xff] %v11401_v20  ;;  %v3600_v15 = vadd.s32 1, %v8500_v46  ;;  %v3926_v9 = vshll.u32 %v16754_v14, %v11401_v20  ;;  %v3929_v46 = vshll.u32 %v16755_v34, %v11401_v20  ;;  %vm3935_vm0 = vcmp.lt.s32.totalorder %v11421_v32, 4 }
 0x3ac   : > { %v4524_v26 = vshrl.u32 %v4523_v52, 23  ;;  %16847 = vst [vmem:[#allocation33_spill] sm:$0xff] %v11421_v32  ;;  %v11427_v52 = vsub.s32 32, %v11401_v20  ;;  %v4214_v38 = vshrl.u32 %v4213_v54, 23  ;;  %v8521_v54 = vadd.s32 4294967169, %v4679_v8 }
 0x3ad   : > { %vm3601_vm12 = vcmp.gt.s32.totalorder %v3600_v15, 0  ;;  %16852 = vst [vmem:[#allocation38_spill] sm:$0xff] %v11453_v41  ;;  %v11468_v8 = vsub.s32 32, %v11451_v50  ;;  %v4394_v28 = vshll.u32 %v16755_v34, %v11451_v50 }
 0x3ae   : > { %v8518_v51 = vadd.s32 4294967169, %v4524_v26  ;;  %16848 = vst [vmem:[#allocation34_spill] sm:$0xff] %v11427_v52  ;;  %v3775_v26 = vshrl.u32 %v16756_v0, %v11405_v45  ;;  %v3927_v24 = vshrl.u32 %v16755_v34, %v11427_v52  ;;  %v3930_v29 = vshrl.u32 %v16756_v0, %v11427_v52 }
 0x3af   : > { %v3119_v53 = vpop.f32.mrf.mxu3  ;;  %v3602_v2 = vsel %vm3601_vm12, %v3600_v15, 0  ;;  %v8512_v47 = vadd.s32 4294967169, %v4214_v38 }
 0x3b0   : > { %v11443_v7 = vadd.f32 %v3119_v53, %v11319_v30  ;;  %v4530_v25 = vadd.s32 1, %v8518_v51  ;;  %v4081_v30 = vshll.u32 %v16754_v14, %v11407_v36  ;;  %v4082_v53 = vshrl.u32 %v16755_v34, %v11434_v37 }
 0x3b1   : > { %v3776_v51 = vor.u32 %v3775_v26, %v3774_v58  ;;  %v11465_v4 = vor.u32 %v3927_v24, %v3926_v9  ;;  %v3931_v1 = vor.u32 %v3930_v29, %v3929_v46  ;;  %v4685_v26 = vadd.s32 1, %v8521_v54 }
 0x3b2   : > { %16851 = vst [vmem:[#allocation37_spill] sm:$0xff] %v11443_v7  ;;  %v4833_v57 = vand.u32 2139095040, %v11443_v7  ;;  %vm4531_vm13 = vcmp.gt.s32.totalorder %v4530_v25, 0  ;;  %v11471_v58 = vor.u32 %v4082_v53, %v4081_v30  ;;  %v11474_v37 = vand.u32 31, %v3602_v2  ;;  %v3064_v30 = vpop.f32.mrf.mxu1 }
 0x3b3   : > { %16853 = vst [vmem:[#allocation39_spill] sm:$0xff] %v11465_v4  ;;  %v4532_v38 = vsel %vm4531_vm13, %v4530_v25, 0  ;;  %v4997_v36 = vsel %vm4996_vm14, %v4995_v6, 0  ;;  %v11479_v9 = vsel %vm3780_vm15, %v11453_v41, 920167782  ;;  %v4086_v24 = vor.u32 %v4085_v16, %v4084_v60 }
 0x3b4   : > { %16854 = vst [vmem:[#allocation40_spill] sm:$0xff] %v11471_v58  ;;  %v4834_v15 = vshrl.u32 %v4833_v57, 23  ;;  %v11483_v46 = vsel %vm3780_vm15, %v3776_v51, 1326507024  ;;  %v4220_v29 = vadd.s32 1, %v8512_v47  ;;  %v11485_v53 = vshrl.u32 %v3602_v2, 5 }
 0x3b5   : > { %16855 = vst [vmem:[#allocation41_spill] sm:$0xff] %v11474_v37  ;;  %v11490_v25 = vsel %vm3935_vm0, %v11465_v4, 920167782  ;;  %v11494_v57 = vsel %vm3935_vm0, %v3931_v1, 1326507024  ;;  %v4392_v6 = vshrl.u32 %v16755_v34, %v11468_v8  ;;  %v11503_v47 = vand.u32 31, %v4532_v38 }
 0x3b6   : > { %16856 = vst [vmem:[#allocation42_spill] sm:$0xff] %v11479_v9  ;;  %v11501_v16 = vsel %vm16549_vm1, %v11471_v58, 920167782  ;;  %vm4686_vm2 = vcmp.gt.s32.totalorder %v4685_v26, 0  ;;  %v4999_v2 = vand.u32 31, %v4997_v36  ;;  %v11506_v54 = vsub.s32 32, %v11474_v37 }
 0x3b7   : > { %16857 = vst [vmem:[#allocation43_spill] sm:$0xff] %v11485_v53  ;;  %v4391_v51 = vshll.u32 %v16754_v14, %v11451_v50  ;;  %v8524_v60 = vadd.s32 4294967169, %v4834_v15  ;;  %v11511_v1 = vadd.f32 %v3064_v30, %v11286_v10  ;;  %v11515_v53 = vsel %vm16549_vm1, %v4086_v24, 1326507024 }
 0x3b8   : > { %16858 = vst [vmem:[#allocation44_spill] sm:$0xff] %v11490_v25  ;;  %vm4221_vm3 = vcmp.gt.s32.totalorder %v4220_v29, 0  ;;  %v4395_v58 = vshrl.u32 %v16756_v0, %v11468_v8  ;;  %v11523_v19 = vshll.u32 %v16754_v14, %v11474_v37  ;;  %v4687_v15 = vsel %vm4686_vm2, %v4685_v26, 0 }
 0x3b9   : > { %16859 = vst [vmem:[#allocation45_spill] sm:$0xff] %v11494_v57  ;;  %v11525_v7 = vor.u32 %v4392_v6, %v4391_v51  ;;  %v5143_v30 = vand.u32 2139095040, %v11511_v1  ;;  %v11530_v24 = vshrl.u32 %v4532_v38, 5  ;;  %v11539_v35 = vshrl.u32 %v16755_v34, %v11506_v54 }
 0x3ba   : > { %16860 = vst [vmem:[#allocation46_spill] sm:$0xff] %v11501_v16  ;;  %v11517_v16 = vshrl.u32 %v4377_v31, 5  ;;  %v11533_v31 = vsub.s32 32, %v11503_v47  ;;  %v4840_v6 = vadd.s32 1, %v8524_v60  ;;  %v4396_v51 = vor.u32 %v4395_v58, %v4394_v28 }
 0x3bb   : > { %16861 = vst [vmem:[#allocation47_spill] sm:$0xff] %v11506_v54  ;;  %v5144_v26 = vshrl.u32 %v5143_v30, 23  ;;  %v11544_v37 = vshrl.u32 %v4687_v15, 5  ;;  %v11546_v38 = vand.u32 31, %v4687_v15  ;;  %v4546_v54 = vshll.u32 %v16754_v14, %v11503_v47 }
 0x3bc   : > { %16862 = vst [vmem:[#allocation48_spill] sm:$0xff] %v11515_v53  ;;  %v11535_v53 = vsub.s32 32, %v4999_v2  ;;  %vm4400_vm5 = vcmp.lt.s32.totalorder %v11517_v16, 4  ;;  %v4547_v28 = vshrl.u32 %v16755_v34, %v11533_v31  ;;  %v4550_v58 = vshrl.u32 %v16756_v0, %v11533_v31 }
 0x3bd   : > { %16863 = vst [vmem:[#allocation49_spill] sm:$0xff] %v11523_v19  ;;  %v11541_v19 = vsel %vm4221_vm3, %v4220_v29, 0  ;;  %v11551_v48 = vsel %vm4400_vm5, %v11525_v7, 920167782  ;;  %v4549_v29 = vshll.u32 %v16755_v34, %v11503_v47  ;;  %v8530_v60 = vadd.s32 4294967169, %v5144_v26 }
 0x3be   : > { %16864 = vst [vmem:[#allocation50_spill] sm:$0xff] %v11539_v35  ;;  %vm4555_vm6 = vcmp.lt.s32.totalorder %v11530_v24, 4  ;;  %v5011_v15 = vshll.u32 %v16754_v14, %v4999_v2  ;;  %v5012_v30 = vshrl.u32 %v16755_v34, %v11535_v53  ;;  %vm4841_vm7 = vcmp.gt.s32.totalorder %v4840_v6, 0 }
 0x3bf   : > { %16865 = vst [vmem:[#allocation51_spill] sm:$0xff] %v11541_v19  ;;  %v11565_v35 = vshrl.u32 %v4997_v36, 5  ;;  %v5014_v19 = vshll.u32 %v16755_v34, %v4999_v2  ;;  %v5150_v5 = vadd.s32 1, %v8530_v60  ;;  %v5015_v26 = vshrl.u32 %v16756_v0, %v11535_v53 }
 0x3c0   : > { %16866 = vst [vmem:[#allocation52_spill] sm:$0xff] %v11544_v37  ;;  %v5002_v23 = vshll.u32 %v16751_v22, %v4999_v2  ;;  %v5003_v49 = vshrl.u32 %v16752_v44, %v11535_v53  ;;  %v5005_v11 = vshll.u32 %v16752_v44, %v4999_v2  ;;  %v5006_v17 = vshrl.u32 %v16753_v55, %v11535_v53 }
 0x3c1   : > { %16867 = vst [vmem:[#allocation53_spill] sm:$0xff] %v11546_v38  ;;  %vm5151_vm11 = vcmp.gt.s32.totalorder %v5150_v5, 0  ;;  %v5008_v36 = vshll.u32 %v16753_v55, %v4999_v2  ;;  %v5009_v27 = vshrl.u32 %v16754_v14, %v11535_v53  ;;  %v11580_v60 = vsub.s32 32, %v11546_v38 }
 0x3c2   : > { %v5013_v42 = vor.u32 %v5012_v30, %v5011_v15  ;;  %v5152_v33 = vsel %vm5151_vm11, %v5150_v5, 0  ;;  %v11585_v18 = vsel %vm4400_vm5, %v4396_v51, 1326507024  ;;  %v11587_v59 = vor.u32 %v4547_v28, %v4546_v54 }
 0x3c3   : > { %16868 = vst [vmem:[#allocation54_spill] sm:$0xff] %v11580_v60  ;;  %v4551_v13 = vor.u32 %v4550_v58, %v4549_v29  ;;  %v11589_v3 = vand.u32 31, %v5152_v33  ;;  %v4701_v2 = vshll.u32 %v16754_v14, %v11546_v38  ;;  %v4842_v25 = vsel %vm4841_vm7, %v4840_v6, 0 }
 0x3c4   : > { %v5016_v4 = vor.u32 %v5015_v26, %v5014_v19  ;;  %vm5020_vm12 = vcmp.lt.s32.totalorder %v11565_v35, 4  ;;  %v5004_v15 = vor.u32 %v5003_v49, %v5002_v23  ;;  %v5007_v30 = vor.u32 %v5006_v17, %v5005_v11 }
 0x3c5   : > { %v11596_v5 = vsub.s32 32, %v11589_v3  ;;  %v5010_v51 = vor.u32 %v5009_v27, %v5008_v36  ;;  %v4702_v54 = vshrl.u32 %v16755_v34, %v11580_v60  ;;  %v4704_v29 = vshll.u32 %v16755_v34, %v11546_v38 }
 0x3c6   : > { %v5026_v28 = vsel %vm5020_vm12, %v5013_v42, 920167782  ;;  %v4992_v19 = vand.u32 8388607, %v16520_v12  ;;  %v11609_v6 = vsel %vm4555_vm6, %v11587_v59, 920167782  ;;  %v4705_v17 = vshrl.u32 %v16756_v0, %v11580_v60 }
 0x3c7   : > { %v11613_v27 = vsel %vm4555_vm6, %v4551_v13, 1326507024  ;;  %v11617_v11 = vand.u32 31, %v4842_v25  ;;  %vm4710_vm13 = vcmp.lt.s32.totalorder %v11544_v37, 4  ;;  %v11620_v49 = vshrl.u32 %v4842_v25, 5 }
 0x3c8   : > { %v5030_v23 = vsel %vm5020_vm12, %v5016_v4, 1326507024  ;;  %vm5017_vm14 = vcmp.lt.s32.totalorder %v11565_v35, 1  ;;  %vm5019_vm2 = vcmp.lt.s32.totalorder %v11565_v35, 3  ;;  %v5166_v13 = vshll.u32 %v16754_v14, %v11589_v3 }
 0x3c9   : > { %16869 = vst [vmem:[#allocation55_spill] sm:$0xff] %v11617_v11  ;;  %v5167_v58 = vshrl.u32 %v16755_v34, %v11596_v5  ;;  %v5025_v26 = vsel %vm5017_vm14, %v5004_v15, %v5007_v30  ;;  %v5027_v25 = vsel %vm5019_vm2, %v5010_v51, %v5026_v28  ;;  %v5169_v36 = vshll.u32 %v16755_v34, %v11589_v3 }
 0x3ca   : > { %16870 = vst [vmem:[#allocation56_spill] sm:$0xff] %v11620_v49  ;;  %v5170_v4 = vshrl.u32 %v16756_v0, %v11596_v5  ;;  %v4993_v12 = vor.u32 8388608, %v4992_v19  ;;  %v5001_v49 = vshrl.u32 %v16751_v22, %v11535_v53  ;;  %v11640_v60 = vor.u32 %v4702_v54, %v4701_v2  ;;  %v3093_v0 = vpop.f32.mrf.mxu2 }
 0x3cb   : > { %v4706_v38 = vor.u32 %v4705_v17, %v4704_v29  ;;  %v11643_v57 = vsub.s32 32, %v11617_v11  ;;  %vm5018_vm3 = vcmp.lt.s32.totalorder %v11565_v35, 2  ;;  %v11648_v28 = vshll.u32 %v16754_v14, %v11617_v11 }
 0x3cc   : > { %16871 = vst [vmem:[#allocation57_spill] sm:$0xff] %v11640_v60  ;;  %v11652_v32 = vshll.u32 %v16755_v34, %v11617_v11  ;;  %v11654_v19 = vshrl.u32 %v5152_v33, 5  ;;  %v5028_v53 = vsel %vm5018_vm3, %v5025_v26, %v5027_v25  ;;  %v11658_v2 = vor.u32 %v5167_v58, %v5166_v13 }
 0x3cd   : > { %16872 = vst [vmem:[#allocation58_spill] sm:$0xff] %v11643_v57  ;;  %v5022_v54 = vsel %vm5020_vm12, %v5010_v51, 2102212464  ;;  %v5029_v29 = vsel %vm5017_vm14, %v5007_v30, %v5010_v51  ;;  %v5031_v17 = vsel %vm5019_vm2, %v5013_v42, %v5030_v23  ;;  %v5021_v33 = vsel %vm5017_vm14, %v5001_v49, %v5004_v15 }
 0x3ce   : > { %16873 = vst [vmem:[#allocation59_spill] sm:$0xff] %v11648_v28  ;;  %v5171_v28 = vor.u32 %v5170_v4, %v5169_v36  ;;  %v5032_v11 = vsel %vm5018_vm3, %v5029_v29, %v5031_v17  ;;  %v11670_v26 = vshll.u32 %v4993_v12, 8  ;;  %v5058_v25 = vand.u32 65535, %v5028_v53 }
 0x3cf   : > { %16874 = vst [vmem:[#allocation60_spill] sm:$0xff] %v11652_v32  ;;  %v5036_v13 = vand.u32 65535, %v5032_v11  ;;  %v5037_v58 = vshrl.u32 %v5032_v11, 16  ;;  %v5059_v32 = vshrl.u32 %v5028_v53, 16  ;;  %vm5175_vm7 = vcmp.lt.s32.totalorder %v11654_v19, 4 }
 0x3d0   : > { %v5023_v51 = vsel %vm5019_vm2, %v5007_v30, %v5022_v54  ;;  %v5034_v42 = vand.u32 65535, %v11670_v26  ;;  %v5035_v23 = vshrl.u32 %v11670_v26, 16  ;;  %v11680_v15 = vsel %vm4710_vm13, %v11640_v60, 920167782 }
 0x3d1   : > { %16875 = vst [vmem:[#allocation61_spill] sm:$0xff] %v11680_v15  ;;  %v11684_v12 = vsel %vm4710_vm13, %v4706_v38, 1326507024  ;;  %v5181_v11 = vsel %vm5175_vm7, %v11658_v2, 920167782  ;;  %v11690_v49 = vadd.f32 %v3093_v0, %v11286_v10  ;;  %v11697_v54 = vsel %vm5018_vm3, %v5021_v33, %v5023_v51 }
 0x3d2   : > { %16876 = vst [vmem:[#allocation62_spill] sm:$0xff] %v11684_v12  ;;  %v5185_v30 = vsel %vm5175_vm7, %v5171_v28, 1326507024  ;;  %v5039_v36 = vmul.u32 %v5037_v58, %v5034_v42  ;;  %v5040_v4 = vmul.u32 %v5036_v13, %v5035_v23  ;;  %v5061_v38 = vmul.u32 %v5059_v32, %v5034_v42 }
 0x3d3   : > { %16877 = vst [vmem:[#allocation63_spill] sm:$0xff] %v11690_v49  ;;  %v5062_v29 = vmul.u32 %v5058_v25, %v5035_v23  ;;  %v5157_v17 = vshll.u32 %v16751_v22, %v11589_v3  ;;  %v5038_v15 = vmul.u32 %v5036_v13, %v5034_v42  ;;  %v5041_v60 = vmul.u32 %v5037_v58, %v5035_v23 }
 0x3d4   : > { %v5042_v0 = vshll.u32 %v5039_v36, 16  ;;  %v5060_v12 = vmul.u32 %v5058_v25, %v5034_v42  ;;  %v5043_v37 = vshrl.u32 %v5039_v36, 16  ;;  %v5044_v52 = vshll.u32 %v5040_v4, 16 }
 0x3d5   : > { %v5063_v28 = vmul.u32 %v5059_v32, %v5035_v23  ;;  %v5064_v20 = vshll.u32 %v5061_v38, 16  ;;  %v5066_v53 = vshll.u32 %v5062_v29, 16  ;;  %v16878_v35 = vand.u32 2147483647, %v11511_v1 }
 0x3d6   : > { %vm5046_vm11 = vc.u32 %v5038_v15, %v5042_v0  ;;  %v5048_v43 = vadd.s32 %v5042_v0, %v5038_v15  ;;  %v5158_v13 = vshrl.u32 %v16752_v44, %v11596_v5  ;;  %v5065_v25 = vshrl.u32 %v5061_v38, 16 }
 0x3d7   : > { %v5147_v33 = vand.u32 8388607, %v16878_v35  ;;  %v5047_v51 = vsel %vm5046_vm11, 1, %v16760_v21  ;;  %vm5068_vm12 = vc.u32 %v5060_v12, %v5064_v20  ;;  %v5070_v9 = vadd.s32 %v5064_v20, %v5060_v12 }
 0x3d8   : > { %v5049_v58 = vadd.s32 %v5047_v51, %v5041_v60  ;;  %vm5050_vm14 = vc.u32 %v5048_v43, %v5044_v52  ;;  %v5069_v42 = vsel %vm5068_vm12, 1, %v16760_v21  ;;  %v11709_v35 = vor.u32 %v5158_v13, %v5157_v17  ;;  %v3122_v17 = vpop.f32.mrf.mxu3 }
 0x3d9   : > { %v5051_v32 = vsel %vm5050_vm14, 1, %v16760_v21  ;;  %v5071_v23 = vadd.s32 %v5069_v42, %v5063_v28  ;;  %vm5072_vm2 = vc.u32 %v5070_v9, %v5066_v53  ;;  %v5148_v15 = vor.u32 8388608, %v5147_v33 }
 0x3da   : > { %v5053_v36 = vadd.s32 %v5051_v32, %v5049_v58  ;;  %v5073_v0 = vsel %vm5072_vm2, 1, %v16760_v21  ;;  %v5160_v20 = vshll.u32 %v16752_v44, %v11589_v3  ;;  %v5161_v43 = vshrl.u32 %v16753_v55, %v11596_v5 }
 0x3db   : > { %v5075_v12 = vadd.s32 %v5073_v0, %v5071_v23  ;;  %v5163_v52 = vshll.u32 %v16753_v55, %v11589_v3  ;;  %v5164_v60 = vshrl.u32 %v16754_v14, %v11596_v5  ;;  %v5045_v38 = vshrl.u32 %v5040_v4, 16 }
 0x3dc   : > { %v5054_v28 = vadd.s32 %v5053_v36, %v5043_v37  ;;  %v5067_v33 = vshrl.u32 %v5062_v29, 16  ;;  %v11719_v51 = vadd.s32 %v5070_v9, %v5066_v53  ;;  %v5162_v58 = vor.u32 %v5161_v43, %v5160_v20 }
 0x3dd   : > { %v5076_v13 = vadd.s32 %v5075_v12, %v5065_v25  ;;  %v5165_v42 = vor.u32 %v5164_v60, %v5163_v52  ;;  %vm5172_vm3 = vcmp.lt.s32.totalorder %v11654_v19, 1  ;;  %vm5173_vm11 = vcmp.lt.s32.totalorder %v11654_v19, 2 }
 0x3de   : > { %v11722_v32 = vadd.s32 %v5054_v28, %v5045_v38  ;;  %vm5174_vm12 = vcmp.lt.s32.totalorder %v11654_v19, 3  ;;  %v11726_v3 = vshll.u32 %v5148_v15, 8  ;;  %v5180_v37 = vsel %vm5172_vm3, %v11709_v35, %v5162_v58 }
 0x3df   : > { %v5077_v23 = vadd.s32 %v5076_v13, %v5067_v33  ;;  %v5182_v9 = vsel %vm5174_vm12, %v5165_v42, %v5181_v11  ;;  %v5186_v4 = vsel %vm5174_vm12, %v11658_v2, %v5185_v30  ;;  %v5298_v53 = vand.u32 2139095040, %v11690_v49 }
 0x3e0   : > { %v11738_v29 = vadd.f32 %v3122_v17, %v11286_v10  ;;  %vm5080_vm14 = vc.u32 %v11722_v32, %v11719_v51  ;;  %v5183_v25 = vsel %vm5173_vm11, %v5180_v37, %v5182_v9  ;;  %v5078_v15 = vmul.u32 %v11670_v26, %v11697_v54 }
 0x3e1   : > { %v5081_v36 = vadd.s32 1, %v5077_v23  ;;  %v5184_v11 = vsel %vm5172_vm3, %v5162_v58, %v5165_v42  ;;  %v5189_v2 = vand.u32 65535, %v11726_v3  ;;  %v5190_v10 = vshrl.u32 %v11726_v3, 16 }
 0x3e2   : > { %16879 = vst [vmem:[#allocation64_spill] sm:$0xff] %v11738_v29  ;;  %v5187_v30 = vsel %vm5173_vm11, %v5184_v11, %v5186_v4  ;;  %v5213_v0 = vand.u32 65535, %v5183_v25  ;;  %v5214_v20 = vshrl.u32 %v5183_v25, 16  ;;  %v11754_v12 = vshrl.u32 %v16755_v34, %v11643_v57 }
 0x3e3   : > { %v5082_v43 = vsel %vm5080_vm14, %v5081_v36, %v5077_v23  ;;  %v5191_v52 = vand.u32 65535, %v5187_v30  ;;  %v5192_v26 = vshrl.u32 %v5187_v30, 16  ;;  %v5453_v54 = vand.u32 2139095040, %v11738_v29 }
 0x3e4   : > { %16880 = vst [vmem:[#allocation65_spill] sm:$0xff] %v11754_v12  ;;  %v5083_v60 = vadd.s32 %v5082_v43, %v5078_v15  ;;  %v5216_v38 = vmul.u32 %v5214_v20, %v5189_v2  ;;  %v5217_v28 = vmul.u32 %v5213_v0, %v5190_v10  ;;  %v5299_v33 = vshrl.u32 %v5298_v53, 23 }
 0x3e5   : > { %v5156_v17 = vshrl.u32 %v16751_v22, %v11596_v5  ;;  %v5194_v13 = vmul.u32 %v5192_v26, %v5189_v2  ;;  %v5195_v37 = vmul.u32 %v5191_v52, %v5190_v10  ;;  %v5177_v4 = vsel %vm5175_vm7, %v5165_v42, 2102212464 }
 0x3e6   : > { %v5084_v9 = vadd.s32 536870912, %v5083_v60  ;;  %v5215_v25 = vmul.u32 %v5213_v0, %v5189_v2  ;;  %v5219_v11 = vshll.u32 %v5216_v38, 16  ;;  %v5193_v23 = vmul.u32 %v5191_v52, %v5189_v2 }
 0x3e7   : > { %v5196_v36 = vmul.u32 %v5192_v26, %v5190_v10  ;;  %v5197_v30 = vshll.u32 %v5194_v13, 16  ;;  %v5218_v12 = vmul.u32 %v5214_v20, %v5190_v10  ;;  %v5199_v15 = vshll.u32 %v5195_v37, 16 }
 0x3e8   : > { %v5085_v29 = vshrl.u32 %v5084_v9, 30  ;;  %v5221_v43 = vshll.u32 %v5217_v28, 16  ;;  %vm5223_vm2 = vc.u32 %v5215_v25, %v5219_v11  ;;  %v5225_v57 = vadd.s32 %v5219_v11, %v5215_v25 }
 0x3e9   : > { %vm5201_vm14 = vc.u32 %v5193_v23, %v5197_v30  ;;  %v5203_v53 = vadd.s32 %v5197_v30, %v5193_v23  ;;  %v5224_v5 = vsel %vm5223_vm2, 1, %v16760_v21  ;;  %v5176_v42 = vsel %vm5172_vm3, %v5156_v17, %v11709_v35 }
 0x3ea   : > { %v5086_v49 = vshll.u32 %v5085_v29, 30  ;;  %v5202_v0 = vsel %vm5201_vm14, 1, %v16760_v21  ;;  %v5226_v2 = vadd.s32 %v5224_v5, %v5218_v12  ;;  %v5178_v10 = vsel %vm5174_vm12, %v5162_v58, %v5177_v4 }
 0x3eb   : > { %v5204_v20 = vadd.s32 %v5202_v0, %v5196_v36  ;;  %vm5205_vm7 = vc.u32 %v5203_v53, %v5199_v15  ;;  %vm5227_vm9 = vc.u32 %v5225_v57, %v5221_v43  ;;  %v8533_v52 = vadd.s32 4294967169, %v5299_v33 }
 0x3ec   : > { %v5087_v26 = vsub.s32 %v5083_v60, %v5086_v49  ;;  %v5206_v9 = vsel %vm5205_vm7, 1, %v16760_v21  ;;  %v5228_v25 = vsel %vm5227_vm9, 1, %v16760_v21  ;;  %v5198_v11 = vshrl.u32 %v5194_v13, 16 }
 0x3ed   : > { %v5208_v23 = vadd.s32 %v5206_v9, %v5204_v20  ;;  %v5220_v30 = vshrl.u32 %v5216_v38, 16  ;;  %v5230_v34 = vadd.s32 %v5228_v25, %v5226_v2  ;;  %v5179_v12 = vsel %vm5173_vm11, %v5176_v42, %v5178_v10 }
 0x3ee   : > { %vm5088_vm3 = vcmp.lt.s32.totalorder %v5087_v26, 0  ;;  %v5089_v35 = vsub.s32 0, %v5087_v26  ;;  %v5200_v17 = vshrl.u32 %v5195_v37, 16  ;;  %v5109_v58 = vsub.s32 4, %v5085_v29 }
 0x3ef   : > { %v5209_v4 = vadd.s32 %v5208_v23, %v5198_v11  ;;  %v5222_v36 = vshrl.u32 %v5217_v28, 16  ;;  %v5231_v15 = vadd.s32 %v5230_v34, %v5220_v30  ;;  %v11772_v33 = vshrl.u32 %v5453_v54, 23 }
 0x3f0   : > { %vm4987_vm12 = vcmp.lt.s32.totalorder %v11365_v61, 0  ;;  %v5090_v49 = vsel %vm5088_vm3, %v5089_v35, %v5087_v26  ;;  %v16550_v60 = vand.u32 2147483647, %v11333_v39  ;;  %v11778_v53 = vadd.s32 %v5225_v57, %v5221_v43 }
 0x3f1   : > { %v5091_v13 = vclz %v5090_v49  ;;  %v11776_v38 = vadd.s32 %v5209_v4, %v5200_v17  ;;  %v5232_v5 = vadd.s32 %v5231_v15, %v5222_v36  ;;  %v11780_v19 = vadd.s32 1, %v8533_v52 }
 0x3f2   : > { %v16881_v37 = vand.u32 2147483647, %v11365_v61  ;;  %v5233_v34 = vmul.u32 %v11726_v3, %v5179_v12  ;;  %v4383_v54 = vshrl.u32 %v16752_v44, %v11468_v8  ;;  %v5110_v0 = vsel %vm4987_vm12, %v5109_v58, %v5085_v29 }
 0x3f3   : > { %v8528_v42 = vadd.s32 4294967294, %v5091_v13  ;;  %vm5235_vm11 = vc.u32 %v11776_v38, %v11778_v53  ;;  %v5236_v57 = vadd.s32 1, %v5232_v5  ;;  %v4372_v43 = vand.u32 8388607, %v16550_v60 }
 0x3f4   : > { %vm11784_vm9 = vcmp.le.f32.partialorder %v16881_v37, 0.7853982  ;;  %v4382_v2 = vshll.u32 %v16751_v22, %v11451_v50  ;;  %v4385_v3 = vshll.u32 %v16752_v44, %v11451_v50  ;;  %v4386_v10 = vshrl.u32 %v16753_v55, %v11468_v8 }
 0x3f5   : > { %vm8529_vm2 = vcmp.lt.s32.totalorder %v8528_v42, 0  ;;  %v5237_v20 = vsel %vm5235_vm11, %v5236_v57, %v5232_v5  ;;  %v4388_v29 = vshll.u32 %v16753_v55, %v11451_v50  ;;  %v4389_v52 = vshrl.u32 %v16754_v14, %v11468_v8 }
 0x3f6   : > { %v5094_v9 = vsel %vm8529_vm2, 0, %v8528_v42  ;;  %v5238_v25 = vadd.s32 %v5237_v20, %v5233_v34  ;;  %v4384_v11 = vor.u32 %v4383_v54, %v4382_v2  ;;  %v4387_v23 = vor.u32 %v4386_v10, %v4385_v3 }
 0x3f7   : > { %v5079_v30 = vadd.s32 %v11719_v51, %v11722_v32  ;;  %v5095_v35 = vsub.s32 32, %v5094_v9  ;;  %v5099_v12 = vsub.s32 4294967266, %v5094_v9  ;;  %v4390_v17 = vor.u32 %v4389_v52, %v4388_v29 }
 0x3f8   : > { %v5112_v58 = vsel %vm11784_vm9, 0, %v5110_v0  ;;  %v5239_v4 = vadd.s32 536870912, %v5238_v25  ;;  %v4373_v36 = vor.u32 8388608, %v4372_v43  ;;  %vm4397_vm14 = vcmp.lt.s32.totalorder %v11517_v16, 1 }
 0x3f9   : > { %v5096_v50 = vshll.u32 %v5087_v26, %v5094_v9  ;;  %v5097_v15 = vshrl.u32 %v5079_v30, %v5095_v35  ;;  %v5100_v49 = vadd.s32 127, %v5099_v12  ;;  %vm4399_vm7 = vcmp.lt.s32.totalorder %v11517_v16, 3 }
 0x3fa   : > { %v5240_v13 = vshrl.u32 %v5239_v4, 30  ;;  %v4405_v5 = vsel %vm4397_vm14, %v4384_v11, %v4387_v23  ;;  %v4407_v51 = vsel %vm4399_vm7, %v4390_v17, %v11551_v48  ;;  %v4409_v32 = vsel %vm4397_vm14, %v4387_v23, %v4390_v17 }
 0x3fb   : > { %v5098_v37 = vor.u32 %v5097_v15, %v5096_v50  ;;  %v5101_v34 = vshll.u32 %v5100_v49, 23  ;;  %vm4398_vm3 = vcmp.lt.s32.totalorder %v11517_v16, 2  ;;  %v4411_v26 = vsel %vm4399_vm7, %v11525_v7, %v11585_v18 }
 0x3fc   : > { %vm5142_vm11 = vcmp.lt.s32.totalorder %v11511_v1, 0  ;;  %v5241_v54 = vshll.u32 %v5240_v13, 30  ;;  %v4412_v42 = vsel %vm4398_vm3, %v4409_v32, %v4411_v26  ;;  %v11828_v0 = vshll.u32 %v4373_v36, 8 }
 0x3fd   : > { %v5102_v48 = vor.u32 4788187, %v5101_v34  ;;  %v5129_v57 = vadd.s32 3, %v5112_v58  ;;  %v11832_v43 = vsel %vm4398_vm3, %v4405_v5, %v4407_v51  ;;  %v4417_v2 = vshrl.u32 %v4412_v42, 16 }
 0x3fe   : > { %v16884_v3 = vand.u32 2147483647, %v11511_v1  ;;  %v11840_v18 = vsub.s32 %v5238_v25, %v5241_v54  ;;  %v4381_v7 = vshrl.u32 %v16751_v22, %v11468_v8  ;;  %v4416_v20 = vand.u32 65535, %v4412_v42 }
 0x3ff   : > { %v5103_v29 = vand.u32 2147483647, %v5102_v48  ;;  %v5105_v52 = vcvt.s32.f32 %v5098_v37  ;;  %v5264_v9 = vsub.s32 4, %v5240_v13  ;;  %v4414_v30 = vand.u32 65535, %v11828_v0 }
 0x400   : > { %vm11836_vm2 = vcmp.le.f32.partialorder %v16884_v3, 0.7853982  ;;  %vm5243_vm1 = vcmp.lt.s32.totalorder %v11840_v18, 0  ;;  %v5244_v35 = vsub.s32 0, %v11840_v18  ;;  %v4415_v12 = vshrl.u32 %v11828_v0, 16 }
 0x401   : > { %v4439_v58 = vshrl.u32 %v11832_v43, 16  ;;  %v5106_v4 = vmul.f32 %v5105_v52, %v5103_v29  ;;  %v11849_v25 = vand.u32 3, %v5129_v57  ;;  %v4402_v8 = vsel %vm4400_vm5, %v4390_v17, 2102212464 }
 0x402   : > { %v4419_v36 = vmul.u32 %v4417_v2, %v4414_v30  ;;  %v5234_v50 = vadd.s32 %v11778_v53, %v11776_v38  ;;  %v5245_v15 = vsel %vm5243_vm1, %v5244_v35, %v11840_v18  ;;  %v4401_v49 = vsel %vm4397_vm14, %v4381_v7, %v4384_v11 }
 0x403   : > { %v11858_v5 = vmul.u32 %v4416_v20, %v4415_v12  ;;  %v5107_v51 = vxor.u32 2147483648, %v5106_v4  ;;  %v5246_v32 = vclz %v5245_v15  ;;  %v4418_v37 = vmul.u32 %v4416_v20, %v4414_v30 }
 0x404   : > { %v4422_v34 = vshll.u32 %v4419_v36, 16  ;;  %v5265_v26 = vsel %vm5142_vm11, %v5264_v9, %v5240_v13  ;;  %v4403_v17 = vsel %vm4399_vm7, %v4387_v23, %v4402_v8  ;;  %v4438_v54 = vand.u32 65535, %v11832_v43 }
 0x405   : > { %v11865_v38 = vmul.u32 %v4439_v58, %v4414_v30  ;;  %v5108_v53 = vsel %vm4987_vm12, %v5107_v51, %v5106_v4  ;;  %v8531_v11 = vadd.s32 4294967294, %v5246_v32  ;;  %v4421_v42 = vmul.u32 %v4417_v2, %v4415_v12 }
 0x406   : > { %vm4426_vm1 = vc.u32 %v4418_v37, %v4422_v34  ;;  %v11872_v48 = vsel %vm11784_vm9, %v11365_v61, %v5108_v53  ;;  %v4424_v13 = vshll.u32 %v11858_v5, 16  ;;  %v4428_v23 = vadd.s32 %v4422_v34, %v4418_v37 }
 0x407   : > { %v4427_v57 = vsel %vm4426_vm1, 1, %v16760_v21  ;;  %v5113_v43 = vmul.f32 %v11872_v48, %v11872_v48  ;;  %vm8532_vm5 = vcmp.lt.s32.totalorder %v8531_v11, 0  ;;  %v5267_v3 = vsel %vm11836_vm2, 0, %v5265_v26 }
 0x408   : > { %v4429_v7 = vadd.s32 %v4427_v57, %v4421_v42  ;;  %v5249_v2 = vsel %vm8532_vm5, 0, %v8531_v11  ;;  %vm4430_vm12 = vc.u32 %v4428_v23, %v4424_v13  ;;  %v4442_v20 = vmul.u32 %v4438_v54, %v4415_v12 }
 0x409   : > { %v4444_v28 = vshll.u32 %v11865_v38, 16  ;;  %v5114_v29 = vmul.f32 -0.001358992, %v5113_v43  ;;  %v5121_v52 = vmul.f32 -0.00019511016, %v5113_v43  ;;  %v5250_v9 = vsub.s32 32, %v5249_v2 }
 0x40a   : > { %v4440_v35 = vmul.u32 %v4438_v54, %v4414_v30  ;;  %v5251_v4 = vshll.u32 %v11840_v18, %v5249_v2  ;;  %v5254_v8 = vsub.s32 4294967266, %v5249_v2  ;;  %v4423_v15 = vshrl.u32 %v4419_v36, 16 }
 0x40b   : > { %v4431_v51 = vsel %vm4430_vm12, 1, %v16760_v21  ;;  %v5115_v32 = vadd.f32 0.041655596, %v5114_v29  ;;  %v5122_v37 = vadd.f32 0.008332121, %v5121_v52  ;;  %v5252_v34 = vshrl.u32 %v5234_v50, %v5250_v9 }
 0x40c   : > { %v4433_v26 = vadd.s32 %v4431_v51, %v4429_v7  ;;  %v5255_v53 = vadd.s32 127, %v5254_v8  ;;  %v4446_v11 = vshll.u32 %v4442_v20, 16  ;;  %vm4448_vm9 = vc.u32 %v4440_v35, %v4444_v28 }
 0x40d   : > { %v4450_v42 = vadd.s32 %v4444_v28, %v4440_v35  ;;  %v5116_v13 = vmul.f32 %v5115_v32, %v5113_v43  ;;  %v5123_v57 = vmul.f32 %v5122_v37, %v5113_v43  ;;  %v4443_v60 = vmul.u32 %v4439_v58, %v4415_v12 }
 0x40e   : > { %v4434_v23 = vadd.s32 %v4433_v26, %v4423_v15  ;;  %v5253_v41 = vor.u32 %v5252_v34, %v5251_v4  ;;  %v5256_v30 = vshll.u32 %v5255_v53, 23  ;;  %v4449_v18 = vsel %vm4448_vm9, 1, %v16760_v21 }
 0x40f   : > { %vm4452_vm14 = vc.u32 %v4450_v42, %v4446_v11  ;;  %v5117_v36 = vadd.f32 -0.4999988, %v5116_v13  ;;  %v5124_v54 = vadd.f32 -0.16666654, %v5123_v57  ;;  %vm5135_vm7 = vcmp.eq.s32.totalorder %v11849_v25, 2 }
 0x410   : > { %v4425_v50 = vshrl.u32 %v11858_v5, 16  ;;  %vm5132_vm1 = vcmp.eq.s32.totalorder %v11849_v25, 0  ;;  %v5257_v7 = vor.u32 4788187, %v5256_v30  ;;  %v4404_v2 = vsel %vm4398_vm3, %v4401_v49, %v4403_v17 }
 0x411   : > { %v4451_v28 = vadd.s32 %v4449_v18, %v4443_v60  ;;  %v4453_v12 = vsel %vm4452_vm14, 1, %v16760_v21  ;;  %v5118_v58 = vmul.f32 %v5117_v36, %v5113_v43  ;;  %v5125_v29 = vmul.f32 %v5124_v54, %v5113_v43 }
 0x412   : > { %vm5131_vm5 = vcmp.lt.s32.totalorder %v11849_v25, 2  ;;  %v5284_v52 = vadd.s32 3, %v5267_v3  ;;  %v11891_v9 = vadd.s32 %v4434_v23, %v4425_v50  ;;  %vm5128_vm12 = vweird.f32 %v11365_v61 }
 0x413   : > { %v5258_v35 = vand.u32 2147483647, %v5257_v7  ;;  %v5260_v5 = vcvt.s32.f32 %v5253_v41  ;;  %v4445_v4 = vshrl.u32 %v11865_v38, 16  ;;  %v4455_v8 = vadd.s32 %v4453_v12, %v4451_v28 }
 0x414   : > { %v5119_v15 = vadd.f32 1.0, %v5118_v58  ;;  %v5126_v16 = vadd.f32 1.0, %v5125_v29  ;;  %v4454_v49 = vadd.s32 %v4450_v42, %v4446_v11  ;;  %v4520_v60 = vand.u32 2147483647, %v11351_v62 }
 0x415   : > { %v5261_v17 = vmul.f32 %v5260_v5, %v5258_v35  ;;  %v4447_v51 = vshrl.u32 %v4442_v20, 16  ;;  %v4456_v43 = vadd.s32 %v4455_v8, %v4445_v4  ;;  %v4458_v32 = vmul.u32 %v11828_v0, %v4404_v2 }
 0x416   : > { %v5127_v3 = vmul.f32 %v5126_v16, %v11872_v48  ;;  %v5136_v37 = vxor.u32 2147483648, %v5119_v15  ;;  %vm4460_vm3 = vc.u32 %v11891_v9, %v4454_v49  ;;  %v4538_v41 = vshrl.u32 %v16752_v44, %v11533_v31 }
 0x417   : > { %v5262_v38 = vxor.u32 2147483648, %v5261_v17  ;;  %v4457_v34 = vadd.s32 %v4456_v43, %v4447_v51  ;;  %v4537_v26 = vshll.u32 %v16751_v22, %v11503_v47  ;;  %v4541_v53 = vshrl.u32 %v16753_v55, %v11533_v31 }
 0x418   : > { %v5133_v20 = vxor.u32 2147483648, %v5127_v3  ;;  %v5137_v0 = vsel %vm5135_vm7, %v5136_v37, %v5127_v3  ;;  %v4527_v48 = vand.u32 8388607, %v4520_v60  ;;  %v4540_v11 = vshll.u32 %v16752_v44, %v11503_v47 }
 0x419   : > { %v5263_v42 = vsel %vm5142_vm11, %v5262_v38, %v5261_v17  ;;  %v4461_v13 = vadd.s32 1, %v4457_v34  ;;  %v4543_v57 = vshll.u32 %v16753_v55, %v11503_v47  ;;  %v4544_v23 = vshrl.u32 %v16754_v14, %v11533_v31 }
 0x41a   : > { %v5134_v30 = vsel %vm5132_vm1, %v5119_v15, %v5133_v20  ;;  %v11922_v18 = vsel %vm11836_vm2, %v11511_v1, %v5263_v42  ;;  %v11924_v36 = vor.u32 %v4538_v41, %v4537_v26  ;;  %v11926_v54 = vor.u32 %v4541_v53, %v4540_v11 }
 0x41b   : > { %v5138_v50 = vsel %vm5131_vm5, %v5134_v30, %v5137_v0  ;;  %v5268_v47 = vmul.f32 %v11922_v18, %v11922_v18  ;;  %v4462_v7 = vsel %vm4460_vm3, %v4461_v13, %v4457_v34  ;;  %v4545_v2 = vor.u32 %v4544_v23, %v4543_v57 }
 0x41c   : > { %v8536_v28 = vadd.s32 4294967169, %v11772_v33  ;;  %v5139_v10 = vsel %vm5128_vm12, nan, %v5138_v50  ;;  %v4463_v12 = vadd.s32 %v4462_v7, %v4458_v32  ;;  %v4528_v58 = vor.u32 8388608, %v4527_v48 }
 0x41d   : > { %5657 = vmatpush.msrb.mxu0 %v5139_v10  ;;  %v5269_v29 = vmul.f32 -0.001358992, %v5268_v47  ;;  %v5276_v35 = vmul.f32 -0.00019511016, %v5268_v47  ;;  %vm4552_vm11 = vcmp.lt.s32.totalorder %v11530_v24, 1  ;;  %vm4554_vm2 = vcmp.lt.s32.totalorder %v11530_v24, 3 }
 0x41e   : > { %v4464_v25 = vadd.s32 536870912, %v4463_v12  ;;  %v4560_v5 = vsel %vm4552_vm11, %v11924_v36, %v11926_v54  ;;  %v4562_v61 = vsel %vm4554_vm2, %v4545_v2, %v11609_v6  ;;  %v4564_v33 = vsel %vm4552_vm11, %v11926_v54, %v4545_v2 }
 0x41f   : > { %vm5306_vm9 = vcmp.gt.s32.totalorder %v11780_v19, 0  ;;  %v5270_v4 = vadd.f32 0.041655596, %v5269_v29  ;;  %v5277_v8 = vadd.f32 0.008332121, %v5276_v35  ;;  %v11950_v15 = vand.u32 3, %v5284_v52 }
 0x420   : > { %v4465_v16 = vshrl.u32 %v4464_v25, 30  ;;  %vm4553_vm14 = vcmp.lt.s32.totalorder %v11530_v24, 2  ;;  %v4566_v17 = vsel %vm4554_vm2, %v11587_v59, %v11613_v27  ;;  %v11957_v51 = vshll.u32 %v4528_v58, 8 }
 0x421   : > { %v5271_v6 = vmul.f32 %v5270_v4, %v5268_v47  ;;  %v5278_v43 = vmul.f32 %v5277_v8, %v5268_v47  ;;  %v11961_v32 = vsel %vm4553_vm14, %v4560_v5, %v4562_v61  ;;  %v4567_v52 = vsel %vm4553_vm14, %v4564_v33, %v4566_v17 }
 0x422   : > { %v11966_v3 = vsel %vm5306_vm9, %v11780_v19, 0  ;;  %v11968_v37 = vadd.s32 1, %v8536_v28  ;;  %vm4367_vm7 = vcmp.lt.s32.totalorder %v11333_v39, 0  ;;  %v4466_v41 = vshll.u32 %v4465_v16, 30 }
 0x423   : > { %v5272_v59 = vadd.f32 -0.4999988, %v5271_v6  ;;  %v5279_v27 = vadd.f32 -0.16666654, %v5278_v43  ;;  %vm5290_vm1 = vcmp.eq.s32.totalorder %v11950_v15, 2  ;;  %v4459_v38 = vadd.s32 %v4454_v49, %v11891_v9 }
 0x424   : > { %v4572_v34 = vshrl.u32 %v4567_v52, 16  ;;  %vm5287_vm5 = vcmp.eq.s32.totalorder %v11950_v15, 0  ;;  %v11974_v26 = vsub.s32 %v4463_v12, %v4466_v41  ;;  %v4569_v53 = vand.u32 65535, %v11957_v51 }
 0x425   : > { %v4571_v19 = vand.u32 65535, %v4567_v52  ;;  %v4594_v20 = vshrl.u32 %v11961_v32, 16  ;;  %v5273_v0 = vmul.f32 %v5272_v59, %v5268_v47  ;;  %v5280_v48 = vmul.f32 %v5279_v27, %v5268_v47 }
 0x426   : > { %vm5286_vm12 = vcmp.lt.s32.totalorder %v11950_v15, 2  ;;  %v4489_v11 = vsub.s32 4, %v4465_v16  ;;  %v4593_v42 = vand.u32 65535, %v11961_v32  ;;  %vm5283_vm3 = vweird.f32 %v11511_v1 }
 0x427   : > { %vm4468_vm9 = vcmp.lt.s32.totalorder %v11974_v26, 0  ;;  %v4469_v9 = vsub.s32 0, %v11974_v26  ;;  %v4570_v49 = vshrl.u32 %v11957_v51, 16  ;;  %v4574_v13 = vmul.u32 %v4572_v34, %v4569_v53 }
 0x428   : > { %v5274_v57 = vadd.f32 1.0, %v5273_v0  ;;  %v5281_v23 = vadd.f32 1.0, %v5280_v48  ;;  %v4536_v30 = vshrl.u32 %v16751_v22, %v11533_v31  ;;  %v4557_v50 = vsel %vm4555_vm6, %v4545_v2, 2102212464 }
 0x429   : > { %v4470_v47 = vsel %vm4468_vm9, %v4469_v9, %v11974_v26  ;;  %v4575_v7 = vmul.u32 %v4571_v19, %v4570_v49  ;;  %v4577_v28 = vshll.u32 %v4574_v13, 16  ;;  %v11989_v10 = vmul.u32 %v4594_v20, %v4569_v53 }
 0x42a   : > { %v5282_v12 = vmul.f32 %v5281_v23, %v11922_v18  ;;  %v5291_v58 = vxor.u32 2147483648, %v5274_v57  ;;  %v4471_v29 = vclz %v4470_v47  ;;  %v4573_v35 = vmul.u32 %v4571_v19, %v4569_v53 }
 0x42b   : > { %v11994_v25 = vsel %vm4367_vm7, %v4489_v11, %v4465_v16  ;;  %v4556_v31 = vsel %vm4552_vm11, %v4536_v30, %v11924_v36  ;;  %v4558_v2 = vsel %vm4554_vm2, %v11926_v54, %v4557_v50  ;;  %v4595_v5 = vmul.u32 %v4593_v42, %v4569_v53 }
 0x42c   : > { %v5288_v61 = vxor.u32 2147483648, %v5282_v12  ;;  %v8516_v33 = vadd.s32 4294967294, %v4471_v29  ;;  %v4576_v4 = vmul.u32 %v4572_v34, %v4570_v49  ;;  %vm4581_vm6 = vc.u32 %v4573_v35, %v4577_v28 }
 0x42d   : > { %v5292_v18 = vsel %vm5290_vm1, %v5291_v58, %v5282_v12  ;;  %v4579_v8 = vshll.u32 %v4575_v7, 16  ;;  %v4582_v16 = vsel %vm4581_vm6, 1, %v16760_v21  ;;  %v4583_v17 = vadd.s32 %v4577_v28, %v4573_v35 }
 0x42e   : > { %v5289_v6 = vsel %vm5287_vm5, %v5274_v57, %v5288_v61  ;;  %vm8517_vm11 = vcmp.lt.s32.totalorder %v8516_v33, 0  ;;  %v4584_v36 = vadd.s32 %v4582_v16, %v4576_v4  ;;  %v4599_v43 = vshll.u32 %v11989_v10, 16 }
 0x42f   : > { %v5293_v54 = vsel %vm5286_vm12, %v5289_v6, %v5292_v18  ;;  %v4474_v32 = vsel %vm8517_vm11, 0, %v8516_v33  ;;  %vm4585_vm2 = vc.u32 %v4583_v17, %v4579_v8  ;;  %v4597_v52 = vmul.u32 %v4593_v42, %v4570_v49 }
 0x430   : > { %v5294_v41 = vsel %vm5283_vm3, nan, %v5293_v54  ;;  %v4475_v59 = vsub.s32 32, %v4474_v32  ;;  %v4479_v27 = vsub.s32 4294967266, %v4474_v32  ;;  %v4578_v34 = vshrl.u32 %v4574_v13, 16 }
 0x431   : > { %5686 = vmatpush.msrb.mxu1 %v5294_v41  ;;  %v4476_v53 = vshll.u32 %v11974_v26, %v4474_v32  ;;  %v4586_v19 = vsel %vm4585_vm2, 1, %v16760_v21  ;;  %v4598_v0 = vmul.u32 %v4594_v20, %v4570_v49  ;;  %vm4603_vm1 = vc.u32 %v4595_v5, %v4599_v43  ;;  %v16890_v41 = vld [vmem:[#allocation38_spill] sm:$0xff] }
 0x432   : > { %v4477_v48 = vshrl.u32 %v4459_v38, %v4475_v59  ;;  %v4480_v11 = vadd.s32 127, %v4479_v27  ;;  %v4588_v15 = vadd.s32 %v4586_v19, %v4584_v36  ;;  %v4604_v9 = vsel %vm4603_vm1, 1, %v16760_v21  ;;  %v16891_v19 = vld [vmem:[#allocation42_spill] sm:$0xff] }
 0x433   : > { %v16887_v42 = vand.u32 2147483647, %v11333_v39  ;;  %v4601_v57 = vshll.u32 %v4597_v52, 16  ;;  %v4605_v13 = vadd.s32 %v4599_v43, %v4595_v5  ;;  %v4606_v23 = vadd.s32 %v4604_v9, %v4598_v0 }
 0x434   : > { %v4478_v30 = vor.u32 %v4477_v48, %v4476_v53  ;;  %v4481_v26 = vshll.u32 %v4480_v11, 23  ;;  %v4589_v50 = vadd.s32 %v4588_v15, %v4578_v34  ;;  %v3745_v20 = vand.u32 2147483647, %v11299_v56 }
 0x435   : > { %vm12017_vm5 = vcmp.le.f32.partialorder %v16887_v42, 0.7853982  ;;  %v4559_v49 = vsel %vm4553_vm14, %v4556_v31, %v4558_v2  ;;  %v4580_v47 = vshrl.u32 %v4575_v7, 16  ;;  %vm4607_vm12 = vc.u32 %v4605_v13, %v4601_v57 }
 0x436   : > { %v4492_v38 = vsel %vm12017_vm5, 0, %v11994_v25  ;;  %v4482_v28 = vor.u32 4788187, %v4481_v26  ;;  %v4600_v12 = vshrl.u32 %v11989_v10, 16  ;;  %v4602_v58 = vshrl.u32 %v4597_v52, 16 }
 0x437   : > { %v4608_v29 = vsel %vm4607_vm12, 1, %v16760_v21  ;;  %v12029_v35 = vadd.s32 %v4589_v50, %v4580_v47  ;;  %v3752_v61 = vand.u32 8388607, %v3745_v20  ;;  %v3762_v25 = vshll.u32 %v16751_v22, %v11376_v63 }
 0x438   : > { %v4610_v5 = vadd.s32 %v4608_v29, %v4606_v23  ;;  %v4483_v33 = vand.u32 2147483647, %v4482_v28  ;;  %v4485_v24 = vcvt.s32.f32 %v4478_v30  ;;  %v12035_v31 = vadd.s32 %v4605_v13, %v4601_v57 }
 0x439   : > { %v3763_v7 = vshrl.u32 %v16752_v44, %v11405_v45  ;;  %v3753_v2 = vor.u32 8388608, %v3752_v61  ;;  %v3765_v4 = vshll.u32 %v16752_v44, %v11376_v63  ;;  %v3766_v18 = vshrl.u32 %v16753_v55, %v11405_v45 }
 0x43a   : > { %v4611_v10 = vadd.s32 %v4610_v5, %v4600_v12  ;;  %v4486_v8 = vmul.f32 %v4485_v24, %v4483_v33  ;;  %v3768_v17 = vshll.u32 %v16753_v55, %v11376_v63  ;;  %v3769_v6 = vshrl.u32 %v16754_v14, %v11405_v45 }
 0x43b   : > { %v12043_v16 = vor.u32 %v3763_v7, %v3762_v25  ;;  %vm4615_vm14 = vc.u32 %v12029_v35, %v12035_v31  ;;  %v12051_v43 = vor.u32 %v3766_v18, %v3765_v4  ;;  %vm3777_vm3 = vcmp.lt.s32.totalorder %v11419_v40, 1 }
 0x43c   : > { %v4612_v36 = vadd.s32 %v4611_v10, %v4602_v58  ;;  %v4487_v54 = vxor.u32 2147483648, %v4486_v8  ;;  %v3770_v32 = vor.u32 %v3769_v6, %v3768_v17  ;;  %vm3778_vm9 = vcmp.lt.s32.totalorder %v11419_v40, 2 }
 0x43d   : > { %vm3779_vm6 = vcmp.lt.s32.totalorder %v11419_v40, 3  ;;  %v3785_v63 = vsel %vm3777_vm3, %v12043_v16, %v12051_v43  ;;  %v12064_v27 = vshll.u32 %v3753_v2, 8  ;;  %v4613_v53 = vmul.u32 %v11957_v51, %v4559_v49 }
 0x43e   : > { %v4616_v52 = vadd.s32 1, %v4612_v36  ;;  %v3791_v59 = vsel %vm3779_vm6, %v16890_v41, %v11483_v46  ;;  %v4488_v34 = vsel %vm4367_vm7, %v4487_v54, %v4486_v8  ;;  %v3787_v0 = vsel %vm3779_vm6, %v3770_v32, %v16891_v19 }
 0x43f   : > { %v3789_v48 = vsel %vm3777_vm3, %v12051_v43, %v3770_v32  ;;  %vm5461_vm11 = vcmp.gt.s32.totalorder %v11968_v37, 0  ;;  %v12079_v46 = vsel %vm12017_vm5, %v11333_v39, %v4488_v34  ;;  %v4509_v11 = vadd.s32 3, %v4492_v38 }
 0x440   : > { %v4617_v51 = vsel %vm4615_vm14, %v4616_v52, %v4612_v36  ;;  %v4493_v15 = vmul.f32 %v12079_v46, %v12079_v46  ;;  %v3788_v42 = vsel %vm3778_vm9, %v3785_v63, %v3787_v0  ;;  %v3792_v57 = vsel %vm3778_vm9, %v3789_v48, %v3791_v59 }
 0x441   : > { %v4618_v9 = vadd.s32 %v4617_v51, %v4613_v53  ;;  %v3794_v13 = vand.u32 65535, %v12064_v27  ;;  %v3795_v1 = vshrl.u32 %v12064_v27, 16  ;;  %v3796_v23 = vand.u32 65535, %v3792_v57 }
 0x442   : > { %v3797_v30 = vshrl.u32 %v3792_v57, 16  ;;  %v12093_v26 = vand.u32 31, %v11966_v3  ;;  %v4494_v50 = vmul.f32 -0.001358992, %v4493_v15  ;;  %v4501_v38 = vmul.f32 -0.00019511016, %v4493_v15 }
 0x443   : > { %v4619_v49 = vadd.s32 536870912, %v4618_v9  ;;  %v12096_v47 = vshrl.u32 %v11966_v3, 5  ;;  %v3798_v28 = vmul.u32 %v3796_v23, %v3794_v13  ;;  %v12100_v58 = vmul.u32 %v3796_v23, %v3795_v1 }
 0x444   : > { %v12098_v12 = vmul.u32 %v3797_v30, %v3794_v13  ;;  %v4495_v29 = vadd.f32 0.041655596, %v4494_v50  ;;  %v4502_v5 = vadd.f32 0.008332121, %v4501_v38  ;;  %v3819_v25 = vshrl.u32 %v3788_v42, 16 }
 0x445   : > { %v12102_v61 = vshrl.u32 %v4619_v49, 30  ;;  %v12107_v33 = vsel %vm5461_vm11, %v11968_v37, 0  ;;  %v4510_v24 = vand.u32 3, %v4509_v11  ;;  %v3804_v3 = vshll.u32 %v12100_v58, 16 }
 0x446   : > { %v3802_v7 = vshll.u32 %v12098_v12, 16  ;;  %v12112_v10 = vsub.s32 32, %v12093_v26  ;;  %v4496_v2 = vmul.f32 %v4495_v29, %v4493_v15  ;;  %v4503_v4 = vmul.f32 %v4502_v5, %v4493_v15 }
 0x447   : > { %v4621_v18 = vshll.u32 %v12102_v61, 30  ;;  %v3801_v8 = vmul.u32 %v3797_v30, %v3795_v1  ;;  %v3818_v6 = vand.u32 65535, %v3788_v42  ;;  %v12117_v52 = vmul.u32 %v3819_v25, %v3794_v13 }
 0x448   : > { %vm3806_vm7 = vc.u32 %v3798_v28, %v3802_v7  ;;  %v3808_v17 = vadd.s32 %v3802_v7, %v3798_v28  ;;  %v4497_v36 = vadd.f32 -0.4999988, %v4496_v2  ;;  %v4504_v54 = vadd.f32 -0.16666654, %v4503_v4 }
 0x449   : > { %v12115_v37 = vsub.s32 %v4618_v9, %v4621_v18  ;;  %vm4512_vm2 = vcmp.eq.s32.totalorder %v4510_v24, 0  ;;  %v3761_v63 = vshrl.u32 %v16751_v22, %v11405_v45  ;;  %v3782_v41 = vsel %vm3780_vm15, %v3770_v32, 2102212464 }
 0x44a   : > { %v3807_v59 = vsel %vm3806_vm7, 1, %v16760_v21  ;;  %vm3810_vm1 = vc.u32 %v3808_v17, %v3804_v3  ;;  %v4498_v34 = vmul.f32 %v4497_v36, %v4493_v15  ;;  %v4505_v53 = vmul.f32 %v4504_v54, %v4493_v15 }
 0x44b   : > { %vm4511_vm5 = vcmp.lt.s32.totalorder %v4510_v24, 2  ;;  %vm4623_vm12 = vcmp.lt.s32.totalorder %v12115_v37, 0  ;;  %v4624_v19 = vsub.s32 0, %v12115_v37  ;;  %vm4508_vm14 = vweird.f32 %v11333_v39 }
 0x44c   : > { %v3809_v0 = vadd.s32 %v3807_v59, %v3801_v8  ;;  %v3811_v48 = vsel %vm3810_vm1, 1, %v16760_v21  ;;  %v3820_v11 = vmul.u32 %v3818_v6, %v3794_v13  ;;  %v3822_v45 = vmul.u32 %v3818_v6, %v3795_v1 }
 0x44d   : > { %v4499_v51 = vadd.f32 1.0, %v4498_v34  ;;  %v4506_v9 = vadd.f32 1.0, %v4505_v53  ;;  %v4625_v32 = vsel %vm4623_vm12, %v4624_v19, %v12115_v37  ;;  %v3824_v42 = vshll.u32 %v12117_v52, 16 }
 0x44e   : > { %vm4515_vm15 = vcmp.eq.s32.totalorder %v4510_v24, 2  ;;  %vm4522_vm11 = vcmp.lt.s32.totalorder %v11351_v62, 0  ;;  %v4614_v15 = vadd.s32 %v12035_v31, %v12029_v35  ;;  %v4626_v57 = vclz %v4625_v32  ;;  %v16892_v24 = vld [vmem:[#allocation6_spill] sm:$0xff] }
 0x44f   : > { %v3803_v23 = vshrl.u32 %v12098_v12, 16  ;;  %v4507_v30 = vmul.f32 %v4506_v9, %v12079_v46  ;;  %v4516_v50 = vxor.u32 2147483648, %v4499_v51  ;;  %v3813_v13 = vadd.s32 %v3811_v48, %v3809_v0 }
 0x450   : > { %v3823_v38 = vmul.u32 %v3819_v25, %v3795_v1  ;;  %v8519_v49 = vadd.s32 4294967294, %v4626_v57  ;;  %v3781_v28 = vsel %vm3777_vm3, %v3761_v63, %v12043_v16  ;;  %v3783_v29 = vsel %vm3779_vm6, %v12051_v43, %v3782_v41 }
 0x451   : > { %v3805_v5 = vshrl.u32 %v12100_v58, 16  ;;  %v4513_v35 = vxor.u32 2147483648, %v4507_v30  ;;  %v4644_v31 = vsub.s32 4, %v12102_v61  ;;  %v3826_v12 = vshll.u32 %v3822_v45, 16 }
 0x452   : > { %vm3828_vm7 = vc.u32 %v3820_v11, %v3824_v42  ;;  %v4517_v46 = vsel %vm4515_vm15, %v4516_v50, %v4507_v30  ;;  %vm8520_vm1 = vcmp.lt.s32.totalorder %v8519_v49, 0  ;;  %v3830_v25 = vadd.s32 %v3824_v42, %v3820_v11  ;;  %v16895_v11 = vld [vmem:[#allocation29_spill] sm:$0xff] }
 0x453   : > { %v3829_v1 = vsel %vm3828_vm7, 1, %v16760_v21  ;;  %v4514_v7 = vsel %vm4512_vm2, %v4499_v51, %v4513_v35  ;;  %v4629_v16 = vsel %vm8520_vm1, 0, %v8519_v49  ;;  %v3814_v3 = vadd.s32 %v3813_v13, %v3803_v23 }
 0x454   : > { %v3831_v2 = vadd.s32 %v3829_v1, %v3823_v38  ;;  %v4518_v43 = vsel %vm4511_vm5, %v4514_v7, %v4517_v46  ;;  %v4630_v4 = vsub.s32 32, %v4629_v16  ;;  %v4634_v58 = vsub.s32 4294967266, %v4629_v16  ;;  %v16898_v1 = vld [vmem:[#allocation45_spill] sm:$0xff] }
 0x455   : > { %v3784_v18 = vsel %vm3778_vm9, %v3781_v28, %v3783_v29  ;;  %v4519_v8 = vsel %vm4508_vm14, nan, %v4518_v43  ;;  %v4631_v17 = vshll.u32 %v12115_v37, %v4629_v16  ;;  %v3825_v6 = vshrl.u32 %v12117_v52, 16 }
 0x456   : > { %vm3832_vm3 = vc.u32 %v3830_v25, %v3826_v12  ;;  %5658 = vmatpush.msrb.mxu0 %v4519_v8  ;;  %v4632_v36 = vshrl.u32 %v4614_v15, %v4630_v4  ;;  %v4635_v54 = vadd.s32 127, %v4634_v58  ;;  %v3900_v41 = vand.u32 2147483647, %v16892_v24 }
 0x457   : > { %v3833_v63 = vsel %vm3832_vm3, 1, %v16760_v21  ;;  %v4645_v40 = vsel %vm4522_vm11, %v4644_v31, %v12102_v61  ;;  %v3815_v59 = vadd.s32 %v3814_v3, %v3805_v5  ;;  %v3827_v34 = vshrl.u32 %v3822_v45, 16  ;;  %v16896_v61 = vld [vmem:[#allocation34_spill] sm:$0xff]  ;;  %v16897_v5 = vld [vmem:[#allocation33_spill] sm:$0xff] }
 0x458   : > { %v3835_v39 = vadd.s32 %v3833_v63, %v3831_v2  ;;  %v4633_v53 = vor.u32 %v4632_v36, %v4631_v17  ;;  %v4636_v19 = vshll.u32 %v4635_v54, 23  ;;  %v3834_v37 = vadd.s32 %v3830_v25, %v3826_v12  ;;  %v16899_v25 = vld [vmem:[#allocation39_spill] sm:$0xff] }
 0x459   : > { %v3907_v52 = vand.u32 8388607, %v3900_v41  ;;  %vm12162_vm9 = vcmp.le.f32.partialorder %v4520_v60, 0.7853982  ;;  %v3917_v51 = vshll.u32 %v16751_v22, %v16895_v11  ;;  %v3918_v45 = vshrl.u32 %v16752_v44, %v16896_v61 }
 0x45a   : > { %v3836_v48 = vadd.s32 %v3835_v39, %v3825_v6  ;;  %v4637_v9 = vor.u32 4788187, %v4636_v19  ;;  %v4647_v32 = vsel %vm12162_vm9, 0, %v4645_v40  ;;  %v3920_v15 = vshll.u32 %v16752_v44, %v16895_v11 }
 0x45b   : > { %v3908_v42 = vor.u32 8388608, %v3907_v52  ;;  %v3838_v60 = vmul.u32 %v12064_v27, %v3784_v18  ;;  %v3921_v23 = vshrl.u32 %v16753_v55, %v16896_v61  ;;  %v3923_v30 = vshll.u32 %v16753_v55, %v16895_v11  ;;  %v16901_v18 = vld [vmem:[#allocation44_spill] sm:$0xff] }
 0x45c   : > { %v3837_v57 = vadd.s32 %v3836_v48, %v3827_v34  ;;  %v4638_v50 = vand.u32 2147483647, %v4637_v9  ;;  %v4640_v13 = vcvt.s32.f32 %v4633_v53  ;;  %vm3840_vm6 = vc.u32 %v3815_v59, %v3834_v37 }
 0x45d   : > { %v3924_v38 = vshrl.u32 %v16754_v14, %v16896_v61  ;;  %v12181_v28 = vor.u32 %v3918_v45, %v3917_v51  ;;  %v12183_v29 = vor.u32 %v3921_v23, %v3920_v15  ;;  %vm3934_vm2 = vcmp.lt.s32.totalorder %v16897_v5, 3 }
 0x45e   : > { %v3841_v49 = vadd.s32 1, %v3837_v57  ;;  %v4641_v27 = vmul.f32 %v4640_v13, %v4638_v50  ;;  %vm3932_vm5 = vcmp.lt.s32.totalorder %v16897_v5, 1  ;;  %v12187_v31 = vshll.u32 %v3908_v42, 8 }
 0x45f   : > { %v3925_v35 = vor.u32 %v3924_v38, %v3923_v30  ;;  %v12191_v12 = vshll.u32 %v16754_v14, %v12093_v26  ;;  %vm3933_vm12 = vcmp.lt.s32.totalorder %v16897_v5, 2  ;;  %v3946_v7 = vsel %vm3934_vm2, %v16899_v25, %v16898_v1 }
 0x460   : > { %v3842_v46 = vsel %vm3840_vm6, %v3841_v49, %v3837_v57  ;;  %v16900_v16 = vmov 920167782   ;;  %v4642_v2 = vxor.u32 2147483648, %v4641_v27  ;;  %v4664_v43 = vadd.s32 3, %v4647_v32 }
 0x461   : > { %v12200_v3 = vshll.u32 %v16900_v16, %v12093_v26  ;;  %v3843_v4 = vadd.s32 %v3842_v46, %v3838_v60  ;;  %v3940_v58 = vsel %vm3932_vm5, %v12181_v28, %v12183_v29  ;;  %v3942_v8 = vsel %vm3934_vm2, %v3925_v35, %v16901_v18 }
 0x462   : > { %v3944_v17 = vsel %vm3932_vm5, %v12183_v29, %v3925_v35  ;;  %v3949_v6 = vand.u32 65535, %v12187_v31  ;;  %v12214_v36 = vshrl.u32 %v12107_v33, 5  ;;  %v4643_v54 = vsel %vm4522_vm11, %v4642_v2, %v4641_v27 }
 0x463   : > { %v3844_v63 = vadd.s32 536870912, %v3843_v4  ;;  %v3947_v40 = vsel %vm3933_vm12, %v3944_v17, %v3946_v7  ;;  %v12223_v34 = vsel %vm12162_vm9, %v11351_v62, %v4643_v54  ;;  %v12226_v39 = vshrl.u32 %v12187_v31, 16 }
 0x464   : > { %v3951_v53 = vand.u32 65535, %v3947_v40  ;;  %v3952_v19 = vshrl.u32 %v3947_v40, 16  ;;  %v12229_v52 = vand.u32 31, %v12107_v33  ;;  %v4648_v48 = vmul.f32 %v12223_v34, %v12223_v34 }
 0x465   : > { %v3845_v11 = vshrl.u32 %v3844_v63, 30  ;;  %v3943_v51 = vsel %vm3933_vm12, %v3940_v58, %v3942_v8  ;;  %v12235_v45 = vand.u32 3, %v4664_v43  ;;  %vm3747_vm14 = vcmp.lt.s32.totalorder %v11299_v56, 0  ;;  %v16904_v63 = vld [vmem:[#allocation14_spill] sm:$0xff] }
 0x466   : > { %v3953_v0 = vmul.u32 %v3951_v53, %v3949_v6  ;;  %v12237_v9 = vmul.u32 %v3952_v19, %v3949_v6  ;;  %v12240_v32 = vmul.u32 %v3951_v53, %v12226_v39  ;;  %v4649_v42 = vmul.f32 -0.001358992, %v4648_v48 }
 0x467   : > { %v4656_v15 = vmul.f32 -0.00019511016, %v4648_v48  ;;  %v12243_v33 = vadd.s32 %v3834_v37, %v3815_v59  ;;  %v3846_v57 = vshll.u32 %v3845_v11, 30  ;;  %v3916_v60 = vshrl.u32 %v16751_v22, %v16896_v61 }
 0x468   : > { %v3957_v23 = vshll.u32 %v12237_v9, 16  ;;  %v3959_v30 = vshll.u32 %v12240_v32, 16  ;;  %v3974_v50 = vshrl.u32 %v3943_v51, 16  ;;  %v4650_v13 = vadd.f32 0.041655596, %v4649_v42 }
 0x469   : > { %v4657_v38 = vadd.f32 0.008332121, %v4656_v15  ;;  %v12249_v49 = vsub.s32 %v3843_v4, %v3846_v57  ;;  %v3956_v27 = vmul.u32 %v3952_v19, %v12226_v39  ;;  %v3937_v46 = vsel %vm3935_vm0, %v3925_v35, 2102212464 }
 0x46a   : > { %vm3961_vm15 = vc.u32 %v3953_v0, %v3957_v23  ;;  %v3963_v59 = vadd.s32 %v3957_v23, %v3953_v0  ;;  %v3973_v37 = vand.u32 65535, %v3943_v51  ;;  %v4651_v1 = vmul.f32 %v4650_v13, %v4648_v48 }
 0x46b   : > { %v4658_v25 = vmul.f32 %v4657_v38, %v4648_v48  ;;  %vm12256_vm11 = vcmp.le.f32.partialorder %v3745_v20, 0.7853982  ;;  %vm3848_vm7 = vcmp.lt.s32.totalorder %v12249_v49, 0  ;;  %v3849_v7 = vsub.s32 0, %v12249_v49 }
 0x46c   : > { %v3869_v2 = vsub.s32 4, %v3845_v11  ;;  %v3962_v43 = vsel %vm3961_vm15, 1, %v16760_v21  ;;  %vm3965_vm1 = vc.u32 %v3963_v59, %v3959_v30  ;;  %v12263_v35 = vmul.u32 %v3974_v50, %v3949_v6 }
 0x46d   : > { %v4652_v4 = vadd.f32 -0.4999988, %v4651_v1  ;;  %v4659_v58 = vadd.f32 -0.16666654, %v4658_v25  ;;  %v3850_v18 = vsel %vm3848_vm7, %v3849_v7, %v12249_v49  ;;  %v3964_v8 = vadd.s32 %v3962_v43, %v3956_v27 }
 0x46e   : > { %vm4667_vm0 = vcmp.eq.s32.totalorder %v12235_v45, 0  ;;  %vm4670_vm3 = vcmp.eq.s32.totalorder %v12235_v45, 2  ;;  %v3851_v20 = vclz %v3850_v18  ;;  %v3936_v17 = vsel %vm3932_vm5, %v3916_v60, %v12181_v28 }
 0x46f   : > { %v3966_v54 = vsel %vm3965_vm1, 1, %v16760_v21  ;;  %v3125_v40 = vand.u32 2147483647, %v16904_v63  ;;  %v4653_v53 = vmul.f32 %v4652_v4, %v4648_v48  ;;  %v4660_v19 = vmul.f32 %v4659_v58, %v4648_v48 }
 0x470   : > { %vm4666_vm9 = vcmp.lt.s32.totalorder %v12235_v45, 2  ;;  %v3938_v51 = vsel %vm3934_vm2, %v12183_v29, %v3937_v46  ;;  %v3977_v0 = vmul.u32 %v3973_v37, %v12226_v39  ;;  %vm4663_vm6 = vweird.f32 %v11351_v62 }
 0x471   : > { %v8504_v42 = vadd.s32 4294967294, %v3851_v20  ;;  %v12281_v28 = vsel %vm3747_vm14, %v3869_v2, %v3845_v11  ;;  %v3958_v15 = vshrl.u32 %v12237_v9, 16  ;;  %v3975_v57 = vmul.u32 %v3973_v37, %v3949_v6 }
 0x472   : > { %v4654_v60 = vadd.f32 1.0, %v4653_v53  ;;  %v4661_v48 = vadd.f32 1.0, %v4660_v19  ;;  %v3968_v23 = vadd.s32 %v3966_v54, %v3964_v8  ;;  %v3979_v30 = vshll.u32 %v12263_v35, 16 }
 0x473   : > { %vm8505_vm5 = vcmp.lt.s32.totalorder %v8504_v42, 0  ;;  %v12287_v29 = vsel %vm3933_vm12, %v3936_v17, %v3938_v51  ;;  %v3960_v13 = vshrl.u32 %v12240_v32, 16  ;;  %v3978_v38 = vmul.u32 %v3974_v50, %v12226_v39 }
 0x474   : > { %v4662_v11 = vmul.f32 %v4661_v48, %v12223_v34  ;;  %v4671_v27 = vxor.u32 2147483648, %v4654_v60  ;;  %v3854_v46 = vsel %vm8505_vm5, 0, %v8504_v42  ;;  %v3981_v9 = vshll.u32 %v3977_v0, 16 }
 0x475   : > { %v3855_v6 = vsub.s32 32, %v3854_v46  ;;  %v3859_v59 = vsub.s32 4294967266, %v3854_v46  ;;  %v3872_v37 = vsel %vm12256_vm11, 0, %v12281_v28  ;;  %vm3983_vm2 = vc.u32 %v3975_v57, %v3979_v30  ;;  %v16905_v28 = vld [vmem:[#allocation16_spill] sm:$0xff] }
 0x476   : > { %v4668_v1 = vxor.u32 2147483648, %v4662_v11  ;;  %v3969_v5 = vadd.s32 %v3968_v23, %v3958_v15  ;;  %v3984_v25 = vsel %vm3983_vm2, 1, %v16760_v21  ;;  %v3985_v7 = vadd.s32 %v3979_v30, %v3975_v57  ;;  %v16906_v15 = vld [vmem:[#allocation7_spill] sm:$0xff] }
 0x477   : > { %v3856_v32 = vshll.u32 %v12249_v49, %v3854_v46  ;;  %v3857_v39 = vshrl.u32 %v12243_v33, %v3855_v6  ;;  %v3860_v34 = vadd.s32 127, %v3859_v59  ;;  %v3986_v50 = vadd.s32 %v3984_v25, %v3978_v38 }
 0x478   : > { %v4669_v2 = vsel %vm4667_vm0, %v4654_v60, %v4668_v1  ;;  %v4672_v43 = vsel %vm4670_vm3, %v4671_v27, %v4662_v11  ;;  %v3980_v4 = vshrl.u32 %v12263_v35, 16  ;;  %vm3987_vm12 = vc.u32 %v3985_v7, %v3981_v9  ;;  %v16907_v27 = vld [vmem:[#allocation20_spill] sm:$0xff]  ;;  %v16908_v1 = vld [vmem:[#allocation26_spill] sm:$0xff] }
 0x479   : > { %v4673_v58 = vsel %vm4666_vm9, %v4669_v2, %v4672_v43  ;;  %v3858_v18 = vor.u32 %v3857_v39, %v3856_v32  ;;  %v3861_v8 = vshll.u32 %v3860_v34, 23  ;;  %v3988_v49 = vsel %vm3987_vm12, 1, %v16760_v21  ;;  %v16910_v34 = vld [vmem:[#allocation25_spill] sm:$0xff] }
 0x47a   : > { %v4674_v33 = vsel %vm4663_vm6, nan, %v4673_v58  ;;  %v12308_v20 = vadd.s32 %v3969_v5, %v3960_v13  ;;  %v3982_v17 = vshrl.u32 %v3977_v0, 16  ;;  %v3990_v54 = vadd.s32 %v3988_v49, %v3986_v50  ;;  %v16909_v5 = vld [vmem:[#allocation9_spill] sm:$0xff] }
 0x47b   : > { %5687 = vmatpush.msrb.mxu1 %v4674_v33  ;;  %v3862_v53 = vor.u32 4788187, %v3861_v8  ;;  %v12310_v19 = vadd.s32 %v3985_v7, %v3981_v9  ;;  %v3993_v35 = vmul.u32 %v12187_v31, %v12287_v29  ;;  %v3132_v45 = vand.u32 8388607, %v3125_v40 }
 0x47c   : > { %v3865_v51 = vcvt.s32.f32 %v3858_v18  ;;  %v3991_v42 = vadd.s32 %v3990_v54, %v3980_v4  ;;  %v3142_v62 = vshll.u32 %v16751_v22, %v16905_v28  ;;  %v3143_v57 = vshrl.u32 %v16752_v44, %v16906_v15 }
 0x47d   : > { %v3863_v0 = vand.u32 2147483647, %v3862_v53  ;;  %v3133_v60 = vor.u32 8388608, %v3132_v45  ;;  %v3145_v48 = vshll.u32 %v16752_v44, %v16905_v28  ;;  %v3146_v23 = vshrl.u32 %v16753_v55, %v16906_v15 }
 0x47e   : > { %v3992_v31 = vadd.s32 %v3991_v42, %v3982_v17  ;;  %v3144_v30 = vor.u32 %v3143_v57, %v3142_v62  ;;  %v3148_v29 = vshll.u32 %v16753_v55, %v16905_v28  ;;  %v3149_v13 = vshrl.u32 %v16754_v14, %v16906_v15 }
 0x47f   : > { %v3866_v38 = vmul.f32 %v3865_v51, %v3863_v0  ;;  %vm3995_vm15 = vc.u32 %v12308_v20, %v12310_v19  ;;  %v3147_v11 = vor.u32 %v3146_v23, %v3145_v48  ;;  %vm3157_vm7 = vcmp.lt.s32.totalorder %v16907_v27, 1 }
 0x480   : > { %v3996_v46 = vadd.s32 1, %v3992_v31  ;;  %v3150_v9 = vor.u32 %v3149_v13, %v3148_v29  ;;  %vm3158_vm1 = vcmp.lt.s32.totalorder %v16907_v27, 2  ;;  %vm3159_vm0 = vcmp.lt.s32.totalorder %v16907_v27, 3 }
 0x481   : > { %v3867_v6 = vxor.u32 2147483648, %v3866_v38  ;;  %v3165_v59 = vsel %vm3157_vm7, %v3144_v30, %v3147_v11  ;;  %v3171_v25 = vsel %vm3159_vm0, %v16909_v5, %v16908_v1  ;;  %v12339_v7 = vshll.u32 %v3133_v60, 8 }
 0x482   : > { %v5322_v32 = vshrl.u32 %v16900_v16, %v12112_v10  ;;  %v3997_v39 = vsel %vm3995_vm15, %v3996_v46, %v3992_v31  ;;  %v3167_v50 = vsel %vm3159_vm0, %v3150_v9, %v16910_v34  ;;  %v3169_v2 = vsel %vm3157_vm7, %v3147_v11, %v3150_v9 }
 0x483   : > { %v16911_v43 = vmov 1326507024   ;;  %v3868_v58 = vsel %vm3747_vm14, %v3867_v6, %v3866_v38  ;;  %v3889_v18 = vadd.s32 3, %v3872_v37  ;;  %v3998_v8 = vadd.s32 %v3997_v39, %v3993_v35 }
 0x484   : > { %v12350_v4 = vshrl.u32 %v16911_v43, %v12112_v10  ;;  %v12357_v49 = vsel %vm12256_vm11, %v11299_v56, %v3868_v58  ;;  %v12361_v33 = vsel %vm3158_vm1, %v3165_v59, %v3167_v50  ;;  %v3172_v17 = vsel %vm3158_vm1, %v3169_v2, %v3171_v25 }
 0x485   : > { %v3174_v54 = vand.u32 65535, %v12339_v7  ;;  %v3873_v53 = vmul.f32 %v12357_v49, %v12357_v49  ;;  %v3999_v45 = vadd.s32 536870912, %v3998_v8  ;;  %v3175_v37 = vshrl.u32 %v12339_v7, 16 }
 0x486   : > { %v3176_v35 = vand.u32 65535, %v3172_v17  ;;  %v12370_v61 = vor.u32 %v5322_v32, %v12191_v12  ;;  %v12373_v51 = vsub.s32 32, %v12229_v52  ;;  %v12377_v42 = vshll.u32 %v16754_v14, %v12229_v52 }
 0x487   : > { %v3177_v28 = vshrl.u32 %v3172_v17, 16  ;;  %v3874_v62 = vmul.f32 -0.001358992, %v3873_v53  ;;  %v3881_v57 = vmul.f32 -0.00019511016, %v3873_v53  ;;  %v12379_v0 = vshrl.u32 %v3999_v45, 30 }
 0x488   : > { %v3141_v60 = vshrl.u32 %v16751_v22, %v16906_v15  ;;  %v3178_v48 = vmul.u32 %v3176_v35, %v3174_v54  ;;  %v12383_v31 = vmul.u32 %v3176_v35, %v3175_v37  ;;  %v3199_v12 = vshrl.u32 %v12361_v33, 16 }
 0x489   : > { %v3179_v23 = vmul.u32 %v3177_v28, %v3174_v54  ;;  %v3875_v29 = vadd.f32 0.041655596, %v3874_v62  ;;  %v3882_v13 = vadd.f32 0.008332121, %v3881_v57  ;;  %v12386_v38 = vand.u32 3, %v3889_v18 }
 0x48a   : > { %v4001_v46 = vshll.u32 %v12379_v0, 30  ;;  %v3162_v6 = vsel %vm3160_vm4, %v3150_v9, 2102212464  ;;  %v3184_v1 = vshll.u32 %v12383_v31, 16  ;;  %v3198_v15 = vand.u32 65535, %v12361_v33 }
 0x48b   : > { %v3182_v59 = vshll.u32 %v3179_v23, 16  ;;  %v3876_v5 = vmul.f32 %v3875_v29, %v3873_v53  ;;  %v3883_v25 = vmul.f32 %v3882_v13, %v3873_v53  ;;  %v3181_v39 = vmul.u32 %v3177_v28, %v3175_v37 }
 0x48c   : > { %v12393_v32 = vsub.s32 %v3998_v8, %v4001_v46  ;;  %v3161_v34 = vsel %vm3157_vm7, %v3141_v60, %v3144_v30  ;;  %v12397_v2 = vmul.u32 %v3199_v12, %v3174_v54  ;;  %v3163_v33 = vsel %vm3159_vm0, %v3147_v11, %v3162_v6 }
 0x48d   : > { %vm3186_vm14 = vc.u32 %v3178_v48, %v3182_v59  ;;  %v3188_v50 = vadd.s32 %v3182_v59, %v3178_v48  ;;  %v3877_v58 = vadd.f32 -0.4999988, %v3876_v5  ;;  %v3884_v18 = vadd.f32 -0.16666654, %v3883_v25 }
 0x48e   : > { %vm4003_vm4 = vcmp.lt.s32.totalorder %v12393_v32, 0  ;;  %v4004_v9 = vsub.s32 0, %v12393_v32  ;;  %v3187_v8 = vsel %vm3186_vm14, 1, %v16760_v21  ;;  %v3200_v17 = vmul.u32 %v3198_v15, %v3174_v54 }
 0x48f   : > { %vm3190_vm11 = vc.u32 %v3188_v50, %v3184_v1  ;;  %v3878_v45 = vmul.f32 %v3877_v58, %v3873_v53  ;;  %v3885_v35 = vmul.f32 %v3884_v18, %v3873_v53  ;;  %vm3891_vm3 = vcmp.lt.s32.totalorder %v12386_v38, 2 }
 0x490   : > { %v4005_v30 = vsel %vm4003_vm4, %v4004_v9, %v12393_v32  ;;  %v3189_v28 = vadd.s32 %v3187_v8, %v3181_v39  ;;  %vm3888_vm9 = vweird.f32 %v11299_v56  ;;  %vm3902_vm6 = vcmp.lt.s32.totalorder %v16892_v24, 0  ;;  %v16914_v8 = vld [vmem:[#allocation13_spill] sm:$0xff] }
 0x491   : > { %v4006_v62 = vclz %v4005_v30  ;;  %v3183_v57 = vshrl.u32 %v3179_v23, 16  ;;  %v3191_v60 = vsel %vm3190_vm11, 1, %v16760_v21  ;;  %v3202_v11 = vmul.u32 %v3198_v15, %v3175_v37 }
 0x492   : > { %v3879_v48 = vadd.f32 1.0, %v3878_v45  ;;  %v3886_v29 = vadd.f32 1.0, %v3885_v35  ;;  %v3193_v13 = vadd.s32 %v3191_v60, %v3189_v28  ;;  %v3204_v54 = vshll.u32 %v12397_v2, 16 }
 0x493   : > { %vm3892_vm5 = vcmp.eq.s32.totalorder %v12386_v38, 0  ;;  %vm3895_vm2 = vcmp.eq.s32.totalorder %v12386_v38, 2  ;;  %v3994_v53 = vadd.s32 %v12310_v19, %v12308_v20  ;;  %v8507_v46 = vadd.s32 4294967294, %v4006_v62 }
 0x494   : > { %v3887_v6 = vmul.f32 %v3886_v29, %v12357_v49  ;;  %v3896_v59 = vxor.u32 2147483648, %v3879_v48  ;;  %vm12417_vm12 = vcmp.le.f32.partialorder %v3900_v41, 0.7853982  ;;  %v12423_v1 = vsel %vm3158_vm1, %v3161_v34, %v3163_v33 }
 0x495   : > { %v3203_v15 = vmul.u32 %v3199_v12, %v3175_v37  ;;  %vm8508_vm15 = vcmp.lt.s32.totalorder %v8507_v46, 0  ;;  %v4024_v5 = vsub.s32 4, %v12379_v0  ;;  %v3185_v20 = vshrl.u32 %v12383_v31, 16 }
 0x496   : > { %vm3208_vm7 = vc.u32 %v3200_v17, %v3204_v54  ;;  %v3893_v19 = vxor.u32 2147483648, %v3887_v6  ;;  %v4009_v49 = vsel %vm8508_vm15, 0, %v8507_v46  ;;  %v3194_v25 = vadd.s32 %v3193_v13, %v3183_v57 }
 0x497   : > { %v3206_v39 = vshll.u32 %v3202_v11, 16  ;;  %v3897_v41 = vsel %vm3895_vm2, %v3896_v59, %v3887_v6  ;;  %v4010_v50 = vsub.s32 32, %v4009_v49  ;;  %v4014_v58 = vsub.s32 4294967266, %v4009_v49 }
 0x498   : > { %v3209_v27 = vsel %vm3208_vm7, 1, %v16760_v21  ;;  %v3894_v37 = vsel %vm3892_vm5, %v3879_v48, %v3893_v19  ;;  %v4011_v12 = vshll.u32 %v12393_v32, %v4009_v49  ;;  %v3210_v34 = vadd.s32 %v3204_v54, %v3200_v17 }
 0x499   : > { %v3211_v18 = vadd.s32 %v3209_v27, %v3203_v15  ;;  %v3898_v31 = vsel %vm3891_vm3, %v3894_v37, %v3897_v41  ;;  %v4012_v9 = vshrl.u32 %v3994_v53, %v4010_v50  ;;  %v4015_v33 = vadd.s32 127, %v4014_v58  ;;  %v16918_v37 = vld [vmem:[#allocation28_spill] sm:$0xff] }
 0x49a   : > { %v3280_v45 = vand.u32 2147483647, %v16914_v8  ;;  %v3899_v35 = vsel %vm3888_vm9, nan, %v3898_v31  ;;  %v4025_v30 = vsel %vm3902_vm6, %v4024_v5, %v12379_v0  ;;  %v3205_v28 = vshrl.u32 %v12397_v2, 16  ;;  %v16915_v2 = vld [vmem:[#allocation15_spill] sm:$0xff] }
 0x49b   : > { %vm3212_vm1 = vc.u32 %v3210_v34, %v3206_v39  ;;  %5659 = vmatpush.msrb.mxu0 %v3899_v35  ;;  %v4013_v32 = vor.u32 %v4012_v9, %v4011_v12  ;;  %v4016_v17 = vshll.u32 %v4015_v33, 23  ;;  %v3207_v62 = vshrl.u32 %v3202_v11, 16  ;;  %v16916_v11 = vld [vmem:[#allocation17_spill] sm:$0xff]  ;;  %v16919_v12 = vld [vmem:[#allocation10_spill] sm:$0xff] }
 0x49c   : > { %v3213_v38 = vsel %vm3212_vm1, 1, %v16760_v21  ;;  %v12443_v57 = vadd.s32 %v3194_v25, %v3185_v20  ;;  %v3214_v60 = vadd.s32 %v3210_v34, %v3206_v39  ;;  %v3287_v56 = vand.u32 8388607, %v3280_v45  ;;  %v16917_v39 = vld [vmem:[#allocation8_spill] sm:$0xff] }
 0x49d   : > { %v3215_v48 = vadd.s32 %v3213_v38, %v3211_v18  ;;  %v4017_v29 = vor.u32 4788187, %v4016_v17  ;;  %v4020_v13 = vcvt.s32.f32 %v4013_v32  ;;  %v4027_v0 = vsel %vm12417_vm12, 0, %v4025_v30  ;;  %v16920_v32 = vld [vmem:[#allocation27_spill] sm:$0xff] }
 0x49e   : > { %v3297_v54 = vshll.u32 %v16751_v22, %v16915_v2  ;;  %v3288_v46 = vor.u32 8388608, %v3287_v56  ;;  %v3298_v6 = vshrl.u32 %v16752_v44, %v16916_v11  ;;  %v3300_v59 = vshll.u32 %v16752_v44, %v16915_v2 }
 0x49f   : > { %v3216_v53 = vadd.s32 %v3215_v48, %v3205_v28  ;;  %vm5330_vm0 = vcmp.lt.s32.totalorder %v12096_v47, 4  ;;  %v4018_v15 = vand.u32 2147483647, %v4017_v29  ;;  %v3301_v5 = vshrl.u32 %v16753_v55, %v16916_v11 }
 0x4a0   : > { %v3303_v20 = vshll.u32 %v16753_v55, %v16915_v2  ;;  %v3304_v19 = vshrl.u32 %v16754_v14, %v16916_v11  ;;  %vm3220_vm14 = vc.u32 %v12443_v57, %v3214_v60  ;;  %v12463_v25 = vor.u32 %v3298_v6, %v3297_v54 }
 0x4a1   : > { %v3217_v49 = vadd.s32 %v3216_v53, %v3207_v62  ;;  %vm3312_vm4 = vcmp.lt.s32.totalorder %v16917_v39, 1  ;;  %v4021_v41 = vmul.f32 %v4020_v13, %v4018_v15  ;;  %v12466_v50 = vor.u32 %v3301_v5, %v3300_v59 }
 0x4a2   : > { %v3305_v58 = vor.u32 %v3304_v19, %v3303_v20  ;;  %vm3314_vm11 = vcmp.lt.s32.totalorder %v16917_v39, 3  ;;  %vm3313_vm3 = vcmp.lt.s32.totalorder %v16917_v39, 2  ;;  %v12474_v18 = vshll.u32 %v3288_v46, 8 }
 0x4a3   : > { %v3221_v27 = vadd.s32 1, %v3217_v49  ;;  %v3326_v34 = vsel %vm3314_vm11, %v16919_v12, %v16918_v37  ;;  %v5326_v31 = vor.u32 %v12350_v4, %v12200_v3  ;;  %v12480_v9 = vshll.u32 %v16900_v16, %v12229_v52 }
 0x4a4   : > { %v4022_v33 = vxor.u32 2147483648, %v4021_v41  ;;  %v3218_v35 = vmul.u32 %v12339_v7, %v12423_v1  ;;  %v3320_v28 = vsel %vm3312_vm4, %v12463_v25, %v12466_v50  ;;  %v3322_v17 = vsel %vm3314_vm11, %v3305_v58, %v16920_v32 }
 0x4a5   : > { %v3222_v30 = vsel %vm3220_vm14, %v3221_v27, %v3217_v49  ;;  %v3324_v3 = vsel %vm3312_vm4, %v12466_v50, %v3305_v58  ;;  %v4044_v62 = vadd.s32 3, %v4027_v0  ;;  %v3329_v48 = vand.u32 65535, %v12474_v18 }
 0x4a6   : > { %v4023_v4 = vsel %vm3902_vm6, %v4022_v33, %v4021_v41  ;;  %v3223_v38 = vadd.s32 %v3222_v30, %v3218_v35  ;;  %v3327_v7 = vsel %vm3313_vm3, %v3324_v3, %v3326_v34  ;;  %v3330_v56 = vshrl.u32 %v12474_v18, 16 }
 0x4a7   : > { %v12501_v1 = vsel %vm12417_vm12, %v16892_v24, %v4023_v4  ;;  %v3331_v29 = vand.u32 65535, %v3327_v7  ;;  %v3323_v0 = vsel %vm3313_vm3, %v3320_v28, %v3322_v17  ;;  %v3332_v54 = vshrl.u32 %v3327_v7, 16 }
 0x4a8   : > { %v4028_v13 = vmul.f32 %v12501_v1, %v12501_v1  ;;  %v3224_v2 = vadd.s32 536870912, %v3223_v38  ;;  %v12512_v53 = vsel %vm5330_vm0, %v12370_v61, 920167782  ;;  %v12516_v23 = vshrl.u32 %v16900_v16, %v12373_v51 }
 0x4a9   : > { %v12520_v46 = vshrl.u32 %v16911_v43, %v12373_v51  ;;  %v12522_v6 = vmul.u32 %v3331_v29, %v3330_v56  ;;  %v3334_v20 = vmul.u32 %v3332_v54, %v3329_v48  ;;  %v12528_v19 = vsel %vm5330_vm0, %v5326_v31, 1326507024 }
 0x4aa   : > { %v4029_v59 = vmul.f32 -0.001358992, %v4028_v13  ;;  %v4036_v15 = vmul.f32 -0.00019511016, %v4028_v13  ;;  %v12524_v5 = vshrl.u32 %v3224_v2, 30  ;;  %v12530_v49 = vand.u32 3, %v4044_v62 }
 0x4ab   : > { %v3333_v41 = vmul.u32 %v3331_v29, %v3329_v48  ;;  %v3354_v27 = vshrl.u32 %v3323_v0, 16  ;;  %v12533_v34 = vadd.s32 %v3214_v60, %v12443_v57  ;;  %v3296_v35 = vshrl.u32 %v16751_v22, %v16916_v11 }
 0x4ac   : > { %v4030_v37 = vadd.f32 0.041655596, %v4029_v59  ;;  %v4037_v12 = vadd.f32 0.008332121, %v4036_v15  ;;  %v3226_v33 = vshll.u32 %v12524_v5, 30  ;;  %v3337_v30 = vshll.u32 %v3334_v20, 16 }
 0x4ad   : > { %v3339_v28 = vshll.u32 %v12522_v6, 16  ;;  %v3353_v32 = vand.u32 65535, %v3323_v0  ;;  %v3336_v4 = vmul.u32 %v3332_v54, %v3330_v56  ;;  %vm4050_vm9 = vcmp.eq.s32.totalorder %v12530_v49, 2 }
 0x4ae   : > { %v4031_v31 = vmul.f32 %v4030_v37, %v4028_v13  ;;  %v4038_v17 = vmul.f32 %v4037_v12, %v4028_v13  ;;  %v12539_v3 = vsub.s32 %v3223_v38, %v3226_v33  ;;  %v3317_v57 = vsel %vm3315_vm8, %v3305_v58, 2102212464 }
 0x4af   : > { %vm3341_vm6 = vc.u32 %v3333_v41, %v3337_v30  ;;  %v3343_v60 = vadd.s32 %v3337_v30, %v3333_v41  ;;  %v12544_v62 = vmul.u32 %v3354_v27, %v3329_v48  ;;  %vm4047_vm2 = vcmp.eq.s32.totalorder %v12530_v49, 0 }
 0x4b0   : > { %v4032_v7 = vadd.f32 -0.4999988, %v4031_v31  ;;  %v4039_v11 = vadd.f32 -0.16666654, %v4038_v17  ;;  %vm3228_vm5 = vcmp.lt.s32.totalorder %v12539_v3, 0  ;;  %v3229_v29 = vsub.s32 0, %v12539_v3 }
 0x4b1   : > { %v3338_v38 = vshrl.u32 %v3334_v20, 16  ;;  %v3342_v2 = vsel %vm3341_vm6, 1, %v16760_v21  ;;  %vm3345_vm12 = vc.u32 %v3343_v60, %v3339_v28  ;;  %v12550_v0 = vmul.u32 %v3353_v32, %v3330_v56 }
 0x4b2   : > { %v4033_v54 = vmul.f32 %v4032_v7, %v4028_v13  ;;  %v4040_v58 = vmul.f32 %v4039_v11, %v4028_v13  ;;  %vm4046_vm8 = vcmp.lt.s32.totalorder %v12530_v49, 2  ;;  %v3230_v59 = vsel %vm3228_vm5, %v3229_v29, %v12539_v3  ;;  %v16923_v49 = vld [vmem:[#allocation63_spill] sm:$0xff] }
 0x4b3   : > { %v3344_v15 = vadd.s32 %v3342_v2, %v3336_v4  ;;  %vm4043_vm15 = vweird.f32 %v16892_v24  ;;  %v3231_v41 = vclz %v3230_v59  ;;  %v3346_v37 = vsel %vm3345_vm12, 1, %v16760_v21 }
 0x4b4   : > { %v3355_v12 = vmul.u32 %v3353_v32, %v3329_v48  ;;  %v3359_v20 = vshll.u32 %v12544_v62, 16  ;;  %v4034_v33 = vadd.f32 1.0, %v4033_v54  ;;  %v4041_v30 = vadd.f32 1.0, %v4040_v58 }
 0x4b5   : > { %v3316_v28 = vsel %vm3312_vm4, %v3296_v35, %v12463_v25  ;;  %v3348_v13 = vadd.s32 %v3346_v37, %v3344_v15  ;;  %v8492_v31 = vadd.s32 4294967294, %v3231_v41  ;;  %v3318_v17 = vsel %vm3314_vm11, %v12466_v50, %v3317_v57 }
 0x4b6   : > { %v3340_v4 = vshrl.u32 %v12522_v6, 16  ;;  %v3358_v60 = vmul.u32 %v3354_v27, %v3330_v56  ;;  %v4042_v7 = vmul.f32 %v4041_v30, %v12501_v1  ;;  %v4051_v48 = vxor.u32 2147483648, %v4034_v33 }
 0x4b7   : > { %v3349_v32 = vadd.s32 %v3348_v13, %v3338_v38  ;;  %v3361_v11 = vshll.u32 %v12550_v0, 16  ;;  %vm8493_vm7 = vcmp.lt.s32.totalorder %v8492_v31, 0  ;;  %v3249_v29 = vsub.s32 4, %v12524_v5 }
 0x4b8   : > { %vm3363_vm1 = vc.u32 %v3355_v12, %v3359_v20  ;;  %v3365_v25 = vadd.s32 %v3359_v20, %v3355_v12  ;;  %v4048_v35 = vxor.u32 2147483648, %v4042_v7  ;;  %v4052_v2 = vsel %vm4050_vm9, %v4051_v48, %v4042_v7 }
 0x4b9   : > { %v3234_v54 = vsel %vm8493_vm7, 0, %v8492_v31  ;;  %v3360_v50 = vshrl.u32 %v12544_v62, 16  ;;  %vm12572_vm14 = vcmp.le.f32.partialorder %v3125_v40, 0.7853982  ;;  %v12576_v27 = vadd.s32 %v3349_v32, %v3340_v4 }
 0x4ba   : > { %v3235_v56 = vsub.s32 32, %v3234_v54  ;;  %v3239_v6 = vsub.s32 4294967266, %v3234_v54  ;;  %v3364_v57 = vsel %vm3363_vm1, 1, %v16760_v21  ;;  %v4049_v38 = vsel %vm4047_vm2, %v4034_v33, %v4048_v35 }
 0x4bb   : > { %v3236_v58 = vshll.u32 %v12539_v3, %v3234_v54  ;;  %v3366_v59 = vadd.s32 %v3364_v57, %v3358_v60  ;;  %vm3367_vm4 = vc.u32 %v3365_v25, %v3361_v11  ;;  %v4053_v62 = vsel %vm4046_vm8, %v4049_v38, %v4052_v2 }
 0x4bc   : > { %v3237_v40 = vshrl.u32 %v12533_v34, %v3235_v56  ;;  %v3240_v15 = vadd.s32 127, %v3239_v6  ;;  %v3368_v41 = vsel %vm3367_vm4, 1, %v16760_v21  ;;  %v4054_v37 = vsel %vm4043_vm15, nan, %v4053_v62 }
 0x4bd   : > { %vm3127_vm11 = vcmp.lt.s32.totalorder %v16904_v63, 0  ;;  %v3319_v12 = vsel %vm3313_vm3, %v3316_v28, %v3318_v17  ;;  %v3370_v20 = vadd.s32 %v3368_v41, %v3366_v59  ;;  %5688 = vmatpush.msrb.mxu1 %v4054_v37  ;;  %v12591_v30 = vadd.s32 %v3365_v25, %v3361_v11 }
 0x4be   : > { %v3238_v3 = vor.u32 %v3237_v40, %v3236_v58  ;;  %v3241_v33 = vshll.u32 %v3240_v15, 23  ;;  %v5295_v13 = vand.u32 2147483647, %v16923_v49  ;;  %v3250_v34 = vsel %vm3127_vm11, %v3249_v29, %v12524_v5 }
 0x4bf   : > { %v3362_v24 = vshrl.u32 %v12550_v0, 16  ;;  %v3371_v31 = vadd.s32 %v3370_v20, %v3360_v50  ;;  %v5313_v4 = vshrl.u32 %v16752_v44, %v12112_v10  ;;  %vm3375_vm3 = vc.u32 %v12576_v27, %v12591_v30 }
 0x4c0   : > { %v3242_v39 = vor.u32 4788187, %v3241_v33  ;;  %v5302_v28 = vand.u32 8388607, %v5295_v13  ;;  %v5312_v17 = vshll.u32 %v16751_v22, %v12093_v26  ;;  %v3245_v60 = vcvt.s32.f32 %v3238_v3 }
 0x4c1   : > { %v3372_v7 = vadd.s32 %v3371_v31, %v3362_v24  ;;  %v5315_v5 = vshll.u32 %v16752_v44, %v12093_v26  ;;  %v5316_v0 = vshrl.u32 %v16753_v55, %v12112_v10  ;;  %v5318_v11 = vshll.u32 %v16753_v55, %v12093_v26  ;;  %v16924_v24 = vld [vmem:[#allocation58_spill] sm:$0xff] }
 0x4c2   : > { %v3243_v48 = vand.u32 2147483647, %v3242_v39  ;;  %v5303_v32 = vor.u32 8388608, %v5302_v28  ;;  %v5319_v29 = vshrl.u32 %v16754_v14, %v12112_v10  ;;  %v3252_v25 = vsel %vm12572_vm14, 0, %v3250_v34 }
 0x4c3   : > { %v3376_v35 = vadd.s32 1, %v3372_v7  ;;  %v12616_v2 = vor.u32 %v5313_v4, %v5312_v17  ;;  %v12618_v54 = vor.u32 %v5316_v0, %v5315_v5  ;;  %v3373_v56 = vmul.u32 %v12474_v18, %v3319_v12 }
 0x4c4   : > { %v3246_v50 = vmul.f32 %v3245_v60, %v3243_v48  ;;  %v5320_v6 = vor.u32 %v5319_v29, %v5318_v11  ;;  %vm5329_vm9 = vcmp.lt.s32.totalorder %v12096_v47, 3  ;;  %v5481_v26 = vor.u32 %v12520_v46, %v12480_v9 }
 0x4c5   : > { %v3377_v57 = vsel %vm3375_vm3, %v3376_v35, %v3372_v7  ;;  %v5341_v38 = vsel %vm5329_vm9, %v12370_v61, %v12528_v19  ;;  %v12631_v58 = vshll.u32 %v5303_v32, 8  ;;  %v3269_v62 = vadd.s32 3, %v3252_v25 }
 0x4c6   : > { %v3247_v59 = vxor.u32 2147483648, %v3246_v50  ;;  %v3378_v18 = vadd.s32 %v3377_v57, %v3373_v56  ;;  %vm5327_vm6 = vcmp.lt.s32.totalorder %v12096_v47, 1  ;;  %vm5328_vm5 = vcmp.lt.s32.totalorder %v12096_v47, 2 }
 0x4c7   : > { %v5335_v9 = vsel %vm5327_vm6, %v12616_v2, %v12618_v54  ;;  %v5337_v46 = vsel %vm5329_vm9, %v5320_v6, %v12512_v53  ;;  %v5339_v61 = vsel %vm5327_vm6, %v12618_v54, %v5320_v6  ;;  %v12650_v41 = vand.u32 65535, %v12631_v58 }
 0x4c8   : > { %v3248_v19 = vsel %vm3127_vm11, %v3247_v59, %v3246_v50  ;;  %v3379_v40 = vadd.s32 536870912, %v3378_v18  ;;  %v5342_v15 = vsel %vm5328_vm5, %v5339_v61, %v5341_v38  ;;  %v12658_v53 = vshrl.u32 %v12631_v58, 16 }
 0x4c9   : > { %v12655_v37 = vsel %vm12572_vm14, %v16904_v63, %v3248_v19  ;;  %v5346_v12 = vand.u32 65535, %v5342_v15  ;;  %v5347_v20 = vshrl.u32 %v5342_v15, 16  ;;  %vm5485_vm2 = vcmp.lt.s32.totalorder %v12214_v36, 4 }
 0x4ca   : > { %v3253_v3 = vmul.f32 %v12655_v37, %v12655_v37  ;;  %v12663_v33 = vshrl.u32 %v3379_v40, 30  ;;  %v12667_v34 = vsel %vm5328_vm5, %v5335_v9, %v5337_v46  ;;  %v12671_v1 = vshrl.u32 %v16911_v43, %v16924_v24 }
 0x4cb   : > { %v12675_v31 = vsel %vm5485_vm2, %v5481_v26, 1326507024  ;;  %v5349_v4 = vmul.u32 %v5347_v20, %v12650_v41  ;;  %v12679_v39 = vmul.u32 %v5346_v12, %v12658_v53  ;;  %v12683_v28 = vor.u32 %v12516_v23, %v12377_v42 }
 0x4cc   : > { %v3254_v17 = vmul.f32 -0.001358992, %v3253_v3  ;;  %v3261_v60 = vmul.f32 -0.00019511016, %v3253_v3  ;;  %v3381_v7 = vshll.u32 %v12663_v33, 30  ;;  %v12686_v5 = vand.u32 3, %v3269_v62 }
 0x4cd   : > { %v5348_v0 = vmul.u32 %v5346_v12, %v12650_v41  ;;  %v5352_v48 = vshll.u32 %v5349_v4, 16  ;;  %v5369_v32 = vshrl.u32 %v12667_v34, 16  ;;  %v5332_v35 = vsel %vm5330_vm0, %v5320_v6, 2102212464 }
 0x4ce   : > { %v3255_v11 = vadd.f32 0.041655596, %v3254_v17  ;;  %v3262_v29 = vadd.f32 0.008332121, %v3261_v60  ;;  %v12690_v25 = vsub.s32 %v3378_v18, %v3381_v7  ;;  %v5351_v42 = vmul.u32 %v5347_v20, %v12658_v53 }
 0x4cf   : > { %v5354_v23 = vshll.u32 %v12679_v39, 16  ;;  %vm5356_vm12 = vc.u32 %v5348_v0, %v5352_v48  ;;  %v5358_v50 = vadd.s32 %v5352_v48, %v5348_v0  ;;  %v5368_v59 = vand.u32 65535, %v12667_v34 }
 0x4d0   : > { %v3256_v56 = vmul.f32 %v3255_v11, %v3253_v3  ;;  %v3263_v26 = vmul.f32 %v3262_v29, %v3253_v3  ;;  %vm3383_vm8 = vcmp.lt.s32.totalorder %v12690_v25, 0  ;;  %v3384_v57 = vsub.s32 0, %v12690_v25 }
 0x4d1   : > { %v5357_v38 = vsel %vm5356_vm12, 1, %v16760_v21  ;;  %vm5360_vm15 = vc.u32 %v5358_v50, %v5354_v23  ;;  %v12701_v62 = vmul.u32 %v5369_v32, %v12650_v41  ;;  %vm3272_vm0 = vcmp.eq.s32.totalorder %v12686_v5, 0 }
 0x4d2   : > { %v3257_v6 = vadd.f32 -0.4999988, %v3256_v56  ;;  %v3264_v18 = vadd.f32 -0.16666654, %v3263_v26  ;;  %v3385_v9 = vsel %vm3383_vm8, %v3384_v57, %v12690_v25  ;;  %v5359_v46 = vadd.s32 %v5357_v38, %v5351_v42 }
 0x4d3   : > { %vm3275_vm7 = vcmp.eq.s32.totalorder %v12686_v5, 2  ;;  %v3386_v61 = vclz %v3385_v9  ;;  %v5311_v19 = vshrl.u32 %v16751_v22, %v12112_v10  ;;  %v5361_v40 = vsel %vm5360_vm15, 1, %v16760_v21 }
 0x4d4   : > { %v3258_v15 = vmul.f32 %v3257_v6, %v3253_v3  ;;  %v3265_v12 = vmul.f32 %v3264_v18, %v3253_v3  ;;  %vm3271_vm1 = vcmp.lt.s32.totalorder %v12686_v5, 2  ;;  %v3374_v20 = vadd.s32 %v12591_v30, %v12576_v27 }
 0x4d5   : > { %v5363_v34 = vadd.s32 %v5361_v40, %v5359_v46  ;;  %vm3268_vm14 = vweird.f32 %v16904_v63  ;;  %v8495_v17 = vadd.s32 4294967294, %v3386_v61  ;;  %v5331_v60 = vsel %vm5327_vm6, %v5311_v19, %v12616_v2  ;;  %v16929_v19 = vld [vmem:[#allocation65_spill] sm:$0xff] }
 0x4d6   : > { %v5333_v10 = vsel %vm5329_vm9, %v12618_v54, %v5332_v35  ;;  %v5353_v7 = vshrl.u32 %v5349_v4, 16  ;;  %v3259_v0 = vadd.f32 1.0, %v3258_v15  ;;  %v3266_v3 = vadd.f32 1.0, %v3265_v12 }
 0x4d7   : > { %v5372_v48 = vmul.u32 %v5368_v59, %v12658_v53  ;;  %v5374_v11 = vshll.u32 %v12701_v62, 16  ;;  %vm3282_vm4 = vcmp.lt.s32.totalorder %v16914_v8, 0  ;;  %vm8496_vm11 = vcmp.lt.s32.totalorder %v8495_v17, 0 }
 0x4d8   : > { %v3404_v27 = vsub.s32 4, %v12663_v33  ;;  %v5355_v30 = vshrl.u32 %v12679_v39, 16  ;;  %v5370_v2 = vmul.u32 %v5368_v59, %v12650_v41  ;;  %v3267_v29 = vmul.f32 %v3266_v3, %v12655_v37 }
 0x4d9   : > { %v3276_v42 = vxor.u32 2147483648, %v3259_v0  ;;  %v3389_v54 = vsel %vm8496_vm11, 0, %v8495_v17  ;;  %v5364_v4 = vadd.s32 %v5363_v34, %v5353_v7  ;;  %v5373_v50 = vmul.u32 %v5369_v32, %v12658_v53  ;;  %v16927_v34 = vld [vmem:[#allocation64_spill] sm:$0xff] }
 0x4da   : > { %v3390_v35 = vsub.s32 32, %v3389_v54  ;;  %v3394_v23 = vsub.s32 4294967266, %v3389_v54  ;;  %vm5378_vm3 = vc.u32 %v5370_v2, %v5374_v11  ;;  %v3273_v56 = vxor.u32 2147483648, %v3267_v29 }
 0x4db   : > { %v5376_v26 = vshll.u32 %v5372_v48, 16  ;;  %v5379_v57 = vsel %vm5378_vm3, 1, %v16760_v21  ;;  %v5380_v38 = vadd.s32 %v5374_v11, %v5370_v2  ;;  %v3391_v6 = vshll.u32 %v12690_v25, %v3389_v54 }
 0x4dc   : > { %v3392_v39 = vshrl.u32 %v3374_v20, %v3390_v35  ;;  %v3395_v18 = vadd.s32 127, %v3394_v23  ;;  %v5381_v41 = vadd.s32 %v5379_v57, %v5373_v50  ;;  %v3274_v37 = vsel %vm3272_vm0, %v3259_v0, %v3273_v56 }
 0x4dd   : > { %v3277_v59 = vsel %vm3275_vm7, %v3276_v42, %v3267_v29  ;;  %v12733_v9 = vadd.s32 %v5364_v4, %v5355_v30  ;;  %vm5382_vm9 = vc.u32 %v5380_v38, %v5376_v26  ;;  %vm12742_vm6 = vcmp.le.f32.partialorder %v3280_v45, 0.7853982 }
 0x4de   : > { %v3278_v53 = vsel %vm3271_vm1, %v3274_v37, %v3277_v59  ;;  %v3393_v32 = vor.u32 %v3392_v39, %v3391_v6  ;;  %v3396_v46 = vshll.u32 %v3395_v18, 23  ;;  %v5383_v61 = vsel %vm5382_vm9, 1, %v16760_v21 }
 0x4df   : > { %v3279_v25 = vsel %vm3268_vm14, nan, %v3278_v53  ;;  %v5375_v40 = vshrl.u32 %v12701_v62, 16  ;;  %v5385_v15 = vadd.s32 %v5383_v61, %v5381_v41  ;;  %v5334_v5 = vsel %vm5328_vm5, %v5331_v60, %v5333_v10 }
 0x4e0   : > { %5660 = vmatpush.msrb.mxu0 %v3279_v25  ;;  %v3397_v12 = vor.u32 4788187, %v3396_v46  ;;  %v12749_v20 = vadd.s32 %v5380_v38, %v5376_v26  ;;  %v5450_v17 = vand.u32 2147483647, %v16927_v34  ;;  %v3405_v63 = vsel %vm3282_vm4, %v3404_v27, %v12663_v33  ;;  %v16928_v25 = vld [vmem:[#allocation59_spill] sm:$0xff] }
 0x4e1   : > { %v5377_v45 = vshrl.u32 %v5372_v48, 16  ;;  %v5386_v7 = vadd.s32 %v5385_v15, %v5375_v40  ;;  %v5468_v0 = vshrl.u32 %v16752_v44, %v12373_v51  ;;  %v3400_v3 = vcvt.s32.f32 %v3393_v32 }
 0x4e2   : > { %v3398_v62 = vand.u32 2147483647, %v3397_v12  ;;  %vm5390_vm12 = vc.u32 %v12733_v9, %v12749_v20  ;;  %v5457_v47 = vand.u32 8388607, %v5450_v17  ;;  %v5467_v10 = vshll.u32 %v16751_v22, %v12229_v52 }
 0x4e3   : > { %v5387_v60 = vadd.s32 %v5386_v7, %v5377_v45  ;;  %v5470_v33 = vshll.u32 %v16752_v44, %v12229_v52  ;;  %v5471_v48 = vshrl.u32 %v16753_v55, %v12373_v51  ;;  %v5473_v30 = vshll.u32 %v16753_v55, %v12229_v52 }
 0x4e4   : > { %v3401_v11 = vmul.f32 %v3400_v3, %v3398_v62  ;;  %v5458_v27 = vor.u32 8388608, %v5457_v47  ;;  %v5474_v2 = vshrl.u32 %v16754_v14, %v12373_v51  ;;  %v3407_v29 = vsel %vm12742_vm6, 0, %v3405_v63  ;;  %v16930_v63 = vld [vmem:[#allocation60_spill] sm:$0xff] }
 0x4e5   : > { %v5391_v42 = vadd.s32 1, %v5387_v60  ;;  %v5469_v54 = vor.u32 %v5468_v0, %v5467_v10  ;;  %v12773_v4 = vor.u32 %v5471_v48, %v5470_v33  ;;  %v5388_v23 = vmul.u32 %v12631_v58, %v5334_v5 }
 0x4e6   : > { %v3402_v35 = vxor.u32 2147483648, %v3401_v11  ;;  %v5475_v50 = vor.u32 %v5474_v2, %v5473_v30  ;;  %vm5484_vm5 = vcmp.lt.s32.totalorder %v12214_v36, 3  ;;  %v5491_v52 = vsel %vm5485_vm2, %v12683_v28, 920167782 }
 0x4e7   : > { %v5392_v56 = vsel %vm5390_vm12, %v5391_v42, %v5387_v60  ;;  %v5496_v26 = vsel %vm5484_vm5, %v12683_v28, %v12675_v31  ;;  %v12787_v57 = vshll.u32 %v5458_v27, 8  ;;  %v3424_v38 = vadd.s32 3, %v3407_v29 }
 0x4e8   : > { %v3403_v58 = vsel %vm3282_vm4, %v3402_v35, %v3401_v11  ;;  %v5393_v6 = vadd.s32 %v5392_v56, %v5388_v23  ;;  %vm5482_vm8 = vcmp.lt.s32.totalorder %v12214_v36, 1  ;;  %vm5483_vm15 = vcmp.lt.s32.totalorder %v12214_v36, 2 }
 0x4e9   : > { %v12795_v39 = vsel %vm12742_vm6, %v16914_v8, %v3403_v58  ;;  %v5490_v31 = vsel %vm5482_vm8, %v5469_v54, %v12773_v4  ;;  %v5494_v28 = vsel %vm5482_vm8, %v12773_v4, %v5475_v50  ;;  %v5492_v37 = vsel %vm5484_vm5, %v5475_v50, %v5491_v52 }
 0x4ea   : > { %v3408_v18 = vmul.f32 %v12795_v39, %v12795_v39  ;;  %v5394_v41 = vadd.s32 536870912, %v5393_v6  ;;  %v5497_v59 = vsel %vm5483_vm15, %v5494_v28, %v5496_v26  ;;  %v5499_v53 = vand.u32 65535, %v12787_v57 }
 0x4eb   : > { %v12812_v32 = vshrl.u32 %v12787_v57, 16  ;;  %v5501_v46 = vand.u32 65535, %v5497_v59  ;;  %v5502_v61 = vshrl.u32 %v5497_v59, 16  ;;  %v12816_v40 = vor.u32 %v16929_v19, %v16928_v25 }
 0x4ec   : > { %v3409_v15 = vmul.f32 -0.001358992, %v3408_v18  ;;  %v3416_v12 = vmul.f32 -0.00019511016, %v3408_v18  ;;  %v12818_v5 = vshrl.u32 %v5394_v41, 30  ;;  %v4861_v45 = vor.u32 %v12671_v1, %v16930_v63 }
 0x4ed   : > { %v12822_v7 = vand.u32 3, %v3424_v38  ;;  %v5504_v0 = vmul.u32 %v5502_v61, %v5499_v53  ;;  %v12825_v62 = vmul.u32 %v5501_v46, %v12812_v32  ;;  %v5493_v10 = vsel %vm5483_vm15, %v5490_v31, %v5492_v37 }
 0x4ee   : > { %v3410_v3 = vadd.f32 0.041655596, %v3409_v15  ;;  %v3417_v47 = vadd.f32 0.008332121, %v3416_v12  ;;  %v5396_v60 = vshll.u32 %v12818_v5, 30  ;;  %v5466_v33 = vshrl.u32 %v16751_v22, %v12373_v51 }
 0x4ef   : > { %v5487_v48 = vsel %vm5485_vm2, %v5475_v50, 2102212464  ;;  %v5503_v11 = vmul.u32 %v5501_v46, %v5499_v53  ;;  %v5507_v27 = vshll.u32 %v5504_v0, 16  ;;  %v5506_v42 = vmul.u32 %v5502_v61, %v12812_v32 }
 0x4f0   : > { %v3411_v30 = vmul.f32 %v3410_v3, %v3408_v18  ;;  %v3418_v2 = vmul.f32 %v3417_v47, %v3408_v18  ;;  %v12834_v29 = vsub.s32 %v5393_v6, %v5396_v60  ;;  %v5509_v35 = vshll.u32 %v12825_v62, 16 }
 0x4f1   : > { %vm5511_vm0 = vc.u32 %v5503_v11, %v5507_v27  ;;  %v5513_v23 = vadd.s32 %v5507_v27, %v5503_v11  ;;  %v5524_v52 = vshrl.u32 %v5493_v10, 16  ;;  %v5486_v50 = vsel %vm5482_vm8, %v5466_v33, %v5469_v54 }
 0x4f2   : > { %v3412_v56 = vadd.f32 -0.4999988, %v3411_v30  ;;  %v3419_v26 = vadd.f32 -0.16666654, %v3418_v2  ;;  %vm5398_vm7 = vcmp.lt.s32.totalorder %v12834_v29, 0  ;;  %v5399_v51 = vsub.s32 0, %v12834_v29 }
 0x4f3   : > { %v5512_v58 = vsel %vm5511_vm0, 1, %v16760_v21  ;;  %vm5515_vm2 = vc.u32 %v5513_v23, %v5509_v35  ;;  %v5523_v38 = vand.u32 65535, %v5493_v10  ;;  %vm3426_vm1 = vcmp.lt.s32.totalorder %v12822_v7, 2 }
 0x4f4   : > { %v3413_v6 = vmul.f32 %v3412_v56, %v3408_v18  ;;  %v3420_v31 = vmul.f32 %v3419_v26, %v3408_v18  ;;  %v5400_v28 = vsel %vm5398_vm7, %v5399_v51, %v12834_v29  ;;  %v5514_v41 = vadd.s32 %v5512_v58, %v5506_v42 }
 0x4f5   : > { %vm3423_vm14 = vweird.f32 %v16914_v8  ;;  %v5401_v37 = vclz %v5400_v28  ;;  %v5488_v59 = vsel %vm5484_vm5, %v12773_v4, %v5487_v48  ;;  %v5516_v54 = vsel %vm5515_vm2, 1, %v16760_v21 }
 0x4f6   : > { %v5526_v46 = vmul.u32 %v5524_v52, %v5499_v53  ;;  %v3414_v61 = vadd.f32 1.0, %v3413_v6  ;;  %v3421_v25 = vadd.f32 1.0, %v3420_v31  ;;  %vm3427_vm4 = vcmp.eq.s32.totalorder %v12822_v7, 0 }
 0x4f7   : > { %v5518_v18 = vadd.s32 %v5516_v54, %v5514_v41  ;;  %vm3430_vm11 = vcmp.eq.s32.totalorder %v12822_v7, 2  ;;  %vm5297_vm3 = vcmp.lt.s32.totalorder %v16923_v49, 0  ;;  %v5389_v19 = vadd.s32 %v12749_v20, %v12733_v9 }
 0x4f8   : > { %v8534_v15 = vadd.s32 4294967294, %v5401_v37  ;;  %v5527_v12 = vmul.u32 %v5523_v38, %v12812_v32  ;;  %v3422_v4 = vmul.f32 %v3421_v25, %v12795_v39  ;;  %v3431_v3 = vxor.u32 2147483648, %v3414_v61  ;;  %v16934_v25 = vld [vmem:[#allocation53_spill] sm:$0xff] }
 0x4f9   : > { %v12859_v47 = vsel %vm5483_vm15, %v5486_v50, %v5488_v59  ;;  %v5508_v60 = vshrl.u32 %v5504_v0, 16  ;;  %v5419_v10 = vsub.s32 4, %v12818_v5  ;;  %v5525_v33 = vmul.u32 %v5523_v38, %v5499_v53  ;;  %v16933_v38 = vld [vmem:[#allocation23_spill] sm:$0xff] }
 0x4fa   : > { %vm8535_vm9 = vcmp.lt.s32.totalorder %v8534_v15, 0  ;;  %v5529_v48 = vshll.u32 %v5526_v46, 16  ;;  %v3428_v11 = vxor.u32 2147483648, %v3422_v4  ;;  %v5528_v9 = vmul.u32 %v5524_v52, %v12812_v32 }
 0x4fb   : > { %v5404_v27 = vsel %vm8535_vm9, 0, %v8534_v15  ;;  %v5519_v30 = vadd.s32 %v5518_v18, %v5508_v60  ;;  %v3432_v20 = vsel %vm3430_vm11, %v3431_v3, %v3422_v4  ;;  %v5531_v42 = vshll.u32 %v5527_v12, 16 }
 0x4fc   : > { %v5405_v39 = vsub.s32 32, %v5404_v27  ;;  %v5409_v2 = vsub.s32 4294967266, %v5404_v27  ;;  %v3429_v36 = vsel %vm3427_vm4, %v3414_v61, %v3428_v11  ;;  %vm12869_vm6 = vcmp.le.f32.partialorder %v5295_v13, 0.7853982 }
 0x4fd   : > { %v5406_v53 = vshll.u32 %v12834_v29, %v5404_v27  ;;  %vm5533_vm12 = vc.u32 %v5525_v33, %v5529_v48  ;;  %v5535_v35 = vadd.s32 %v5529_v48, %v5525_v33  ;;  %v3433_v32 = vsel %vm3426_vm1, %v3429_v36, %v3432_v20  ;;  %v16936_v20 = vld [vmem:[#allocation52_spill] sm:$0xff]  ;;  %v16937_v36 = vld [vmem:[#allocation62_spill] sm:$0xff] }
 0x4fe   : > { %v5407_v23 = vshrl.u32 %v5389_v19, %v5405_v39  ;;  %v5410_v52 = vadd.s32 127, %v5409_v2  ;;  %v5534_v56 = vsel %vm5533_vm12, 1, %v16760_v21  ;;  %v3434_v26 = vsel %vm3423_vm14, nan, %v3433_v32  ;;  %v16935_v19 = vld [vmem:[#allocation54_spill] sm:$0xff] }
 0x4ff   : > { %v5510_v51 = vshrl.u32 %v12825_v62, 16  ;;  %v5536_v13 = vadd.s32 %v5534_v56, %v5528_v9  ;;  %vm5537_vm5 = vc.u32 %v5535_v35, %v5531_v42  ;;  %5689 = vmatpush.msrb.mxu1 %v3434_v26  ;;  %v4675_v6 = vand.u32 2147483647, %v16933_v38 }
 0x500   : > { %v5408_v50 = vor.u32 %v5407_v23, %v5406_v53  ;;  %v5411_v58 = vshll.u32 %v5410_v52, 23  ;;  %v5538_v29 = vsel %vm5537_vm5, 1, %v16760_v21  ;;  %v5420_v7 = vsel %vm5297_vm3, %v5419_v10, %v12818_v5  ;;  %v16938_v53 = vld [vmem:[#allocation57_spill] sm:$0xff] }
 0x501   : > { %v12885_v31 = vadd.s32 %v5519_v30, %v5510_v51  ;;  %v5530_v28 = vshrl.u32 %v5526_v46, 16  ;;  %v5540_v8 = vadd.s32 %v5538_v29, %v5536_v13  ;;  %v5532_v37 = vshrl.u32 %v5527_v12, 16  ;;  %v16939_v23 = vld [vmem:[#allocation61_spill] sm:$0xff] }
 0x502   : > { %v5412_v41 = vor.u32 4788187, %v5411_v58  ;;  %v12887_v62 = vadd.s32 %v5535_v35, %v5531_v42  ;;  %v4682_v59 = vand.u32 8388607, %v4675_v6  ;;  %v5415_v54 = vcvt.s32.f32 %v5408_v50 }
 0x503   : > { %v5541_v61 = vadd.s32 %v5540_v8, %v5530_v28  ;;  %v4692_v18 = vshll.u32 %v16751_v22, %v16934_v25  ;;  %v4693_v15 = vshrl.u32 %v16752_v44, %v16935_v19  ;;  %v4695_v46 = vshll.u32 %v16752_v44, %v16934_v25 }
 0x504   : > { %v5413_v5 = vand.u32 2147483647, %v5412_v41  ;;  %v4683_v4 = vor.u32 8388608, %v4682_v59  ;;  %v4696_v12 = vshrl.u32 %v16753_v55, %v16935_v19  ;;  %v4698_v10 = vshll.u32 %v16753_v55, %v16934_v25 }
 0x505   : > { %v5542_v3 = vadd.s32 %v5541_v61, %v5532_v37  ;;  %v12899_v60 = vor.u32 %v4693_v15, %v4692_v18  ;;  %v4699_v33 = vshrl.u32 %v16754_v14, %v16935_v19  ;;  %v5422_v11 = vsel %vm12869_vm6, 0, %v5420_v7  ;;  %v16941_v61 = vld [vmem:[#allocation51_spill] sm:$0xff] }
 0x506   : > { %v5416_v48 = vmul.f32 %v5415_v54, %v5413_v5  ;;  %vm5545_vm8 = vc.u32 %v12885_v31, %v12887_v62  ;;  %v12909_v27 = vor.u32 %v4696_v12, %v4695_v46  ;;  %vm4707_vm15 = vcmp.lt.s32.totalorder %v16936_v20, 1 }
 0x507   : > { %v5546_v30 = vadd.s32 1, %v5542_v3  ;;  %v4700_v9 = vor.u32 %v4699_v33, %v4698_v10  ;;  %vm4709_vm0 = vcmp.lt.s32.totalorder %v16936_v20, 3  ;;  %v5543_v2 = vmul.u32 %v12787_v57, %v12859_v47  ;;  %v16940_v47 = vld [vmem:[#allocation56_spill] sm:$0xff] }
 0x508   : > { %v5417_v39 = vxor.u32 2147483648, %v5416_v48  ;;  %v4715_v42 = vsel %vm4707_vm15, %v12899_v60, %v12909_v27  ;;  %v4721_v35 = vsel %vm4709_vm0, %v16938_v53, %v16937_v36  ;;  %v12929_v57 = vshll.u32 %v4683_v4, 8 }
 0x509   : > { %v5547_v32 = vsel %vm5545_vm8, %v5546_v30, %v5542_v3  ;;  %v4717_v52 = vsel %vm4709_vm0, %v4700_v9, %v16939_v23  ;;  %v4719_v56 = vsel %vm4707_vm15, %v12909_v27, %v4700_v9  ;;  %vm4865_vm7 = vcmp.lt.s32.totalorder %v16940_v47, 4 }
 0x50a   : > { %v5418_v26 = vsel %vm5297_vm3, %v5417_v39, %v5416_v48  ;;  %v5548_v51 = vadd.s32 %v5547_v32, %v5543_v2  ;;  %vm4708_vm2 = vcmp.lt.s32.totalorder %v16936_v20, 2  ;;  %v12938_v13 = vsel %vm4865_vm7, %v12816_v40, 920167782 }
 0x50b   : > { %v5421_v50 = vsel %vm12869_vm6, %v16923_v49, %v5418_v26  ;;  %v5439_v58 = vadd.s32 3, %v5422_v11  ;;  %v4722_v29 = vsel %vm4708_vm2, %v4719_v56, %v4721_v35  ;;  %v12947_v8 = vsel %vm4708_vm2, %v4715_v42, %v4717_v52 }
 0x50c   : > { %v5423_v7 = vmul.f32 %v5421_v50, %v5421_v50  ;;  %v5549_v28 = vadd.s32 536870912, %v5548_v51  ;;  %v4726_v41 = vand.u32 65535, %v4722_v29  ;;  %v12954_v37 = vsel %vm4865_vm7, %v4861_v45, 1326507024 }
 0x50d   : > { %v4724_v0 = vand.u32 65535, %v12929_v57  ;;  %v4725_v59 = vshrl.u32 %v12929_v57, 16  ;;  %v4727_v54 = vshrl.u32 %v4722_v29, 16  ;;  %v12959_v25 = vand.u32 31, %v16941_v61 }
 0x50e   : > { %v5424_v18 = vmul.f32 -0.001358992, %v5423_v7  ;;  %v5431_v15 = vmul.f32 -0.00019511016, %v5423_v7  ;;  %v12961_v5 = vshrl.u32 %v5549_v28, 30  ;;  %v12963_v4 = vand.u32 3, %v5439_v58 }
 0x50f   : > { %v4729_v46 = vmul.u32 %v4727_v54, %v4724_v0  ;;  %v12965_v1 = vmul.u32 %v4726_v41, %v4725_v59  ;;  %v4749_v63 = vshrl.u32 %v12947_v8, 16  ;;  %v4691_v10 = vshrl.u32 %v16751_v22, %v16935_v19 }
 0x510   : > { %v5425_v45 = vadd.f32 0.041655596, %v5424_v18  ;;  %v5432_v12 = vadd.f32 0.008332121, %v5431_v15  ;;  %v5551_v3 = vshll.u32 %v12961_v5, 30  ;;  %v4728_v48 = vmul.u32 %v4726_v41, %v4724_v0 }
 0x511   : > { %v4712_v33 = vsel %vm4710_vm13, %v4700_v9, 2102212464  ;;  %v4732_v11 = vshll.u32 %v4729_v46, 16  ;;  %v4748_v30 = vand.u32 65535, %v12947_v8  ;;  %v4731_v36 = vmul.u32 %v4727_v54, %v4725_v59 }
 0x512   : > { %v5426_v39 = vmul.f32 %v5425_v45, %v5423_v7  ;;  %v5433_v2 = vmul.f32 %v5432_v12, %v5423_v7  ;;  %v12974_v42 = vsub.s32 %v5548_v51, %v5551_v3  ;;  %v4734_v53 = vshll.u32 %v12965_v1, 16 }
 0x513   : > { %vm4736_vm1 = vc.u32 %v4728_v48, %v4732_v11  ;;  %v4738_v35 = vadd.s32 %v4732_v11, %v4728_v48  ;;  %v12977_v32 = vmul.u32 %v4749_v63, %v4724_v0  ;;  %vm5442_vm13 = vcmp.eq.s32.totalorder %v12963_v4, 0 }
 0x514   : > { %v5427_v23 = vadd.f32 -0.4999988, %v5426_v39  ;;  %v5434_v19 = vadd.f32 -0.16666654, %v5433_v2  ;;  %vm5553_vm14 = vcmp.lt.s32.totalorder %v12974_v42, 0  ;;  %v5554_v9 = vsub.s32 0, %v12974_v42 }
 0x515   : > { %v4711_v52 = vsel %vm4707_vm15, %v4691_v10, %v12899_v60  ;;  %v4737_v56 = vsel %vm4736_vm1, 1, %v16760_v21  ;;  %vm4740_vm4 = vc.u32 %v4738_v35, %v4734_v53  ;;  %vm5441_vm11 = vcmp.lt.s32.totalorder %v12963_v4, 2 }
 0x516   : > { %v5428_v26 = vmul.f32 %v5427_v23, %v5423_v7  ;;  %v5435_v51 = vmul.f32 %v5434_v19, %v5423_v7  ;;  %v5555_v58 = vsel %vm5553_vm14, %v5554_v9, %v12974_v42  ;;  %v4739_v29 = vadd.s32 %v4737_v56, %v4731_v36 }
 0x517   : > { %vm5438_vm3 = vweird.f32 %v16923_v49  ;;  %vm5452_vm9 = vcmp.lt.s32.totalorder %v16927_v34, 0  ;;  %v5556_v28 = vclz %v5555_v58  ;;  %v4713_v8 = vsel %vm4709_vm0, %v12909_v27, %v4712_v33 }
 0x518   : > { %v4741_v60 = vsel %vm4740_vm4, 1, %v16760_v21  ;;  %v12994_v41 = vmul.u32 %v4748_v30, %v4725_v59  ;;  %v5429_v54 = vadd.f32 1.0, %v5428_v26  ;;  %v5436_v7 = vadd.f32 1.0, %v5435_v51 }
 0x519   : > { %v4743_v18 = vadd.s32 %v4741_v60, %v4739_v29  ;;  %v4754_v15 = vshll.u32 %v12977_v32, 16  ;;  %vm5445_vm6 = vcmp.eq.s32.totalorder %v12963_v4, 2  ;;  %v5544_v45 = vadd.s32 %v12887_v62, %v12885_v31 }
 0x51a   : > { %v8537_v12 = vadd.s32 4294967294, %v5556_v28  ;;  %v4750_v3 = vmul.u32 %v4748_v30, %v4724_v0  ;;  %v5437_v10 = vmul.f32 %v5436_v7, %v5421_v50  ;;  %v5446_v48 = vxor.u32 2147483648, %v5429_v54  ;;  %v5605_v28 = vld [vmem:[%s16422_s5] sm:$0xff]  ;;  %v16945_v7 = vld [vmem:[#allocation55_spill] sm:$0xff] }
 0x51b   : > { %v13002_v27 = vsel %vm4708_vm2, %v4711_v52, %v4713_v8  ;;  %v4733_v33 = vshrl.u32 %v4729_v46, 16  ;;  %v5574_v11 = vsub.s32 4, %v12961_v5  ;;  %v4753_v39 = vmul.u32 %v4749_v63, %v4725_v59  ;;  %v16944_v52 = vld [vmem:[#allocation37_spill] sm:$0xff]  ;;  %8539 = vmatmul.msk.f32.vlgmr.msrb.gmra.mxu0 %vm16588_vm10, %v5605_v28  ;;  %8543 = vmatmul.msk.f32.vlgmr.msrb.gmra.mxu1 %vm16588_vm10, %v5605_v28 }
 0x51c   : > { %vm8538_vm12 = vcmp.lt.s32.totalorder %v8537_v12, 0  ;;  %vm4758_vm5 = vc.u32 %v4750_v3, %v4754_v15  ;;  %v5443_v2 = vxor.u32 2147483648, %v5437_v10  ;;  %v4756_v35 = vshll.u32 %v12994_v41, 16 }
 0x51d   : > { %v5559_v36 = vsel %vm8538_vm12, 0, %v8537_v12  ;;  %v4744_v53 = vadd.s32 %v4743_v18, %v4733_v33  ;;  %v5447_v31 = vsel %vm5445_vm6, %v5446_v48, %v5437_v10  ;;  %v4759_v20 = vsel %vm4758_vm5, 1, %v16760_v21 }
 0x51e   : > { %v5560_v62 = vsub.s32 32, %v5559_v36  ;;  %v5564_v50 = vsub.s32 4294967266, %v5559_v36  ;;  %v5444_v0 = vsel %vm5442_vm13, %v5429_v54, %v5443_v2  ;;  %v5561_v46 = vshll.u32 %v12974_v42, %v5559_v36 }
 0x51f   : > { %v4760_v30 = vadd.s32 %v4754_v15, %v4750_v3  ;;  %v4761_v59 = vadd.s32 %v4759_v20, %v4753_v39  ;;  %v5448_v63 = vsel %vm5441_vm11, %v5444_v0, %v5447_v31  ;;  %vm13016_vm8 = vcmp.le.f32.partialorder %v5450_v17, 0.7853982 }
 0x520   : > { %v5562_v19 = vshrl.u32 %v5544_v45, %v5560_v62  ;;  %v5565_v9 = vadd.s32 127, %v5564_v50  ;;  %v4830_v56 = vand.u32 2147483647, %v16944_v52  ;;  %v5449_v26 = vsel %vm5438_vm3, nan, %v5448_v63 }
 0x521   : > { %v5575_v42 = vsel %vm5452_vm9, %v5574_v11, %v12961_v5  ;;  %v4735_v4 = vshrl.u32 %v12965_v1, 16  ;;  %vm4762_vm15 = vc.u32 %v4760_v30, %v4756_v35  ;;  %5715 = vmatpush.msrb.mxu2 %v5449_v26  ;;  %v4755_v58 = vshrl.u32 %v12977_v32, 16 }
 0x522   : > { %v5563_v51 = vor.u32 %v5562_v19, %v5561_v46  ;;  %v5566_v17 = vshll.u32 %v5565_v9, 23  ;;  %v4763_v29 = vsel %vm4762_vm15, 1, %v16760_v21  ;;  %v4757_v8 = vshrl.u32 %v12994_v41, 16 }
 0x523   : > { %v13032_v49 = vadd.s32 %v4744_v53, %v4735_v4  ;;  %v4765_v60 = vadd.s32 %v4763_v29, %v4761_v59  ;;  %v4837_v5 = vand.u32 8388607, %v4830_v56  ;;  %v4764_v32 = vadd.s32 %v4760_v30, %v4756_v35 }
 0x524   : > { %v5567_v1 = vor.u32 4788187, %v5566_v17  ;;  %v5570_v54 = vcvt.s32.f32 %v5563_v51  ;;  %v4847_v18 = vshll.u32 %v16751_v22, %v16945_v7  ;;  %v4848_v12 = vshrl.u32 %v16752_v44, %v16924_v24 }
 0x525   : > { %v4766_v15 = vadd.s32 %v4765_v60, %v4755_v58  ;;  %v4838_v45 = vor.u32 8388608, %v4837_v5  ;;  %v4850_v41 = vshll.u32 %v16752_v44, %v16945_v7  ;;  %v4851_v10 = vshrl.u32 %v16753_v55, %v16924_v24 }
 0x526   : > { %v5568_v3 = vand.u32 2147483647, %v5567_v1  ;;  %v4853_v48 = vshll.u32 %v16753_v55, %v16945_v7  ;;  %v4854_v33 = vshrl.u32 %v16754_v14, %v16924_v24  ;;  %v4768_v39 = vmul.u32 %v12929_v57, %v13002_v27 }
 0x527   : > { %v4767_v11 = vadd.s32 %v4766_v15, %v4757_v8  ;;  %vm4770_vm0 = vc.u32 %v13032_v49, %v4764_v32  ;;  %v13054_v2 = vor.u32 %v4848_v12, %v4847_v18  ;;  %v13056_v53 = vor.u32 %v4851_v10, %v4850_v41 }
 0x528   : > { %v5571_v36 = vmul.f32 %v5570_v54, %v5568_v3  ;;  %v4855_v35 = vor.u32 %v4854_v33, %v4853_v48  ;;  %vm4864_vm2 = vcmp.lt.s32.totalorder %v16940_v47, 3  ;;  %v5577_v31 = vsel %vm13016_vm8, 0, %v5575_v42 }
 0x529   : > { %v4771_v62 = vadd.s32 1, %v4767_v11  ;;  %vm4862_vm1 = vcmp.lt.s32.totalorder %v16940_v47, 1  ;;  %v4876_v57 = vsel %vm4864_vm2, %v12816_v40, %v12954_v37  ;;  %v13073_v0 = vshll.u32 %v4838_v45, 8 }
 0x52a   : > { %v5572_v27 = vxor.u32 2147483648, %v5571_v36  ;;  %v4870_v50 = vsel %vm4862_vm1, %v13054_v2, %v13056_v53  ;;  %v4872_v20 = vsel %vm4864_vm2, %v4855_v35, %v12938_v13  ;;  %v13076_v46 = vsub.s32 32, %v12959_v25 }
 0x52b   : > { %v4772_v30 = vsel %vm4770_vm0, %v4771_v62, %v4767_v11  ;;  %vm4863_vm14 = vcmp.lt.s32.totalorder %v16940_v47, 2  ;;  %v4874_v40 = vsel %vm4862_vm1, %v13056_v53, %v4855_v35  ;;  %v13083_v37 = vshrl.u32 %v16941_v61, 5 }
 0x52c   : > { %v5573_v59 = vsel %vm5452_vm9, %v5572_v27, %v5571_v36  ;;  %v4773_v63 = vadd.s32 %v4772_v30, %v4768_v39  ;;  %v4877_v13 = vsel %vm4863_vm14, %v4874_v40, %v4876_v57  ;;  %v5594_v9 = vadd.s32 3, %v5577_v31 }
 0x52d   : > { %v13092_v19 = vsel %vm13016_vm8, %v16927_v34, %v5573_v59  ;;  %v13096_v26 = vsel %vm4863_vm14, %v4870_v50, %v4872_v20  ;;  %v4881_v42 = vand.u32 65535, %v4877_v13  ;;  %v4879_v51 = vand.u32 65535, %v13073_v0 }
 0x52e   : > { %v5578_v61 = vmul.f32 %v13092_v19, %v13092_v19  ;;  %v4774_v4 = vadd.s32 536870912, %v4773_v63  ;;  %v4882_v17 = vshrl.u32 %v4877_v13, 16  ;;  %v13103_v58 = vshll.u32 %v16754_v14, %v12959_v25 }
 0x52f   : > { %v13107_v23 = vshrl.u32 %v16900_v16, %v13076_v46  ;;  %v13111_v29 = vshll.u32 %v16900_v16, %v12959_v25  ;;  %v4880_v28 = vshrl.u32 %v13073_v0, 16  ;;  %v13118_v54 = vshrl.u32 %v16911_v43, %v13076_v46 }
 0x530   : > { %v5579_v8 = vmul.f32 -0.001358992, %v5578_v61  ;;  %v5586_v60 = vmul.f32 -0.00019511016, %v5578_v61  ;;  %v13114_v5 = vshrl.u32 %v4774_v4, 30  ;;  %v4884_v1 = vmul.u32 %v4882_v17, %v4879_v51 }
 0x531   : > { %v13120_v7 = vand.u32 3, %v5594_v9  ;;  %v13122_v18 = vmul.u32 %v4881_v42, %v4880_v28  ;;  %v4904_v15 = vshrl.u32 %v13096_v26, 16  ;;  %v13126_v41 = vadd.s32 %v4764_v32, %v13032_v49 }
 0x532   : > { %v5580_v45 = vadd.f32 0.041655596, %v5579_v8  ;;  %v5587_v12 = vadd.f32 0.008332121, %v5586_v60  ;;  %v4776_v3 = vshll.u32 %v13114_v5, 30  ;;  %v4846_v10 = vshrl.u32 %v16751_v22, %v16924_v24 }
 0x533   : > { %v4883_v48 = vmul.u32 %v4881_v42, %v4879_v51  ;;  %v4887_v33 = vshll.u32 %v4884_v1, 16  ;;  %v4903_v11 = vand.u32 65535, %v13096_v26  ;;  %v4886_v62 = vmul.u32 %v4882_v17, %v4880_v28 }
 0x534   : > { %v5581_v39 = vmul.f32 %v5580_v45, %v5578_v61  ;;  %v5588_v36 = vmul.f32 %v5587_v12, %v5578_v61  ;;  %v13132_v31 = vsub.s32 %v4773_v63, %v4776_v3  ;;  %vm5600_vm13 = vcmp.eq.s32.totalorder %v13120_v7, 2 }
 0x535   : > { %v4889_v57 = vshll.u32 %v13122_v18, 16  ;;  %vm4891_vm4 = vc.u32 %v4883_v48, %v4887_v33  ;;  %v4893_v49 = vadd.s32 %v4887_v33, %v4883_v48  ;;  %v13136_v32 = vmul.u32 %v4904_v15, %v4879_v51 }
 0x536   : > { %v5582_v27 = vadd.f32 -0.4999988, %v5581_v39  ;;  %v5589_v50 = vadd.f32 -0.16666654, %v5588_v36  ;;  %vm4778_vm11 = vcmp.lt.s32.totalorder %v13132_v31, 0  ;;  %v4779_v24 = vsub.s32 0, %v13132_v31 }
 0x537   : > { %vm5597_vm3 = vcmp.eq.s32.totalorder %v13120_v7, 0  ;;  %v4866_v20 = vsel %vm4862_vm1, %v4846_v10, %v13054_v2  ;;  %v4867_v30 = vsel %vm4865_vm7, %v4855_v35, 2102212464  ;;  %v4892_v40 = vsel %vm4891_vm4, 1, %v16760_v21 }
 0x538   : > { %vm4895_vm9 = vc.u32 %v4893_v49, %v4889_v57  ;;  %v5583_v59 = vmul.f32 %v5582_v27, %v5578_v61  ;;  %v5590_v63 = vmul.f32 %v5589_v50, %v5578_v61  ;;  %vm5596_vm6 = vcmp.lt.s32.totalorder %v13120_v7, 2  ;;  %v16948_v7 = vld [vmem:[#allocation12_spill] sm:$0xff] }
 0x539   : > { %v4780_v13 = vsel %vm4778_vm11, %v4779_v24, %v13132_v31  ;;  %v4894_v9 = vadd.s32 %v4892_v40, %v4886_v62  ;;  %vm5593_vm12 = vweird.f32 %v16927_v34  ;;  %v4888_v42 = vshrl.u32 %v4884_v1, 16  ;;  %v16950_v34 = vld [vmem:[#allocation36_spill] sm:$0xff] }
 0x53a   : > { %v4781_v26 = vclz %v4780_v13  ;;  %v4896_v4 = vsel %vm4895_vm9, 1, %v16760_v21  ;;  %v4909_v2 = vshll.u32 %v13136_v32, 16  ;;  %v5584_v17 = vadd.f32 1.0, %v5583_v59 }
 0x53b   : > { %v5591_v35 = vadd.f32 1.0, %v5590_v63  ;;  %v4898_v8 = vadd.s32 %v4896_v4, %v4894_v9  ;;  %v4907_v60 = vmul.u32 %v4903_v11, %v4880_v28  ;;  %v4868_v61 = vsel %vm4864_vm2, %v13056_v53, %v4867_v30 }
 0x53c   : > { %v8522_v45 = vadd.s32 4294967294, %v4781_v26  ;;  %v4890_v12 = vshrl.u32 %v13122_v18, 16  ;;  %v4905_v3 = vmul.u32 %v4903_v11, %v4879_v51  ;;  %v5601_v48 = vxor.u32 2147483648, %v5584_v17 }
 0x53d   : > { %v5592_v10 = vmul.f32 %v5591_v35, %v13092_v19  ;;  %vm4677_vm7 = vcmp.lt.s32.totalorder %v16933_v38, 0  ;;  %v4799_v1 = vsub.s32 4, %v13114_v5  ;;  %v4899_v33 = vadd.s32 %v4898_v8, %v4888_v42 }
 0x53e   : > { %vm8523_vm5 = vcmp.lt.s32.totalorder %v8522_v45, 0  ;;  %v4908_v39 = vmul.u32 %v4904_v15, %v4880_v28  ;;  %vm4913_vm8 = vc.u32 %v4905_v3, %v4909_v2  ;;  %v4915_v36 = vadd.s32 %v4909_v2, %v4905_v3 }
 0x53f   : > { %v5598_v62 = vxor.u32 2147483648, %v5592_v10  ;;  %v5602_v57 = vsel %vm5600_vm13, %v5601_v48, %v5592_v10  ;;  %v4784_v53 = vsel %vm8523_vm5, 0, %v8522_v45  ;;  %v4911_v49 = vshll.u32 %v4907_v60, 16 }
 0x540   : > { %vm13163_vm15 = vcmp.le.f32.partialorder %v4675_v6, 0.7853982  ;;  %v4785_v51 = vsub.s32 32, %v4784_v53  ;;  %v4789_v18 = vsub.s32 4294967266, %v4784_v53  ;;  %v13167_v11 = vadd.s32 %v4899_v33, %v4890_v12 }
 0x541   : > { %v4914_v28 = vsel %vm4913_vm8, 1, %v16760_v21  ;;  %v5599_v15 = vsel %vm5597_vm3, %v5584_v17, %v5598_v62  ;;  %v4786_v27 = vshll.u32 %v13132_v31, %v4784_v53  ;;  %vm4917_vm0 = vc.u32 %v4915_v36, %v4911_v49  ;;  %v16949_v17 = vld [vmem:[#allocation30_spill] sm:$0xff] }
 0x542   : > { %v4916_v50 = vadd.s32 %v4914_v28, %v4908_v39  ;;  %v5603_v24 = vsel %vm5596_vm6, %v5599_v15, %v5602_v57  ;;  %v4787_v6 = vshrl.u32 %v13126_v41, %v4785_v51  ;;  %v4790_v30 = vadd.s32 127, %v4789_v18  ;;  %v16952_v28 = vld [vmem:[#allocation48_spill] sm:$0xff] }
 0x543   : > { %v4918_v40 = vsel %vm4917_vm0, 1, %v16760_v21  ;;  %v5604_v59 = vsel %vm5593_vm12, nan, %v5603_v24  ;;  %v4869_v63 = vsel %vm4863_vm14, %v4866_v20, %v4868_v61  ;;  %v4910_v13 = vshrl.u32 %v13136_v32, 16  ;;  %v16953_v15 = vld [vmem:[#allocation40_spill] sm:$0xff] }
 0x544   : > { %v4920_v9 = vadd.s32 %v4918_v40, %v4916_v50  ;;  %5744 = vmatpush.msrb.mxu3 %v5604_v59  ;;  %v4788_v31 = vor.u32 %v4787_v6, %v4786_v27  ;;  %v4791_v26 = vshll.u32 %v4790_v30, 23  ;;  %v13182_v42 = vadd.s32 %v4915_v36, %v4911_v49  ;;  %v16951_v49 = vld [vmem:[#allocation35_spill] sm:$0xff] }
 0x545   : > { %v4055_v4 = vand.u32 2147483647, %v16948_v7  ;;  %v4912_v41 = vshrl.u32 %v4907_v60, 16  ;;  %v4072_v35 = vshll.u32 %v16751_v22, %v16949_v17  ;;  %v4073_v8 = vshrl.u32 %v16752_v44, %v16950_v34 }
 0x546   : > { %v4921_v2 = vadd.s32 %v4920_v9, %v4910_v13  ;;  %v4792_v47 = vor.u32 4788187, %v4791_v26  ;;  %v4800_v32 = vsel %vm4677_vm7, %v4799_v1, %v13114_v5  ;;  %vm4925_vm2 = vc.u32 %v13167_v11, %v13182_v42 }
 0x547   : > { %v4062_v20 = vand.u32 8388607, %v4055_v4  ;;  %v4795_v45 = vcvt.s32.f32 %v4788_v31  ;;  %v4075_v61 = vshll.u32 %v16752_v44, %v16949_v17  ;;  %v4076_v12 = vshrl.u32 %v16753_v55, %v16950_v34 }
 0x548   : > { %v4922_v60 = vadd.s32 %v4921_v2, %v4912_v41  ;;  %v4793_v3 = vand.u32 2147483647, %v4792_v47  ;;  %v4078_v48 = vshll.u32 %v16753_v55, %v16949_v17  ;;  %v4079_v5 = vshrl.u32 %v16754_v14, %v16950_v34 }
 0x549   : > { %v4063_v10 = vor.u32 8388608, %v4062_v20  ;;  %v4802_v1 = vsel %vm13163_vm15, 0, %v4800_v32  ;;  %v13206_v39 = vor.u32 %v4073_v8, %v4072_v35  ;;  %v13208_v36 = vor.u32 %v4076_v12, %v4075_v61 }
 0x54a   : > { %v4926_v33 = vadd.s32 1, %v4922_v60  ;;  %v4796_v62 = vmul.f32 %v4795_v45, %v4793_v3  ;;  %v4923_v57 = vmul.u32 %v13073_v0, %v4869_v63  ;;  %v4080_v53 = vor.u32 %v4079_v5, %v4078_v48 }
 0x54b   : > { %vm4089_vm1 = vcmp.lt.s32.totalorder %v16951_v49, 3  ;;  %v4241_v51 = vor.u32 %v13118_v54, %v13111_v29  ;;  %v13221_v50 = vshll.u32 %v4063_v10, 8  ;;  %v4819_v6 = vadd.s32 3, %v4802_v1  ;;  %v16954_v54 = vld [vmem:[#allocation46_spill] sm:$0xff] }
 0x54c   : > { %v4927_v18 = vsel %vm4925_vm2, %v4926_v33, %v4922_v60  ;;  %v4101_v27 = vsel %vm4089_vm1, %v16953_v15, %v16952_v28  ;;  %v4797_v24 = vxor.u32 2147483648, %v4796_v62  ;;  %vm4087_vm14 = vcmp.lt.s32.totalorder %v16951_v49, 1 }
 0x54d   : > { %v4928_v0 = vadd.s32 %v4927_v18, %v4923_v57  ;;  %vm4088_vm13 = vcmp.lt.s32.totalorder %v16951_v49, 2  ;;  %v4095_v29 = vsel %vm4087_vm14, %v13206_v39, %v13208_v36  ;;  %v4097_v30 = vsel %vm4089_vm1, %v4080_v53, %v16954_v54 }
 0x54e   : > { %v4099_v40 = vsel %vm4087_vm14, %v13208_v36, %v4080_v53  ;;  %v4798_v59 = vsel %vm4677_vm7, %v4797_v24, %v4796_v62  ;;  %v13240_v9 = vand.u32 65535, %v13221_v50  ;;  %v13248_v26 = vshrl.u32 %v13221_v50, 16 }
 0x54f   : > { %v4929_v63 = vadd.s32 536870912, %v4928_v0  ;;  %v4102_v13 = vsel %vm4088_vm13, %v4099_v40, %v4101_v27  ;;  %v13245_v31 = vsel %vm13163_vm15, %v16933_v38, %v4798_v59  ;;  %vm4245_vm4 = vcmp.lt.s32.totalorder %v13083_v37, 4 }
 0x550   : > { %v4106_v41 = vand.u32 65535, %v4102_v13  ;;  %v4107_v2 = vshrl.u32 %v4102_v13, 16  ;;  %v4803_v17 = vmul.f32 %v13245_v31, %v13245_v31  ;;  %v13257_v8 = vsel %vm4088_vm13, %v4095_v29, %v4097_v30 }
 0x551   : > { %v13253_v35 = vshrl.u32 %v4929_v63, 30  ;;  %v13261_v19 = vor.u32 %v13107_v23, %v13103_v58  ;;  %v13265_v47 = vsel %vm4245_vm4, %v4241_v51, 1326507024  ;;  %v13271_v61 = vand.u32 3, %v4819_v6 }
 0x552   : > { %v4109_v32 = vmul.u32 %v4107_v2, %v13240_v9  ;;  %v13269_v20 = vmul.u32 %v4106_v41, %v13248_v26  ;;  %v4804_v45 = vmul.f32 -0.001358992, %v4803_v17  ;;  %v4811_v60 = vmul.f32 -0.00019511016, %v4803_v17 }
 0x553   : > { %v4931_v12 = vshll.u32 %v13253_v35, 30  ;;  %v4071_v3 = vshrl.u32 %v16751_v22, %v16950_v34  ;;  %v4108_v58 = vmul.u32 %v4106_v41, %v13240_v9  ;;  %v4129_v10 = vshrl.u32 %v13257_v8, 16 }
 0x554   : > { %v4112_v23 = vshll.u32 %v4109_v32, 16  ;;  %v4805_v48 = vadd.f32 0.041655596, %v4804_v45  ;;  %v4812_v5 = vadd.f32 0.008332121, %v4811_v60  ;;  %vm16955_vm11 = vcmp.lt.s32.totalorder %v16951_v49, 4 }
 0x555   : > { %v13278_v1 = vsub.s32 %v4928_v0, %v4931_v12  ;;  %v4092_v33 = vsel %vm16955_vm11, %v4080_v53, 2102212464  ;;  %v4111_v62 = vmul.u32 %v4107_v2, %v13248_v26  ;;  %v4114_v57 = vshll.u32 %v13269_v20, 16 }
 0x556   : > { %vm4116_vm3 = vc.u32 %v4108_v58, %v4112_v23  ;;  %v4118_v51 = vadd.s32 %v4112_v23, %v4108_v58  ;;  %v4806_v18 = vmul.f32 %v4805_v48, %v4803_v17  ;;  %v4813_v34 = vmul.f32 %v4812_v5, %v4803_v17 }
 0x557   : > { %vm4933_vm9 = vcmp.lt.s32.totalorder %v13278_v1, 0  ;;  %v4934_v28 = vsub.s32 0, %v13278_v1  ;;  %v4117_v15 = vsel %vm4116_vm3, 1, %v16760_v21  ;;  %v4128_v27 = vand.u32 65535, %v13257_v8 }
 0x558   : > { %vm4120_vm6 = vc.u32 %v4118_v51, %v4114_v57  ;;  %v13289_v24 = vmul.u32 %v4129_v10, %v13240_v9  ;;  %v4807_v53 = vadd.f32 -0.4999988, %v4806_v18  ;;  %v4814_v6 = vadd.f32 -0.16666654, %v4813_v34 }
 0x559   : > { %v4935_v0 = vsel %vm4933_vm9, %v4934_v28, %v13278_v1  ;;  %v4119_v29 = vadd.s32 %v4117_v15, %v4111_v62  ;;  %vm4822_vm12 = vcmp.eq.s32.totalorder %v13271_v61, 0  ;;  %vm4825_vm7 = vcmp.eq.s32.totalorder %v13271_v61, 2 }
 0x55a   : > { %v4936_v54 = vclz %v4935_v0  ;;  %v4121_v30 = vsel %vm4120_vm6, 1, %v16760_v21  ;;  %v4808_v40 = vmul.f32 %v4807_v53, %v4803_v17  ;;  %v4815_v59 = vmul.f32 %v4814_v6, %v4803_v17 }
 0x55b   : > { %vm4821_vm5 = vcmp.lt.s32.totalorder %v13271_v61, 2  ;;  %v4924_v63 = vadd.s32 %v13182_v42, %v13167_v11  ;;  %v4123_v13 = vadd.s32 %v4121_v30, %v4119_v29  ;;  %vm4818_vm8 = vweird.f32 %v16933_v38 }
 0x55c   : > { %v8525_v41 = vadd.s32 4294967294, %v4936_v54  ;;  %v4091_v2 = vsel %vm4087_vm14, %v4071_v3, %v13206_v39  ;;  %v4093_v8 = vsel %vm4089_vm1, %v13208_v36, %v4092_v33  ;;  %v4113_v45 = vshrl.u32 %v4109_v32, 16 }
 0x55d   : > { %v4809_v60 = vadd.f32 1.0, %v4808_v40  ;;  %v4816_v17 = vadd.f32 1.0, %v4815_v59  ;;  %v4132_v12 = vmul.u32 %v4128_v27, %v13248_v26  ;;  %v4134_v58 = vshll.u32 %v13289_v24, 16  ;;  %v16958_v59 = vld [vmem:[#allocation21_spill] sm:$0xff] }
 0x55e   : > { %vm4832_vm15 = vcmp.lt.s32.totalorder %v16944_v52, 0  ;;  %vm8526_vm0 = vcmp.lt.s32.totalorder %v8525_v41, 0  ;;  %v4954_v11 = vsub.s32 4, %v13253_v35  ;;  %v4115_v42 = vshrl.u32 %v13269_v20, 16 }
 0x55f   : > { %v4130_v39 = vmul.u32 %v4128_v27, %v13240_v9  ;;  %v4817_v3 = vmul.f32 %v4816_v17, %v13245_v31  ;;  %v4826_v23 = vxor.u32 2147483648, %v4809_v60  ;;  %v4939_v36 = vsel %vm8526_vm0, 0, %v8525_v41 }
 0x560   : > { %v4124_v32 = vadd.s32 %v4123_v13, %v4113_v45  ;;  %v4940_v48 = vsub.s32 32, %v4939_v36  ;;  %v4944_v5 = vsub.s32 4294967266, %v4939_v36  ;;  %v4133_v33 = vmul.u32 %v4129_v10, %v13248_v26 }
 0x561   : > { %vm4138_vm2 = vc.u32 %v4130_v39, %v4134_v58  ;;  %v4823_v62 = vxor.u32 2147483648, %v4817_v3  ;;  %v4136_v57 = vshll.u32 %v4132_v12, 16  ;;  %v4140_v18 = vadd.s32 %v4134_v58, %v4130_v39 }
 0x562   : > { %v4139_v51 = vsel %vm4138_vm2, 1, %v16760_v21  ;;  %v4941_v34 = vshll.u32 %v13278_v1, %v4939_v36  ;;  %v4942_v20 = vshrl.u32 %v4924_v63, %v4940_v48  ;;  %v4945_v28 = vadd.s32 127, %v4944_v5 }
 0x563   : > { %v4141_v9 = vadd.s32 %v4139_v51, %v4133_v33  ;;  %v4824_v31 = vsel %vm4822_vm12, %v4809_v60, %v4823_v62  ;;  %v4827_v15 = vsel %vm4825_vm7, %v4826_v23, %v4817_v3  ;;  %v13319_v27 = vadd.s32 %v4124_v32, %v4115_v42 }
 0x564   : > { %vm4142_vm1 = vc.u32 %v4140_v18, %v4136_v57  ;;  %v4828_v26 = vsel %vm4821_vm5, %v4824_v31, %v4827_v15  ;;  %v4943_v10 = vor.u32 %v4942_v20, %v4941_v34  ;;  %v4946_v53 = vshll.u32 %v4945_v28, 23 }
 0x565   : > { %v4143_v6 = vsel %vm4142_vm1, 1, %v16760_v21  ;;  %v4829_v1 = vsel %vm4818_vm8, nan, %v4828_v26  ;;  %vm13328_vm14 = vcmp.le.f32.partialorder %v4830_v56, 0.7853982  ;;  %v4135_v29 = vshrl.u32 %v13289_v24, 16 }
 0x566   : > { %v4145_v54 = vadd.s32 %v4143_v6, %v4141_v9  ;;  %5716 = vmatpush.msrb.mxu2 %v4829_v1  ;;  %v4947_v30 = vor.u32 4788187, %v4946_v53  ;;  %v4094_v61 = vsel %vm4088_vm13, %v4091_v2, %v4093_v8  ;;  %v13335_v40 = vadd.s32 %v4140_v18, %v4136_v57  ;;  %v16959_v53 = vld [vmem:[#allocation41_spill] sm:$0xff] }
 0x567   : > { %v4210_v63 = vand.u32 2147483647, %v16958_v59  ;;  %v4955_v38 = vsel %vm4832_vm15, %v4954_v11, %v13253_v35  ;;  %v4137_v56 = vshrl.u32 %v4132_v12, 16  ;;  %v4228_v41 = vshrl.u32 %v16752_v44, %v13076_v46 }
 0x568   : > { %v4146_v13 = vadd.s32 %v4145_v54, %v4135_v29  ;;  %v4948_v24 = vand.u32 2147483647, %v4947_v30  ;;  %v4950_v45 = vcvt.s32.f32 %v4943_v10  ;;  %vm4150_vm11 = vc.u32 %v13319_v27, %v13335_v40  ;;  %v16960_v54 = vld [vmem:[#allocation49_spill] sm:$0xff]  ;;  %v16961_v30 = vld [vmem:[#allocation50_spill] sm:$0xff] }
 0x569   : > { %v4217_v49 = vand.u32 8388607, %v4210_v63  ;;  %v4227_v8 = vshll.u32 %v16751_v22, %v12959_v25  ;;  %v4230_v35 = vshll.u32 %v16752_v44, %v12959_v25  ;;  %v4231_v60 = vshrl.u32 %v16753_v55, %v13076_v46 }
 0x56a   : > { %v4147_v2 = vadd.s32 %v4146_v13, %v4137_v56  ;;  %v4951_v17 = vmul.f32 %v4950_v45, %v4948_v24  ;;  %v4233_v58 = vshll.u32 %v16753_v55, %v12959_v25  ;;  %v4234_v11 = vshrl.u32 %v16754_v14, %v13076_v46 }
 0x56b   : > { %v4218_v12 = vor.u32 8388608, %v4217_v49  ;;  %v4957_v42 = vsel %vm13328_vm14, 0, %v4955_v38  ;;  %v4229_v3 = vor.u32 %v4228_v41, %v4227_v8  ;;  %v13359_v23 = vor.u32 %v4231_v60, %v4230_v35 }
 0x56c   : > { %v4151_v39 = vadd.s32 1, %v4147_v2  ;;  %v4952_v36 = vxor.u32 2147483648, %v4951_v17  ;;  %v4148_v32 = vmul.u32 %v13221_v50, %v4094_v61  ;;  %v4235_v48 = vor.u32 %v4234_v11, %v4233_v58 }
 0x56d   : > { %vm4244_vm13 = vcmp.lt.s32.totalorder %v13083_v37, 3  ;;  %v4251_v25 = vsel %vm4245_vm4, %v13261_v19, 920167782  ;;  %v13373_v62 = vshll.u32 %v4218_v12, 8  ;;  %v4974_v57 = vadd.s32 3, %v4957_v42 }
 0x56e   : > { %v4152_v5 = vsel %vm4150_vm11, %v4151_v39, %v4147_v2  ;;  %v4256_v33 = vsel %vm4244_vm13, %v13261_v19, %v13265_v47  ;;  %v4953_v50 = vsel %vm4832_vm15, %v4952_v36, %v4951_v17  ;;  %vm4242_vm3 = vcmp.lt.s32.totalorder %v13083_v37, 1 }
 0x56f   : > { %v4153_v51 = vadd.s32 %v4152_v5, %v4148_v32  ;;  %v13381_v18 = vsel %vm13328_vm14, %v16944_v52, %v4953_v50  ;;  %vm4243_vm9 = vcmp.lt.s32.totalorder %v13083_v37, 2  ;;  %v4250_v19 = vsel %vm4242_vm3, %v4229_v3, %v13359_v23 }
 0x570   : > { %v4254_v47 = vsel %vm4242_vm3, %v13359_v23, %v4235_v48  ;;  %v4958_v34 = vmul.f32 %v13381_v18, %v13381_v18  ;;  %v4252_v28 = vsel %vm4244_vm13, %v4235_v48, %v4251_v25  ;;  %v4259_v31 = vand.u32 65535, %v13373_v62 }
 0x571   : > { %v4154_v20 = vadd.s32 536870912, %v4153_v51  ;;  %v4257_v9 = vsel %vm4243_vm9, %v4254_v47, %v4256_v33  ;;  %v13398_v15 = vshrl.u32 %v13373_v62, 16  ;;  %v13402_v6 = vshll.u32 %v16900_v16, %v16959_v53 }
 0x572   : > { %v4261_v26 = vand.u32 65535, %v4257_v9  ;;  %v4262_v10 = vshrl.u32 %v4257_v9, 16  ;;  %v4959_v1 = vmul.f32 -0.001358992, %v4958_v34  ;;  %v4966_v0 = vmul.f32 -0.00019511016, %v4958_v34 }
 0x573   : > { %v13404_v29 = vshrl.u32 %v4154_v20, 30  ;;  %v13408_v61 = vor.u32 %v16961_v30, %v16960_v54  ;;  %v13410_v38 = vand.u32 3, %v4974_v57  ;;  %v4253_v49 = vsel %vm4243_vm9, %v4250_v19, %v4252_v28 }
 0x574   : > { %v4264_v56 = vmul.u32 %v4262_v10, %v4259_v31  ;;  %v13413_v13 = vmul.u32 %v4261_v26, %v13398_v15  ;;  %v4960_v41 = vadd.f32 0.041655596, %v4959_v1  ;;  %v4967_v24 = vadd.f32 0.008332121, %v4966_v0 }
 0x575   : > { %v4156_v45 = vshll.u32 %v13404_v29, 30  ;;  %v4226_v2 = vshrl.u32 %v16751_v22, %v13076_v46  ;;  %v4247_v8 = vsel %vm4245_vm4, %v4235_v48, 2102212464  ;;  %v4263_v35 = vmul.u32 %v4261_v26, %v4259_v31 }
 0x576   : > { %v4267_v60 = vshll.u32 %v4264_v56, 16  ;;  %v4961_v17 = vmul.f32 %v4960_v41, %v4958_v34  ;;  %v4968_v12 = vmul.f32 %v4967_v24, %v4958_v34  ;;  %v4266_v11 = vmul.u32 %v4262_v10, %v13398_v15 }
 0x577   : > { %v13422_v58 = vsub.s32 %v4153_v51, %v4156_v45  ;;  %v4269_v42 = vshll.u32 %v13413_v13, 16  ;;  %v4284_v36 = vshrl.u32 %v4253_v49, 16  ;;  %v4246_v48 = vsel %vm4242_vm3, %v4226_v2, %v4229_v3 }
 0x578   : > { %vm4271_vm6 = vc.u32 %v4263_v35, %v4267_v60  ;;  %v4273_v39 = vadd.s32 %v4267_v60, %v4263_v35  ;;  %v4962_v32 = vadd.f32 -0.4999988, %v4961_v17  ;;  %v4969_v25 = vadd.f32 -0.16666654, %v4968_v12 }
 0x579   : > { %vm4158_vm12 = vcmp.lt.s32.totalorder %v13422_v58, 0  ;;  %v4159_v46 = vsub.s32 0, %v13422_v58  ;;  %v4272_v5 = vsel %vm4271_vm6, 1, %v16760_v21  ;;  %v4283_v33 = vand.u32 65535, %v4253_v49 }
 0x57a   : > { %vm4275_vm4 = vc.u32 %v4273_v39, %v4269_v42  ;;  %v4963_v50 = vmul.f32 %v4962_v32, %v4958_v34  ;;  %v4970_v57 = vmul.f32 %v4969_v25, %v4958_v34  ;;  %vm4976_vm7 = vcmp.lt.s32.totalorder %v13410_v38, 2 }
 0x57b   : > { %v4160_v51 = vsel %vm4158_vm12, %v4159_v46, %v13422_v58  ;;  %v4274_v19 = vadd.s32 %v4272_v5, %v4266_v11  ;;  %vm4973_vm5 = vweird.f32 %v16944_v52  ;;  %v4248_v20 = vsel %vm4244_vm13, %v13359_v23, %v4247_v8 }
 0x57c   : > { %v4161_v47 = vclz %v4160_v51  ;;  %v4276_v3 = vsel %vm4275_vm4, 1, %v16760_v21  ;;  %v4286_v28 = vmul.u32 %v4284_v36, %v4259_v31  ;;  %v4964_v9 = vadd.f32 1.0, %v4963_v50 }
 0x57d   : > { %v4971_v26 = vadd.f32 1.0, %v4970_v57  ;;  %vm4977_vm8 = vcmp.eq.s32.totalorder %v13410_v38, 0  ;;  %v4278_v34 = vadd.s32 %v4276_v3, %v4274_v19  ;;  %vm4980_vm15 = vcmp.eq.s32.totalorder %v13410_v38, 2  ;;  %v16965_v3 = vld [vmem:[#allocation18_spill] sm:$0xff] }
 0x57e   : > { %vm4057_vm0 = vcmp.lt.s32.totalorder %v16948_v7, 0  ;;  %v4149_v10 = vadd.s32 %v13335_v40, %v13319_v27  ;;  %v8510_v1 = vadd.s32 4294967294, %v4161_v47  ;;  %v4287_v0 = vmul.u32 %v4283_v33, %v13398_v15 }
 0x57f   : > { %v4972_v23 = vmul.f32 %v4971_v26, %v13381_v18  ;;  %v4981_v54 = vxor.u32 2147483648, %v4964_v9  ;;  %v13447_v30 = vsel %vm4243_vm9, %v4246_v48, %v4248_v20  ;;  %v4268_v41 = vshrl.u32 %v4264_v56, 16  ;;  %v16964_v48 = vld [vmem:[#allocation5_spill] sm:$0xff]  ;;  %v16966_v26 = vld [vmem:[#allocation22_spill] sm:$0xff] }
 0x580   : > { %vm8511_vm2 = vcmp.lt.s32.totalorder %v8510_v1, 0  ;;  %v4179_v24 = vsub.s32 4, %v13404_v29  ;;  %v4285_v45 = vmul.u32 %v4283_v33, %v4259_v31  ;;  %v4289_v49 = vshll.u32 %v4286_v28, 16 }
 0x581   : > { %v4978_v2 = vxor.u32 2147483648, %v4972_v23  ;;  %v4164_v8 = vsel %vm8511_vm2, 0, %v8510_v1  ;;  %v4279_v35 = vadd.s32 %v4278_v34, %v4268_v41  ;;  %v4288_v27 = vmul.u32 %v4284_v36, %v13398_v15 }
 0x582   : > { %v4982_v40 = vsel %vm4980_vm15, %v4981_v54, %v4972_v23  ;;  %v4165_v18 = vsub.s32 32, %v4164_v8  ;;  %v4169_v60 = vsub.s32 4294967266, %v4164_v8  ;;  %v4291_v17 = vshll.u32 %v4287_v0, 16 }
 0x583   : > { %v4979_v37 = vsel %vm4977_vm8, %v4964_v9, %v4978_v2  ;;  %vm13457_vm1 = vcmp.le.f32.partialorder %v4055_v4, 0.7853982  ;;  %v4166_v31 = vshll.u32 %v13422_v58, %v4164_v8  ;;  %vm4293_vm14 = vc.u32 %v4285_v45, %v4289_v49 }
 0x584   : > { %v4295_v12 = vadd.s32 %v4289_v49, %v4285_v45  ;;  %v4983_v15 = vsel %vm4976_vm7, %v4979_v37, %v4982_v40  ;;  %v4167_v11 = vshrl.u32 %v4149_v10, %v4165_v18  ;;  %v4170_v42 = vadd.s32 127, %v4169_v60  ;;  %v16968_v60 = vld [vmem:[#allocation32_spill] sm:$0xff] }
 0x585   : > { %v4294_v39 = vsel %vm4293_vm14, 1, %v16760_v21  ;;  %v4984_v36 = vsel %vm4973_vm5, nan, %v4983_v15  ;;  %v4270_v32 = vshrl.u32 %v13413_v13, 16  ;;  %v3435_v5 = vand.u32 2147483647, %v16964_v48 }
 0x586   : > { %v4296_v4 = vadd.s32 %v4294_v39, %v4288_v27  ;;  %vm4297_vm11 = vc.u32 %v4295_v12, %v4291_v17  ;;  %5745 = vmatpush.msrb.mxu3 %v4984_v36  ;;  %v4168_v25 = vor.u32 %v4167_v11, %v4166_v31  ;;  %v4171_v46 = vshll.u32 %v4170_v42, 23 }
 0x587   : > { %v4298_v58 = vsel %vm4297_vm11, 1, %v16760_v21  ;;  %v4180_v38 = vsel %vm4057_vm0, %v4179_v24, %v13404_v29  ;;  %v13473_v33 = vadd.s32 %v4279_v35, %v4270_v32  ;;  %v4290_v50 = vshrl.u32 %v4286_v28, 16  ;;  %v16967_v35 = vld [vmem:[#allocation11_spill] sm:$0xff] }
 0x588   : > { %v4300_v52 = vadd.s32 %v4298_v58, %v4296_v4  ;;  %v4172_v57 = vor.u32 4788187, %v4171_v46  ;;  %v4292_v51 = vshrl.u32 %v4287_v0, 16  ;;  %v13475_v13 = vadd.s32 %v4295_v12, %v4291_v17  ;;  %v16969_v17 = vld [vmem:[#allocation24_spill] sm:$0xff]  ;;  %v16970_v12 = vld [vmem:[#allocation31_spill] sm:$0xff] }
 0x589   : > { %v3442_v19 = vand.u32 8388607, %v3435_v5  ;;  %v4175_v47 = vcvt.s32.f32 %v4168_v25  ;;  %v3452_v9 = vshll.u32 %v16751_v22, %v16965_v3  ;;  %v3453_v34 = vshrl.u32 %v16752_v44, %v16966_v26  ;;  %v16972_v32 = vld [vmem:[#allocation43_spill] sm:$0xff] }
 0x58a   : > { %v4301_v20 = vadd.s32 %v4300_v52, %v4290_v50  ;;  %v4173_v29 = vand.u32 2147483647, %v4172_v57  ;;  %v3455_v28 = vshll.u32 %v16752_v44, %v16965_v3  ;;  %v3456_v1 = vshrl.u32 %v16753_v55, %v16966_v26 }
 0x58b   : > { %v3443_v10 = vor.u32 8388608, %v3442_v19  ;;  %v13487_v23 = vor.u32 %v3453_v34, %v3452_v9  ;;  %v3458_v54 = vshll.u32 %v16753_v55, %v16965_v3  ;;  %v3459_v41 = vshrl.u32 %v16754_v14, %v16966_v26 }
 0x58c   : > { %v4302_v0 = vadd.s32 %v4301_v20, %v4292_v51  ;;  %v4176_v24 = vmul.f32 %v4175_v47, %v4173_v29  ;;  %v4182_v45 = vsel %vm13457_vm1, 0, %v4180_v38  ;;  %vm4305_vm13 = vc.u32 %v13473_v33, %v13475_v13 }
 0x58d   : > { %v13497_v49 = vor.u32 %v3456_v1, %v3455_v28  ;;  %v3460_v8 = vor.u32 %v3459_v41, %v3458_v54  ;;  %vm3467_vm3 = vcmp.lt.s32.totalorder %v16967_v35, 1  ;;  %vm3469_vm9 = vcmp.lt.s32.totalorder %v16967_v35, 3 }
 0x58e   : > { %v4306_v2 = vadd.s32 1, %v4302_v0  ;;  %v4177_v27 = vxor.u32 2147483648, %v4176_v24  ;;  %v4303_v40 = vmul.u32 %v13373_v62, %v13447_v30  ;;  %v3481_v37 = vsel %vm3469_vm9, %v16969_v17, %v16968_v60  ;;  %v16971_v30 = vld [vmem:[#allocation47_spill] sm:$0xff] }
 0x58f   : > { %v3475_v18 = vsel %vm3467_vm3, %v13487_v23, %v13497_v49  ;;  %v3477_v15 = vsel %vm3469_vm9, %v3460_v8, %v16970_v12  ;;  %v3479_v11 = vsel %vm3467_vm3, %v13497_v49, %v3460_v8  ;;  %v13517_v62 = vshll.u32 %v3443_v10, 8 }
 0x590   : > { %v4307_v31 = vsel %vm4305_vm13, %v4306_v2, %v4302_v0  ;;  %v3620_v42 = vshrl.u32 %v16911_v43, %v16971_v30  ;;  %v4178_v39 = vsel %vm4057_vm0, %v4177_v27, %v4176_v24  ;;  %vm3468_vm6 = vcmp.lt.s32.totalorder %v16967_v35, 2 }
 0x591   : > { %v4308_v36 = vadd.s32 %v4307_v31, %v4303_v40  ;;  %vm3625_vm12 = vcmp.lt.s32.totalorder %v16972_v32, 4  ;;  %v4181_v4 = vsel %vm13457_vm1, %v16948_v7, %v4178_v39  ;;  %v4199_v25 = vadd.s32 3, %v4182_v45 }
 0x592   : > { %v3482_v46 = vsel %vm3468_vm6, %v3479_v11, %v3481_v37  ;;  %v4183_v58 = vmul.f32 %v4181_v4, %v4181_v4  ;;  %v13532_v50 = vsel %vm3468_vm6, %v3475_v18, %v3477_v15  ;;  %v13537_v57 = vsel %vm3625_vm12, %v13408_v61, 920167782 }
 0x593   : > { %v4309_v38 = vadd.s32 536870912, %v4308_v36  ;;  %v3486_v52 = vand.u32 65535, %v3482_v46  ;;  %v3484_v51 = vand.u32 65535, %v13517_v62  ;;  %v3485_v56 = vshrl.u32 %v13517_v62, 16 }
 0x594   : > { %v3487_v19 = vshrl.u32 %v3482_v46, 16  ;;  %v3621_v47 = vor.u32 %v3620_v42, %v13402_v6  ;;  %v4184_v20 = vmul.f32 -0.001358992, %v4183_v58  ;;  %v4191_v3 = vmul.f32 -0.00019511016, %v4183_v58 }
 0x595   : > { %v13542_v9 = vshrl.u32 %v4309_v38, 30  ;;  %v13544_v34 = vand.u32 3, %v4199_v25  ;;  %v13546_v10 = vmul.u32 %v3486_v52, %v3485_v56  ;;  %v3509_v28 = vshrl.u32 %v13532_v50, 16 }
 0x596   : > { %v3489_v29 = vmul.u32 %v3487_v19, %v3484_v51  ;;  %v4185_v1 = vadd.f32 0.041655596, %v4184_v20  ;;  %v4192_v0 = vadd.f32 0.008332121, %v4191_v3  ;;  %v3451_v41 = vshrl.u32 %v16751_v22, %v16966_v26 }
 0x597   : > { %v4311_v54 = vshll.u32 %v13542_v9, 30  ;;  %vm16973_vm4 = vcmp.lt.s32.totalorder %v16967_v35, 4  ;;  %v3488_v24 = vmul.u32 %v3486_v52, %v3484_v51  ;;  %v3508_v2 = vand.u32 65535, %v13532_v50 }
 0x598   : > { %v3472_v6 = vsel %vm16973_vm4, %v3460_v8, 2102212464  ;;  %v3492_v45 = vshll.u32 %v3489_v29, 16  ;;  %v4186_v27 = vmul.f32 %v4185_v1, %v4183_v58  ;;  %v4193_v40 = vmul.f32 %v4192_v0, %v4183_v58 }
 0x599   : > { %v13555_v18 = vsub.s32 %v4308_v36, %v4311_v54  ;;  %v3491_v60 = vmul.u32 %v3487_v19, %v3485_v56  ;;  %v3494_v17 = vshll.u32 %v13546_v10, 16  ;;  %v13558_v31 = vmul.u32 %v3509_v28, %v3484_v51 }
 0x59a   : > { %vm3496_vm7 = vc.u32 %v3488_v24, %v3492_v45  ;;  %v3498_v37 = vadd.s32 %v3492_v45, %v3488_v24  ;;  %v4187_v12 = vadd.f32 -0.4999988, %v4186_v27  ;;  %v4194_v26 = vadd.f32 -0.16666654, %v4193_v40 }
 0x59b   : > { %vm4313_vm5 = vcmp.lt.s32.totalorder %v13555_v18, 0  ;;  %v4314_v8 = vsub.s32 0, %v13555_v18  ;;  %v13564_v15 = vsel %vm3625_vm12, %v3621_v47, 1326507024  ;;  %v3471_v11 = vsel %vm3467_vm3, %v3451_v41, %v13487_v23 }
 0x59c   : > { %v3497_v42 = vsel %vm3496_vm7, 1, %v16760_v21  ;;  %vm3500_vm8 = vc.u32 %v3498_v37, %v3494_v17  ;;  %v4188_v39 = vmul.f32 %v4187_v12, %v4183_v58  ;;  %v4195_v36 = vmul.f32 %v4194_v26, %v4183_v58  ;;  %v16974_v12 = vld [vmem:[#allocation19_spill] sm:$0xff] }
 0x59d   : > { %vm4201_vm15 = vcmp.lt.s32.totalorder %v13544_v34, 2  ;;  %v4315_v25 = vsel %vm4313_vm5, %v4314_v8, %v13555_v18  ;;  %v3499_v46 = vadd.s32 %v3497_v42, %v3491_v60  ;;  %vm4198_vm0 = vweird.f32 %v16948_v7 }
 0x59e   : > { %v4316_v38 = vclz %v4315_v25  ;;  %v3473_v50 = vsel %vm3469_vm9, %v13497_v49, %v3472_v6  ;;  %v3501_v52 = vsel %vm3500_vm8, 1, %v16760_v21  ;;  %v3512_v23 = vmul.u32 %v3508_v2, %v3485_v56 }
 0x59f   : > { %v4189_v19 = vadd.f32 1.0, %v4188_v39  ;;  %v4196_v47 = vadd.f32 1.0, %v4195_v36  ;;  %v3503_v20 = vadd.s32 %v3501_v52, %v3499_v46  ;;  %v3514_v58 = vshll.u32 %v13558_v31, 16 }
 0x5a0   : > { %vm4202_vm2 = vcmp.eq.s32.totalorder %v13544_v34, 0  ;;  %vm4205_vm1 = vcmp.eq.s32.totalorder %v13544_v34, 2  ;;  %v8513_v3 = vadd.s32 4294967294, %v4316_v38  ;;  %v3510_v1 = vmul.u32 %v3508_v2, %v3484_v51 }
 0x5a1   : > { %v4197_v0 = vmul.f32 %v4196_v47, %v4181_v4  ;;  %v4206_v54 = vxor.u32 2147483648, %v4189_v19  ;;  %v4304_v41 = vadd.s32 %v13475_v13, %v13473_v33  ;;  %v3493_v49 = vshrl.u32 %v3489_v29, 16 }
 0x5a2   : > { %vm8514_vm14 = vcmp.lt.s32.totalorder %v8513_v3, 0  ;;  %v13584_v6 = vsel %vm3468_vm6, %v3471_v11, %v3473_v50  ;;  %v3513_v24 = vmul.u32 %v3509_v28, %v3485_v56  ;;  %vm3518_vm11 = vc.u32 %v3510_v1, %v3514_v58 }
 0x5a3   : > { %v4203_v45 = vxor.u32 2147483648, %v4197_v0  ;;  %v4319_v27 = vsel %vm8514_vm14, 0, %v8513_v3  ;;  %v3504_v40 = vadd.s32 %v3503_v20, %v3493_v49  ;;  %v3516_v60 = vshll.u32 %v3512_v23, 16 }
 0x5a4   : > { %v4207_v17 = vsel %vm4205_vm1, %v4206_v54, %v4197_v0  ;;  %v4320_v37 = vsub.s32 32, %v4319_v27  ;;  %v4324_v51 = vsub.s32 4294967266, %v4319_v27  ;;  %v3519_v4 = vsel %vm3518_vm11, 1, %v16760_v21 }
 0x5a5   : > { %v4204_v33 = vsel %vm4202_vm2, %v4189_v19, %v4203_v45  ;;  %v4321_v13 = vshll.u32 %v13555_v18, %v4319_v27  ;;  %v3520_v29 = vadd.s32 %v3514_v58, %v3510_v1  ;;  %v3521_v35 = vadd.s32 %v3519_v4, %v3513_v24 }
 0x5a6   : > { %v4208_v56 = vsel %vm4201_vm15, %v4204_v33, %v4207_v17  ;;  %vm4212_vm13 = vcmp.lt.s32.totalorder %v16958_v59, 0  ;;  %v4322_v28 = vshrl.u32 %v4304_v41, %v4320_v37  ;;  %v4325_v2 = vadd.s32 127, %v4324_v51 }
 0x5a7   : > { %v3590_v26 = vand.u32 2147483647, %v16974_v12  ;;  %v4209_v8 = vsel %vm4198_vm0, nan, %v4208_v56  ;;  %v4334_v11 = vsub.s32 4, %v13542_v9  ;;  %v3495_v42 = vshrl.u32 %v13546_v10, 16 }
 0x5a8   : > { %vm3522_vm3 = vc.u32 %v3520_v29, %v3516_v60  ;;  %5717 = vmatpush.msrb.mxu2 %v4209_v8  ;;  %v4323_v18 = vor.u32 %v4322_v28, %v4321_v13  ;;  %v4326_v39 = vshll.u32 %v4325_v2, 23  ;;  %v3515_v34 = vshrl.u32 %v13558_v31, 16 }
 0x5a9   : > { %v3523_v36 = vsel %vm3522_vm3, 1, %v16760_v21  ;;  %v13600_v25 = vadd.s32 %v3504_v40, %v3495_v42  ;;  %v3517_v46 = vshrl.u32 %v3512_v23, 16  ;;  %v3597_v7 = vand.u32 8388607, %v3590_v26 }
 0x5aa   : > { %v3525_v38 = vadd.s32 %v3523_v36, %v3521_v35  ;;  %v4327_v50 = vor.u32 4788187, %v4326_v39  ;;  %v4330_v52 = vcvt.s32.f32 %v4323_v18  ;;  %v13604_v19 = vadd.s32 %v3520_v29, %v3516_v60 }
 0x5ab   : > { %v3607_v10 = vshll.u32 %v16751_v22, %v16959_v53  ;;  %v3598_v20 = vor.u32 8388608, %v3597_v7  ;;  %v3608_v31 = vshrl.u32 %v16752_v44, %v16971_v30  ;;  %v3610_v58 = vshll.u32 %v16752_v44, %v16959_v53 }
 0x5ac   : > { %v3526_v47 = vadd.s32 %v3525_v38, %v3515_v34  ;;  %v4328_v23 = vand.u32 2147483647, %v4327_v50  ;;  %v3611_v3 = vshrl.u32 %v16753_v55, %v16971_v30  ;;  %v3613_v1 = vshll.u32 %v16753_v55, %v16959_v53 }
 0x5ad   : > { %v3614_v0 = vshrl.u32 %v16754_v14, %v16971_v30  ;;  %v3528_v41 = vmul.u32 %v13517_v62, %v13584_v6  ;;  %vm3530_vm9 = vc.u32 %v13600_v25, %v13604_v19  ;;  %v13622_v49 = vor.u32 %v3608_v31, %v3607_v10 }
 0x5ae   : > { %v3527_v54 = vadd.s32 %v3526_v47, %v3517_v46  ;;  %v4331_v24 = vmul.f32 %v4330_v52, %v4328_v23  ;;  %v13624_v45 = vor.u32 %v3611_v3, %v3610_v58  ;;  %vm3624_vm6 = vcmp.lt.s32.totalorder %v16972_v32, 3 }
 0x5af   : > { %v13626_v27 = vor.u32 %v3614_v0, %v3613_v1  ;;  %v4335_v53 = vsel %vm4212_vm13, %v4334_v11, %v13542_v9  ;;  %vm3622_vm4 = vcmp.lt.s32.totalorder %v16972_v32, 1  ;;  %v3636_v62 = vsel %vm3624_vm6, %v13408_v61, %v13564_v15 }
 0x5b0   : > { %v3531_v40 = vadd.s32 1, %v3527_v54  ;;  %v4332_v6 = vxor.u32 2147483648, %v4331_v24  ;;  %v3630_v60 = vsel %vm3622_vm4, %v13622_v49, %v13624_v45  ;;  %v13645_v9 = vshll.u32 %v3598_v20, 8 }
 0x5b1   : > { %v3632_v17 = vsel %vm3624_vm6, %v13626_v27, %v13537_v57  ;;  %vm4211_vm7 = vcmp.le.f32.partialorder %v4210_v63, 0.7853982  ;;  %vm3623_vm5 = vcmp.lt.s32.totalorder %v16972_v32, 2  ;;  %v3634_v61 = vsel %vm3622_vm4, %v13624_v45, %v13626_v27 }
 0x5b2   : > { %v3532_v37 = vsel %vm3530_vm9, %v3531_v40, %v3527_v54  ;;  %v4333_v15 = vsel %vm4212_vm13, %v4332_v6, %v4331_v24  ;;  %v4337_v51 = vsel %vm4211_vm7, 0, %v4335_v53  ;;  %v3637_v57 = vsel %vm3623_vm5, %v3634_v61, %v3636_v62 }
 0x5b3   : > { %v3533_v4 = vadd.s32 %v3532_v37, %v3528_v41  ;;  %v4336_v33 = vsel %vm4211_vm7, %v16958_v59, %v4333_v15  ;;  %v3633_v63 = vsel %vm3623_vm5, %v3630_v60, %v3632_v17  ;;  %v3641_v13 = vand.u32 65535, %v3637_v57 }
 0x5b4   : > { %v4338_v29 = vmul.f32 %v4336_v33, %v4336_v33  ;;  %v3639_v56 = vand.u32 65535, %v13645_v9  ;;  %v3642_v28 = vshrl.u32 %v3637_v57, 16  ;;  %v4354_v2 = vadd.s32 3, %v4337_v51 }
 0x5b5   : > { %v3534_v35 = vadd.s32 536870912, %v3533_v4  ;;  %v3640_v8 = vshrl.u32 %v13645_v9, 16  ;;  %v3664_v36 = vshrl.u32 %v3633_v63, 16  ;;  %v3663_v47 = vand.u32 65535, %v3633_v63 }
 0x5b6   : > { %v4339_v11 = vmul.f32 -0.001358992, %v4338_v29  ;;  %v4346_v42 = vmul.f32 -0.00019511016, %v4338_v29  ;;  %v3644_v39 = vmul.u32 %v3642_v28, %v3639_v56  ;;  %v4355_v50 = vand.u32 3, %v4354_v2 }
 0x5b7   : > { %v13663_v18 = vshrl.u32 %v3534_v35, 30  ;;  %v13665_v34 = vmul.u32 %v3641_v13, %v3640_v8  ;;  %v3643_v52 = vmul.u32 %v3641_v13, %v3639_v56  ;;  %v3646_v23 = vmul.u32 %v3642_v28, %v3640_v8 }
 0x5b8   : > { %v4340_v46 = vadd.f32 0.041655596, %v4339_v11  ;;  %v4347_v38 = vadd.f32 0.008332121, %v4346_v42  ;;  %v3647_v10 = vshll.u32 %v3644_v39, 16  ;;  %v3666_v0 = vmul.u32 %v3664_v36, %v3639_v56 }
 0x5b9   : > { %v3536_v7 = vshll.u32 %v13663_v18, 30  ;;  %v3649_v3 = vshll.u32 %v13665_v34, 16  ;;  %vm4357_vm0 = vcmp.eq.s32.totalorder %v4355_v50, 0  ;;  %vm4360_vm2 = vcmp.eq.s32.totalorder %v4355_v50, 2 }
 0x5ba   : > { %v4341_v20 = vmul.f32 %v4340_v46, %v4338_v29  ;;  %v4348_v31 = vmul.f32 %v4347_v38, %v4338_v29  ;;  %vm3651_vm8 = vc.u32 %v3643_v52, %v3647_v10  ;;  %v3653_v1 = vadd.s32 %v3647_v10, %v3643_v52 }
 0x5bb   : > { %v3537_v58 = vsub.s32 %v3533_v4, %v3536_v7  ;;  %v3652_v53 = vsel %vm3651_vm8, 1, %v16760_v21  ;;  %vm4356_vm14 = vcmp.lt.s32.totalorder %v4355_v50, 2  ;;  %vm4353_vm11 = vweird.f32 %v16958_v59 }
 0x5bc   : > { %v4342_v54 = vadd.f32 -0.4999988, %v4341_v20  ;;  %v4349_v41 = vadd.f32 -0.16666654, %v4348_v31  ;;  %vm3655_vm1 = vc.u32 %v3653_v1, %v3649_v3  ;;  %v3654_v60 = vadd.s32 %v3652_v53, %v3646_v23 }
 0x5bd   : > { %vm3538_vm15 = vcmp.lt.s32.totalorder %v3537_v58, 0  ;;  %v3539_v24 = vsub.s32 0, %v3537_v58  ;;  %v3529_v17 = vadd.s32 %v13604_v19, %v13600_v25  ;;  %v3656_v61 = vsel %vm3655_vm1, 1, %v16760_v21 }
 0x5be   : > { %v4343_v40 = vmul.f32 %v4342_v54, %v4338_v29  ;;  %v4350_v62 = vmul.f32 %v4349_v41, %v4338_v29  ;;  %v3669_v15 = vshll.u32 %v3666_v0, 16  ;;  %v3658_v57 = vadd.s32 %v3656_v61, %v3654_v60 }
 0x5bf   : > { %v3540_v6 = vsel %vm3538_vm15, %v3539_v24, %v3537_v58  ;;  %v3667_v63 = vmul.u32 %v3663_v47, %v3640_v8  ;;  %v3606_v29 = vshrl.u32 %v16751_v22, %v16971_v30  ;;  %v3627_v35 = vsel %vm3625_vm12, %v13626_v27, 2102212464 }
 0x5c0   : > { %v3541_v37 = vclz %v3540_v6  ;;  %v4344_v51 = vadd.f32 1.0, %v4343_v40  ;;  %v4351_v4 = vadd.f32 1.0, %v4350_v62  ;;  %v3665_v28 = vmul.u32 %v3663_v47, %v3639_v56 }
 0x5c1   : > { %v3648_v25 = vshrl.u32 %v3644_v39, 16  ;;  %v3650_v19 = vshrl.u32 %v13665_v34, 16  ;;  %v3668_v42 = vmul.u32 %v3664_v36, %v3640_v8  ;;  %v3671_v10 = vshll.u32 %v3667_v63, 16 }
 0x5c2   : > { %v8498_v13 = vadd.s32 4294967294, %v3541_v37  ;;  %v4352_v2 = vmul.f32 %v4351_v4, %v4336_v33  ;;  %v4361_v11 = vxor.u32 2147483648, %v4344_v51  ;;  %vm3673_vm3 = vc.u32 %v3665_v28, %v3669_v15 }
 0x5c3   : > { %v3675_v46 = vadd.s32 %v3669_v15, %v3665_v28  ;;  %v3659_v52 = vadd.s32 %v3658_v57, %v3648_v25  ;;  %v3674_v27 = vsel %vm3673_vm3, 1, %v16760_v21  ;;  %v3626_v3 = vsel %vm3622_vm4, %v3606_v29, %v13622_v49 }
 0x5c4   : > { %vm8499_vm13 = vcmp.lt.s32.totalorder %v8498_v13, 0  ;;  %v4358_v38 = vxor.u32 2147483648, %v4352_v2  ;;  %v4362_v30 = vsel %vm4360_vm2, %v4361_v11, %v4352_v2  ;;  %v3676_v39 = vadd.s32 %v3674_v27, %v3668_v42 }
 0x5c5   : > { %v3544_v7 = vsel %vm8499_vm13, 0, %v8498_v13  ;;  %vm3677_vm12 = vc.u32 %v3675_v46, %v3671_v10  ;;  %v3670_v1 = vshrl.u32 %v3666_v0, 16  ;;  %v3628_v50 = vsel %vm3624_vm6, %v13624_v45, %v3627_v35 }
 0x5c6   : > { %v3545_v20 = vsub.s32 32, %v3544_v7  ;;  %v3549_v31 = vsub.s32 4294967266, %v3544_v7  ;;  %v4359_v33 = vsel %vm4357_vm0, %v4344_v51, %v4358_v38  ;;  %v3546_v56 = vshll.u32 %v3537_v58, %v3544_v7 }
 0x5c7   : > { %v4363_v34 = vsel %vm4356_vm14, %v4359_v33, %v4362_v30  ;;  %v3678_v47 = vsel %vm3677_vm12, 1, %v16760_v21  ;;  %v3660_v24 = vadd.s32 %v3659_v52, %v3650_v19  ;;  %v3672_v53 = vshrl.u32 %v3667_v63, 16 }
 0x5c8   : > { %v3547_v8 = vshrl.u32 %v3529_v17, %v3545_v20  ;;  %v3550_v36 = vadd.s32 127, %v3549_v31  ;;  %v4364_v23 = vsel %vm4353_vm11, nan, %v4363_v34  ;;  %v3680_v54 = vadd.s32 %v3678_v47, %v3676_v39 }
 0x5c9   : > { %5746 = vmatpush.msrb.mxu3 %v4364_v23  ;;  %v3679_v6 = vadd.s32 %v3675_v46, %v3671_v10  ;;  %v3629_v59 = vsel %vm3623_vm5, %v3626_v3, %v3628_v50  ;;  %vm3437_vm6 = vcmp.lt.s32.totalorder %v16964_v48, 0  ;;  %vm13699_vm4 = vcmp.le.f32.partialorder %v3435_v5, 0.7853982 }
 0x5ca   : > { %v3548_v41 = vor.u32 %v3547_v8, %v3546_v56  ;;  %v3551_v58 = vshll.u32 %v3550_v36, 23  ;;  %v3681_v40 = vadd.s32 %v3680_v54, %v3670_v1  ;;  %v3683_v61 = vmul.u32 %v13645_v9, %v3629_v59 }
 0x5cb   : > { %vm3685_vm9 = vc.u32 %v3660_v24, %v3679_v6  ;;  %v3559_v57 = vsub.s32 4, %v13663_v18  ;;  %v3684_v23 = vadd.s32 %v3679_v6, %v3660_v24  ;;  %vm3578_vm2 = vweird.f32 %v16964_v48  ;;  %v5606_v24 = vld [vmem:[%s16422_s5 + $0x8] sm:$0xff]  ;;  %v8669_v6 = vld [vmem:[%s16422_s5] sm:$0xff] }
 0x5cc   : > { %v3552_v62 = vor.u32 4788187, %v3551_v58  ;;  %v3682_v60 = vadd.s32 %v3681_v40, %v3672_v53  ;;  %v3555_v49 = vcvt.s32.f32 %v3548_v41  ;;  %8540 = vmatmul.msk.f32.gmra.mxu0 %vm16588_vm10, %v5606_v24  ;;  %8544 = vmatmul.msk.f32.gmra.mxu1 %vm16588_vm10, %v5606_v24  ;;  %vm3592_vm1 = vcmp.lt.s32.totalorder %v16974_v12, 0 }
 0x5cd   : > { %v3560_v35 = vsel %vm3437_vm6, %v3559_v57, %v13663_v18  ;;  %vm13726_vm14 = vcmp.le.f32.partialorder %v3590_v26, 0.7853982  ;;  %vm3733_vm12 = vweird.f32 %v16974_v12 }
 0x5ce   : > { %v3553_v17 = vand.u32 2147483647, %v3552_v62  ;;  %v3686_v0 = vadd.s32 1, %v3682_v60  ;;  %v3562_v42 = vsel %vm13699_vm4, 0, %v3560_v35 }
 0x5cf   : > { %v3579_v30 = vadd.s32 3, %v3562_v42 }
 0x5d0   : > { %v3556_v37 = vmul.f32 %v3555_v49, %v3553_v17  ;;  %v3687_v15 = vsel %vm3685_vm9, %v3686_v0, %v3682_v60 }
 0x5d1   : > { %v3688_v4 = vadd.s32 %v3687_v15, %v3683_v61  ;;  %v3580_v34 = vand.u32 3, %v3579_v30 }
 0x5d2   : > { %v3557_v51 = vxor.u32 2147483648, %v3556_v37 }
 0x5d3   : > { %v3689_v63 = vadd.s32 536870912, %v3688_v4  ;;  %vm3582_vm8 = vcmp.eq.s32.totalorder %v3580_v34, 0  ;;  %vm3585_vm15 = vcmp.eq.s32.totalorder %v3580_v34, 2  ;;  %vm3581_vm0 = vcmp.lt.s32.totalorder %v3580_v34, 2 }
 0x5d4   : > { %v3558_v32 = vsel %vm3437_vm6, %v3557_v51, %v3556_v37 }
 0x5d5   : > { %v3561_v13 = vsel %vm13699_vm4, %v16964_v48, %v3558_v32  ;;  %v13707_v29 = vshrl.u32 %v3689_v63, 30 }
 0x5d6   : > { %v3563_v9 = vmul.f32 %v3561_v13, %v3561_v13 }
 0x5d7   : > { %v3691_v5 = vshll.u32 %v13707_v29, 30  ;;  %v3714_v45 = vsub.s32 4, %v13707_v29 }
 0x5d8   : > { %v3564_v28 = vmul.f32 -0.001358992, %v3563_v9  ;;  %v3571_v2 = vmul.f32 -0.00019511016, %v3563_v9 }
 0x5d9   : > { %v3692_v19 = vsub.s32 %v3688_v4, %v3691_v5  ;;  %v5607_v4 = vld [vmem:[%s16422_s5 + $0x10] sm:$0xff] }
 0x5da   : > { %v3565_v11 = vadd.f32 0.041655596, %v3564_v28  ;;  %v3572_v25 = vadd.f32 0.008332121, %v3571_v2  ;;  %8541 = vmatmul.msk.f32.gmra.mxu0 %vm16588_vm10, %v5607_v4  ;;  %8545 = vmatmul.msk.f32.gmra.mxu1 %vm16588_vm10, %v5607_v4 }
 0x5db   : > { %vm3693_vm7 = vcmp.lt.s32.totalorder %v3692_v19, 0  ;;  %v3694_v7 = vsub.s32 0, %v3692_v19 }
 0x5dc   : > { %v3566_v46 = vmul.f32 %v3565_v11, %v3563_v9  ;;  %v3573_v38 = vmul.f32 %v3572_v25, %v3563_v9  ;;  %v5608_v11 = vld [vmem:[%s16422_s5 + $0x18] sm:$0xff] }
 0x5dd   : > { %v3695_v20 = vsel %vm3693_vm7, %v3694_v7, %v3692_v19 }
 0x5de   : > { %v3567_v52 = vadd.f32 -0.4999988, %v3566_v46  ;;  %v3574_v10 = vadd.f32 -0.16666654, %v3573_v38  ;;  %v3696_v31 = vclz %v3695_v20 }
 0x5e0   : > { %v3568_v18 = vmul.f32 %v3567_v52, %v3563_v9  ;;  %v3575_v27 = vmul.f32 %v3574_v10, %v3563_v9  ;;  %v8501_v33 = vadd.s32 4294967294, %v3696_v31 }
 0x5e2   : > { %v3569_v56 = vadd.f32 1.0, %v3568_v18  ;;  %v3576_v39 = vadd.f32 1.0, %v3575_v27  ;;  %vm8502_vm5 = vcmp.lt.s32.totalorder %v8501_v33, 0  ;;  %8542 = vmatmul.msk.f32.gmra.mxu0 %vm16588_vm10, %v5608_v11  ;;  %8546 = vmatmul.msk.f32.gmra.mxu1 %vm16588_vm10, %v5608_v11 }
 0x5e3   : > { %v3699_v47 = vsel %vm8502_vm5, 0, %v8501_v33 }
 0x5e4   : > { %v3577_v8 = vmul.f32 %v3576_v39, %v3561_v13  ;;  %v3586_v36 = vxor.u32 2147483648, %v3569_v56  ;;  %v3700_v3 = vsub.s32 32, %v3699_v47  ;;  %v3704_v1 = vsub.s32 4294967266, %v3699_v47  ;;  %v13755_v39 = vpop.permute.xlu0 %5615 }
 0x5e5   : > { %v3701_v41 = vshll.u32 %v3692_v19, %v3699_v47  ;;  %v3715_v13 = vsel %vm3592_vm1, %v3714_v45, %v13707_v29 }
 0x5e6   : > { %v3583_v54 = vxor.u32 2147483648, %v3577_v8  ;;  %v3702_v58 = vshrl.u32 %v3684_v23, %v3700_v3  ;;  %v3705_v50 = vadd.s32 127, %v3704_v1  ;;  %v3587_v40 = vsel %vm3585_vm15, %v3586_v36, %v3577_v8  ;;  %v5691_v8 = vpop.f32.mrf.mxu1  ;;  %v13764_v23 = vpop.permute.xlu2 %5630 }
 0x5e7   : > { %v3717_v28 = vsel %vm13726_vm14, 0, %v3715_v13  ;;  %v13762_v36 = vadd.f32 %v5691_v8, %v13755_v39 }
 0x5e8   : > { %v3584_v53 = vsel %vm3582_vm8, %v3569_v56, %v3583_v54  ;;  %v3703_v59 = vor.u32 %v3702_v58, %v3701_v41  ;;  %v3706_v60 = vshll.u32 %v3705_v50, 23  ;;  %v3734_v29 = vadd.s32 3, %v3717_v28  ;;  %v5662_v56 = vpop.f32.mrf.mxu0 }
 0x5e9   : > { %v3588_v62 = vsel %vm3581_vm0, %v3584_v53, %v3587_v40  ;;  %v13758_v34 = vadd.f32 %v5662_v56, %v13755_v39  ;;  %16980 = vst [vmem:[#allocation42_spill] sm:$0xff] %v13762_v36  ;;  %v5919_v3 = vand.u32 2139095040, %v13762_v36  ;;  %v16553_v58 = vand.u32 2147483647, %v13762_v36 }
 0x5ea   : > { %v3589_v17 = vsel %vm3578_vm2, nan, %v3588_v62  ;;  %v3707_v49 = vor.u32 4788187, %v3706_v60  ;;  %v3710_v48 = vcvt.s32.f32 %v3703_v59  ;;  %v3735_v52 = vand.u32 3, %v3734_v29 }
 0x5eb   : > { %5718 = vmatpush.msrb.mxu2 %v3589_v17  ;;  %16979 = vst [vmem:[#allocation38_spill] sm:$0xff] %v13758_v34  ;;  %v5920_v54 = vshrl.u32 %v5919_v3, 23  ;;  %v16554_v41 = vand.u32 2147483647, %v13758_v34  ;;  %v5923_v60 = vand.u32 8388607, %v16553_v58 }
 0x5ec   : > { %8547 = vmatmul.msk.f32.vlgmr.msrb.gmra.mxu2 %vm16588_vm10, %v8669_v6  ;;  %v3708_v0 = vand.u32 2147483647, %v3707_v49  ;;  %vm3737_vm11 = vcmp.eq.s32.totalorder %v3735_v52, 0  ;;  %vm3740_vm13 = vcmp.eq.s32.totalorder %v3735_v52, 2  ;;  %vm3736_vm3 = vcmp.lt.s32.totalorder %v3735_v52, 2 }
 0x5ed   : > { %v8558_v53 = vadd.s32 4294967169, %v5920_v54  ;;  %v5768_v59 = vand.u32 8388607, %v16554_v41 }
 0x5ee   : > { %v3711_v37 = vmul.f32 %v3710_v48, %v3708_v0  ;;  %v13769_v62 = vpop.permute.xlu2 %5620  ;;  %v5924_v48 = vor.u32 8388608, %v5923_v60 }
 0x5ef   : > { %v5926_v49 = vadd.s32 1, %v8558_v53 }
 0x5f0   : > { %v3712_v61 = vxor.u32 2147483648, %v3711_v37 }
 0x5f1   : > { %vm5927_vm6 = vcmp.gt.s32.totalorder %v5926_v49, 0 }
 0x5f2   : > { %v3713_v51 = vsel %vm3592_vm1, %v3712_v61, %v3711_v37  ;;  %v5928_v45 = vsel %vm5927_vm6, %v5926_v49, 0 }
 0x5f3   : > { %v3716_v32 = vsel %vm13726_vm14, %v16974_v12, %v3713_v51  ;;  %v5764_v12 = vand.u32 2139095040, %v13758_v34 }
 0x5f4   : > { %8548 = vmatmul.msk.f32.gmra.mxu2 %vm16588_vm10, %v5606_v24  ;;  %v3718_v57 = vmul.f32 %v3716_v32, %v3716_v32 }
 0x5f5   : > { %v5765_v47 = vshrl.u32 %v5764_v12, 23 }
 0x5f6   : > { %v3719_v26 = vmul.f32 -0.001358992, %v3718_v57  ;;  %v3726_v63 = vmul.f32 -0.00019511016, %v3718_v57 }
 0x5f7   : > { %v8555_v1 = vadd.s32 4294967169, %v5765_v47 }
 0x5f8   : > { %v3720_v9 = vadd.f32 0.041655596, %v3719_v26  ;;  %v3727_v35 = vadd.f32 0.008332121, %v3726_v63 }
 0x5f9   : > { %v5771_v50 = vadd.s32 1, %v8555_v1 }
 0x5fa   : > { %v3721_v2 = vmul.f32 %v3720_v9, %v3718_v57  ;;  %v3728_v5 = vmul.f32 %v3727_v35, %v3718_v57  ;;  %v5930_v9 = vand.u32 31, %v5928_v45 }
 0x5fb   : > { %vm5772_vm9 = vcmp.gt.s32.totalorder %v5771_v50, 0 }
 0x5fc   : > { %8549 = vmatmul.msk.f32.gmra.mxu2 %vm16588_vm10, %v5607_v4  ;;  %v3722_v25 = vadd.f32 -0.4999988, %v3721_v2  ;;  %v3729_v19 = vadd.f32 -0.16666654, %v3728_v5  ;;  %v5773_v0 = vsel %vm5772_vm9, %v5771_v50, 0  ;;  %v5933_v54 = vshll.u32 %v16751_v22, %v5930_v9 }
 0x5fd   : > { %v5775_v15 = vand.u32 31, %v5773_v0  ;;  %v13798_v28 = vshrl.u32 %v5773_v0, 5 }
 0x5fe   : > { %v3723_v42 = vmul.f32 %v3722_v25, %v3718_v57  ;;  %v3730_v46 = vmul.f32 %v3729_v19, %v3718_v57 }
 0x5ff   : > { %v13787_v26 = vsub.s32 32, %v5775_v15  ;;  %16989 = vst [vmem:[#allocation16_spill] sm:$0xff] %v13798_v28  ;;  %v5778_v25 = vshll.u32 %v16751_v22, %v5775_v15  ;;  %v5781_v19 = vshll.u32 %v16752_v44, %v5775_v15  ;;  %v5784_v29 = vshll.u32 %v16753_v55, %v5775_v15 }
 0x600   : > { %v3724_v38 = vadd.f32 1.0, %v3723_v42  ;;  %v3731_v7 = vadd.f32 1.0, %v3730_v46  ;;  %v13806_v42 = vshrl.u32 %v5928_v45, 5  ;;  %v5787_v52 = vshll.u32 %v16754_v14, %v5775_v15 }
 0x601   : > { %16985 = vst [vmem:[#allocation45_spill] sm:$0xff] %v13787_v26  ;;  %v5791_v12 = vshrl.u32 %v16911_v43, %v13787_v26  ;;  %vm16640_vm4 = vcmp.lt.s32.totalorder %v13798_v28, 1  ;;  %vm16631_vm7 = vcmp.lt.s32.totalorder %v13798_v28, 3  ;;  %vm16659_vm5 = vcmp.lt.s32.totalorder %v13798_v28, 4 }
 0x602   : > { %v3732_v10 = vmul.f32 %v3731_v7, %v3716_v32  ;;  %v3741_v30 = vxor.u32 2147483648, %v3724_v38  ;;  %16991 = vst [vmem:[#allocation20_spill] sm:$0xff] %v13806_v42  ;;  %v5782_v7 = vshrl.u32 %v16753_v55, %v13787_v26  ;;  %vm16630_vm0 = vcmp.lt.s32.totalorder %v13806_v42, 4 }
 0x603   : > { %vm16629_vm2 = vcmp.lt.s32.totalorder %v13806_v42, 1  ;;  %vm16627_vm1 = vcmp.lt.s32.totalorder %v13806_v42, 3 }
 0x604   : > { %8550 = vmatmul.msk.f32.gmra.mxu2 %vm16588_vm10, %v5608_v11  ;;  %v3738_v20 = vxor.u32 2147483648, %v3732_v10  ;;  %v3742_v18 = vsel %vm3740_vm13, %v3741_v30, %v3732_v10  ;;  %v5788_v10 = vshrl.u32 %v16900_v16, %v13787_v26  ;;  %v5785_v30 = vshrl.u32 %v16754_v14, %v13787_v26 }
 0x605   : > { %v13832_v3 = vor.u32 %v5782_v7, %v5781_v19 }
 0x606   : > { %v3739_v31 = vsel %vm3737_vm11, %v3724_v38, %v3738_v20  ;;  %v5779_v38 = vshrl.u32 %v16752_v44, %v13787_v26  ;;  %v5790_v20 = vshll.u32 %v16900_v16, %v5775_v15  ;;  %v5789_v1 = vor.u32 %v5788_v10, %v5787_v52 }
 0x607   : > { %v3743_v27 = vsel %vm3736_vm3, %v3739_v31, %v3742_v18  ;;  %v13818_v31 = vsub.s32 32, %v5930_v9  ;;  %16995 = vst [vmem:[#allocation13_spill] sm:$0xff] %v13832_v3  ;;  %v13835_v50 = vor.u32 %v5785_v30, %v5784_v29  ;;  %v5939_v10 = vshll.u32 %v16753_v55, %v5930_v9 }
 0x608   : > { %v3744_v33 = vsel %vm3733_vm12, nan, %v3743_v27  ;;  %v13830_v47 = vor.u32 %v5779_v38, %v5778_v25  ;;  %v5802_v45 = vsel %vm16659_vm5, %v5789_v1, 920167782 }
 0x609   : > { %5747 = vmatpush.msrb.mxu3 %v3744_v33  ;;  %16992 = vst [vmem:[#allocation26_spill] sm:$0xff] %v13818_v31  ;;  %v5943_v53 = vshrl.u32 %v16900_v16, %v13818_v31  ;;  %v5934_v0 = vshrl.u32 %v16752_v44, %v13818_v31  ;;  %v13866_v7 = vsel %vm16631_vm7, %v13835_v50, %v5802_v45 }
 0x60a   : > { %8551 = vmatmul.msk.f32.vlgmr.msrb.gmra.mxu3 %vm16588_vm10, %v8669_v6  ;;  %v5769_v6 = vor.u32 8388608, %v5768_v59  ;;  %16994 = vst [vmem:[#allocation25_spill] sm:$0xff] %v13830_v47  ;;  %v13854_v15 = vsel %vm16640_vm4, %v13830_v47, %v13832_v3  ;;  %v13872_v52 = vsel %vm16640_vm4, %v13832_v3, %v13835_v50 }
 0x60b   : > { %16996 = vst [vmem:[#allocation15_spill] sm:$0xff] %v13835_v50 }
 0x60c   : > { %v13782_v51 = vshll.u32 %v5769_v6, 8  ;;  %v5792_v6 = vor.u32 %v5791_v12, %v5790_v20  ;;  %16997 = vst [vmem:[#allocation17_spill] sm:$0xff] %v13854_v15 }
 0x60d   : > { %16998 = vst [vmem:[#allocation8_spill] sm:$0xff] %v13866_v7 }
 0x60e   : > { %16983 = vst [vmem:[#allocation34_spill] sm:$0xff] %v13782_v51  ;;  %v13790_v63 = vand.u32 65535, %v13782_v51  ;;  %v13793_v13 = vshrl.u32 %v13782_v51, 16  ;;  %v5806_v20 = vsel %vm16659_vm5, %v5792_v6, 1326507024 }
 0x60f   : > { %16999 = vst [vmem:[#allocation28_spill] sm:$0xff] %v13872_v52 }
 0x610   : > { %16986 = vst [vmem:[#allocation39_spill] sm:$0xff] %v13790_v63 }
 0x611   : > { %16987 = vst [vmem:[#allocation44_spill] sm:$0xff] %v13793_v13 }
 0x612   : > { %8552 = vmatmul.msk.f32.gmra.mxu3 %vm16588_vm10, %v5606_v24 }
 0x61a   : > { %8553 = vmatmul.msk.f32.gmra.mxu3 %vm16588_vm10, %v5607_v4  ;;  %v13784_v4 = vshll.u32 %v5924_v48, 8  ;;  %v5936_v48 = vshll.u32 %v16752_v44, %v5930_v9 }
 0x61c   : > { %16984 = vst [vmem:[#allocation33_spill] sm:$0xff] %v13784_v4  ;;  %v13796_v35 = vand.u32 65535, %v13784_v4  ;;  %v13801_v2 = vshrl.u32 %v13784_v4, 16 }
 0x61e   : > { %16988 = vst [vmem:[#allocation14_spill] sm:$0xff] %v13796_v35 }
 0x61f   : > { %16990 = vst [vmem:[#allocation7_spill] sm:$0xff] %v13801_v2 }
 0x622   : > { %8554 = vmatmul.msk.f32.gmra.mxu3 %vm16588_vm10, %v5608_v11 }
 0x649   : > { %v5665_v40 = vpop.f32.mrf.mxu0  ;;  %v5694_v24 = vpop.f32.mrf.mxu1 }
 0x64a   : > { %v13776_v17 = vadd.f32 %v5665_v40, %v13769_v62  ;;  %v13780_v61 = vadd.f32 %v5694_v24, %v13769_v62  ;;  %v5946_v40 = vshrl.u32 %v16911_v43, %v13818_v31 }
 0x64c   : > { %16981 = vst [vmem:[#allocation6_spill] sm:$0xff] %v13776_v17  ;;  %v6384_v37 = vand.u32 2139095040, %v13776_v17  ;;  %v6539_v57 = vand.u32 2139095040, %v13780_v61  ;;  %v16556_v18 = vand.u32 2147483647, %v13776_v17 }
 0x64d   : > { %16982 = vst [vmem:[#allocation29_spill] sm:$0xff] %v13780_v61  ;;  %v16555_v33 = vand.u32 2147483647, %v13780_v61 }
 0x64e   : > { %v6385_v32 = vshrl.u32 %v6384_v37, 23  ;;  %v6540_v11 = vshrl.u32 %v6539_v57, 23  ;;  %v6388_v59 = vand.u32 8388607, %v16556_v18  ;;  %v5942_v37 = vshll.u32 %v16754_v14, %v5930_v9 }
 0x64f   : > { %v6543_v60 = vand.u32 8388607, %v16555_v33  ;;  %v5945_v57 = vshll.u32 %v16900_v16, %v5930_v9 }
 0x650   : > { %v8567_v5 = vadd.s32 4294967169, %v6385_v32  ;;  %v8570_v56 = vadd.s32 4294967169, %v6540_v11  ;;  %v5937_v32 = vshrl.u32 %v16753_v55, %v13818_v31  ;;  %v5944_v11 = vor.u32 %v5943_v53, %v5942_v37 }
 0x651   : > { %v6389_v25 = vor.u32 8388608, %v6388_v59  ;;  %v5947_v29 = vor.u32 %v5946_v40, %v5945_v57 }
 0x652   : > { %v6391_v27 = vadd.s32 1, %v8567_v5  ;;  %v6546_v49 = vadd.s32 1, %v8570_v56  ;;  %v5940_v5 = vshrl.u32 %v16754_v14, %v13818_v31  ;;  %v13880_v56 = vor.u32 %v5937_v32, %v5936_v48 }
 0x653   : > { %v13885_v40 = vshll.u32 %v6389_v25, 8  ;;  %v5957_v9 = vsel %vm16630_vm0, %v5944_v11, 920167782  ;;  %v13897_v48 = vsel %vm16631_vm7, %v5789_v1, %v5806_v20 }
 0x654   : > { %vm6392_vm8 = vcmp.gt.s32.totalorder %v6391_v27, 0  ;;  %vm6547_vm15 = vcmp.gt.s32.totalorder %v6546_v49, 0  ;;  %17001 = vst [vmem:[#allocation27_spill] sm:$0xff] %v13880_v56  ;;  %v13882_v53 = vor.u32 %v5940_v5, %v5939_v10 }
 0x655   : > { %v6393_v19 = vsel %vm6392_vm8, %v6391_v27, 0  ;;  %v13878_v27 = vor.u32 %v5934_v0, %v5933_v54  ;;  %17003 = vst [vmem:[#allocation58_spill] sm:$0xff] %v13885_v40  ;;  %v6548_v59 = vsel %vm6547_vm15, %v6546_v49, 0  ;;  %v13893_v0 = vpop.permute.xlu1 %5625 }
 0x656   : > { %v6395_v12 = vand.u32 31, %v6393_v19  ;;  %17002 = vst [vmem:[#allocation63_spill] sm:$0xff] %v13882_v53  ;;  %v6550_v32 = vand.u32 31, %v6548_v59  ;;  %v13919_v57 = vsel %vm16627_vm1, %v13882_v53, %v5957_v9  ;;  %v13925_v5 = vsel %vm16629_vm2, %v13880_v56, %v13882_v53 }
 0x657   : > { %17000 = vst [vmem:[#allocation10_spill] sm:$0xff] %v13878_v27  ;;  %v13909_v37 = vsel %vm16629_vm2, %v13878_v27, %v13880_v56  ;;  %v13943_v9 = vshrl.u32 %v6393_v19, 5 }
 0x658   : > { %17005 = vst [vmem:[#allocation59_spill] sm:$0xff] %v13897_v48  ;;  %v13911_v45 = vsub.s32 32, %v6395_v12  ;;  %v13953_v18 = vsub.s32 32, %v6550_v32  ;;  %v6401_v19 = vshll.u32 %v16752_v44, %v6395_v12  ;;  %v6404_v36 = vshll.u32 %v16753_v55, %v6395_v12 }
 0x659   : > { %17006 = vst [vmem:[#allocation65_spill] sm:$0xff] %v13909_v37  ;;  %v6407_v4 = vshll.u32 %v16754_v14, %v6395_v12  ;;  %v6410_v27 = vshll.u32 %v16900_v16, %v6395_v12  ;;  %vm16724_vm11 = vcmp.lt.s32.totalorder %v13943_v9, 1  ;;  %vm6416_vm13 = vcmp.lt.s32.totalorder %v13943_v9, 4 }
 0x65a   : > { %17007 = vst [vmem:[#allocation60_spill] sm:$0xff] %v13911_v45  ;;  %v6399_v41 = vshrl.u32 %v16752_v44, %v13911_v45  ;;  %v6402_v33 = vshrl.u32 %v16753_v55, %v13911_v45  ;;  %v6405_v56 = vshrl.u32 %v16754_v14, %v13911_v45  ;;  %vm6415_vm3 = vcmp.lt.s32.totalorder %v13943_v9, 3 }
 0x65b   : > { %17009 = vst [vmem:[#allocation53_spill] sm:$0xff] %v13919_v57  ;;  %v6563_v31 = vshrl.u32 %v16900_v16, %v13953_v18  ;;  %v6554_v35 = vshrl.u32 %v16752_v44, %v13953_v18  ;;  %v6557_v37 = vshrl.u32 %v16753_v55, %v13953_v18  ;;  %v6565_v51 = vshll.u32 %v16900_v16, %v6550_v32 }
 0x65c   : > { %17010 = vst [vmem:[#allocation54_spill] sm:$0xff] %v13925_v5  ;;  %v5697_v5 = vpop.f32.mrf.mxu1 }
 0x65d   : > { %17016 = vst [vmem:[#allocation51_spill] sm:$0xff] %v13943_v9 }
 0x65e   : > { %17018 = vst [vmem:[#allocation55_spill] sm:$0xff] %v13953_v18 }
 0x66f   : > { %v5720_v46 = vpop.f32.mrf.mxu2 }
 0x670   : > { %v13823_v8 = vadd.f32 %v5720_v46, %v13755_v39  ;;  %v6544_v46 = vor.u32 8388608, %v6543_v60  ;;  %v5668_v60 = vpop.f32.mrf.mxu0 }
 0x671   : > { %v13914_v1 = vadd.f32 %v5668_v60, %v13893_v0 }
 0x672   : > { %16993 = vst [vmem:[#allocation9_spill] sm:$0xff] %v13823_v8  ;;  %v6074_v24 = vand.u32 2139095040, %v13823_v8  ;;  %v16552_v30 = vand.u32 2147483647, %v13823_v8  ;;  %v13891_v6 = vshll.u32 %v6544_v46, 8  ;;  %v13935_v46 = vshrl.u32 %v13885_v40, 16 }
 0x673   : > { %17008 = vst [vmem:[#allocation23_spill] sm:$0xff] %v13914_v1  ;;  %v6408_v8 = vshrl.u32 %v16900_v16, %v13911_v45 }
 0x674   : > { %v6075_v38 = vshrl.u32 %v6074_v24, 23  ;;  %v5961_v24 = vsel %vm16630_vm0, %v5947_v29, 1326507024  ;;  %17004 = vst [vmem:[#allocation64_spill] sm:$0xff] %v13891_v6  ;;  %v13903_v49 = vand.u32 8388607, %v16552_v30  ;;  %v6398_v30 = vshll.u32 %v16751_v22, %v6395_v12 }
 0x675   : > { %v13929_v25 = vsel %vm16627_vm1, %v5944_v11, %v5961_v24  ;;  %v13932_v29 = vand.u32 65535, %v13885_v40  ;;  %17013 = vst [vmem:[#allocation57_spill] sm:$0xff] %v13935_v46  ;;  %v13941_v10 = vshrl.u32 %v13891_v6, 16  ;;  %v13946_v11 = vshrl.u32 %v6548_v59, 5 }
 0x676   : > { %v8561_v54 = vadd.s32 4294967169, %v6075_v38  ;;  %17011 = vst [vmem:[#allocation52_spill] sm:$0xff] %v13929_v25  ;;  %v13938_v38 = vand.u32 65535, %v13891_v6  ;;  %v6411_v59 = vshrl.u32 %v16911_v43, %v13911_v45  ;;  %v13974_v53 = vor.u32 %v6399_v41, %v6398_v30 }
 0x677   : > { %17012 = vst [vmem:[#allocation62_spill] sm:$0xff] %v13932_v29  ;;  %v5723_v60 = vpop.f32.mrf.mxu2  ;;  %v6560_v41 = vshrl.u32 %v16754_v14, %v13953_v18  ;;  %vm16666_vm12 = vcmp.lt.s32.totalorder %v13946_v11, 4  ;;  %vm16723_vm9 = vcmp.lt.s32.totalorder %v13946_v11, 1  ;;  %vm16665_vm6 = vcmp.lt.s32.totalorder %v13946_v11, 3 }
 0x678   : > { %17014 = vst [vmem:[#allocation61_spill] sm:$0xff] %v13938_v38  ;;  %v6081_v20 = vadd.s32 1, %v8561_v54  ;;  %v7004_v54 = vand.u32 2139095040, %v13914_v1  ;;  %v13962_v24 = vadd.f32 %v5723_v60, %v13769_v62  ;;  %v13976_v60 = vor.u32 %v6402_v33, %v6401_v19 }
 0x679   : > { %17015 = vst [vmem:[#allocation56_spill] sm:$0xff] %v13941_v10  ;;  %v6412_v2 = vor.u32 %v6411_v59, %v6410_v27  ;;  %v6562_v33 = vshll.u32 %v16754_v14, %v6550_v32  ;;  %v13989_v19 = vor.u32 %v6405_v56, %v6404_v36  ;;  %v6559_v27 = vshll.u32 %v16753_v55, %v6550_v32 }
 0x67a   : > { %17017 = vst [vmem:[#allocation37_spill] sm:$0xff] %v13946_v11  ;;  %vm6082_vm14 = vcmp.gt.s32.totalorder %v6081_v20, 0  ;;  %v14002_v36 = vsel %vm16724_vm11, %v13974_v53, %v13976_v60 }
 0x67b   : > { %17019 = vst [vmem:[#allocation12_spill] sm:$0xff] %v13962_v24  ;;  %v6083_v12 = vsel %vm6082_vm14, %v6081_v20, 0  ;;  %v13996_v20 = vor.u32 %v6563_v31, %v6562_v33  ;;  %v6426_v25 = vsel %vm6416_vm13, %v6412_v2, 1326507024  ;;  %v14019_v3 = vsel %vm16724_vm11, %v13976_v60, %v13989_v19 }
 0x67c   : > { %17021 = vst [vmem:[#allocation36_spill] sm:$0xff] %v13974_v53  ;;  %v6085_v59 = vand.u32 31, %v6083_v12  ;;  %v14023_v2 = vadd.f32 %v5697_v5, %v13893_v0 }
 0x67d   : > { %17022 = vst [vmem:[#allocation35_spill] sm:$0xff] %v13976_v60 }
 0x67e   : > { %17023 = vst [vmem:[#allocation48_spill] sm:$0xff] %v13989_v19  ;;  %v6097_v50 = vshll.u32 %v16754_v14, %v6085_v59  ;;  %v6100_v15 = vshll.u32 %v16900_v16, %v6085_v59  ;;  %v6091_v52 = vshll.u32 %v16752_v44, %v6085_v59 }
 0x67f   : > { %17024 = vst [vmem:[#allocation40_spill] sm:$0xff] %v14002_v36 }
 0x680   : > { %17028 = vst [vmem:[#allocation49_spill] sm:$0xff] %v14019_v3 }
 0x681   : > { %17029 = vst [vmem:[#allocation50_spill] sm:$0xff] %v14023_v2 }
 0x68d   : > { %v5749_v58 = vpop.f32.mrf.mxu3 }
 0x68e   : > { %v13967_v34 = vadd.f32 %v5749_v58, %v13755_v39  ;;  %v7005_v39 = vshrl.u32 %v7004_v54, 23  ;;  %v6409_v58 = vor.u32 %v6408_v8, %v6407_v4  ;;  %v6553_v54 = vshll.u32 %v16751_v22, %v6550_v32 }
 0x68f   : > { %v6556_v4 = vshll.u32 %v16752_v44, %v6550_v32  ;;  %v6566_v8 = vshrl.u32 %v16911_v43, %v13953_v18 }
 0x690   : > { %17020 = vst [vmem:[#allocation30_spill] sm:$0xff] %v13967_v34  ;;  %v6229_v30 = vand.u32 2139095040, %v13967_v34  ;;  %v8579_v57 = vadd.s32 4294967169, %v7005_v39  ;;  %v6422_v56 = vsel %vm6416_vm13, %v6409_v58, 920167782  ;;  %v14009_v42 = vor.u32 %v6554_v35, %v6553_v54 }
 0x691   : > { %v14011_v31 = vor.u32 %v6557_v37, %v6556_v4  ;;  %v14013_v39 = vor.u32 %v6560_v41, %v6559_v27  ;;  %v6567_v47 = vor.u32 %v6566_v8, %v6565_v51  ;;  %v6577_v35 = vsel %vm16666_vm12, %v13996_v20, 920167782 }
 0x692   : > { %17025 = vst [vmem:[#allocation46_spill] sm:$0xff] %v14009_v42  ;;  %v6230_v33 = vshrl.u32 %v6229_v30, 23  ;;  %v14028_v37 = vsub.s32 32, %v6085_v59  ;;  %v7011_v41 = vadd.s32 1, %v8579_v57  ;;  %v14034_v30 = vsel %vm6415_vm3, %v13989_v19, %v6422_v56 }
 0x693   : > { %17026 = vst [vmem:[#allocation21_spill] sm:$0xff] %v14011_v31  ;;  %v14038_v51 = vsel %vm6415_vm3, %v6409_v58, %v6426_v25  ;;  %v14046_v5 = vsel %vm16723_vm9, %v14009_v42, %v14011_v31  ;;  %v14052_v57 = vsel %vm16723_vm9, %v14011_v31, %v14013_v39  ;;  %v17035_v54 = vor.u32 8388608, %v13903_v49 }
 0x694   : > { %17027 = vst [vmem:[#allocation41_spill] sm:$0xff] %v14013_v39  ;;  %v8564_v58 = vadd.s32 4294967169, %v6230_v33  ;;  %v14061_v4 = vsel %vm16665_vm6, %v14013_v39, %v6577_v35  ;;  %v6581_v8 = vsel %vm16666_vm12, %v6567_v47, 1326507024  ;;  %v14065_v27 = vshrl.u32 %v6083_v12, 5 }
 0x695   : > { %17030 = vst [vmem:[#allocation5_spill] sm:$0xff] %v14028_v37  ;;  %v14056_v25 = vshll.u32 %v17035_v54, 8  ;;  %v7159_v56 = vand.u32 2139095040, %v14023_v2  ;;  %v6098_v32 = vshrl.u32 %v16900_v16, %v14028_v37  ;;  %v17039_v54 = vand.u32 2147483647, %v13914_v1  ;;  %v5752_v61 = vpop.f32.mrf.mxu3 }
 0x696   : > { %17031 = vst [vmem:[#allocation18_spill] sm:$0xff] %v14034_v30  ;;  %vm7012_vm8 = vcmp.gt.s32.totalorder %v7011_v41, 0  ;;  %v6088_v35 = vshll.u32 %v16751_v22, %v6085_v59  ;;  %v6101_v47 = vshrl.u32 %v16911_v43, %v14028_v37  ;;  %v6089_v26 = vshrl.u32 %v16752_v44, %v14028_v37 }
 0x697   : > { %17032 = vst [vmem:[#allocation22_spill] sm:$0xff] %v14038_v51  ;;  %v7008_v33 = vand.u32 8388607, %v17039_v54  ;;  %v6092_v49 = vshrl.u32 %v16753_v55, %v14028_v37  ;;  %v6236_v54 = vadd.s32 1, %v8564_v58  ;;  %v6095_v7 = vshrl.u32 %v16754_v14, %v14028_v37 }
 0x698   : > { %17033 = vst [vmem:[#allocation11_spill] sm:$0xff] %v14046_v5  ;;  %v7013_v13 = vsel %vm7012_vm8, %v7011_v41, 0  ;;  %v7160_v63 = vshrl.u32 %v7159_v56, 23  ;;  %v14086_v6 = vadd.f32 %v5752_v61, %v13769_v62  ;;  %v6099_v12 = vor.u32 %v6098_v32, %v6097_v50 }
 0x699   : > { %17034 = vst [vmem:[#allocation32_spill] sm:$0xff] %v14052_v57  ;;  %v17041_v48 = vand.u32 2147483647, %v13967_v34  ;;  %v7009_v31 = vor.u32 8388608, %v7008_v33  ;;  %v6094_v39 = vshll.u32 %v16753_v55, %v6085_v59  ;;  %v6102_v42 = vor.u32 %v6101_v47, %v6100_v15 }
 0x69a   : > { %17036 = vst [vmem:[#allocation24_spill] sm:$0xff] %v14056_v25  ;;  %v14093_v58 = vand.u32 65535, %v14056_v25  ;;  %v17043_v37 = vand.u32 2147483647, %v14023_v2  ;;  %v14097_v56 = vor.u32 %v6089_v26, %v6088_v35  ;;  %v14099_v62 = vor.u32 %v6092_v49, %v6091_v52 }
 0x69b   : > { %17037 = vst [vmem:[#allocation31_spill] sm:$0xff] %v14061_v4  ;;  %v6233_v28 = vand.u32 8388607, %v17041_v48  ;;  %vm6237_vm15 = vcmp.gt.s32.totalorder %v6236_v54, 0  ;;  %v7015_v61 = vand.u32 31, %v7013_v13  ;;  %v14101_v50 = vor.u32 %v6095_v7, %v6094_v39 }
 0x69c   : > { %17038 = vst [vmem:[#allocation47_spill] sm:$0xff] %v14065_v27  ;;  %v7163_v41 = vand.u32 8388607, %v17043_v37  ;;  %vm16607_vm14 = vcmp.lt.s32.totalorder %v14065_v27, 4  ;;  %v8582_v48 = vadd.s32 4294967169, %v7160_v63  ;;  %v6694_v59 = vand.u32 2139095040, %v13962_v24 }
 0x69d   : > { %17040 = vst [vmem:[#allocation43_spill] sm:$0xff] %v14086_v6  ;;  %v14108_v15 = vsel %vm16665_vm6, %v13996_v20, %v6581_v8  ;;  %v6112_v26 = vsel %vm16607_vm14, %v6099_v12, 920167782  ;;  %v6234_v37 = vor.u32 8388608, %v6233_v28  ;;  %v14112_v52 = vshll.u32 %v7009_v31, 8 }
 0x69e   : > { %17042 = vst [vmem:[#allocation19_spill] sm:$0xff] %v14093_v58  ;;  %vm16608_vm8 = vcmp.lt.s32.totalorder %v14065_v27, 1  ;;  %v6116_v7 = vsel %vm16607_vm14, %v6102_v42, 1326507024  ;;  %v6238_v39 = vsel %vm6237_vm15, %v6236_v54, 0  ;;  %v7164_v63 = vor.u32 8388608, %v7163_v41 }
 0x69f   : > { %17044 = vst [vmem:[#allocation66_spill] sm:$0xff] %v14097_v56  ;;  %vm16604_vm10 = vcmp.lt.s32.totalorder %v14065_v27, 3  ;;  %v14122_v20 = vsel %vm16608_vm8, %v14097_v56, %v14099_v62  ;;  %v14125_v32 = vshrl.u32 %v14056_v25, 16  ;;  %v14127_v28 = vsub.s32 32, %v7015_v61 }
 0x6a0   : > { %17045 = vst [vmem:[#allocation67_spill] sm:$0xff] %v14099_v62  ;;  %v14132_v31 = vsel %vm16604_vm10, %v14101_v50, %v6112_v26  ;;  %v14138_v42 = vsel %vm16608_vm8, %v14099_v62, %v14101_v50  ;;  %v7166_v8 = vadd.s32 1, %v8582_v48  ;;  %v6695_v49 = vshrl.u32 %v6694_v59, 23  ;;  %v5671_v48 = vpop.f32.mrf.mxu0 }
 0x6a1   : > { %17046 = vst [vmem:[#allocation68_spill] sm:$0xff] %v14101_v50  ;;  %v14142_v33 = vsel %vm16604_vm10, %v6099_v12, %v6116_v7  ;;  %v6240_v35 = vand.u32 31, %v6238_v39  ;;  %v14144_v47 = vshll.u32 %v6234_v37, 8  ;;  %v14147_v54 = vand.u32 65535, %v14112_v52 }
 0x6a2   : > { %17047 = vst [vmem:[#allocation69_spill] sm:$0xff] %v14108_v15  ;;  %v14149_v41 = vshrl.u32 %v7013_v13, 5  ;;  %v7018_v26 = vshll.u32 %v16751_v22, %v7015_v61  ;;  %v14153_v34 = vshrl.u32 %v14112_v52, 16  ;;  %v14155_v25 = vshll.u32 %v7164_v63, 8 }
 0x6a3   : > { %17048 = vst [vmem:[#allocation70_spill] sm:$0xff] %v14112_v52  ;;  %v7019_v12 = vshrl.u32 %v16752_v44, %v14127_v28  ;;  %v7021_v59 = vshll.u32 %v16752_v44, %v7015_v61  ;;  %v7022_v37 = vshrl.u32 %v16753_v55, %v14127_v28  ;;  %v7025_v13 = vshrl.u32 %v16754_v14, %v14127_v28 }
 0x6a4   : > { %17049 = vst [vmem:[#allocation71_spill] sm:$0xff] %v14122_v20  ;;  %v7028_v7 = vshrl.u32 %v16900_v16, %v14127_v28  ;;  %v7031_v62 = vshrl.u32 %v16911_v43, %v14127_v28  ;;  %vm7167_vm15 = vcmp.gt.s32.totalorder %v7166_v8, 0  ;;  %v8573_v63 = vadd.s32 4294967169, %v6695_v49 }
 0x6a5   : > { %17050 = vst [vmem:[#allocation72_spill] sm:$0xff] %v14125_v32  ;;  %v14168_v50 = vsub.s32 32, %v6240_v35  ;;  %v14171_v56 = vand.u32 65535, %v14144_v47  ;;  %v7024_v32 = vshll.u32 %v16753_v55, %v7015_v61  ;;  %v14175_v58 = vadd.f32 %v5671_v48, %v13764_v23 }
 0x6a6   : > { %17051 = vst [vmem:[#allocation73_spill] sm:$0xff] %v14127_v28  ;;  %v14177_v20 = vshrl.u32 %v6238_v39, 5  ;;  %v14184_v49 = vor.u32 %v7019_v12, %v7018_v26  ;;  %v14186_v27 = vor.u32 %v7022_v37, %v7021_v59  ;;  %vm7033_vm10 = vcmp.lt.s32.totalorder %v14149_v41, 1 }
 0x6a7   : > { %17052 = vst [vmem:[#allocation74_spill] sm:$0xff] %v14132_v31  ;;  %v14180_v31 = vshrl.u32 %v14144_v47, 16  ;;  %v14188_v17 = vor.u32 %v7025_v13, %v7024_v32  ;;  %v6701_v39 = vadd.s32 1, %v8573_v63  ;;  %v6243_v48 = vshll.u32 %v16751_v22, %v6240_v35 }
 0x6a8   : > { %17053 = vst [vmem:[#allocation75_spill] sm:$0xff] %v14138_v42  ;;  %v7027_v42 = vshll.u32 %v16754_v14, %v7015_v61  ;;  %v6247_v26 = vshrl.u32 %v16753_v55, %v14168_v50  ;;  %v6249_v32 = vshll.u32 %v16753_v55, %v6240_v35  ;;  %v14205_v12 = vshll.u32 %v16900_v16, %v6240_v35 }
 0x6a9   : > { %17054 = vst [vmem:[#allocation76_spill] sm:$0xff] %v14142_v33  ;;  %v7030_v33 = vshll.u32 %v16900_v16, %v7015_v61  ;;  %v7624_v61 = vand.u32 2139095040, %v14175_v58  ;;  %v14209_v59 = vshrl.u32 %v16911_v43, %v14168_v50  ;;  %vm7036_vm14 = vcmp.lt.s32.totalorder %v14149_v41, 4 }
 0x6aa   : > { %17055 = vst [vmem:[#allocation77_spill] sm:$0xff] %v14144_v47  ;;  %v7029_v18 = vor.u32 %v7028_v7, %v7027_v42  ;;  %v6244_v47 = vshrl.u32 %v16752_v44, %v14168_v50  ;;  %vm6702_vm8 = vcmp.gt.s32.totalorder %v6701_v39, 0  ;;  %v6849_v37 = vand.u32 2139095040, %v14086_v6 }
 0x6ab   : > { %17056 = vst [vmem:[#allocation78_spill] sm:$0xff] %v14147_v54  ;;  %v7032_v10 = vor.u32 %v7031_v62, %v7030_v33  ;;  %v6250_v62 = vshrl.u32 %v16754_v14, %v14168_v50  ;;  %v6253_v33 = vshrl.u32 %v16900_v16, %v14168_v50  ;;  %v16615_v63 = vand.u32 2147483647, %v13962_v24 }
 0x6ac   : > { %17057 = vst [vmem:[#allocation79_spill] sm:$0xff] %v14153_v34  ;;  %v14214_v13 = vor.u32 %v6244_v47, %v6243_v48  ;;  %v7042_v7 = vsel %vm7036_vm14, %v7029_v18, 920167782  ;;  %v14235_v48 = vsel %vm7033_vm10, %v14184_v49, %v14186_v27  ;;  %v14278_v15 = vshrl.u32 %v14155_v25, 16 }
 0x6ad   : > { %17058 = vst [vmem:[#allocation80_spill] sm:$0xff] %v14155_v25  ;;  %v14221_v38 = vor.u32 %v6250_v62, %v6249_v32  ;;  %v17082_v53 = vand.u32 2147483647, %v14086_v6 }
 0x6ae   : > { %17059 = vst [vmem:[#allocation81_spill] sm:$0xff] %v14168_v50  ;;  %v7046_v50 = vsel %vm7036_vm14, %v7032_v10, 1326507024  ;;  %v14246_v10 = vsel %vm7033_vm10, %v14186_v27, %v14188_v17 }
 0x6af   : > { %17060 = vst [vmem:[#allocation82_spill] sm:$0xff] %v14171_v56  ;;  %v7168_v56 = vsel %vm7167_vm15, %v7166_v8, 0  ;;  %v6252_v8 = vshll.u32 %v16754_v14, %v6240_v35  ;;  %vm7035_vm15 = vcmp.lt.s32.totalorder %v14149_v41, 3  ;;  %v6853_v2 = vand.u32 8388607, %v17082_v53 }
 0x6b0   : > { %17061 = vst [vmem:[#allocation83_spill] sm:$0xff] %v14175_v58  ;;  %v7170_v42 = vand.u32 31, %v7168_v56  ;;  %v14250_v62 = vsel %vm7035_vm15, %v7029_v18, %v7046_v50 }
 0x6b1   : > { %17062 = vst [vmem:[#allocation84_spill] sm:$0xff] %v14177_v20  ;;  %v14227_v57 = vor.u32 %v6253_v33, %v6252_v8  ;;  %v14252_v8 = vshrl.u32 %v7168_v56, 5  ;;  %v6698_v33 = vand.u32 8388607, %v16615_v63 }
 0x6b2   : > { %17063 = vst [vmem:[#allocation85_spill] sm:$0xff] %v14180_v31  ;;  %v6246_v31 = vshll.u32 %v16752_v44, %v6240_v35  ;;  %v7625_v35 = vshrl.u32 %v7624_v61, 23  ;;  %v14225_v40 = vsub.s32 32, %v7170_v42  ;;  %v14240_v61 = vsel %vm7035_vm15, %v14188_v17, %v7042_v7  ;;  %v5700_v7 = vpop.f32.mrf.mxu1 }
 0x6b3   : > { %17064 = vst [vmem:[#allocation86_spill] sm:$0xff] %v14184_v49  ;;  %v7173_v56 = vshll.u32 %v16751_v22, %v7170_v42  ;;  %v7176_v63 = vshll.u32 %v16752_v44, %v7170_v42  ;;  %v6699_v5 = vor.u32 8388608, %v6698_v33  ;;  %vm7188_vm1 = vcmp.lt.s32.totalorder %v14252_v8, 1 }
 0x6b4   : > { %17065 = vst [vmem:[#allocation87_spill] sm:$0xff] %v14186_v27  ;;  %v14219_v20 = vor.u32 %v6247_v26, %v6246_v31  ;;  %v6703_v31 = vsel %vm6702_vm8, %v6701_v39, 0  ;;  %v6850_v26 = vshrl.u32 %v6849_v37, 23  ;;  %v8591_v32 = vadd.s32 4294967169, %v7625_v35 }
 0x6b5   : > { %17066 = vst [vmem:[#allocation88_spill] sm:$0xff] %v14188_v17  ;;  %v14255_v39 = vand.u32 65535, %v14155_v25  ;;  %v7174_v47 = vshrl.u32 %v16752_v44, %v14225_v40  ;;  %v7177_v37 = vshrl.u32 %v16753_v55, %v14225_v40  ;;  %v7183_v35 = vshrl.u32 %v16900_v16, %v14225_v40 }
 0x6b6   : > { %17067 = vst [vmem:[#allocation89_spill] sm:$0xff] %v14205_v12  ;;  %v6705_v18 = vand.u32 31, %v6703_v31  ;;  %v7180_v50 = vshrl.u32 %v16754_v14, %v14225_v40  ;;  %v8576_v24 = vadd.s32 4294967169, %v6850_v26  ;;  %v14272_v12 = vadd.f32 %v5700_v7, %v13764_v23 }
 0x6b7   : > { %17068 = vst [vmem:[#allocation90_spill] sm:$0xff] %v14209_v59  ;;  %v7179_v59 = vshll.u32 %v16753_v55, %v7170_v42  ;;  %v14280_v4 = vor.u32 %v7174_v47, %v7173_v56  ;;  %v7185_v7 = vshll.u32 %v16900_v16, %v7170_v42  ;;  %vm7190_vm2 = vcmp.lt.s32.totalorder %v14252_v8, 3 }
 0x6b8   : > { %17069 = vst [vmem:[#allocation91_spill] sm:$0xff] %v14214_v13  ;;  %v7631_v13 = vadd.s32 1, %v8591_v32  ;;  %v14282_v32 = vor.u32 %v7177_v37, %v7176_v63  ;;  %v14284_v11 = vsub.s32 32, %v6705_v18  ;;  %v6856_v60 = vadd.s32 1, %v8576_v24 }
 0x6b9   : > { %17070 = vst [vmem:[#allocation92_spill] sm:$0xff] %v14219_v20  ;;  %v7182_v20 = vshll.u32 %v16754_v14, %v7170_v42  ;;  %v14286_v26 = vor.u32 %v7180_v50, %v7179_v59  ;;  %v7779_v47 = vand.u32 2139095040, %v14272_v12  ;;  %vm7191_vm0 = vcmp.lt.s32.totalorder %v14252_v8, 4 }
 0x6ba   : > { %17071 = vst [vmem:[#allocation93_spill] sm:$0xff] %v14221_v38  ;;  %vm7632_vm8 = vcmp.gt.s32.totalorder %v7631_v13, 0  ;;  %v14302_v53 = vsel %vm7188_vm1, %v14280_v4, %v14282_v32  ;;  %v6718_v42 = vshrl.u32 %v16900_v16, %v14284_v11  ;;  %v6721_v37 = vshrl.u32 %v16911_v43, %v14284_v11 }
 0x6bb   : > { %17072 = vst [vmem:[#allocation94_spill] sm:$0xff] %v14225_v40  ;;  %v7184_v38 = vor.u32 %v7183_v35, %v7182_v20  ;;  %v14296_v20 = vshll.u32 %v6699_v5, 8  ;;  %v7633_v59 = vsel %vm7632_vm8, %v7631_v13, 0  ;;  %v6717_v5 = vshll.u32 %v16754_v14, %v6705_v18 }
 0x6bc   : > { %17073 = vst [vmem:[#allocation95_spill] sm:$0xff] %v14227_v57  ;;  %v7186_v57 = vshrl.u32 %v16911_v43, %v14225_v40  ;;  %v6854_v35 = vor.u32 8388608, %v6853_v2  ;;  %v6709_v56 = vshrl.u32 %v16752_v44, %v14284_v11  ;;  %v6712_v50 = vshrl.u32 %v16753_v55, %v14284_v11 }
 0x6bd   : > { %17074 = vst [vmem:[#allocation96_spill] sm:$0xff] %v14252_v8  ;;  %v7197_v24 = vsel %vm7191_vm0, %v7184_v38, 920167782  ;;  %vm6857_vm7 = vcmp.gt.s32.totalorder %v6856_v60, 0  ;;  %v7780_v13 = vshrl.u32 %v7779_v47, 23  ;;  %v6715_v33 = vshrl.u32 %v16754_v14, %v14284_v11 }
 0x6be   : > { %17075 = vst [vmem:[#allocation97_spill] sm:$0xff] %v14255_v39  ;;  %v7187_v63 = vor.u32 %v7186_v57, %v7185_v7  ;;  %v14312_v57 = vsel %vm7188_vm1, %v14282_v32, %v14286_v26  ;;  %v14321_v7 = vshrl.u32 %v6703_v31, 5  ;;  %v6720_v6 = vshll.u32 %v16900_v16, %v6705_v18 }
 0x6bf   : > { %17076 = vst [vmem:[#allocation98_spill] sm:$0xff] %v14272_v12  ;;  %v14326_v45 = vand.u32 31, %v7633_v59  ;;  %v6708_v19 = vshll.u32 %v16751_v22, %v6705_v18  ;;  %v6711_v46 = vshll.u32 %v16752_v44, %v6705_v18  ;;  %v6719_v29 = vor.u32 %v6718_v42, %v6717_v5 }
 0x6c0   : > { %17077 = vst [vmem:[#allocation99_spill] sm:$0xff] %v14278_v15  ;;  %v7201_v2 = vsel %vm7191_vm0, %v7187_v63, 1326507024  ;;  %v6714_v25 = vshll.u32 %v16753_v55, %v6705_v18  ;;  %v6722_v47 = vor.u32 %v6721_v37, %v6720_v6  ;;  %v6858_v31 = vsel %vm6857_vm7, %v6856_v60, 0 }
 0x6c1   : > { %17078 = vst [vmem:[#allocation100_spill] sm:$0xff] %v14280_v4  ;;  %v8594_v3 = vadd.s32 4294967169, %v7780_v13  ;;  %v14338_v51 = vor.u32 %v6709_v56, %v6708_v19  ;;  %v14340_v36 = vor.u32 %v6712_v50, %v6711_v46  ;;  %v14342_v63 = vshll.u32 %v6854_v35, 8 }
 0x6c2   : > { %17079 = vst [vmem:[#allocation101_spill] sm:$0xff] %v14282_v32  ;;  %v14344_v30 = vor.u32 %v6715_v33, %v6714_v25  ;;  %vm16641_vm8 = vcmp.lt.s32.totalorder %v14321_v7, 4  ;;  %v14348_v18 = vand.u32 65535, %v14296_v20  ;;  %v14351_v6 = vsub.s32 32, %v14326_v45 }
 0x6c3   : > { %17080 = vst [vmem:[#allocation102_spill] sm:$0xff] %v14284_v11  ;;  %v14336_v11 = vsel %vm7190_vm2, %v14286_v26, %v7197_v24  ;;  %v14355_v60 = vsel %vm7190_vm2, %v7184_v38, %v7201_v2  ;;  %v6732_v46 = vsel %vm16641_vm8, %v6719_v29, 920167782  ;;  %v6860_v19 = vand.u32 31, %v6858_v31 }
 0x6c4   : > { %17081 = vst [vmem:[#allocation103_spill] sm:$0xff] %v14286_v26  ;;  %v7786_v24 = vadd.s32 1, %v8594_v3  ;;  %vm16658_vm7 = vcmp.lt.s32.totalorder %v14321_v7, 1  ;;  %v6736_v25 = vsel %vm16641_vm8, %v6722_v47, 1326507024  ;;  %v14363_v33 = vshrl.u32 %v14296_v20, 16 }
 0x6c5   : > { %17083 = vst [vmem:[#allocation104_spill] sm:$0xff] %v14296_v20  ;;  %v17095_v42 = vand.u32 2147483647, %v14175_v58  ;;  %vm16653_vm4 = vcmp.lt.s32.totalorder %v14321_v7, 3  ;;  %v14372_v38 = vsel %vm16658_vm7, %v14338_v51, %v14340_v36  ;;  %v14375_v3 = vand.u32 65535, %v14342_v63 }
 0x6c6   : > { %17084 = vst [vmem:[#allocation105_spill] sm:$0xff] %v14302_v53  ;;  %v14378_v37 = vshrl.u32 %v14342_v63, 16  ;;  %v14383_v35 = vsel %vm16653_vm4, %v14344_v30, %v6732_v46  ;;  %v14389_v56 = vsel %vm16658_vm7, %v14340_v36, %v14344_v30  ;;  %v14391_v50 = vshrl.u32 %v6858_v31, 5 }
 0x6c7   : > { %17085 = vst [vmem:[#allocation106_spill] sm:$0xff] %v14312_v57  ;;  %v7628_v5 = vand.u32 8388607, %v17095_v42  ;;  %v7651_v13 = vshrl.u32 %v16911_v43, %v14351_v6  ;;  %v14397_v2 = vsel %vm16653_vm4, %v6719_v29, %v6736_v25  ;;  %v14399_v47 = vsub.s32 32, %v6860_v19 }
 0x6c8   : > { %17086 = vst [vmem:[#allocation107_spill] sm:$0xff] %v14321_v7  ;;  %v6863_v46 = vshll.u32 %v16751_v22, %v6860_v19  ;;  %vm7787_vm8 = vcmp.gt.s32.totalorder %v7786_v24, 0  ;;  %v6866_v42 = vshll.u32 %v16752_v44, %v6860_v19  ;;  %v7645_v31 = vshrl.u32 %v16754_v14, %v14351_v6 }
 0x6c9   : > { %17087 = vst [vmem:[#allocation108_spill] sm:$0xff] %v14336_v11  ;;  %v7650_v20 = vshll.u32 %v16900_v16, %v14326_v45  ;;  %v6872_v29 = vshll.u32 %v16754_v14, %v6860_v19  ;;  %v7642_v25 = vshrl.u32 %v16753_v55, %v14351_v6  ;;  %v6873_v9 = vshrl.u32 %v16900_v16, %v14399_v47 }
 0x6ca   : > { %17088 = vst [vmem:[#allocation109_spill] sm:$0xff] %v14338_v51  ;;  %v7637_v4 = vshrl.u32 %v16751_v22, %v14351_v6  ;;  %vm16674_vm6 = vcmp.lt.s32.totalorder %v14391_v50, 4 }
 0x6cb   : > { %17089 = vst [vmem:[#allocation110_spill] sm:$0xff] %v14340_v36  ;;  %v14416_v36 = vshll.u32 %v16900_v16, %v6860_v19  ;;  %v7652_v51 = vor.u32 %v7651_v13, %v7650_v20 }
 0x6cc   : > { %17090 = vst [vmem:[#allocation111_spill] sm:$0xff] %v14342_v63  ;;  %v14403_v63 = vshrl.u32 %v7633_v59, 5  ;;  %v7644_v59 = vshll.u32 %v16753_v55, %v14326_v45 }
 0x6cd   : > { %17091 = vst [vmem:[#allocation112_spill] sm:$0xff] %v14344_v30  ;;  %v7788_v30 = vsel %vm7787_vm8, %v7786_v24, 0  ;;  %vm16675_vm8 = vcmp.lt.s32.totalorder %v14391_v50, 1 }
 0x6ce   : > { %17092 = vst [vmem:[#allocation113_spill] sm:$0xff] %v14348_v18  ;;  %v7629_v18 = vor.u32 8388608, %v7628_v5  ;;  %v7646_v7 = vor.u32 %v7645_v31, %v7644_v59  ;;  %vm7656_vm4 = vcmp.lt.s32.totalorder %v14403_v63, 4  ;;  %v14431_v5 = vand.u32 31, %v7788_v30 }
 0x6cf   : > { %17093 = vst [vmem:[#allocation114_spill] sm:$0xff] %v14355_v60  ;;  %v7638_v31 = vshll.u32 %v16751_v22, %v14326_v45  ;;  %v7666_v59 = vsel %vm7656_vm4, %v7652_v51, 1326507024  ;;  %vm7653_vm7 = vcmp.lt.s32.totalorder %v14403_v63, 1  ;;  %vm7655_vm5 = vcmp.lt.s32.totalorder %v14403_v63, 3 }
 0x6d0   : > { %17094 = vst [vmem:[#allocation115_spill] sm:$0xff] %v14363_v33  ;;  %v5726_v33 = vpop.f32.mrf.mxu2  ;;  %vm7654_vm12 = vcmp.lt.s32.totalorder %v14403_v63, 2 }
 0x6d1   : > { %17096 = vst [vmem:[#allocation116_spill] sm:$0xff] %v14372_v38  ;;  %v7641_v38 = vshll.u32 %v16752_v44, %v14326_v45  ;;  %v14434_v13 = vadd.f32 %v5726_v33, %v13893_v0  ;;  %v14448_v33 = vshll.u32 %v7629_v18, 8  ;;  %v14461_v18 = vsub.s32 32, %v14431_v5 }
 0x6d2   : > { %17097 = vst [vmem:[#allocation117_spill] sm:$0xff] %v14375_v3  ;;  %v7648_v3 = vshrl.u32 %v16900_v16, %v14351_v6 }
 0x6d3   : > { %17098 = vst [vmem:[#allocation118_spill] sm:$0xff] %v14378_v37  ;;  %v6869_v37 = vshll.u32 %v16753_v55, %v6860_v19  ;;  %v7639_v19 = vshrl.u32 %v16752_v44, %v14351_v6  ;;  %v7643_v20 = vor.u32 %v7642_v25, %v7641_v38  ;;  %v6870_v38 = vshrl.u32 %v16754_v14, %v14399_v47 }
 0x6d4   : > { %17099 = vst [vmem:[#allocation119_spill] sm:$0xff] %v14383_v35  ;;  %v7647_v35 = vshll.u32 %v16754_v14, %v14326_v45  ;;  %v7658_v45 = vsel %vm7656_vm4, %v7646_v7, 2102212464  ;;  %v7794_v63 = vshrl.u32 %v16752_v44, %v14461_v18 }
 0x6d5   : > { %17100 = vst [vmem:[#allocation120_spill] sm:$0xff] %v14389_v56  ;;  %v6867_v56 = vshrl.u32 %v16753_v55, %v14399_v47  ;;  %v7640_v1 = vor.u32 %v7639_v19, %v7638_v31  ;;  %v7665_v51 = vsel %vm7653_vm7, %v7643_v20, %v7646_v7  ;;  %v14468_v31 = vor.u32 %v6873_v9, %v6872_v29 }
 0x6d6   : > { %17101 = vst [vmem:[#allocation121_spill] sm:$0xff] %v14391_v50  ;;  %v7649_v24 = vor.u32 %v7648_v3, %v7647_v35  ;;  %v6876_v3 = vshrl.u32 %v16911_v43, %v14399_v47  ;;  %v17105_v35 = vand.u32 2147483647, %v14272_v12  ;;  %v14472_v26 = vor.u32 %v6870_v38, %v6869_v37 }
 0x6d7   : > { %17102 = vst [vmem:[#allocation122_spill] sm:$0xff] %v14397_v2  ;;  %v6864_v2 = vshrl.u32 %v16752_v44, %v14399_v47  ;;  %v14466_v19 = vor.u32 %v6867_v56, %v6866_v42  ;;  %v7659_v56 = vsel %vm7655_vm5, %v7643_v20, %v7658_v45  ;;  %v14488_v37 = vand.u32 65535, %v14448_v33 }
 0x6d8   : > { %17103 = vst [vmem:[#allocation123_spill] sm:$0xff] %v14399_v47  ;;  %v7783_v25 = vand.u32 8388607, %v17105_v35  ;;  %v7667_v32 = vsel %vm7655_vm5, %v7649_v24, %v7666_v59  ;;  %v7314_v47 = vand.u32 2139095040, %v14434_v13  ;;  %v6877_v40 = vor.u32 %v6876_v3, %v14416_v36 }
 0x6d9   : > { %17104 = vst [vmem:[#allocation124_spill] sm:$0xff] %v14434_v13  ;;  %v14464_v35 = vor.u32 %v6864_v2, %v6863_v46  ;;  %v7657_v59 = vsel %vm7653_vm7, %v7637_v4, %v7640_v1  ;;  %v7662_v9 = vsel %vm7656_vm4, %v7649_v24, 920167782  ;;  %v14485_v6 = vsel %vm7654_vm12, %v7665_v51, %v7667_v32  ;;  %v5755_v51 = vpop.f32.mrf.mxu3 }
 0x6da   : > { %17107 = vst [vmem:[#allocation126_spill] sm:$0xff] %v14466_v19  ;;  %v7784_v36 = vor.u32 8388608, %v7783_v25  ;;  %v7806_v2 = vshrl.u32 %v16911_v43, %v14461_v18  ;;  %v7315_v46 = vshrl.u32 %v7314_v47, 23  ;;  %v14501_v42 = vsel %vm16674_vm6, %v14468_v31, 920167782 }
 0x6db   : > { %17106 = vst [vmem:[#allocation125_spill] sm:$0xff] %v14464_v35  ;;  %v14496_v4 = vsel %vm16675_vm8, %v14464_v35, %v14466_v19  ;;  %v7661_v32 = vsel %vm7653_vm7, %v7640_v1, %v7643_v20  ;;  %v14506_v29 = vshrl.u32 %v14448_v33, 16  ;;  %v14510_v47 = vsel %vm7654_vm12, %v7657_v59, %v7659_v56  ;;  %v5729_v19 = vpop.f32.mrf.mxu2 }
 0x6dc   : > { %17108 = vst [vmem:[#allocation127_spill] sm:$0xff] %v14468_v31  ;;  %v7663_v24 = vsel %vm7655_vm5, %v7646_v7, %v7662_v9  ;;  %v7673_v38 = vshrl.u32 %v14485_v6, 16  ;;  %v7805_v3 = vshll.u32 %v16900_v16, %v14431_v5  ;;  %v14517_v25 = vshrl.u32 %v7788_v30, 5 }
 0x6dd   : > { %17109 = vst [vmem:[#allocation128_spill] sm:$0xff] %v14472_v26  ;;  %v7797_v1 = vshrl.u32 %v16753_v55, %v14461_v18  ;;  %v7800_v20 = vshrl.u32 %v16754_v14, %v14461_v18  ;;  %v7803_v45 = vshrl.u32 %v16900_v16, %v14461_v18  ;;  %v14527_v7 = vsel %vm16674_vm6, %v6877_v40, 1326507024 }
 0x6de   : > { %17110 = vst [vmem:[#allocation129_spill] sm:$0xff] %v14496_v4  ;;  %v7807_v59 = vor.u32 %v7806_v2, %v7805_v3  ;;  %v14529_v56 = vshll.u32 %v7784_v36, 8  ;;  %v8585_v9 = vadd.s32 4294967169, %v7315_v46  ;;  %v7664_v30 = vsel %vm7654_vm12, %v7661_v32, %v7663_v24 }
 0x6df   : > { %17111 = vst [vmem:[#allocation130_spill] sm:$0xff] %v14501_v42  ;;  %v7796_v35 = vshll.u32 %v16752_v44, %v14431_v5  ;;  %v7799_v4 = vshll.u32 %v16753_v55, %v14431_v5  ;;  %v7802_v31 = vshll.u32 %v16754_v14, %v14431_v5  ;;  %v14540_v40 = vmul.u32 %v7673_v38, %v14488_v37 }
 0x6e0   : > { %17112 = vst [vmem:[#allocation131_spill] sm:$0xff] %v14527_v7  ;;  %v14547_v2 = vadd.f32 %v5755_v51, %v13893_v0  ;;  %vm7811_vm4 = vcmp.lt.s32.totalorder %v14517_v25, 4  ;;  %v7793_v3 = vshll.u32 %v16751_v22, %v14431_v5  ;;  %v7321_v26 = vadd.s32 1, %v8585_v9 }
 0x6e1   : > { %17113 = vst [vmem:[#allocation132_spill] sm:$0xff] %v14529_v56  ;;  %v7798_v46 = vor.u32 %v7797_v1, %v7796_v35  ;;  %v7801_v32 = vor.u32 %v7800_v20, %v7799_v4  ;;  %v7804_v24 = vor.u32 %v7803_v45, %v7802_v31  ;;  %v7821_v7 = vsel %vm7811_vm4, %v7807_v59, 1326507024 }
 0x6e2   : > { %17114 = vst [vmem:[#allocation133_spill] sm:$0xff] %v14547_v2  ;;  %v14555_v36 = vadd.f32 %v5729_v19, %v13764_v23  ;;  %v7672_v42 = vand.u32 65535, %v14485_v6  ;;  %v7694_v50 = vand.u32 65535, %v7664_v30  ;;  %v7695_v0 = vshrl.u32 %v7664_v30, 16 }
 0x6e3   : > { %v7825_v35 = vand.u32 65535, %v14529_v56  ;;  %v7795_v4 = vor.u32 %v7794_v63, %v7793_v3  ;;  %vm7808_vm5 = vcmp.lt.s32.totalorder %v14517_v25, 1  ;;  %vm7810_vm12 = vcmp.lt.s32.totalorder %v14517_v25, 3 }
 0x6e4   : > { %17115 = vst [vmem:[#allocation134_spill] sm:$0xff] %v14555_v36  ;;  %v7678_v31 = vshll.u32 %v14540_v40, 16  ;;  %v7817_v1 = vsel %vm7811_vm4, %v7804_v24, 920167782  ;;  %v7820_v19 = vsel %vm7808_vm5, %v7798_v46, %v7801_v32  ;;  %v7822_v6 = vsel %vm7810_vm12, %v7804_v24, %v7821_v7 }
 0x6e5   : > { %v7826_v20 = vshrl.u32 %v14529_v56, 16  ;;  %vm7322_vm7 = vcmp.gt.s32.totalorder %v7321_v26, 0  ;;  %v7469_v45 = vand.u32 2139095040, %v14547_v2  ;;  %v7934_v51 = vand.u32 2139095040, %v14555_v36 }
 0x6e6   : > { %v7674_v59 = vmul.u32 %v7672_v42, %v14488_v37  ;;  %v7792_v9 = vshrl.u32 %v16751_v22, %v14461_v18  ;;  %vm7809_vm6 = vcmp.lt.s32.totalorder %v14517_v25, 2  ;;  %v7813_v30 = vsel %vm7811_vm4, %v7801_v32, 2102212464 }
 0x6e7   : > { %v7816_v7 = vsel %vm7808_vm5, %v7795_v4, %v7798_v46  ;;  %v7818_v63 = vsel %vm7810_vm12, %v7801_v32, %v7817_v1  ;;  %v7823_v24 = vsel %vm7809_vm6, %v7820_v19, %v7822_v6  ;;  %v7935_v3 = vshrl.u32 %v7934_v51, 23 }
 0x6e8   : > { %v14585_v5 = vmul.u32 %v7672_v42, %v14506_v29  ;;  %vm7682_vm8 = vc.u32 %v7674_v59, %v7678_v31  ;;  %v17116_v18 = vand.u32 2147483647, %v14434_v13  ;;  %v7323_v11 = vsel %vm7322_vm7, %v7321_v26, 0 }
 0x6e9   : > { %v7812_v15 = vsel %vm7808_vm5, %v7792_v9, %v7795_v4  ;;  %v7814_v39 = vsel %vm7810_vm12, %v7798_v46, %v7813_v30  ;;  %v7470_v52 = vshrl.u32 %v7469_v45, 23  ;;  %v8597_v32 = vadd.s32 4294967169, %v7935_v3 }
 0x6ea   : > { %v7318_v53 = vand.u32 8388607, %v17116_v18  ;;  %v7677_v1 = vmul.u32 %v7673_v38, %v14506_v29  ;;  %v14595_v19 = vmul.u32 %v7694_v50, %v14488_v37  ;;  %v7819_v42 = vsel %vm7809_vm6, %v7816_v7, %v7818_v63 }
 0x6eb   : > { %v7828_v6 = vshrl.u32 %v7823_v24, 16  ;;  %v14600_v51 = vmul.u32 %v7695_v0, %v14488_v37  ;;  %v14603_v26 = vmul.u32 %v7694_v50, %v14506_v29  ;;  %v7827_v4 = vand.u32 65535, %v7823_v24 }
 0x6ec   : > { %v7325_v9 = vand.u32 31, %v7323_v11  ;;  %v7683_v46 = vsel %vm7682_vm8, 1, %v16760_v21  ;;  %v14607_v45 = vmul.u32 %v7695_v0, %v14506_v29  ;;  %v14611_v38 = vsel %vm7809_vm6, %v7812_v15, %v7814_v39 }
 0x6ed   : > { %17117 = vst [vmem:[#allocation135_spill] sm:$0xff] %v14611_v38  ;;  %v7319_v30 = vor.u32 8388608, %v7318_v53  ;;  %v7849_v7 = vand.u32 65535, %v7819_v42  ;;  %v7850_v63 = vshrl.u32 %v7819_v42, 16  ;;  %v8588_v3 = vadd.s32 4294967169, %v7470_v52 }
 0x6ee   : > { %v7941_v37 = vadd.s32 1, %v8597_v32  ;;  %v14614_v50 = vadd.s32 %v7678_v31, %v7674_v59  ;;  %v14616_v24 = vmul.u32 %v7828_v6, %v7825_v35  ;;  %v16681_v13 = vand.u32 2147483647, %v14547_v2 }
 0x6ef   : > { %v14619_v57 = vadd.s32 %v7683_v46, %v7677_v1  ;;  %v14621_v29 = vmul.u32 %v7827_v4, %v7826_v20  ;;  %v14625_v39 = vsub.s32 32, %v7325_v9  ;;  %v7829_v53 = vmul.u32 %v7827_v4, %v7825_v35 }
 0x6f0   : > { %v7832_v52 = vmul.u32 %v7828_v6, %v7826_v20  ;;  %v14627_v25 = vshll.u32 %v7319_v30, 8  ;;  %v16684_v0 = vand.u32 2147483647, %v14555_v36  ;;  %v14630_v31 = vmul.u32 %v7849_v7, %v7825_v35  ;;  %v5758_v6 = vpop.f32.mrf.mxu3 }
 0x6f1   : > { %17118 = vst [vmem:[#allocation136_spill] sm:$0xff] %v14625_v39  ;;  %v14632_v59 = vmul.u32 %v7850_v63, %v7825_v35  ;;  %v7476_v32 = vadd.s32 1, %v8588_v3  ;;  %vm7942_vm6 = vcmp.gt.s32.totalorder %v7941_v37, 0  ;;  %v7833_v1 = vshll.u32 %v14616_v24, 16 }
 0x6f2   : > { %17119 = vst [vmem:[#allocation137_spill] sm:$0xff] %v14627_v25  ;;  %v14635_v42 = vmul.u32 %v7849_v7, %v7826_v20  ;;  %v14637_v46 = vmul.u32 %v7850_v63, %v7826_v20  ;;  %v7473_v4 = vand.u32 8388607, %v16681_v13  ;;  %v14642_v15 = vshrl.u32 %v7323_v11, 5 }
 0x6f3   : > { %v7338_v35 = vshrl.u32 %v16900_v16, %v14625_v39  ;;  %v7341_v3 = vshrl.u32 %v16911_v43, %v14625_v39  ;;  %v7337_v18 = vshll.u32 %v16754_v14, %v7325_v9  ;;  %v7340_v7 = vshll.u32 %v16900_v16, %v7325_v9 }
 0x6f4   : > { %17120 = vst [vmem:[#allocation138_spill] sm:$0xff] %v14642_v15  ;;  %v7938_v20 = vand.u32 8388607, %v16684_v0  ;;  %v7943_v63 = vsel %vm7942_vm6, %v7941_v37, 0  ;;  %v7329_v13 = vshrl.u32 %v16752_v44, %v14625_v39  ;;  %v7332_v11 = vshrl.u32 %v16753_v55, %v14625_v39 }
 0x6f5   : > { %vm7477_vm8 = vcmp.gt.s32.totalorder %v7476_v32, 0  ;;  %v14657_v30 = vadd.f32 %v5758_v6, %v13764_v23  ;;  %vm14659_vm4 = vc.u32 %v7829_v53, %v7833_v1  ;;  %v7328_v60 = vshll.u32 %v16751_v22, %v7325_v9 }
 0x6f6   : > { %v7335_v0 = vshrl.u32 %v16754_v14, %v14625_v39  ;;  %v7474_v37 = vor.u32 8388608, %v7473_v4  ;;  %v7331_v36 = vshll.u32 %v16752_v44, %v7325_v9  ;;  %v7339_v8 = vor.u32 %v7338_v35, %v7337_v18 }
 0x6f7   : > { %17121 = vst [vmem:[#allocation139_spill] sm:$0xff] %v14657_v30  ;;  %v7342_v27 = vor.u32 %v7341_v3, %v7340_v7  ;;  %v7945_v12 = vand.u32 31, %v7943_v63  ;;  %v7334_v49 = vshll.u32 %v16753_v55, %v7325_v9  ;;  %v14669_v23 = vand.u32 65535, %v14627_v25 }
 0x6f8   : > { %v7478_v6 = vsel %vm7477_vm8, %v7476_v32, 0  ;;  %v7939_v17 = vor.u32 8388608, %v7938_v20  ;;  %v14671_v28 = vor.u32 %v7329_v13, %v7328_v60  ;;  %v14673_v58 = vor.u32 %v7332_v11, %v7331_v36 }
 0x6f9   : > { %17124 = vst [vmem:[#allocation140_spill] sm:$0xff] %v14669_v23  ;;  %v14676_v38 = vshrl.u32 %v14627_v25, 16  ;;  %v16698_v4 = vand.u32 2147483647, %v14657_v30  ;;  %v7838_v18 = vsel %vm14659_vm4, 1, %v16760_v21  ;;  %v14682_v35 = vor.u32 %v7335_v0, %v7334_v49 }
 0x6fa   : > { %17125 = vst [vmem:[#allocation141_spill] sm:$0xff] %v14671_v28  ;;  %vm16719_vm5 = vcmp.lt.s32.totalorder %v14642_v15, 4  ;;  %v14685_v9 = vshll.u32 %v7474_v37, 8  ;;  %v7480_v36 = vand.u32 31, %v7478_v6  ;;  %v7946_v32 = vsub.s32 32, %v7945_v12 }
 0x6fb   : > { %17126 = vst [vmem:[#allocation142_spill] sm:$0xff] %v14673_v58  ;;  %v7352_v60 = vsel %vm16719_vm5, %v7339_v8, 920167782  ;;  %v7356_v13 = vsel %vm16719_vm5, %v7342_v27, 1326507024  ;;  %v14691_v3 = vadd.s32 %v7833_v1, %v7829_v53  ;;  %vm16722_vm12 = vcmp.lt.s32.totalorder %v14642_v15, 1 }
 0x6fc   : > { %17127 = vst [vmem:[#allocation143_spill] sm:$0xff] %v14676_v38  ;;  %v14694_v2 = vshll.u32 %v7939_v17, 8  ;;  %v8089_v49 = vand.u32 2139095040, %v14657_v30  ;;  %v14697_v0 = vadd.s32 %v7838_v18, %v7832_v52  ;;  %vm16718_vm7 = vcmp.lt.s32.totalorder %v14642_v15, 3 }
 0x6fd   : > { %17128 = vst [vmem:[#allocation144_spill] sm:$0xff] %v14682_v35  ;;  %v14704_v7 = vsel %vm16722_vm12, %v14671_v28, %v14673_v58  ;;  %v14708_v27 = vand.u32 8388607, %v16698_v4  ;;  %v14713_v17 = vsel %vm16718_vm7, %v14682_v35, %v7352_v60  ;;  %v14719_v53 = vsel %vm16722_vm12, %v14673_v58, %v14682_v35 }
 0x6fe   : > { %17129 = vst [vmem:[#allocation145_spill] sm:$0xff] %v14685_v9  ;;  %v14723_v52 = vsel %vm16718_vm7, %v7339_v8, %v7356_v13  ;;  %v14726_v1 = vand.u32 65535, %v14685_v9  ;;  %v14728_v20 = vshrl.u32 %v7478_v6, 5  ;;  %v14730_v11 = vsub.s32 32, %v7480_v36 }
 0x6ff   : > { %17130 = vst [vmem:[#allocation146_spill] sm:$0xff] %v14694_v2  ;;  %v14733_v37 = vshrl.u32 %v14685_v9, 16  ;;  %v7961_v18 = vshrl.u32 %v16911_v43, %v7946_v32  ;;  %v7955_v60 = vshrl.u32 %v16754_v14, %v7946_v32  ;;  %v14738_v4 = vand.u32 65535, %v14694_v2 }
 0x700   : > { %17131 = vst [vmem:[#allocation147_spill] sm:$0xff] %v14704_v7  ;;  %v14741_v8 = vshrl.u32 %v14694_v2, 16  ;;  %v8090_v13 = vshrl.u32 %v8089_v49, 23  ;;  %v7486_v6 = vshll.u32 %v16752_v44, %v7480_v36  ;;  %v7960_v25 = vshll.u32 %v16900_v16, %v7945_v12 }
 0x701   : > { %17132 = vst [vmem:[#allocation148_spill] sm:$0xff] %v14713_v17  ;;  %v8094_v9 = vor.u32 8388608, %v14708_v27  ;;  %v7952_v30 = vshrl.u32 %v16753_v55, %v7946_v32  ;;  %v7954_v58 = vshll.u32 %v16753_v55, %v7945_v12  ;;  %v7958_v38 = vshrl.u32 %v16900_v16, %v7946_v32 }
 0x702   : > { %17133 = vst [vmem:[#allocation149_spill] sm:$0xff] %v14719_v53  ;;  %v7489_v35 = vshll.u32 %v16753_v55, %v7480_v36  ;;  %v7493_v49 = vshrl.u32 %v16900_v16, %v14730_v11  ;;  %v7949_v28 = vshrl.u32 %v16752_v44, %v7946_v32  ;;  %v7962_v23 = vor.u32 %v7961_v18, %v7960_v25 }
 0x703   : > { %17134 = vst [vmem:[#allocation150_spill] sm:$0xff] %v14723_v52  ;;  %v7951_v7 = vshll.u32 %v16752_v44, %v7945_v12  ;;  %v7956_v17 = vor.u32 %v7955_v60, %v7954_v58  ;;  %v7957_v27 = vshll.u32 %v16754_v14, %v7945_v12  ;;  %v7492_v39 = vshll.u32 %v16754_v14, %v7480_v36 }
 0x704   : > { %17135 = vst [vmem:[#allocation151_spill] sm:$0xff] %v14726_v1  ;;  %v7483_v1 = vshll.u32 %v16751_v22, %v7480_v36  ;;  %v7495_v53 = vshll.u32 %v16900_v16, %v7480_v36  ;;  %v7496_v52 = vshrl.u32 %v16911_v43, %v14730_v11  ;;  %v7948_v15 = vshll.u32 %v16751_v22, %v7945_v12 }
 0x705   : > { %17136 = vst [vmem:[#allocation152_spill] sm:$0xff] %v14728_v20  ;;  %v7484_v56 = vshrl.u32 %v16752_v44, %v14730_v11  ;;  %vm7498_vm6 = vcmp.lt.s32.totalorder %v14728_v20, 1  ;;  %v7953_v25 = vor.u32 %v7952_v30, %v7951_v7  ;;  %v7959_v18 = vor.u32 %v7958_v38, %v7957_v27 }
 0x706   : > { %17137 = vst [vmem:[#allocation153_spill] sm:$0xff] %v14730_v11  ;;  %v7487_v58 = vshrl.u32 %v16753_v55, %v14730_v11  ;;  %v7490_v60 = vshrl.u32 %v16754_v14, %v14730_v11  ;;  %v7950_v36 = vor.u32 %v7949_v28, %v7948_v15  ;;  %v7494_v16 = vor.u32 %v7493_v49, %v7492_v39 }
 0x707   : > { %17138 = vst [vmem:[#allocation154_spill] sm:$0xff] %v14733_v37  ;;  %v7944_v37 = vshrl.u32 %v7943_v63, 5  ;;  %v8600_v63 = vadd.s32 4294967169, %v8090_v13  ;;  %vm7501_vm4 = vcmp.lt.s32.totalorder %v14728_v20, 4  ;;  %v7497_v34 = vor.u32 %v7496_v52, %v7495_v53 }
 0x708   : > { %v7947_v54 = vshrl.u32 %v16751_v22, %v7946_v32  ;;  %v14770_v38 = vor.u32 %v7484_v56, %v7483_v1  ;;  %v14772_v55 = vor.u32 %v7487_v58, %v7486_v6  ;;  %v14774_v11 = vor.u32 %v7490_v60, %v7489_v35 }
 0x709   : > { %vm7966_vm8 = vcmp.lt.s32.totalorder %v7944_v37, 4  ;;  %v8096_v43 = vadd.s32 1, %v8600_v63  ;;  %vm7963_vm7 = vcmp.lt.s32.totalorder %v7944_v37, 1  ;;  %vm7965_vm5 = vcmp.lt.s32.totalorder %v7944_v37, 3 }
 0x70a   : > { %v7976_v13 = vsel %vm7966_vm8, %v7962_v23, 1326507024  ;;  %v7968_v12 = vsel %vm7966_vm8, %v7956_v17, 2102212464  ;;  %17139 = vst [vmem:[#allocation155_spill] sm:$0xff] %v14770_v38  ;;  %v7975_v7 = vsel %vm7963_vm7, %v7953_v25, %v7956_v17  ;;  %v7967_v28 = vsel %vm7963_vm7, %v7947_v54, %v7950_v36 }
 0x70b   : > { %v7972_v30 = vsel %vm7966_vm8, %v7959_v18, 920167782  ;;  %v7977_v27 = vsel %vm7965_vm5, %v7959_v18, %v7976_v13  ;;  %17140 = vst [vmem:[#allocation156_spill] sm:$0xff] %v14772_v55  ;;  %v7969_v15 = vsel %vm7965_vm5, %v7953_v25, %v7968_v12  ;;  %v7507_v39 = vsel %vm7501_vm4, %v7494_v16, 920167782 }
 0x70c   : > { %17141 = vst [vmem:[#allocation157_spill] sm:$0xff] %v14774_v11  ;;  %vm7964_vm12 = vcmp.lt.s32.totalorder %v7944_v37, 2  ;;  %vm8097_vm9 = vcmp.gt.s32.totalorder %v8096_v43, 0  ;;  %v17142_v23 = vshll.u32 %v14585_v5, 16  ;;  %v7511_v56 = vsel %vm7501_vm4, %v7497_v34, 1326507024 }
 0x70d   : > { %v7971_v32 = vsel %vm7963_vm7, %v7950_v36, %v7953_v25  ;;  %v7973_v53 = vsel %vm7965_vm5, %v7956_v17, %v7972_v30  ;;  %v7978_v52 = vsel %vm7964_vm12, %v7975_v7, %v7977_v27  ;;  %vm16728_vm8 = vcmp.lt.s32.totalorder %v14728_v20, 3  ;;  %v17170_v20 = vld [vmem:[#allocation96_spill] sm:$0xff] }
 0x70e   : > { %vm7686_vm11 = vc.u32 %v14614_v50, %v17142_v23  ;;  %v14786_v54 = vsel %vm7964_vm12, %v7967_v28, %v7969_v15  ;;  %v7700_v1 = vshll.u32 %v14600_v51, 16  ;;  %v14794_v50 = vsel %vm7498_vm6, %v14770_v38, %v14772_v55 }
 0x70f   : > { %17143 = vst [vmem:[#allocation158_spill] sm:$0xff] %v14786_v54  ;;  %v7687_v35 = vsel %vm7686_vm11, 1, %v16760_v21  ;;  %v14800_v34 = vsel %vm7498_vm6, %v14772_v55, %v14774_v11  ;;  %v8098_v17 = vsel %vm8097_vm9, %v8096_v43, 0  ;;  %v14802_v6 = vshll.u32 %v8094_v9, 8  ;;  %v17157_v55 = vld [vmem:[#allocation83_spill] sm:$0xff] }
 0x710   : > { %17144 = vst [vmem:[#allocation159_spill] sm:$0xff] %v14794_v50  ;;  %v14807_v49 = vsel %vm16728_vm8, %v14774_v11, %v7507_v39  ;;  %v14811_v63 = vsel %vm16728_vm8, %v7494_v16, %v7511_v56  ;;  %v14814_v25 = vsel %vm7964_vm12, %v7971_v32, %v7973_v53  ;;  %v7982_v18 = vand.u32 65535, %v7978_v52 }
 0x711   : > { %17145 = vst [vmem:[#allocation160_spill] sm:$0xff] %v14800_v34  ;;  %v7983_v58 = vshrl.u32 %v7978_v52, 16  ;;  %v7679_v43 = vshrl.u32 %v14540_v40, 16  ;;  %v7689_v9 = vadd.s32 %v7687_v35, %v14619_v57  ;;  %v14820_v36 = vshrl.u32 %v8098_v17, 5 }
 0x712   : > { %17146 = vst [vmem:[#allocation161_spill] sm:$0xff] %v14807_v49  ;;  %v7702_v13 = vshll.u32 %v14603_v26, 16  ;;  %vm7704_vm11 = vc.u32 %v14595_v19, %v7700_v1  ;;  %v7706_v16 = vadd.s32 %v7700_v1, %v14595_v19  ;;  %v16726_v37 = vand.u32 65535, %v14814_v25 }
 0x713   : > { %17147 = vst [vmem:[#allocation162_spill] sm:$0xff] %v14811_v63  ;;  %v16725_v12 = vshrl.u32 %v14814_v25, 16  ;;  %v7690_v30 = vadd.s32 %v7689_v9, %v7679_v43  ;;  %v7705_v7 = vsel %vm7704_vm11, 1, %v16760_v21  ;;  %v14829_v27 = vmul.u32 %v7982_v18, %v14738_v4 }
 0x714   : > { %v14831_v40 = vand.u32 31, %v8098_v17  ;;  %v7707_v57 = vadd.s32 %v7705_v7, %v14607_v45  ;;  %vm7708_vm9 = vc.u32 %v7706_v16, %v7702_v13  ;;  %v14835_v28 = vmul.u32 %v7983_v58, %v14738_v4 }
 0x715   : > { %v14838_v19 = vmul.u32 %v7982_v18, %v14741_v8  ;;  %v7681_v15 = vshrl.u32 %v14585_v5, 16  ;;  %v7709_v39 = vsel %vm7708_vm9, 1, %v16760_v21  ;;  %v7701_v23 = vshrl.u32 %v14600_v51, 16 }
 0x716   : > { %v7711_v56 = vadd.s32 %v7709_v39, %v7707_v57  ;;  %v17148_v32 = vshll.u32 %v14621_v29, 16  ;;  %v7855_v45 = vshll.u32 %v14632_v59, 16  ;;  %v14848_v53 = vmul.u32 %v7983_v58, %v14741_v8 }
 0x717   : > { %v14853_v52 = vmul.u32 %v16726_v37, %v14738_v4  ;;  %v14855_v5 = vadd.s32 %v7690_v30, %v7681_v15  ;;  %v7703_v51 = vshrl.u32 %v14603_v26, 16  ;;  %v7834_v17 = vshrl.u32 %v14616_v24, 16 }
 0x718   : > { %vm7841_vm5 = vc.u32 %v14691_v3, %v17148_v32  ;;  %v7712_v1 = vadd.s32 %v7711_v56, %v7701_v23  ;;  %v14861_v18 = vadd.s32 %v7706_v16, %v7702_v13  ;;  %v7857_v58 = vshll.u32 %v14635_v42, 16 }
 0x719   : > { %v7842_v35 = vsel %vm7841_vm5, 1, %v16760_v21  ;;  %vm7859_vm12 = vc.u32 %v14630_v31, %v7855_v45  ;;  %v7861_v43 = vadd.s32 %v7855_v45, %v14630_v31  ;;  %v14869_v9 = vmul.u32 %v16725_v12, %v14738_v4 }
 0x71a   : > { %v7844_v3 = vadd.s32 %v7842_v35, %v14697_v0  ;;  %v7713_v30 = vadd.s32 %v7712_v1, %v7703_v51  ;;  %v7860_v7 = vsel %vm7859_vm12, 1, %v16760_v21  ;;  %vm7716_vm7 = vc.u32 %v14855_v5, %v14861_v18 }
 0x71b   : > { %v7862_v0 = vadd.s32 %v7860_v7, %v14637_v46  ;;  %vm7863_vm11 = vc.u32 %v7861_v43, %v7857_v58  ;;  %v7836_v31 = vshrl.u32 %v14621_v29, 16  ;;  %vm7034_vm9 = vcmp.lt.s32.totalorder %v14149_v41, 2 }
 0x71c   : > { %v7845_v26 = vadd.s32 %v7844_v3, %v7834_v17  ;;  %v7717_v13 = vadd.s32 1, %v7713_v30  ;;  %v7864_v16 = vsel %vm7863_vm11, 1, %v16760_v21  ;;  %v7856_v4 = vshrl.u32 %v14632_v59, 16  ;;  %v17151_v17 = vld [vmem:[#allocation78_spill] sm:$0xff] }
 0x71d   : > { %v7866_v57 = vadd.s32 %v7864_v16, %v7862_v0  ;;  %v14884_v15 = vsel %vm7034_vm9, %v14235_v48, %v14240_v61  ;;  %v7048_v46 = vsel %vm7034_vm9, %v14246_v10, %v14250_v62  ;;  %v8101_v29 = vsub.s32 32, %v14831_v40 }
 0x71e   : > { %v7718_v39 = vsel %vm7716_vm7, %v7717_v13, %v7713_v30  ;;  %v14891_v23 = vadd.s32 %v7845_v26, %v7836_v31  ;;  %v7858_v56 = vshrl.u32 %v14635_v42, 16  ;;  %v17149_v59 = vmul.u32 %v14448_v33, %v14510_v47 }
 0x71f   : > { %v7867_v45 = vadd.s32 %v7866_v57, %v7856_v4  ;;  %v7052_v35 = vand.u32 65535, %v7048_v46  ;;  %v7053_v48 = vshrl.u32 %v7048_v46, 16  ;;  %v8103_v61 = vshll.u32 %v16751_v22, %v14831_v40 }
 0x720   : > { %v7719_v32 = vadd.s32 %v7718_v39, %v17149_v59  ;;  %v14901_v10 = vshll.u32 %v16752_v44, %v14831_v40  ;;  %v14903_v62 = vadd.s32 %v7861_v43, %v7857_v58  ;;  %v7075_v51 = vshrl.u32 %v14884_v15, 16  ;;  %v17152_v58 = vld [vmem:[#allocation79_spill] sm:$0xff] }
 0x721   : > { %v17150_v42 = vmov 2131351028   ;;  %v7868_v47 = vadd.s32 %v7867_v45, %v7858_v56  ;;  %v14911_v3 = vmul.u32 %v7053_v48, %v17151_v17  ;;  %v14915_v30 = vshll.u32 %v16754_v14, %v14831_v40 }
 0x722   : > { %v14908_v1 = vshll.u32 %v17150_v42, %v14831_v40  ;;  %v7720_v33 = vadd.s32 536870912, %v7719_v32  ;;  %vm7871_vm5 = vc.u32 %v14891_v23, %v14903_v62  ;;  %v14920_v43 = vmul.u32 %v7052_v35, %v17152_v58 }
 0x723   : > { %v14923_v26 = vmul.u32 %v7075_v51, %v17151_v17  ;;  %v7872_v0 = vadd.s32 1, %v7868_v47  ;;  %v7054_v13 = vmul.u32 %v7052_v35, %v17151_v17  ;;  %v7058_v31 = vshll.u32 %v14911_v3, 16  ;;  %v17155_v35 = vld [vmem:[#allocation135_spill] sm:$0xff] }
 0x724   : > { %v7721_v7 = vshrl.u32 %v7720_v33, 30  ;;  %v14928_v16 = vshrl.u32 %v16751_v22, %v8101_v29  ;;  %v8104_v4 = vshrl.u32 %v16752_v44, %v8101_v29  ;;  %v17153_v57 = vmov 920167782   ;;  %v17154_v33 = vld [vmem:[#allocation132_spill] sm:$0xff] }
 0x725   : > { %v14933_v46 = vshll.u32 %v17153_v57, %v14831_v40  ;;  %v7074_v39 = vand.u32 65535, %v14884_v15  ;;  %v7873_v59 = vsel %vm7871_vm5, %v7872_v0, %v7868_v47  ;;  %v7060_v45 = vshll.u32 %v14920_v43, 16 }
 0x726   : > { %v7722_v56 = vshll.u32 %v7721_v7, 30  ;;  %vm7062_vm12 = vc.u32 %v7054_v13, %v7058_v31  ;;  %v17156_v60 = vmul.u32 %v17154_v33, %v17155_v35  ;;  %v7064_v24 = vadd.s32 %v7058_v31, %v7054_v13 }
 0x727   : > { %v7063_v37 = vsel %vm7062_vm12, 1, %v16760_v21  ;;  %v7080_v44 = vshll.u32 %v14923_v26, 16  ;;  %vm7623_vm7 = vcmp.lt.s32.totalorder %v17157_v55, 0  ;;  %v14944_v40 = vshrl.u32 %v17150_v42, %v8101_v29 }
 0x728   : > { %v7874_v12 = vadd.s32 %v7873_v59, %v17156_v60  ;;  %v14947_v15 = vshrl.u32 %v16754_v14, %v8101_v29  ;;  %v7723_v47 = vsub.s32 %v7719_v32, %v7722_v56  ;;  %v7057_v0 = vmul.u32 %v7053_v48, %v17152_v58 }
 0x729   : > { %v14951_v50 = vshrl.u32 %v17153_v57, %v8101_v29  ;;  %vm7066_vm11 = vc.u32 %v7064_v24, %v7060_v45  ;;  %v7076_v13 = vmul.u32 %v7074_v39, %v17151_v17  ;;  %v14955_v33 = vmul.u32 %v7074_v39, %v17152_v58  ;;  %v17161_v17 = vld [vmem:[#allocation73_spill] sm:$0xff] }
 0x72a   : > { %v7875_v60 = vadd.s32 536870912, %v7874_v12  ;;  %vm7724_vm5 = vcmp.lt.s32.totalorder %v7723_v47, 0  ;;  %v7725_v31 = vsub.s32 0, %v7723_v47  ;;  %v7065_v59 = vadd.s32 %v7063_v37, %v7057_v0  ;;  %v17162_v37 = vld [vmem:[#allocation88_spill] sm:$0xff] }
 0x72b   : > { %v14957_v42 = vor.u32 %v8104_v4, %v8103_v61  ;;  %v17158_v14 = vand.u32 2147483647, %v17157_v55  ;;  %v7067_v57 = vsel %vm7066_vm11, 1, %v16760_v21  ;;  %vm7084_vm8 = vc.u32 %v7076_v13, %v7080_v44 }
 0x72c   : > { %v7876_v48 = vshrl.u32 %v7875_v60, 30  ;;  %v7726_v24 = vsel %vm7724_vm5, %v7725_v31, %v7723_v47  ;;  %v7017_v56 = vshrl.u32 %v16751_v22, %v17161_v17  ;;  %v7038_v39 = vsel %vm7036_vm14, %v17162_v37, 2102212464  ;;  %v17164_v37 = vld [vmem:[#allocation86_spill] sm:$0xff] }
 0x72d   : > { %vm14961_vm12 = vcmp.le.f32.partialorder %v17158_v14, 0.7853982  ;;  %v7086_v61 = vadd.s32 %v7080_v44, %v7076_v13  ;;  %v7727_v4 = vclz %v7726_v24  ;;  %v7745_v45 = vsub.s32 4, %v7721_v7  ;;  %v17165_v13 = vld [vmem:[#allocation98_spill] sm:$0xff]  ;;  %v17166_v24 = vld [vmem:[#allocation87_spill] sm:$0xff] }
 0x72e   : > { %v7877_v35 = vshll.u32 %v7876_v48, 30  ;;  %v7085_v0 = vsel %vm7084_vm8, 1, %v16760_v21  ;;  %v17163_v14 = vmov 1326507024   ;;  %v7069_v60 = vadd.s32 %v7067_v57, %v7065_v59 }
 0x72f   : > { %v14973_v49 = vshrl.u32 %v17163_v14, %v8101_v29  ;;  %v7079_v11 = vmul.u32 %v7075_v51, %v17152_v58  ;;  %v7082_v31 = vshll.u32 %v14955_v33, 16  ;;  %v7715_v17 = vadd.s32 %v14861_v18, %v14855_v5 }
 0x730   : > { %v8592_v38 = vadd.s32 4294967294, %v7727_v4  ;;  %v7878_v34 = vsub.s32 %v7874_v12, %v7877_v35  ;;  %v7037_v44 = vsel %vm7033_vm10, %v7017_v56, %v17164_v37  ;;  %vm7778_vm14 = vcmp.lt.s32.totalorder %v17165_v13, 0 }
 0x731   : > { %v7039_v29 = vsel %vm7035_vm15, %v17166_v24, %v7038_v39  ;;  %v7059_v59 = vshrl.u32 %v14911_v3, 16  ;;  %v7087_v51 = vadd.s32 %v7085_v0, %v7079_v11  ;;  %vm7088_vm8 = vc.u32 %v7086_v61, %v7082_v31 }
 0x732   : > { %vm8593_vm11 = vcmp.lt.s32.totalorder %v8592_v38, 0  ;;  %v7746_v5 = vsel %vm7623_vm7, %v7745_v45, %v7721_v7  ;;  %vm7879_vm5 = vcmp.lt.s32.totalorder %v7878_v34, 0  ;;  %v7880_v12 = vsub.s32 0, %v7878_v34 }
 0x733   : > { %v7730_v18 = vsel %vm8593_vm11, 0, %v8592_v38  ;;  %v7870_v58 = vadd.s32 %v14903_v62, %v14891_v23  ;;  %v7070_v57 = vadd.s32 %v7069_v60, %v7059_v59  ;;  %v7089_v56 = vsel %vm7088_vm8, 1, %v16760_v21 }
 0x734   : > { %v7731_v4 = vsub.s32 32, %v7730_v18  ;;  %v7735_v35 = vsub.s32 4294967266, %v7730_v18  ;;  %v7881_v39 = vsel %vm7879_vm5, %v7880_v12, %v7878_v34  ;;  %v7061_v3 = vshrl.u32 %v14920_v43, 16 }
 0x735   : > { %v7748_v11 = vsel %vm14961_vm12, 0, %v7746_v5  ;;  %v17167_v0 = vand.u32 2147483647, %v17165_v13  ;;  %v7882_v38 = vclz %v7881_v39  ;;  %v7081_v23 = vshrl.u32 %v14923_v26, 16 }
 0x736   : > { %v7091_v62 = vadd.s32 %v7089_v56, %v7087_v51  ;;  %v7732_v45 = vshll.u32 %v7723_v47, %v7730_v18  ;;  %v7733_v14 = vshrl.u32 %v7715_v17, %v7731_v4  ;;  %v7736_v60 = vadd.s32 127, %v7735_v35  ;;  %v17171_v51 = vld [vmem:[#allocation114_spill] sm:$0xff] }
 0x737   : > { %vm14997_vm10 = vcmp.le.f32.partialorder %v17167_v0, 0.7853982  ;;  %v7900_v37 = vsub.s32 4, %v7876_v48  ;;  %v8595_v24 = vadd.s32 4294967294, %v7882_v38  ;;  %v7040_v43 = vsel %vm7034_vm9, %v7037_v44, %v7039_v29  ;;  %v17172_v47 = vld [vmem:[#allocation106_spill] sm:$0xff] }
 0x738   : > { %v7071_v59 = vadd.s32 %v7070_v57, %v7061_v3  ;;  %v7083_v5 = vshrl.u32 %v14955_v33, 16  ;;  %v7734_v12 = vor.u32 %v7733_v14, %v7732_v45  ;;  %v7737_v0 = vshll.u32 %v7736_v60, 23 }
 0x739   : > { %v7092_v63 = vadd.s32 %v7091_v62, %v7081_v23  ;;  %vm7189_vm15 = vcmp.lt.s32.totalorder %v17170_v20, 2  ;;  %v7765_v39 = vadd.s32 3, %v7748_v11  ;;  %vm8596_vm8 = vcmp.lt.s32.totalorder %v8595_v24, 0  ;;  %v17173_v23 = vld [vmem:[#allocation70_spill] sm:$0xff]  ;;  %v17187_v20 = vld [vmem:[#allocation49_spill] sm:$0xff] }
 0x73a   : > { %v7090_v26 = vadd.s32 %v7086_v61, %v7082_v31  ;;  %v7203_v17 = vsel %vm7189_vm15, %v17172_v47, %v17171_v51  ;;  %v7738_v18 = vor.u32 4788187, %v7737_v0  ;;  %v7885_v56 = vsel %vm8596_vm8, 0, %v8595_v24 }
 0x73b   : > { %v7901_v41 = vsel %vm7778_vm14, %v7900_v37, %v7876_v48  ;;  %v7093_v44 = vadd.s32 %v7092_v63, %v7083_v5  ;;  %v7741_v33 = vcvt.s32.f32 %v7734_v12  ;;  %v7886_v29 = vsub.s32 32, %v7885_v56  ;;  %v17174_v48 = vld [vmem:[#allocation97_spill] sm:$0xff]  ;;  %v17175_v12 = vld [vmem:[#allocation99_spill] sm:$0xff] }
 0x73c   : > { %v7890_v57 = vsub.s32 4294967266, %v7885_v56  ;;  %vm7096_vm9 = vc.u32 %v7071_v59, %v7090_v26  ;;  %v7739_v4 = vand.u32 2147483647, %v7738_v18  ;;  %v7207_v3 = vand.u32 65535, %v7203_v17 }
 0x73d   : > { %v7097_v35 = vadd.s32 1, %v7093_v44  ;;  %v7208_v11 = vshrl.u32 %v7203_v17, 16  ;;  %v7887_v61 = vshll.u32 %v7878_v34, %v7885_v56  ;;  %v7888_v31 = vshrl.u32 %v7870_v58, %v7886_v29  ;;  %v17176_v56 = vld [vmem:[#allocation108_spill] sm:$0xff] }
 0x73e   : > { %v7891_v38 = vadd.s32 127, %v7890_v57  ;;  %v7094_v62 = vmul.u32 %v17173_v23, %v7040_v43  ;;  %v7742_v45 = vmul.f32 %v7741_v33, %v7739_v4  ;;  %v7903_v14 = vsel %vm14997_vm10, 0, %v7901_v41  ;;  %v17177_v41 = vld [vmem:[#allocation105_spill] sm:$0xff] }
 0x73f   : > { %v7098_v60 = vsel %vm7096_vm9, %v7097_v35, %v7093_v44  ;;  %v15016_v63 = vmul.u32 %v7208_v11, %v17174_v48  ;;  %v7889_v37 = vor.u32 %v7888_v31, %v7887_v61  ;;  %v15019_v0 = vmul.u32 %v7207_v3, %v17175_v12 }
 0x740   : > { %v7892_v24 = vshll.u32 %v7891_v38, 23  ;;  %v7099_v5 = vadd.s32 %v7098_v60, %v7094_v62  ;;  %v7743_v51 = vxor.u32 2147483648, %v7742_v45  ;;  %v15021_v34 = vand.u32 3, %v7765_v39 }
 0x741   : > { %v7209_v58 = vmul.u32 %v7207_v3, %v17174_v48  ;;  %v7213_v43 = vshll.u32 %v15016_v63, 16  ;;  %v7920_v17 = vadd.s32 3, %v7903_v14  ;;  %v15029_v44 = vsel %vm7189_vm15, %v17177_v41, %v17176_v56  ;;  %v17180_v41 = vld [vmem:[#allocation100_spill] sm:$0xff] }
 0x742   : > { %v7893_v47 = vor.u32 4788187, %v7892_v24  ;;  %v7100_v18 = vadd.s32 536870912, %v7099_v5  ;;  %v7744_v33 = vsel %vm7623_vm7, %v7743_v51, %v7742_v45  ;;  %v7896_v29 = vcvt.s32.f32 %v7889_v37  ;;  %v17178_v24 = vld [vmem:[#allocation94_spill] sm:$0xff] }
 0x743   : > { %vm7217_vm11 = vc.u32 %v7209_v58, %v7213_v43  ;;  %v7219_v39 = vadd.s32 %v7213_v43, %v7209_v58  ;;  %v15036_v57 = vsel %vm14961_vm12, %v17157_v55, %v7744_v33  ;;  %v7215_v3 = vshll.u32 %v15019_v0, 16 }
 0x744   : > { %v7894_v4 = vand.u32 2147483647, %v7893_v47  ;;  %v15038_v35 = vshrl.u32 %v7100_v18, 30  ;;  %v7749_v61 = vmul.f32 %v15036_v57, %v15036_v57  ;;  %v15043_v31 = vadd.s32 %v7090_v26, %v7071_v59  ;;  %v17179_v26 = vld [vmem:[#allocation103_spill] sm:$0xff] }
 0x745   : > { %v7218_v38 = vsel %vm7217_vm11, 1, %v16760_v21  ;;  %v7230_v23 = vshrl.u32 %v15029_v44, 16  ;;  %v7212_v32 = vmul.u32 %v7208_v11, %v17175_v12  ;;  %vm7221_vm7 = vc.u32 %v7219_v39, %v7215_v3 }
 0x746   : > { %v7897_v62 = vmul.f32 %v7896_v29, %v7894_v4  ;;  %v7102_v45 = vshll.u32 %v15038_v35, 30  ;;  %v7750_v14 = vmul.f32 -0.001358992, %v7749_v61  ;;  %v7757_v60 = vmul.f32 -0.00019511016, %v7749_v61 }
 0x747   : > { %v15049_v37 = vand.u32 3, %v7920_v17  ;;  %v7172_v51 = vshrl.u32 %v16751_v22, %v17178_v24  ;;  %v7193_v43 = vsel %vm7191_vm0, %v17179_v26, 2102212464  ;;  %v7220_v47 = vadd.s32 %v7218_v38, %v7212_v32  ;;  %v17181_v32 = vld [vmem:[#allocation101_spill] sm:$0xff] }
 0x748   : > { %v7898_v58 = vxor.u32 2147483648, %v7897_v62  ;;  %v15053_v59 = vsub.s32 %v7099_v5, %v7102_v45  ;;  %v7751_v18 = vadd.f32 0.041655596, %v7750_v14  ;;  %v7758_v56 = vadd.f32 0.008332121, %v7757_v60 }
 0x749   : > { %v15061_v11 = vsel %vm7188_vm1, %v7172_v51, %v17180_v41  ;;  %v7222_v17 = vsel %vm7221_vm7, 1, %v16760_v21  ;;  %v15069_v29 = vmul.u32 %v7230_v23, %v17174_v48  ;;  %v7229_v38 = vand.u32 65535, %v15029_v44 }
 0x74a   : > { %v7899_v33 = vsel %vm7778_vm14, %v7898_v58, %v7897_v62  ;;  %vm7104_vm12 = vcmp.lt.s32.totalorder %v15053_v59, 0  ;;  %v7105_v5 = vsub.s32 0, %v15053_v59  ;;  %v7752_v39 = vmul.f32 %v7751_v18, %v7749_v61 }
 0x74b   : > { %v7759_v4 = vmul.f32 %v7758_v56, %v7749_v61  ;;  %v15074_v3 = vsel %vm14997_vm10, %v17165_v13, %v7899_v33  ;;  %v15083_v14 = vsel %vm7190_vm2, %v17181_v32, %v7193_v43  ;;  %v7224_v60 = vadd.s32 %v7222_v17, %v7220_v47 }
 0x74c   : > { %v7904_v45 = vmul.f32 %v15074_v3, %v15074_v3  ;;  %v7106_v62 = vsel %vm7104_vm12, %v7105_v5, %v15053_v59  ;;  %v7753_v24 = vadd.f32 -0.4999988, %v7752_v39  ;;  %v7214_v7 = vshrl.u32 %v15016_v63, 16 }
 0x74d   : > { %v7760_v51 = vadd.f32 -0.16666654, %v7759_v4  ;;  %v7107_v58 = vclz %v7106_v62  ;;  %vm7768_vm0 = vcmp.eq.s32.totalorder %v15021_v34, 0  ;;  %vm7771_vm1 = vcmp.eq.s32.totalorder %v15021_v34, 2 }
 0x74e   : > { %v7905_v44 = vmul.f32 -0.001358992, %v7904_v45  ;;  %v7912_v26 = vmul.f32 -0.00019511016, %v7904_v45  ;;  %v7216_v18 = vshrl.u32 %v15019_v0, 16  ;;  %v7235_v56 = vshll.u32 %v15069_v29, 16 }
 0x74f   : > { %v7754_v41 = vmul.f32 %v7753_v24, %v7749_v61  ;;  %v7761_v33 = vmul.f32 %v7760_v51, %v7749_v61  ;;  %vm7767_vm2 = vcmp.lt.s32.totalorder %v15021_v34, 2  ;;  %v8580_v43 = vadd.s32 4294967294, %v7107_v58 }
 0x750   : > { %v15092_v47 = vmul.u32 %v7229_v38, %v17175_v12  ;;  %vm7764_vm14 = vweird.f32 %v17157_v55  ;;  %v7906_v63 = vadd.f32 0.041655596, %v7905_v44  ;;  %v7913_v17 = vadd.f32 0.008332121, %v7912_v26  ;;  %v17182_v44 = vld [vmem:[#allocation23_spill] sm:$0xff] }
 0x751   : > { %v7225_v5 = vadd.s32 %v7224_v60, %v7214_v7  ;;  %v7231_v39 = vmul.u32 %v7229_v38, %v17174_v48  ;;  %v7755_v4 = vadd.f32 1.0, %v7754_v41  ;;  %v7762_v62 = vadd.f32 1.0, %v7761_v33 }
 0x752   : > { %vm8581_vm5 = vcmp.lt.s32.totalorder %v8580_v43, 0  ;;  %v7234_v0 = vmul.u32 %v7230_v23, %v17175_v12  ;;  %v7907_v32 = vmul.f32 %v7906_v63, %v7904_v45  ;;  %v7914_v61 = vmul.f32 %v7913_v17, %v7904_v45 }
 0x753   : > { %v7110_v24 = vsel %vm8581_vm5, 0, %v8580_v43  ;;  %vm7239_vm10 = vc.u32 %v7231_v39, %v7235_v56  ;;  %v7763_v51 = vmul.f32 %v7762_v62, %v15036_v57  ;;  %v7772_v58 = vxor.u32 2147483648, %v7755_v4 }
 0x754   : > { %v7111_v54 = vsub.s32 32, %v7110_v24  ;;  %v7237_v2 = vshll.u32 %v15092_v47, 16  ;;  %vm7003_vm8 = vcmp.lt.s32.totalorder %v17182_v44, 0  ;;  %v7908_v60 = vadd.f32 -0.4999988, %v7907_v32 }
 0x755   : > { %v7915_v7 = vadd.f32 -0.16666654, %v7914_v61  ;;  %v7115_v48 = vsub.s32 4294967266, %v7110_v24  ;;  %v7240_v38 = vsel %vm7239_vm10, 1, %v16760_v21  ;;  %v7769_v26 = vxor.u32 2147483648, %v7763_v51 }
 0x756   : > { %v7112_v12 = vshll.u32 %v15053_v59, %v7110_v24  ;;  %v7113_v23 = vshrl.u32 %v15043_v31, %v7111_v54  ;;  %v7241_v41 = vadd.s32 %v7235_v56, %v7231_v39  ;;  %v7909_v33 = vmul.f32 %v7908_v60, %v7904_v45 }
 0x757   : > { %v7916_v43 = vmul.f32 %v7915_v7, %v7904_v45  ;;  %vm7922_vm9 = vcmp.lt.s32.totalorder %v15049_v37, 2  ;;  %v7116_v57 = vadd.s32 127, %v7115_v48  ;;  %v7242_v63 = vadd.s32 %v7240_v38, %v7234_v0 }
 0x758   : > { %v7770_v17 = vsel %vm7768_vm0, %v7755_v4, %v7769_v26  ;;  %v7773_v62 = vsel %vm7771_vm1, %v7772_v58, %v7763_v51  ;;  %vm7919_vm11 = vweird.f32 %v17165_v13  ;;  %v7114_v32 = vor.u32 %v7113_v23, %v7112_v12 }
 0x759   : > { %vm7243_vm7 = vc.u32 %v7241_v41, %v7237_v2  ;;  %v7774_v54 = vsel %vm7767_vm2, %v7770_v17, %v7773_v62  ;;  %v7910_v31 = vadd.f32 1.0, %v7909_v33  ;;  %v7917_v59 = vadd.f32 1.0, %v7916_v43  ;;  %v17183_v33 = vld [vmem:[#allocation51_spill] sm:$0xff]  ;;  %v17184_v43 = vld [vmem:[#allocation18_spill] sm:$0xff] }
 0x75a   : > { %v7117_v45 = vshll.u32 %v7116_v57, 23  ;;  %v7775_v56 = vsel %vm7764_vm14, nan, %v7774_v54  ;;  %v7125_v39 = vsub.s32 4, %v15038_v35  ;;  %v7236_v4 = vshrl.u32 %v15069_v29, 16  ;;  %v17185_v57 = vld [vmem:[#allocation40_spill] sm:$0xff] }
 0x75b   : > { %v7244_v0 = vsel %vm7243_vm7, 1, %v16760_v21  ;;  %8263 = vmatpush.msra.mxu0 %v7775_v56  ;;  %v7918_v61 = vmul.f32 %v7917_v59, %v15074_v3  ;;  %v7927_v24 = vxor.u32 2147483648, %v7910_v31  ;;  %vm7923_vm12 = vcmp.eq.s32.totalorder %v15049_v37, 0 }
 0x75c   : > { %v7118_v51 = vor.u32 4788187, %v7117_v45  ;;  %v7246_v58 = vadd.s32 %v7244_v0, %v7242_v63  ;;  %vm7926_vm0 = vcmp.eq.s32.totalorder %v15049_v37, 2  ;;  %v15119_v34 = vadd.s32 %v7225_v5, %v7216_v18  ;;  %v17186_v63 = vld [vmem:[#allocation22_spill] sm:$0xff] }
 0x75d   : > { %v7238_v55 = vshrl.u32 %v15092_v47, 16  ;;  %v7924_v60 = vxor.u32 2147483648, %v7918_v61  ;;  %v7121_v48 = vcvt.s32.f32 %v7114_v32  ;;  %v7928_v38 = vsel %vm7926_vm0, %v7927_v24, %v7918_v61  ;;  %v17191_v32 = vld [vmem:[#allocation80_spill] sm:$0xff]  ;;  %v17192_v0 = vld [vmem:[#allocation62_spill] sm:$0xff] }
 0x75e   : > { %v7119_v7 = vand.u32 2147483647, %v7118_v51  ;;  %v7247_v29 = vadd.s32 %v7246_v58, %v7236_v4  ;;  %v7126_v3 = vsel %vm7003_vm8, %v7125_v39, %v15038_v35  ;;  %v7195_v26 = vsel %vm7189_vm15, %v15061_v11, %v15083_v14 }
 0x75f   : > { %v7245_v12 = vadd.s32 %v7241_v41, %v7237_v2  ;;  %v7925_v23 = vsel %vm7923_vm12, %v7910_v31, %v7924_v60  ;;  %vm6414_vm1 = vcmp.lt.s32.totalorder %v17183_v33, 2  ;;  %v17188_v14 = vand.u32 2147483647, %v17182_v44 }
 0x760   : > { %v7122_v18 = vmul.f32 %v7121_v48, %v7119_v7  ;;  %v7248_v5 = vadd.s32 %v7247_v29, %v7238_v55  ;;  %v7929_v47 = vsel %vm7922_vm9, %v7925_v23, %v7928_v38  ;;  %v15137_v35 = vsel %vm6414_vm1, %v17185_v57, %v17184_v43  ;;  %v17193_v55 = vld [vmem:[#allocation57_spill] sm:$0xff] }
 0x761   : > { %vm7251_vm2 = vc.u32 %v15119_v34, %v7245_v12  ;;  %v6428_v2 = vsel %vm6414_vm1, %v17187_v20, %v17186_v63  ;;  %v7930_v11 = vsel %vm7919_vm11, nan, %v7929_v47  ;;  %vm15147_vm15 = vcmp.le.f32.partialorder %v17188_v14, 0.7853982 }
 0x762   : > { %v7123_v41 = vxor.u32 2147483648, %v7122_v18  ;;  %v7252_v17 = vadd.s32 1, %v7248_v5  ;;  %8283 = vmatpush.msra.mxu1 %v7930_v11  ;;  %v7128_v62 = vsel %vm15147_vm15, 0, %v7126_v3  ;;  %v7249_v54 = vmul.u32 %v17191_v32, %v7195_v26 }
 0x763   : > { %v6432_v31 = vand.u32 65535, %v6428_v2  ;;  %v6433_v59 = vshrl.u32 %v6428_v2, 16  ;;  %v15156_v13 = vor.u32 %v14944_v40, %v14901_v10  ;;  %vm8118_vm14 = vcmp.lt.s32.totalorder %v14820_v36, 1 }
 0x764   : > { %vm8121_vm5 = vcmp.lt.s32.totalorder %v14820_v36, 4  ;;  %v7124_v45 = vsel %vm7003_vm8, %v7123_v41, %v7122_v18  ;;  %v7253_v56 = vsel %vm7251_vm2, %v7252_v17, %v7248_v5  ;;  %v6455_v39 = vshrl.u32 %v15137_v35, 16 }
 0x765   : > { %v15167_v4 = vor.u32 %v14947_v15, %v14908_v1  ;;  %v15172_v10 = vsel %vm15147_vm15, %v17182_v44, %v7124_v45  ;;  %v7254_v40 = vadd.s32 %v7253_v56, %v7249_v54  ;;  %v6435_v61 = vmul.u32 %v6433_v59, %v17192_v0 }
 0x766   : > { %v8117_v24 = vor.u32 %v14973_v49, %v14933_v46  ;;  %v7129_v51 = vmul.f32 %v15172_v10, %v15172_v10  ;;  %v7145_v58 = vadd.s32 3, %v7128_v62  ;;  %v15180_v60 = vmul.u32 %v6432_v31, %v17193_v55 }
 0x767   : > { %v7255_v1 = vadd.s32 536870912, %v7254_v40  ;;  %v6434_v15 = vmul.u32 %v6432_v31, %v17192_v0  ;;  %v6438_v7 = vshll.u32 %v6435_v61, 16  ;;  %v6454_v48 = vand.u32 65535, %v15137_v35 }
 0x768   : > { %v7130_v29 = vmul.f32 -0.001358992, %v7129_v51  ;;  %v7137_v38 = vmul.f32 -0.00019511016, %v7129_v51  ;;  %v6437_v3 = vmul.u32 %v6433_v59, %v17193_v55  ;;  %v15186_v26 = vmul.u32 %v6455_v39, %v17192_v0  ;;  %v17194_v59 = vld [vmem:[#allocation48_spill] sm:$0xff] }
 0x769   : > { %v15188_v49 = vshrl.u32 %v7255_v1, 30  ;;  %v6440_v46 = vshll.u32 %v15180_v60, 16  ;;  %vm6442_vm10 = vc.u32 %v6434_v15, %v6438_v7  ;;  %v6444_v23 = vadd.s32 %v6438_v7, %v6434_v15 }
 0x76a   : > { %v15193_v18 = vor.u32 %v14951_v50, %v14915_v30  ;;  %v7131_v5 = vadd.f32 0.041655596, %v7130_v29  ;;  %v7138_v47 = vadd.f32 0.008332121, %v7137_v38  ;;  %v6443_v43 = vsel %vm6442_vm10, 1, %v16760_v21  ;;  %v17195_v38 = vld [vmem:[#allocation60_spill] sm:$0xff] }
 0x76b   : > { %v15196_v57 = vand.u32 3, %v7145_v58  ;;  %v7257_v35 = vshll.u32 %v15188_v49, 30  ;;  %v6445_v63 = vadd.s32 %v6443_v43, %v6437_v3  ;;  %vm6446_vm8 = vc.u32 %v6444_v23, %v6440_v46  ;;  %v17196_v3 = vld [vmem:[#allocation35_spill] sm:$0xff] }
 0x76c   : > { %v7132_v20 = vmul.f32 %v7131_v5, %v7129_v51  ;;  %v7139_v2 = vmul.f32 %v7138_v47, %v7129_v51  ;;  %v6447_v11 = vsel %vm6446_vm8, 1, %v16760_v21  ;;  %v6460_v14 = vshll.u32 %v15186_v26, 16 }
 0x76d   : > { %v15205_v50 = vsel %vm8118_vm14, %v15156_v13, %v15167_v4  ;;  %v15209_v30 = vsel %vm8121_vm5, %v8117_v24, 1326507024  ;;  %v15211_v37 = vsub.s32 %v7254_v40, %v7257_v35  ;;  %v6458_v41 = vmul.u32 %v6454_v48, %v17193_v55  ;;  %v17198_v35 = vld [vmem:[#allocation36_spill] sm:$0xff] }
 0x76e   : > { %v7133_v17 = vadd.f32 -0.4999988, %v7132_v20  ;;  %v7140_v62 = vadd.f32 -0.16666654, %v7139_v2  ;;  %v7250_v32 = vadd.s32 %v7245_v12, %v15119_v34  ;;  %v6456_v54 = vmul.u32 %v6454_v48, %v17192_v0 }
 0x76f   : > { %vm7148_vm9 = vcmp.eq.s32.totalorder %v15196_v57, 0  ;;  %vm7151_vm11 = vcmp.eq.s32.totalorder %v15196_v57, 2  ;;  %vm7259_vm7 = vcmp.lt.s32.totalorder %v15211_v37, 0  ;;  %v7260_v31 = vsub.s32 0, %v15211_v37 }
 0x770   : > { %v6418_v45 = vsel %vm6416_vm13, %v17194_v59, 2102212464  ;;  %v6449_v56 = vadd.s32 %v6447_v11, %v6445_v63  ;;  %v7134_v40 = vmul.f32 %v7133_v17, %v7129_v51  ;;  %v7141_v24 = vmul.f32 %v7140_v62, %v7129_v51 }
 0x771   : > { %vm7147_vm12 = vcmp.lt.s32.totalorder %v15196_v57, 2  ;;  %v6439_v34 = vshrl.u32 %v6435_v61, 16  ;;  %vm6464_vm0 = vc.u32 %v6456_v54, %v6460_v14  ;;  %vm7144_vm2 = vweird.f32 %v17182_v44 }
 0x772   : > { %v7261_v12 = vsel %vm7259_vm7, %v7260_v31, %v15211_v37  ;;  %v6459_v0 = vmul.u32 %v6455_v39, %v17193_v55  ;;  %v6462_v58 = vshll.u32 %v6458_v41, 16  ;;  %v6465_v1 = vsel %vm6464_vm0, 1, %v16760_v21  ;;  %v17197_v55 = vld [vmem:[#allocation50_spill] sm:$0xff] }
 0x773   : > { %v7135_v15 = vadd.f32 1.0, %v7134_v40  ;;  %v7142_v7 = vadd.f32 1.0, %v7141_v24  ;;  %v7262_v48 = vclz %v7261_v12  ;;  %v6466_v29 = vadd.s32 %v6460_v14, %v6456_v54 }
 0x774   : > { %v6397_v51 = vshrl.u32 %v16751_v22, %v17195_v38  ;;  %v6419_v61 = vsel %vm6415_vm3, %v17196_v3, %v6418_v45  ;;  %v6450_v46 = vadd.s32 %v6449_v56, %v6439_v34  ;;  %v6467_v23 = vadd.s32 %v6465_v1, %v6459_v0  ;;  %v17200_v34 = vld [vmem:[#allocation37_spill] sm:$0xff]  ;;  %v17202_v1 = vld [vmem:[#allocation11_spill] sm:$0xff] }
 0x775   : > { %v7143_v5 = vmul.f32 %v7142_v7, %v15172_v10  ;;  %v7152_v47 = vxor.u32 2147483648, %v7135_v15  ;;  %v8583_v39 = vadd.s32 4294967294, %v7262_v48  ;;  %vm6468_vm13 = vc.u32 %v6466_v29, %v6462_v58  ;;  %v17204_v48 = vld [vmem:[#allocation32_spill] sm:$0xff] }
 0x776   : > { %vm7158_vm15 = vcmp.lt.s32.totalorder %v17197_v55, 0  ;;  %v7280_v43 = vsub.s32 4, %v15188_v49  ;;  %vm17199_vm10 = vcmp.lt.s32.totalorder %v17183_v33, 1  ;;  %v6441_v20 = vshrl.u32 %v15180_v60, 16 }
 0x777   : > { %v6417_v63 = vsel %vm17199_vm10, %v6397_v51, %v17198_v35  ;;  %v6469_v2 = vsel %vm6468_vm13, 1, %v16760_v21  ;;  %v7149_v11 = vxor.u32 2147483648, %v7143_v5  ;;  %vm8584_vm3 = vcmp.lt.s32.totalorder %v8583_v39, 0 }
 0x778   : > { %v6461_v14 = vshrl.u32 %v15186_v26, 16  ;;  %v6471_v10 = vadd.s32 %v6469_v2, %v6467_v23  ;;  %v7265_v17 = vsel %vm8584_vm3, 0, %v8583_v39  ;;  %v15242_v62 = vadd.s32 %v6450_v46, %v6441_v20  ;;  %v17208_v39 = vld [vmem:[#allocation58_spill] sm:$0xff] }
 0x779   : > { %v6463_v54 = vshrl.u32 %v6458_v41, 16  ;;  %v15244_v31 = vadd.s32 %v6466_v29, %v6462_v58  ;;  %v7150_v59 = vsel %vm7148_vm9, %v7135_v15, %v7149_v11  ;;  %v7153_v45 = vsel %vm7151_vm11, %v7152_v47, %v7143_v5  ;;  %v17201_v58 = vld [vmem:[#allocation31_spill] sm:$0xff] }
 0x77a   : > { %v7266_v60 = vsub.s32 32, %v7265_v17  ;;  %v7270_v56 = vsub.s32 4294967266, %v7265_v17  ;;  %v7154_v40 = vsel %vm7147_vm12, %v7150_v59, %v7153_v45  ;;  %v7267_v26 = vshll.u32 %v15211_v37, %v7265_v17  ;;  %v17203_v37 = vld [vmem:[#allocation69_spill] sm:$0xff] }
 0x77b   : > { %v6472_v24 = vadd.s32 %v6471_v10, %v6461_v14  ;;  %vm6569_vm8 = vcmp.lt.s32.totalorder %v17200_v34, 2  ;;  %v7155_v41 = vsel %vm7144_vm2, nan, %v7154_v40  ;;  %v6420_v57 = vsel %vm6414_vm1, %v6417_v63, %v6419_v61  ;;  %v17209_v63 = vld [vmem:[#allocation61_spill] sm:$0xff]  ;;  %v17210_v14 = vld [vmem:[#allocation56_spill] sm:$0xff] }
 0x77c   : > { %v7268_v12 = vshrl.u32 %v7250_v32, %v7266_v60  ;;  %v7271_v0 = vadd.s32 127, %v7270_v56  ;;  %v6579_v15 = vsel %vm6569_vm8, %v17202_v1, %v17201_v58  ;;  %8264 = vmatpush.msra.mxu0 %v7155_v41  ;;  %vm6476_vm9 = vc.u32 %v15242_v62, %v15244_v31 }
 0x77d   : > { %v6473_v7 = vadd.s32 %v6472_v24, %v6463_v54  ;;  %v6583_v44 = vsel %vm6569_vm8, %v17204_v48, %v17203_v37  ;;  %v17205_v3 = vand.u32 2147483647, %v17197_v55  ;;  %v6609_v61 = vand.u32 65535, %v6579_v15 }
 0x77e   : > { %v7269_v32 = vor.u32 %v7268_v12, %v7267_v26  ;;  %v7272_v29 = vshll.u32 %v7271_v0, 23  ;;  %v6587_v38 = vand.u32 65535, %v6583_v44  ;;  %v6588_v51 = vshrl.u32 %v6583_v44, 16  ;;  %v17211_v0 = vld [vmem:[#allocation55_spill] sm:$0xff] }
 0x77f   : > { %vm15270_vm11 = vcmp.le.f32.partialorder %v17205_v3, 0.7853982  ;;  %v6477_v33 = vadd.s32 1, %v6473_v7  ;;  %v6610_v23 = vshrl.u32 %v6579_v15, 16  ;;  %v7281_v47 = vsel %vm7158_vm15, %v7280_v43, %v15188_v49 }
 0x780   : > { %v7273_v5 = vor.u32 4788187, %v7272_v29  ;;  %v6474_v35 = vmul.u32 %v17208_v39, %v6420_v57  ;;  %v6590_v20 = vmul.u32 %v6588_v51, %v17209_v63  ;;  %v7276_v2 = vcvt.s32.f32 %v7269_v32  ;;  %v17212_v29 = vld [vmem:[#allocation6_spill] sm:$0xff] }
 0x781   : > { %v6478_v11 = vsel %vm6476_vm9, %v6477_v33, %v6473_v7  ;;  %v6591_v10 = vmul.u32 %v6587_v38, %v17210_v14  ;;  %v6612_v17 = vmul.u32 %v6610_v23, %v17209_v63  ;;  %v6589_v45 = vmul.u32 %v6587_v38, %v17209_v63 }
 0x782   : > { %v7274_v54 = vand.u32 2147483647, %v7273_v5  ;;  %v6479_v59 = vadd.s32 %v6478_v11, %v6474_v35  ;;  %v6593_v60 = vshll.u32 %v6590_v20, 16  ;;  %v6592_v56 = vmul.u32 %v6588_v51, %v17210_v14  ;;  %v17215_v11 = vld [vmem:[#allocation41_spill] sm:$0xff] }
 0x783   : > { %v6595_v40 = vshll.u32 %v6591_v10, 16  ;;  %v6613_v49 = vmul.u32 %v6609_v61, %v17210_v14  ;;  %v6615_v43 = vshll.u32 %v6612_v17, 16  ;;  %v7283_v12 = vsel %vm15270_vm11, 0, %v7281_v47 }
 0x784   : > { %v7277_v26 = vmul.f32 %v7276_v2, %v7274_v54  ;;  %v6480_v24 = vadd.s32 536870912, %v6479_v59  ;;  %vm6597_vm1 = vc.u32 %v6589_v45, %v6593_v60  ;;  %v6599_v41 = vadd.s32 %v6593_v60, %v6589_v45  ;;  %v17213_v2 = vld [vmem:[#allocation46_spill] sm:$0xff] }
 0x785   : > { %v6552_v58 = vshrl.u32 %v16751_v22, %v17211_v0  ;;  %v6598_v1 = vsel %vm6597_vm1, 1, %v16760_v21  ;;  %v6611_v15 = vmul.u32 %v6609_v61, %v17209_v63  ;;  %v6617_v44 = vshll.u32 %v6613_v49, 16  ;;  %v17217_v0 = vld [vmem:[#allocation21_spill] sm:$0xff] }
 0x786   : > { %v7278_v57 = vxor.u32 2147483648, %v7277_v26  ;;  %v6481_v7 = vshrl.u32 %v6480_v24, 30  ;;  %v6600_v37 = vadd.s32 %v6598_v1, %v6592_v56  ;;  %vm6601_vm7 = vc.u32 %v6599_v41, %v6595_v40 }
 0x787   : > { %v6602_v48 = vsel %vm6601_vm7, 1, %v16760_v21  ;;  %vm6619_vm12 = vc.u32 %v6611_v15, %v6615_v43  ;;  %v6621_v32 = vadd.s32 %v6615_v43, %v6611_v15  ;;  %vm6383_vm0 = vcmp.lt.s32.totalorder %v17212_v29, 0 }
 0x788   : > { %v7279_v38 = vsel %vm7158_vm15, %v7278_v57, %v7277_v26  ;;  %v6482_v51 = vshll.u32 %v6481_v7, 30  ;;  %v6594_v3 = vshrl.u32 %v6590_v20, 16  ;;  %v6604_v33 = vadd.s32 %v6602_v48, %v6600_v37 }
 0x789   : > { %v15297_v61 = vsel %vm15270_vm11, %v17197_v55, %v7279_v38  ;;  %v6614_v5 = vmul.u32 %v6610_v23, %v17210_v14  ;;  %v6620_v47 = vsel %vm6619_vm12, 1, %v16760_v21  ;;  %vm6623_vm2 = vc.u32 %v6621_v32, %v6617_v44 }
 0x78a   : > { %v7284_v39 = vmul.f32 %v15297_v61, %v15297_v61  ;;  %v7300_v35 = vadd.s32 3, %v7283_v12  ;;  %v15303_v63 = vsub.s32 %v6479_v59, %v6482_v51  ;;  %vm17214_vm13 = vcmp.lt.s32.totalorder %v17200_v34, 1 }
 0x78b   : > { %v6572_v20 = vsel %vm17214_vm13, %v6552_v58, %v17213_v2  ;;  %vm17216_vm15 = vcmp.lt.s32.totalorder %v17200_v34, 4  ;;  %v6605_v54 = vadd.s32 %v6604_v33, %v6594_v3  ;;  %v6622_v45 = vadd.s32 %v6620_v47, %v6614_v5 }
 0x78c   : > { %v6573_v46 = vsel %vm17216_vm15, %v17215_v11, 2102212464  ;;  %v6624_v23 = vsel %vm6623_vm2, 1, %v16760_v21  ;;  %v7285_v14 = vmul.f32 -0.001358992, %v7284_v39  ;;  %vm6484_vm10 = vcmp.lt.s32.totalorder %v15303_v63, 0 }
 0x78d   : > { %v7292_v60 = vmul.f32 -0.00019511016, %v7284_v39  ;;  %v6485_v56 = vsub.s32 0, %v15303_v63  ;;  %v6505_v59 = vsub.s32 4, %v6481_v7  ;;  %v6596_v40 = vshrl.u32 %v6591_v10, 16 }
 0x78e   : > { %v6616_v43 = vshrl.u32 %v6612_v17, 16  ;;  %v6626_v26 = vadd.s32 %v6624_v23, %v6622_v45  ;;  %v7286_v24 = vadd.f32 0.041655596, %v7285_v14  ;;  %vm17218_vm3 = vcmp.lt.s32.totalorder %v17200_v34, 3  ;;  %v17222_v45 = vld [vmem:[#allocation16_spill] sm:$0xff] }
 0x78f   : > { %v7293_v41 = vadd.f32 0.008332121, %v7292_v60  ;;  %v6486_v12 = vsel %vm6484_vm10, %v6485_v56, %v15303_v63  ;;  %v6574_v58 = vsel %vm17218_vm3, %v17217_v0, %v6573_v46  ;;  %v17219_v1 = vand.u32 2147483647, %v17212_v29 }
 0x790   : > { %v6487_v57 = vclz %v6486_v12  ;;  %v15324_v37 = vadd.s32 %v6605_v54, %v6596_v40  ;;  %v6627_v10 = vadd.s32 %v6626_v26, %v6616_v43  ;;  %v7287_v17 = vmul.f32 %v7286_v24, %v7284_v39 }
 0x791   : > { %vm15320_vm9 = vcmp.le.f32.partialorder %v17219_v1, 0.7853982  ;;  %v7294_v48 = vmul.f32 %v7293_v41, %v7284_v39  ;;  %v7301_v38 = vand.u32 3, %v7300_v35  ;;  %v6618_v51 = vshrl.u32 %v6613_v49, 16  ;;  %v17223_v49 = vld [vmem:[#allocation59_spill] sm:$0xff]  ;;  %v17224_v35 = vld [vmem:[#allocation28_spill] sm:$0xff] }
 0x792   : > { %v8568_v3 = vadd.s32 4294967294, %v6487_v57  ;;  %v6506_v33 = vsel %vm6383_vm0, %v6505_v59, %v6481_v7  ;;  %v6575_v5 = vsel %vm6569_vm8, %v6572_v20, %v6574_v58  ;;  %v15330_v47 = vadd.s32 %v6621_v32, %v6617_v44 }
 0x793   : > { %v7288_v2 = vadd.f32 -0.4999988, %v7287_v17  ;;  %v7295_v11 = vadd.f32 -0.16666654, %v7294_v48  ;;  %v6628_v46 = vadd.s32 %v6627_v10, %v6618_v51  ;;  %vm5794_vm11 = vcmp.lt.s32.totalorder %v17222_v45, 2 }
 0x794   : > { %v6475_v54 = vadd.s32 %v15244_v31, %v15242_v62  ;;  %vm8569_vm1 = vcmp.lt.s32.totalorder %v8568_v3, 0  ;;  %vm6631_vm7 = vc.u32 %v15324_v37, %v15330_v47  ;;  %v5808_v34 = vsel %vm5794_vm11, %v17224_v35, %v17223_v49  ;;  %v17225_v31 = vld [vmem:[#allocation64_spill] sm:$0xff] }
 0x795   : > { %v7289_v7 = vmul.f32 %v7288_v2, %v7284_v39  ;;  %v7296_v44 = vmul.f32 %v7295_v11, %v7284_v39  ;;  %vm7302_vm8 = vcmp.lt.s32.totalorder %v7301_v38, 2  ;;  %v6490_v32 = vsel %vm8569_vm1, 0, %v8568_v3  ;;  %v17227_v3 = vld [vmem:[#allocation44_spill] sm:$0xff] }
 0x796   : > { %v6632_v20 = vadd.s32 1, %v6628_v46  ;;  %vm7299_vm12 = vweird.f32 %v17197_v55  ;;  %v6491_v23 = vsub.s32 32, %v6490_v32  ;;  %v6495_v14 = vsub.s32 4294967266, %v6490_v32  ;;  %v17228_v11 = vld [vmem:[#allocation8_spill] sm:$0xff] }
 0x797   : > { %v6508_v62 = vsel %vm15320_vm9, 0, %v6506_v33  ;;  %v6629_v60 = vmul.u32 %v17225_v31, %v6575_v5  ;;  %vm8120_vm2 = vcmp.lt.s32.totalorder %v14820_v36, 3  ;;  %v7290_v56 = vadd.f32 1.0, %v7289_v7 }
 0x798   : > { %v7297_v59 = vadd.f32 1.0, %v7296_v44  ;;  %v6492_v40 = vshll.u32 %v15303_v63, %v6490_v32  ;;  %v6633_v39 = vsel %vm6631_vm7, %v6632_v20, %v6628_v46  ;;  %v6493_v43 = vshrl.u32 %v6475_v54, %v6491_v23  ;;  %v17226_v63 = vld [vmem:[#allocation39_spill] sm:$0xff]  ;;  %v17229_v46 = vld [vmem:[#allocation17_spill] sm:$0xff] }
 0x799   : > { %v6496_v26 = vadd.s32 127, %v6495_v14  ;;  %v6634_v24 = vadd.s32 %v6633_v39, %v6629_v60  ;;  %v5812_v41 = vand.u32 65535, %v5808_v34  ;;  %vm7303_vm13 = vcmp.eq.s32.totalorder %v7301_v38, 0 }
 0x79a   : > { %v7298_v12 = vmul.f32 %v7297_v59, %v15297_v61  ;;  %v7307_v0 = vxor.u32 2147483648, %v7290_v56  ;;  %v5813_v58 = vshrl.u32 %v5808_v34, 16  ;;  %vm7306_vm15 = vcmp.eq.s32.totalorder %v7301_v38, 2 }
 0x79b   : > { %v6494_v1 = vor.u32 %v6493_v43, %v6492_v40  ;;  %v6497_v57 = vshll.u32 %v6496_v26, 23  ;;  %v6635_v10 = vadd.s32 536870912, %v6634_v24  ;;  %v6525_v48 = vadd.s32 3, %v6508_v62 }
 0x79c   : > { %v7304_v17 = vxor.u32 2147483648, %v7298_v12  ;;  %v5815_v51 = vmul.u32 %v5813_v58, %v17226_v63  ;;  %v15353_v33 = vmul.u32 %v5812_v41, %v17227_v3  ;;  %v5804_v61 = vsel %vm5794_vm11, %v17229_v46, %v17228_v11  ;;  %v17233_v11 = vld [vmem:[#allocation29_spill] sm:$0xff] }
 0x79d   : > { %v6498_v5 = vor.u32 4788187, %v6497_v57  ;;  %v15355_v2 = vshrl.u32 %v6635_v10, 30  ;;  %v5814_v54 = vmul.u32 %v5812_v41, %v17226_v63  ;;  %v7308_v35 = vsel %vm7306_vm15, %v7307_v0, %v7298_v12  ;;  %v17230_v41 = vld [vmem:[#allocation45_spill] sm:$0xff]  ;;  %v17231_v10 = vld [vmem:[#allocation15_spill] sm:$0xff] }
 0x79e   : > { %v7305_v49 = vsel %vm7303_vm13, %v7290_v56, %v7304_v17  ;;  %v6501_v34 = vcvt.s32.f32 %v6494_v1  ;;  %v5818_v7 = vshll.u32 %v5815_v51, 16  ;;  %v5817_v23 = vmul.u32 %v5813_v58, %v17227_v3 }
 0x79f   : > { %v7309_v44 = vsel %vm7302_vm8, %v7305_v49, %v7308_v35  ;;  %v6499_v32 = vand.u32 2147483647, %v6498_v5  ;;  %v6637_v20 = vshll.u32 %v15355_v2, 30  ;;  %v5820_v62 = vshll.u32 %v15353_v33, 16 }
 0x7a0   : > { %v7310_v14 = vsel %vm7299_vm12, nan, %v7309_v44  ;;  %vm5822_vm10 = vc.u32 %v5814_v54, %v5818_v7  ;;  %v5824_v31 = vadd.s32 %v5818_v7, %v5814_v54  ;;  %v15372_v60 = vsel %vm8120_vm2, %v15193_v18, %v15209_v30  ;;  %v17234_v54 = vld [vmem:[#allocation25_spill] sm:$0xff] }
 0x7a1   : > { %8284 = vmatpush.msra.mxu1 %v7310_v14  ;;  %v6502_v38 = vmul.f32 %v6501_v34, %v6499_v32  ;;  %v6638_v56 = vsub.s32 %v6634_v24, %v6637_v20  ;;  %v5823_v59 = vsel %vm5822_vm10, 1, %v16760_v21  ;;  %v5834_v39 = vand.u32 65535, %v5804_v61  ;;  %v17236_v32 = vld [vmem:[#allocation13_spill] sm:$0xff] }
 0x7a2   : > { %v5825_v40 = vadd.s32 %v5823_v59, %v5817_v23  ;;  %vm5826_vm3 = vc.u32 %v5824_v31, %v5820_v62  ;;  %v5835_v55 = vshrl.u32 %v5804_v61, 16  ;;  %v5777_v12 = vshrl.u32 %v16751_v22, %v17230_v41 }
 0x7a3   : > { %v6503_v43 = vxor.u32 2147483648, %v6502_v38  ;;  %vm6639_vm1 = vcmp.lt.s32.totalorder %v6638_v56, 0  ;;  %v6640_v26 = vsub.s32 0, %v6638_v56  ;;  %v15377_v0 = vand.u32 3, %v6525_v48 }
 0x7a4   : > { %v6630_v30 = vadd.s32 %v15330_v47, %v15324_v37  ;;  %v5827_v58 = vsel %vm5826_vm3, 1, %v16760_v21  ;;  %v5837_v24 = vmul.u32 %v5835_v55, %v17226_v63  ;;  %vm17232_vm7 = vcmp.lt.s32.totalorder %v17222_v45, 4 }
 0x7a5   : > { %v6504_v1 = vsel %vm6383_vm0, %v6503_v43, %v6502_v38  ;;  %v6641_v57 = vsel %vm6639_vm1, %v6640_v26, %v6638_v56  ;;  %v5798_v17 = vsel %vm17232_vm7, %v17231_v10, 2102212464  ;;  %v5829_v5 = vadd.s32 %v5827_v58, %v5825_v40 }
 0x7a6   : > { %vm6538_vm8 = vcmp.lt.s32.totalorder %v17233_v11, 0  ;;  %v6507_v48 = vsel %vm15320_vm9, %v17212_v29, %v6504_v1  ;;  %v6642_v37 = vclz %v6641_v57  ;;  %v5838_v47 = vmul.u32 %v5834_v39, %v17227_v3 }
 0x7a7   : > { %v5840_v46 = vshll.u32 %v5837_v24, 16  ;;  %v6509_v61 = vmul.f32 %v6507_v48, %v6507_v48  ;;  %vm17235_vm0 = vcmp.lt.s32.totalorder %v17222_v45, 1  ;;  %v5819_v35 = vshrl.u32 %v5815_v51, 16 }
 0x7a8   : > { %v5797_v49 = vsel %vm17235_vm0, %v5777_v12, %v17234_v54  ;;  %v5836_v34 = vmul.u32 %v5834_v39, %v17226_v63  ;;  %v8571_v7 = vadd.s32 4294967294, %v6642_v37  ;;  %v6660_v44 = vsub.s32 4, %v15355_v2 }
 0x7a9   : > { %vm17237_vm12 = vcmp.lt.s32.totalorder %v17222_v45, 3  ;;  %v5839_v20 = vmul.u32 %v5835_v55, %v17227_v3  ;;  %v6510_v23 = vmul.f32 -0.001358992, %v6509_v61  ;;  %v6517_v14 = vmul.f32 -0.00019511016, %v6509_v61  ;;  %v17243_v45 = vld [vmem:[#allocation52_spill] sm:$0xff] }
 0x7aa   : > { %v5799_v15 = vsel %vm17237_vm12, %v17236_v32, %v5798_v17  ;;  %v5830_v62 = vadd.s32 %v5829_v5, %v5819_v35  ;;  %vm5844_vm9 = vc.u32 %v5836_v34, %v5840_v46  ;;  %vm8572_vm13 = vcmp.lt.s32.totalorder %v8571_v7, 0 }
 0x7ab   : > { %v5842_v31 = vshll.u32 %v5838_v47, 16  ;;  %v5845_v38 = vsel %vm5844_vm9, 1, %v16760_v21  ;;  %v5846_v51 = vadd.s32 %v5840_v46, %v5836_v34  ;;  %v6511_v59 = vadd.f32 0.041655596, %v6510_v23 }
 0x7ac   : > { %v6518_v63 = vadd.f32 0.008332121, %v6517_v14  ;;  %v6645_v40 = vsel %vm8572_vm13, 0, %v8571_v7  ;;  %v5847_v39 = vadd.s32 %v5845_v38, %v5839_v20  ;;  %v5821_v41 = vshrl.u32 %v15353_v33, 16 }
 0x7ad   : > { %v6646_v43 = vsub.s32 32, %v6645_v40  ;;  %v6650_v26 = vsub.s32 4294967266, %v6645_v40  ;;  %vm5848_vm15 = vc.u32 %v5846_v51, %v5842_v31  ;;  %v6512_v12 = vmul.f32 %v6511_v59, %v6509_v61 }
 0x7ae   : > { %v6519_v3 = vmul.f32 %v6518_v63, %v6509_v61  ;;  %v5841_v55 = vshrl.u32 %v5837_v24, 16  ;;  %v5849_v58 = vsel %vm5848_vm15, 1, %v16760_v21  ;;  %v6647_v1 = vshll.u32 %v6638_v56, %v6645_v40  ;;  %v17242_v40 = vld [vmem:[#allocation34_spill] sm:$0xff] }
 0x7af   : > { %v6648_v57 = vshrl.u32 %v6630_v30, %v6646_v43  ;;  %v6651_v10 = vadd.s32 127, %v6650_v26  ;;  %v5851_v17 = vadd.s32 %v5849_v58, %v5847_v39  ;;  %v6513_v5 = vadd.f32 -0.4999988, %v6512_v12  ;;  %v17245_v58 = vld [vmem:[#allocation53_spill] sm:$0xff] }
 0x7b0   : > { %v6520_v37 = vadd.f32 -0.16666654, %v6519_v3  ;;  %v6661_v46 = vsel %vm6538_vm8, %v6660_v44, %v15355_v2  ;;  %v15408_v54 = vadd.s32 %v5830_v62, %v5821_v41  ;;  %v5843_v34 = vshrl.u32 %v5838_v47, 16 }
 0x7b1   : > { %v6649_v35 = vor.u32 %v6648_v57, %v6647_v1  ;;  %v6652_v33 = vshll.u32 %v6651_v10, 23  ;;  %v5852_v7 = vadd.s32 %v5851_v17, %v5841_v55  ;;  %v6514_v32 = vmul.f32 %v6513_v5, %v6509_v61  ;;  %v17246_v1 = vld [vmem:[#allocation65_spill] sm:$0xff]  ;;  %v17247_v10 = vld [vmem:[#allocation14_spill] sm:$0xff]  ;;  %v17248_v5 = vld [vmem:[#allocation7_spill] sm:$0xff] }
 0x7b2   : > { %v6521_v24 = vmul.f32 %v6520_v37, %v6509_v61  ;;  %v17238_v20 = vand.u32 2147483647, %v17233_v11  ;;  %v15416_v30 = vadd.s32 %v5846_v51, %v5842_v31  ;;  %vm6524_vm3 = vweird.f32 %v17212_v29  ;;  %v17241_v51 = vld [vmem:[#allocation20_spill] sm:$0xff] }
 0x7b3   : > { %vm6527_vm1 = vcmp.lt.s32.totalorder %v15377_v0, 2  ;;  %v6653_v2 = vor.u32 4788187, %v6652_v33  ;;  %v5800_v44 = vsel %vm5794_vm11, %v5797_v49, %v5799_v15  ;;  %v5853_v47 = vadd.s32 %v5852_v7, %v5843_v34  ;;  %v17244_v49 = vld [vmem:[#allocation54_spill] sm:$0xff] }
 0x7b4   : > { %vm15412_vm10 = vcmp.le.f32.partialorder %v17238_v20, 0.7853982  ;;  %v6515_v23 = vadd.f32 1.0, %v6514_v32  ;;  %v6522_v14 = vadd.f32 1.0, %v6521_v24  ;;  %vm5856_vm7 = vc.u32 %v15408_v54, %v15416_v30 }
 0x7b5   : > { %v6663_v61 = vsel %vm15412_vm10, 0, %v6661_v46  ;;  %v6654_v62 = vand.u32 2147483647, %v6653_v2  ;;  %v6656_v31 = vcvt.s32.f32 %v6649_v35  ;;  %v5857_v38 = vadd.s32 1, %v5853_v47 }
 0x7b6   : > { %vm5949_vm0 = vcmp.lt.s32.totalorder %v17241_v51, 2  ;;  %v6523_v59 = vmul.f32 %v6522_v14, %v6507_v48  ;;  %v6532_v63 = vxor.u32 2147483648, %v6515_v23  ;;  %v5854_v39 = vmul.u32 %v17242_v40, %v5800_v44 }
 0x7b7   : > { %v5963_v15 = vsel %vm5949_vm0, %v17244_v49, %v17243_v45  ;;  %vm8119_vm11 = vcmp.lt.s32.totalorder %v14820_v36, 2  ;;  %v6657_v43 = vmul.f32 %v6656_v31, %v6654_v62  ;;  %v5858_v26 = vsel %vm5856_vm7, %v5857_v38, %v5853_v47 }
 0x7b8   : > { %v5967_v41 = vand.u32 65535, %v5963_v15  ;;  %v5968_v12 = vshrl.u32 %v5963_v15, 16  ;;  %vm6528_vm12 = vcmp.eq.s32.totalorder %v15377_v0, 0  ;;  %v6529_v3 = vxor.u32 2147483648, %v6523_v59 }
 0x7b9   : > { %vm6531_vm9 = vcmp.eq.s32.totalorder %v15377_v0, 2  ;;  %v5859_v48 = vadd.s32 %v5858_v26, %v5854_v39  ;;  %v6658_v55 = vxor.u32 2147483648, %v6657_v43  ;;  %v5959_v57 = vsel %vm5949_vm0, %v17246_v1, %v17245_v58 }
 0x7ba   : > { %v15440_v17 = vmul.u32 %v5968_v12, %v17247_v10  ;;  %v15443_v37 = vmul.u32 %v5967_v41, %v17248_v5  ;;  %v6530_v46 = vsel %vm6528_vm12, %v6515_v23, %v6529_v3  ;;  %v6533_v35 = vsel %vm6531_vm9, %v6532_v63, %v6523_v59 }
 0x7bb   : > { %v6680_v33 = vadd.s32 3, %v6663_v61  ;;  %v5860_v34 = vadd.s32 536870912, %v5859_v48  ;;  %v6534_v7 = vsel %vm6527_vm1, %v6530_v46, %v6533_v35  ;;  %v6659_v32 = vsel %vm6538_vm8, %v6658_v55, %v6657_v43 }
 0x7bc   : > { %v5969_v24 = vmul.u32 %v5967_v41, %v17247_v10  ;;  %v5973_v20 = vshll.u32 %v15440_v17, 16  ;;  %v6535_v2 = vsel %vm6524_vm3, nan, %v6534_v7  ;;  %v15456_v44 = vsel %vm15412_vm10, %v17233_v11, %v6659_v32  ;;  %v17249_v7 = vld [vmem:[#allocation26_spill] sm:$0xff] }
 0x7bd   : > { %v15458_v47 = vshrl.u32 %v5860_v34, 30  ;;  %v5990_v23 = vshrl.u32 %v5959_v57, 16  ;;  %8265 = vmatpush.msra.mxu0 %v6535_v2  ;;  %v6664_v0 = vmul.f32 %v15456_v44, %v15456_v44  ;;  %v5975_v14 = vshll.u32 %v15443_v37, 16 }
 0x7be   : > { %vm5977_vm8 = vc.u32 %v5969_v24, %v5973_v20  ;;  %v5979_v61 = vadd.s32 %v5973_v20, %v5969_v24  ;;  %v5972_v29 = vmul.u32 %v5968_v12, %v17248_v5  ;;  %v5989_v56 = vand.u32 65535, %v5959_v57 }
 0x7bf   : > { %v5862_v62 = vshll.u32 %v15458_v47, 30  ;;  %v5978_v31 = vsel %vm5977_vm8, 1, %v16760_v21  ;;  %v8127_v38 = vsel %vm8121_vm5, %v15193_v18, 920167782  ;;  %v6665_v59 = vmul.f32 -0.001358992, %v6664_v0 }
 0x7c0   : > { %v6672_v63 = vmul.f32 -0.00019511016, %v6664_v0  ;;  %vm5981_vm13 = vc.u32 %v5979_v61, %v5975_v14  ;;  %v15473_v40 = vsel %vm8119_vm11, %v15205_v50, %v15372_v60  ;;  %v5980_v45 = vadd.s32 %v5978_v31, %v5972_v29 }
 0x7c1   : > { %v15475_v39 = vsub.s32 %v5859_v48, %v5862_v62  ;;  %v5992_v49 = vmul.u32 %v5990_v23, %v17247_v10  ;;  %v15482_v15 = vsel %vm8118_vm14, %v14957_v42, %v15156_v13  ;;  %v6666_v18 = vadd.f32 0.041655596, %v6665_v59 }
 0x7c2   : > { %v6673_v43 = vadd.f32 0.008332121, %v6672_v63  ;;  %v5982_v26 = vsel %vm5981_vm13, 1, %v16760_v21  ;;  %v6681_v41 = vand.u32 3, %v6680_v33  ;;  %v5993_v60 = vmul.u32 %v5989_v56, %v17248_v5 }
 0x7c3   : > { %vm5864_vm15 = vcmp.lt.s32.totalorder %v15475_v39, 0  ;;  %v5865_v50 = vsub.s32 0, %v15475_v39  ;;  %v15491_v12 = vsel %vm8120_vm2, %v15167_v4, %v8127_v38  ;;  %v8138_v3 = vshrl.u32 %v15473_v40, 16 }
 0x7c4   : > { %v6667_v48 = vmul.f32 %v6666_v18, %v6664_v0  ;;  %v6674_v55 = vmul.f32 %v6673_v43, %v6664_v0  ;;  %v5984_v1 = vadd.s32 %v5982_v26, %v5980_v45  ;;  %v5991_v57 = vmul.u32 %v5989_v56, %v17247_v10  ;;  %v17250_v10 = vld [vmem:[#allocation63_spill] sm:$0xff]  ;;  %v17252_v18 = vld [vmem:[#allocation10_spill] sm:$0xff] }
 0x7c5   : > { %v5866_v58 = vsel %vm5864_vm15, %v5865_v50, %v15475_v39  ;;  %v5995_v46 = vshll.u32 %v5992_v49, 16  ;;  %v5932_v32 = vshrl.u32 %v16751_v22, %v17249_v7  ;;  %vm6683_vm10 = vcmp.eq.s32.totalorder %v6681_v41, 0 }
 0x7c6   : > { %v6668_v35 = vadd.f32 -0.4999988, %v6667_v48  ;;  %v6675_v33 = vadd.f32 -0.16666654, %v6674_v55  ;;  %v5867_v34 = vclz %v5866_v58  ;;  %v5974_v24 = vshrl.u32 %v15440_v17, 16  ;;  %v17254_v58 = vld [vmem:[#allocation27_spill] sm:$0xff] }
 0x7c7   : > { %v5997_v20 = vshll.u32 %v5993_v60, 16  ;;  %vm5999_vm3 = vc.u32 %v5991_v57, %v5995_v46  ;;  %v6001_v2 = vadd.s32 %v5995_v46, %v5991_v57  ;;  %vm6682_vm1 = vcmp.lt.s32.totalorder %v6681_v41, 2 }
 0x7c8   : > { %v6669_v14 = vmul.f32 %v6668_v35, %v6664_v0  ;;  %v6676_v61 = vmul.f32 %v6675_v33, %v6664_v0  ;;  %v8556_v62 = vadd.s32 4294967294, %v5867_v34  ;;  %v5994_v29 = vmul.u32 %v5990_v23, %v17248_v5  ;;  %v17256_v33 = vld [vmem:[#allocation38_spill] sm:$0xff] }
 0x7c9   : > { %vm6679_vm7 = vweird.f32 %v17233_v11  ;;  %vm17251_vm12 = vcmp.lt.s32.totalorder %v17241_v51, 4  ;;  %v5985_v56 = vadd.s32 %v5984_v1, %v5974_v24  ;;  %v6000_v38 = vsel %vm5999_vm3, 1, %v16760_v21 }
 0x7ca   : > { %v5953_v31 = vsel %vm17251_vm12, %v17250_v10, 2102212464  ;;  %vm6003_vm9 = vc.u32 %v6001_v2, %v5997_v20  ;;  %v6670_v17 = vadd.f32 1.0, %v6669_v14  ;;  %v6677_v59 = vadd.f32 1.0, %v6676_v61 }
 0x7cb   : > { %vm8557_vm8 = vcmp.lt.s32.totalorder %v8556_v62, 0  ;;  %v6002_v63 = vadd.s32 %v6000_v38, %v5994_v29  ;;  %v5855_v0 = vadd.s32 %v15416_v30, %v15408_v54  ;;  %vm17253_vm13 = vcmp.lt.s32.totalorder %v17241_v51, 1  ;;  %v17258_v38 = vld [vmem:[#allocation33_spill] sm:$0xff] }
 0x7cc   : > { %v5870_v45 = vsel %vm8557_vm8, 0, %v8556_v62  ;;  %v5952_v5 = vsel %vm17253_vm13, %v5932_v32, %v17252_v18  ;;  %v6004_v23 = vsel %vm6003_vm9, 1, %v16760_v21  ;;  %v6678_v43 = vmul.f32 %v6677_v59, %v15456_v44 }
 0x7cd   : > { %v6687_v26 = vxor.u32 2147483648, %v6670_v17  ;;  %v5871_v50 = vsub.s32 32, %v5870_v45  ;;  %v5976_v48 = vshrl.u32 %v15443_v37, 16  ;;  %v5875_v55 = vsub.s32 4294967266, %v5870_v45 }
 0x7ce   : > { %vm17255_vm15 = vcmp.lt.s32.totalorder %v17241_v51, 3  ;;  %v5996_v57 = vshrl.u32 %v5992_v49, 16  ;;  %v6006_v54 = vadd.s32 %v6004_v23, %v6002_v63  ;;  %v6684_v30 = vxor.u32 2147483648, %v6678_v43 }
 0x7cf   : > { %v5954_v1 = vsel %vm17255_vm15, %v17254_v58, %v5953_v31  ;;  %vm6686_vm3 = vcmp.eq.s32.totalorder %v6681_v41, 2  ;;  %v5873_v46 = vshrl.u32 %v5855_v0, %v5871_v50  ;;  %v15516_v35 = vadd.s32 %v5985_v56, %v5976_v48  ;;  %v17261_v50 = vld [vmem:[#allocation42_spill] sm:$0xff] }
 0x7d0   : > { %vm5763_vm12 = vcmp.lt.s32.totalorder %v17256_v33, 0  ;;  %v5872_v44 = vshll.u32 %v15475_v39, %v5870_v45  ;;  %v5876_v34 = vadd.s32 127, %v5875_v55  ;;  %v5998_v7 = vshrl.u32 %v5993_v60, 16 }
 0x7d1   : > { %v6007_v32 = vadd.s32 %v6006_v54, %v5996_v57  ;;  %v6685_v37 = vsel %vm6683_vm10, %v6670_v17, %v6684_v30  ;;  %v6688_v24 = vsel %vm6686_vm3, %v6687_v26, %v6678_v43  ;;  %v5955_v14 = vsel %vm5949_vm0, %v5952_v5, %v5954_v1 }
 0x7d2   : > { %v15523_v49 = vadd.s32 %v6001_v2, %v5997_v20  ;;  %v6689_v61 = vsel %vm6682_vm1, %v6685_v37, %v6688_v24  ;;  %v5874_v62 = vor.u32 %v5873_v46, %v5872_v44  ;;  %v5877_v29 = vshll.u32 %v5876_v34, 23 }
 0x7d3   : > { %v6008_v10 = vadd.s32 %v6007_v32, %v5998_v7  ;;  %v8123_v39 = vsel %vm8121_vm5, %v15167_v4, 2102212464  ;;  %v8135_v60 = vand.u32 65535, %v14802_v6  ;;  %v6690_v31 = vsel %vm6679_vm7, nan, %v6689_v61 }
 0x7d4   : > { %vm6011_vm10 = vc.u32 %v15516_v35, %v15523_v49  ;;  %v17257_v51 = vshll.u32 %v14835_v28, 16  ;;  %v8122_v41 = vsel %vm8118_vm14, %v14928_v16, %v14957_v42  ;;  %8285 = vmatpush.msra.mxu1 %v6690_v31  ;;  %v5878_v20 = vor.u32 4788187, %v5877_v29 }
 0x7d5   : > { %v6012_v4 = vadd.s32 1, %v6008_v10  ;;  %v8129_v11 = vsel %vm8119_vm11, %v15482_v15, %v15491_v12  ;;  %v15547_v2 = vmul.u32 %v8138_v3, %v8135_v60  ;;  %v5885_v56 = vsub.s32 4, %v15458_v47 }
 0x7d6   : > { %vm7992_vm0 = vc.u32 %v14829_v27, %v17257_v51  ;;  %v6009_v17 = vmul.u32 %v17258_v38, %v5955_v14  ;;  %v8124_v16 = vsel %vm8120_vm2, %v15156_v13, %v8123_v39  ;;  %v5879_v42 = vand.u32 2147483647, %v5878_v20 }
 0x7d7   : > { %v5881_v59 = vcvt.s32.f32 %v5874_v62  ;;  %v6013_v63 = vsel %vm6011_vm10, %v6012_v4, %v6008_v10  ;;  %v7993_v0 = vsel %vm7992_vm0, 1, %v16760_v21  ;;  %v17259_v15 = vand.u32 65535, %v14814_v25 }
 0x7d8   : > { %v8137_v45 = vand.u32 65535, %v15473_v40  ;;  %v6014_v18 = vadd.s32 %v6013_v63, %v6009_v17  ;;  %v7990_v5 = vshll.u32 %v14838_v19, 16  ;;  %v17260_v23 = vshrl.u32 %v14814_v25, 16  ;;  %v17267_v17 = vld [vmem:[#allocation150_spill] sm:$0xff]  ;;  %v17268_v40 = vld [vmem:[#allocation149_spill] sm:$0xff] }
 0x7d9   : > { %v15558_v12 = vmul.u32 %v17259_v15, %v14741_v8  ;;  %v8159_v13 = vand.u32 65535, %v8129_v11  ;;  %v5882_v26 = vmul.f32 %v5881_v59, %v5879_v42  ;;  %vm5918_vm14 = vcmp.lt.s32.totalorder %v17261_v50, 0 }
 0x7da   : > { %v15565_v43 = vmul.u32 %v17260_v23, %v14741_v8  ;;  %v15570_v48 = vsel %vm8119_vm11, %v8122_v41, %v8124_v16  ;;  %v8143_v55 = vshll.u32 %v15547_v2, 16  ;;  %v5886_v58 = vsel %vm5763_vm12, %v5885_v56, %v15458_v47  ;;  %v17266_v56 = vld [vmem:[#allocation138_spill] sm:$0xff] }
 0x7db   : > { %v6015_v1 = vadd.s32 536870912, %v6014_v18  ;;  %v17262_v25 = vmov %v17257_v51  ;;  %v15582_v57 = vadd.s32 %v7993_v0, %v14848_v53  ;;  %v8160_v54 = vshrl.u32 %v8129_v11, 16 }
 0x7dc   : > { %v15579_v8 = vadd.s32 %v17262_v25, %v14829_v27  ;;  %v5883_v30 = vxor.u32 2147483648, %v5882_v26  ;;  %v8136_v36 = vshrl.u32 %v14802_v6, 16  ;;  %v8139_v46 = vmul.u32 %v8137_v45, %v8135_v60 }
 0x7dd   : > { %v17263_v44 = vand.u32 2147483647, %v17256_v33  ;;  %v6016_v47 = vshrl.u32 %v6015_v1, 30  ;;  %v15591_v7 = vmul.u32 %v8159_v13, %v8135_v60  ;;  %v8179_v27 = vmul.u32 %v14802_v6, %v15570_v48 }
 0x7de   : > { %v5884_v53 = vsel %vm5763_vm12, %v5883_v30, %v5882_v26  ;;  %v15599_v37 = vmul.u32 %v8137_v45, %v8136_v36  ;;  %vm8147_vm2 = vc.u32 %v8139_v46, %v8143_v55  ;;  %v15604_v61 = vmul.u32 %v8160_v54, %v8135_v60  ;;  %v17273_v30 = vld [vmem:[#allocation148_spill] sm:$0xff] }
 0x7df   : > { %vm15587_vm5 = vcmp.le.f32.partialorder %v17263_v44, 0.7853982  ;;  %v6017_v14 = vshll.u32 %v6016_v47, 30  ;;  %v15606_v62 = vmul.u32 %v8159_v13, %v8136_v36  ;;  %v6040_v10 = vsub.s32 4, %v6016_v47 }
 0x7e0   : > { %v5888_v32 = vsel %vm15587_vm5, 0, %v5886_v58  ;;  %v5887_v24 = vsel %vm15587_vm5, %v17256_v33, %v5884_v53  ;;  %v8142_v39 = vmul.u32 %v8138_v3, %v8136_v36  ;;  %v15610_v31 = vmul.u32 %v8160_v54, %v8136_v36  ;;  %v17272_v54 = vld [vmem:[#allocation136_spill] sm:$0xff]  ;;  %v17274_v36 = vld [vmem:[#allocation147_spill] sm:$0xff] }
 0x7e1   : > { %v5889_v29 = vmul.f32 %v5887_v24, %v5887_v24  ;;  %v5905_v51 = vadd.s32 3, %v5888_v32  ;;  %v15612_v41 = vsub.s32 %v6014_v18, %v6017_v14  ;;  %v8148_v20 = vsel %vm8147_vm2, 1, %v16760_v21  ;;  %v17275_v32 = vld [vmem:[#allocation140_spill] sm:$0xff] }
 0x7e2   : > { %vm7344_vm11 = vcmp.lt.s32.totalorder %v17266_v56, 2  ;;  %v8145_v60 = vshll.u32 %v15599_v37, 16  ;;  %v6041_v59 = vsel %vm5918_vm14, %v6040_v10, %v6016_v47  ;;  %v15625_v0 = vadd.s32 %v8143_v55, %v8139_v46 }
 0x7e3   : > { %v5890_v4 = vmul.f32 -0.001358992, %v5889_v29  ;;  %v5897_v11 = vmul.f32 -0.00019511016, %v5889_v29  ;;  %vm6019_vm1 = vcmp.lt.s32.totalorder %v15612_v41, 0  ;;  %v6020_v38 = vsub.s32 0, %v15612_v41 }
 0x7e4   : > { %v7358_v3 = vsel %vm7344_vm11, %v17268_v40, %v17267_v17  ;;  %v15627_v15 = vadd.s32 %v8148_v20, %v8142_v39  ;;  %v5906_v45 = vand.u32 3, %v5905_v51  ;;  %v17269_v26 = vand.u32 2147483647, %v17261_v50  ;;  %v17276_v39 = vld [vmem:[#allocation141_spill] sm:$0xff] }
 0x7e5   : > { %v5891_v16 = vadd.f32 0.041655596, %v5890_v4  ;;  %v5898_v42 = vadd.f32 0.008332121, %v5897_v11  ;;  %v7363_v63 = vshrl.u32 %v7358_v3, 16  ;;  %v6021_v18 = vsel %vm6019_vm1, %v6020_v38, %v15612_v41  ;;  %v17278_v20 = vld [vmem:[#allocation153_spill] sm:$0xff] }
 0x7e6   : > { %vm15632_vm7 = vcmp.le.f32.partialorder %v17269_v26, 0.7853982  ;;  %v6022_v1 = vclz %v6021_v18  ;;  %v7327_v55 = vshrl.u32 %v16751_v22, %v17272_v54  ;;  %v15644_v46 = vsel %vm7344_vm11, %v17274_v36, %v17273_v30 }
 0x7e7   : > { %v5892_v23 = vmul.f32 %v5891_v16, %v5889_v29  ;;  %v5899_v13 = vmul.f32 %v5898_v42, %v5889_v29  ;;  %v6043_v25 = vsel %vm15632_vm7, 0, %v6041_v59  ;;  %v7362_v44 = vand.u32 65535, %v7358_v3  ;;  %v17281_v16 = vld [vmem:[#allocation143_spill] sm:$0xff] }
 0x7e8   : > { %v8559_v53 = vadd.s32 4294967294, %v6022_v1  ;;  %v15647_v14 = vmul.u32 %v7363_v63, %v17275_v32  ;;  %vm5908_vm9 = vcmp.eq.s32.totalorder %v5906_v45, 0  ;;  %vm5911_vm8 = vcmp.eq.s32.totalorder %v5906_v45, 2 }
 0x7e9   : > { %v5893_v34 = vadd.f32 -0.4999988, %v5892_v23  ;;  %v5900_v47 = vadd.f32 -0.16666654, %v5899_v13  ;;  %v6010_v10 = vadd.s32 %v15523_v49, %v15516_v35  ;;  %vm17277_vm13 = vcmp.lt.s32.totalorder %v17266_v56, 1  ;;  %v17279_v35 = vld [vmem:[#allocation144_spill] sm:$0xff] }
 0x7ea   : > { %v15654_v51 = vsel %vm17277_vm13, %v7327_v55, %v17276_v39  ;;  %v15658_v4 = vshrl.u32 %v16751_v22, %v17278_v20  ;;  %vm5907_vm15 = vcmp.lt.s32.totalorder %v5906_v45, 2  ;;  %vm8560_vm3 = vcmp.lt.s32.totalorder %v8559_v53, 0 }
 0x7eb   : > { %v5894_v11 = vmul.f32 %v5893_v34, %v5889_v29  ;;  %v5901_v38 = vmul.f32 %v5900_v47, %v5889_v29  ;;  %v7384_v17 = vand.u32 65535, %v15644_v46  ;;  %vm5904_vm12 = vweird.f32 %v17256_v33 }
 0x7ec   : > { %v6025_v40 = vsel %vm8560_vm3, 0, %v8559_v53  ;;  %v15662_v3 = vadd.s32 3, %v6043_v25  ;;  %vm17280_vm10 = vcmp.lt.s32.totalorder %v17266_v56, 4  ;;  %v15670_v42 = vmul.u32 %v7362_v44, %v17281_v16 }
 0x7ed   : > { %v15667_v49 = vsel %vm17280_vm10, %v17279_v35, 2102212464  ;;  %v5895_v59 = vadd.f32 1.0, %v5894_v11  ;;  %v5902_v18 = vadd.f32 1.0, %v5901_v38  ;;  %v6026_v29 = vsub.s32 32, %v6025_v40 }
 0x7ee   : > { %v7368_v23 = vshll.u32 %v15647_v14, 16  ;;  %v6030_v13 = vsub.s32 4294967266, %v6025_v40  ;;  %v7364_v26 = vmul.u32 %v7362_v44, %v17275_v32  ;;  %v15675_v1 = vmul.u32 %v7363_v63, %v17281_v16 }
 0x7ef   : > { %v7385_v25 = vshrl.u32 %v15644_v46, 16  ;;  %v5903_v54 = vmul.f32 %v5902_v18, %v5887_v24  ;;  %v5912_v55 = vxor.u32 2147483648, %v5895_v59  ;;  %v6028_v30 = vshrl.u32 %v6010_v10, %v6026_v29  ;;  %v15700_v29 = vld [vmem:[%s16424_s7] sm:$0x7] }
 0x7f0   : > { %v15681_v36 = vmul.u32 %v7384_v17, %v17275_v32  ;;  %v6027_v34 = vshll.u32 %v15612_v41, %v6025_v40  ;;  %v6031_v47 = vadd.s32 127, %v6030_v13  ;;  %v8010_v53 = vshll.u32 %v14869_v9, 16 }
 0x7f1   : > { %v7370_v44 = vshll.u32 %v15670_v42, 16  ;;  %v5909_v39 = vxor.u32 2147483648, %v5903_v54  ;;  %v5913_v63 = vsel %vm5911_vm8, %v5912_v55, %v5903_v54  ;;  %v7989_v20 = vshrl.u32 %v14835_v28, 16 }
 0x7f2   : > { %v7374_v24 = vadd.s32 %v7368_v23, %v7364_v26  ;;  %v6029_v11 = vor.u32 %v6028_v30, %v6027_v34  ;;  %v6032_v10 = vshll.u32 %v6031_v47, 23  ;;  %vm8014_vm0 = vc.u32 %v14853_v52, %v8010_v53 }
 0x7f3   : > { %v8016_v38 = vadd.s32 %v8010_v53, %v14853_v52  ;;  %v5910_v35 = vsel %vm5908_vm9, %v5895_v59, %v5909_v39  ;;  %vm7996_vm5 = vc.u32 %v15579_v8, %v7990_v5  ;;  %v8012_v41 = vshll.u32 %v15558_v12, 16 }
 0x7f4   : > { %v8015_v40 = vsel %vm8014_vm0, 1, %v16760_v21  ;;  %v5914_v18 = vsel %vm5907_vm15, %v5910_v35, %v5913_v63  ;;  %v6033_v28 = vor.u32 4788187, %v6032_v10  ;;  %v7997_v52 = vsel %vm7996_vm5, 1, %v16760_v21 }
 0x7f5   : > { %v8017_v59 = vadd.s32 %v8015_v40, %v15565_v43  ;;  %v5915_v13 = vsel %vm5904_vm12, nan, %v5914_v18  ;;  %v7991_v5 = vshrl.u32 %v14838_v19, 16  ;;  %v7999_v8 = vadd.s32 %v7997_v52, %v15582_v57 }
 0x7f6   : > { %vm8018_vm2 = vc.u32 %v8016_v38, %v8012_v41  ;;  %8266 = vmatpush.msra.mxu0 %v5915_v13  ;;  %v6034_v45 = vand.u32 2147483647, %v6033_v28  ;;  %v6036_v54 = vcvt.s32.f32 %v6029_v11  ;;  %v8011_v55 = vshrl.u32 %v14869_v9, 16 }
 0x7f7   : > { %v8019_v30 = vsel %vm8018_vm2, 1, %v16760_v21  ;;  %vm17282_vm1 = vcmask 261120   ;;  %v8000_v34 = vadd.s32 %v7999_v8, %v7989_v20  ;;  %vm8151_vm9 = vc.u32 %v15625_v0, %v8145_v60 }
 0x7f8   : > { %8603 = vmatmul.msk.f32.vlgmr.msra.gmra.mxu0 %vm17282_vm1, %v15700_v29  ;;  %v8021_v43 = vadd.s32 %v8019_v30, %v8017_v59  ;;  %v8165_v19 = vshll.u32 %v15604_v61, 16  ;;  %v6037_v33 = vmul.f32 %v6036_v54, %v6034_v45  ;;  %v8013_v57 = vshrl.u32 %v15558_v12, 16 }
 0x7f9   : > { %v15717_v47 = vadd.s32 %v8016_v38, %v8012_v41  ;;  %v8152_v9 = vsel %vm8151_vm9, 1, %v16760_v21  ;;  %v15720_v53 = vadd.s32 %v8000_v34, %v7991_v5  ;;  %v8144_v63 = vshrl.u32 %v15547_v2, 16  ;;  %v17286_v5 = vld [vmem:[#allocation158_spill] sm:$0xff] }
 0x7fa   : > { %v8022_v39 = vadd.s32 %v8021_v43, %v8011_v55  ;;  %v8154_v20 = vadd.s32 %v8152_v9, %v15627_v15  ;;  %v6038_v11 = vxor.u32 2147483648, %v6037_v33  ;;  %v8167_v10 = vshll.u32 %v15606_v62, 16 }
 0x7fb   : > { %vm8169_vm8 = vc.u32 %v15591_v7, %v8165_v19  ;;  %v8171_v60 = vadd.s32 %v8165_v19, %v15591_v7  ;;  %vm7372_vm13 = vc.u32 %v7364_v26, %v7368_v23  ;;  %v15730_v38 = vmul.u32 %v7385_v25, %v17275_v32 }
 0x7fc   : > { %v8023_v0 = vadd.s32 %v8022_v39, %v8013_v57  ;;  %v8155_v12 = vadd.s32 %v8154_v20, %v8144_v63  ;;  %v6039_v2 = vsel %vm5918_vm14, %v6038_v11, %v6037_v33  ;;  %vm8026_vm15 = vc.u32 %v15720_v53, %v15717_v47 }
 0x7fd   : > { %v8170_v15 = vsel %vm8169_vm8, 1, %v16760_v21  ;;  %vm8173_vm3 = vc.u32 %v8171_v60, %v8167_v10  ;;  %v15740_v7 = vsel %vm15632_vm7, %v17261_v50, %v6039_v2  ;;  %v8146_v26 = vshrl.u32 %v15599_v37, 16  ;;  %v17289_v2 = vld [vmem:[#allocation142_spill] sm:$0xff] }
 0x7fe   : > { %v8027_v23 = vadd.s32 1, %v8023_v0  ;;  %v8172_v32 = vadd.s32 %v8170_v15, %v15610_v31  ;;  %v6044_v35 = vmul.f32 %v15740_v7, %v15740_v7  ;;  %v8174_v41 = vsel %vm8173_vm3, 1, %v16760_v21  ;;  %v17285_v31 = vld [vmem:[#allocation146_spill] sm:$0xff] }
 0x7ff   : > { %v7373_v40 = vsel %vm7372_vm13, 1, %v16760_v21  ;;  %vm15748_vm14 = vc.u32 %v7374_v24, %v7370_v44  ;;  %v15752_v58 = vadd.s32 %v8155_v12, %v8146_v26  ;;  %v8166_v52 = vshrl.u32 %v15604_v61, 16 }
 0x800   : > { %v8028_v28 = vsel %vm8026_vm15, %v8027_v23, %v8023_v0  ;;  %v8176_v59 = vadd.s32 %v8174_v41, %v8172_v32  ;;  %v6045_v37 = vmul.f32 -0.001358992, %v6044_v35  ;;  %v6052_v13 = vmul.f32 -0.00019511016, %v6044_v35 }
 0x801   : > { %v17287_v8 = vmul.u32 %v17285_v31, %v17286_v5  ;;  %v8168_v54 = vshrl.u32 %v15606_v62, 16  ;;  %v15759_v55 = vadd.s32 %v8171_v60, %v8167_v10  ;;  %v15764_v24 = vmul.u32 %v7384_v17, %v17281_v16  ;;  %v17288_v10 = vld [vmem:[#allocation134_spill] sm:$0xff] }
 0x802   : > { %v8177_v44 = vadd.s32 %v8176_v59, %v8166_v52  ;;  %v7390_v30 = vshll.u32 %v15730_v38, 16  ;;  %v6046_v61 = vadd.f32 0.041655596, %v6045_v37  ;;  %v6053_v34 = vadd.f32 0.008332121, %v6052_v13  ;;  %v17294_v37 = vld [vmem:[#allocation152_spill] sm:$0xff] }
 0x803   : > { %v8029_v45 = vadd.s32 %v8028_v28, %v17287_v8  ;;  %v7375_v19 = vadd.s32 %v7373_v40, %v15675_v1  ;;  %vm8181_vm7 = vc.u32 %v15752_v58, %v15759_v55  ;;  %v7377_v62 = vsel %vm15748_vm14, 1, %v16760_v21 }
 0x804   : > { %v8178_v33 = vadd.s32 %v8177_v44, %v8168_v54  ;;  %vm7394_vm12 = vc.u32 %v15681_v36, %v7390_v30  ;;  %v6047_v57 = vmul.f32 %v6046_v61, %v6044_v35  ;;  %v6054_v17 = vmul.f32 %v6053_v34, %v6044_v35 }
 0x805   : > { %v8030_v43 = vadd.s32 536870912, %v8029_v45  ;;  %v7389_v39 = vmul.u32 %v7385_v25, %v17281_v16  ;;  %v7392_v1 = vshll.u32 %v15764_v24, 16  ;;  %v7395_v20 = vsel %vm7394_vm12, 1, %v16760_v21 }
 0x806   : > { %v8182_v63 = vadd.s32 1, %v8178_v33  ;;  %v7396_v11 = vadd.s32 %v7390_v30, %v15681_v36  ;;  %vm7933_vm10 = vcmp.lt.s32.totalorder %v17288_v10, 0  ;;  %v6048_v60 = vadd.f32 -0.4999988, %v6047_v57 }
 0x807   : > { %v8031_v9 = vshrl.u32 %v8030_v43, 30  ;;  %v6055_v0 = vadd.f32 -0.16666654, %v6054_v17  ;;  %vm17290_vm0 = vcmp.lt.s32.totalorder %v17266_v56, 3  ;;  %v7379_v16 = vadd.s32 %v7377_v62, %v7375_v19  ;;  %v17295_v19 = vld [vmem:[#allocation139_spill] sm:$0xff] }
 0x808   : > { %v7349_v15 = vsel %vm17290_vm0, %v17289_v2, %v15667_v49  ;;  %v8183_v46 = vsel %vm8181_vm7, %v8182_v63, %v8178_v33  ;;  %v7397_v25 = vadd.s32 %v7395_v20, %v7389_v39  ;;  %vm7398_vm5 = vc.u32 %v7396_v11, %v7392_v1 }
 0x809   : > { %v8032_v12 = vshll.u32 %v8031_v9, 30  ;;  %v6049_v23 = vmul.f32 %v6048_v60, %v6044_v35  ;;  %v6056_v26 = vmul.f32 %v6055_v0, %v6044_v35  ;;  %v6061_v36 = vand.u32 3, %v15662_v3 }
 0x80a   : > { %vm6059_vm2 = vweird.f32 %v17261_v50  ;;  %v17291_v41 = vand.u32 2147483647, %v17288_v10  ;;  %v8184_v49 = vadd.s32 %v8183_v46, %v8179_v27  ;;  %v7369_v18 = vshrl.u32 %v15647_v14, 16 }
 0x80b   : > { %v15789_v32 = vsub.s32 %v8029_v45, %v8032_v12  ;;  %v7391_v35 = vshrl.u32 %v15730_v38, 16  ;;  %v7399_v3 = vsel %vm7398_vm5, 1, %v16760_v21  ;;  %v6050_v28 = vadd.f32 1.0, %v6049_v23 }
 0x80c   : > { %vm15794_vm1 = vcmp.le.f32.partialorder %v17291_v41, 0.7853982  ;;  %v6057_v52 = vadd.f32 1.0, %v6056_v26  ;;  %vm7499_vm8 = vcmp.lt.s32.totalorder %v17294_v37, 2  ;;  %v8055_v13 = vsub.s32 4, %v8031_v9 }
 0x80d   : > { %vm8034_vm9 = vcmp.lt.s32.totalorder %v15789_v32, 0  ;;  %v8035_v59 = vsub.s32 0, %v15789_v32  ;;  %v8185_v31 = vadd.s32 536870912, %v8184_v49  ;;  %v7380_v5 = vadd.s32 %v7379_v16, %v7369_v18 }
 0x80e   : > { %v7401_v8 = vadd.s32 %v7399_v3, %v7397_v25  ;;  %v6058_v6 = vmul.f32 %v6057_v52, %v15740_v7  ;;  %v6067_v48 = vxor.u32 2147483648, %v6050_v28  ;;  %v7350_v14 = vsel %vm7344_vm11, %v15654_v51, %v7349_v15 }
 0x80f   : > { %v8036_v27 = vsel %vm8034_vm9, %v8035_v59, %v15789_v32  ;;  %v8186_v45 = vshrl.u32 %v8185_v31, 30  ;;  %v7371_v54 = vshrl.u32 %v15670_v42, 16  ;;  %vm6062_vm13 = vcmp.lt.s32.totalorder %v6061_v36, 2  ;;  %v17303_v59 = vld [vmem:[#allocation155_spill] sm:$0xff] }
 0x810   : > { %v8037_v38 = vclz %v8036_v27  ;;  %v7402_v44 = vadd.s32 %v7401_v8, %v7391_v35  ;;  %vm6063_vm15 = vcmp.eq.s32.totalorder %v6061_v36, 0  ;;  %v6064_v30 = vxor.u32 2147483648, %v6058_v6  ;;  %v17304_v27 = vld [vmem:[#allocation157_spill] sm:$0xff] }
 0x811   : > { %v7393_v61 = vshrl.u32 %v15764_v24, 16  ;;  %vm6066_vm3 = vcmp.eq.s32.totalorder %v6061_v36, 2  ;;  %v8056_v7 = vsel %vm7933_vm10, %v8055_v13, %v8031_v9  ;;  %v7381_v43 = vadd.s32 %v7380_v5, %v7371_v54 }
 0x812   : > { %v8598_v34 = vadd.s32 4294967294, %v8037_v38  ;;  %vm8088_vm14 = vcmp.lt.s32.totalorder %v17295_v19, 0  ;;  %v6065_v56 = vsel %vm6063_vm15, %v6050_v28, %v6064_v30  ;;  %v6068_v51 = vsel %vm6066_vm3, %v6067_v48, %v6058_v6 }
 0x813   : > { %v8187_v33 = vshll.u32 %v8186_v45, 30  ;;  %v7403_v62 = vadd.s32 %v7402_v44, %v7393_v61  ;;  %v6069_v57 = vsel %vm6062_vm13, %v6065_v56, %v6068_v51  ;;  %v8025_v42 = vadd.s32 %v15717_v47, %v15720_v53  ;;  %v17299_v47 = vld [vmem:[#allocation162_spill] sm:$0xff]  ;;  %v17300_v53 = vld [vmem:[#allocation160_spill] sm:$0xff] }
 0x814   : > { %vm8599_vm11 = vcmp.lt.s32.totalorder %v8598_v34, 0  ;;  %v7400_v17 = vadd.s32 %v7396_v11, %v7392_v1  ;;  %v6070_v24 = vsel %vm6059_vm2, nan, %v6069_v57  ;;  %v8058_v9 = vsel %vm15794_vm1, 0, %v8056_v7  ;;  %v17302_v11 = vld [vmem:[#allocation137_spill] sm:$0xff] }
 0x815   : > { %v8040_v39 = vsel %vm8599_vm11, 0, %v8598_v34  ;;  %v8188_v63 = vsub.s32 %v8184_v49, %v8187_v33  ;;  %8286 = vmatpush.msra.mxu1 %v6070_v24  ;;  %v17296_v0 = vand.u32 2147483647, %v17295_v19  ;;  %v7513_v50 = vsel %vm7499_vm8, %v17300_v53, %v17299_v47  ;;  %v17309_v24 = vld [vmem:[#allocation156_spill] sm:$0xff] }
 0x816   : > { %v8041_v20 = vsub.s32 32, %v8040_v39  ;;  %v8045_v60 = vsub.s32 4294967266, %v8040_v39  ;;  %vm7406_vm12 = vc.u32 %v7381_v43, %v7400_v17  ;;  %vm17301_vm0 = vcmask 261120  }
 0x817   : > { %vm15825_vm7 = vcmp.le.f32.partialorder %v17296_v0, 0.7853982  ;;  %8604 = vmatmul.msk.f32.vlgmr.msra.gmra.mxu1 %vm17301_vm0, %v15700_v29  ;;  %vm8189_vm5 = vcmp.lt.s32.totalorder %v8188_v63, 0  ;;  %v8190_v1 = vsub.s32 0, %v8188_v63  ;;  %v7404_v2 = vmul.u32 %v17302_v11, %v7350_v14  ;;  %v17306_v14 = vld [vmem:[#allocation159_spill] sm:$0xff] }
 0x818   : > { %v7407_v15 = vadd.s32 1, %v7403_v62  ;;  %v8042_v46 = vshll.u32 %v15789_v32, %v8040_v39  ;;  %v8043_v16 = vshrl.u32 %v8025_v42, %v8041_v20  ;;  %v8046_v25 = vadd.s32 127, %v8045_v60 }
 0x819   : > { %v8210_v23 = vsub.s32 4, %v8186_v45  ;;  %v8075_v26 = vadd.s32 3, %v8058_v9  ;;  %v8191_v36 = vsel %vm8189_vm5, %v8190_v1, %v8188_v63  ;;  %v7518_v49 = vshrl.u32 %v7513_v50, 16 }
 0x81a   : > { %v7408_v41 = vsel %vm7406_vm12, %v7407_v15, %v7403_v62  ;;  %v8044_v18 = vor.u32 %v8043_v16, %v8042_v46  ;;  %v8047_v35 = vshll.u32 %v8046_v25, 23  ;;  %v8192_v3 = vclz %v8191_v36  ;;  %v17308_v62 = vld [vmem:[#allocation154_spill] sm:$0xff] }
 0x81b   : > { %v7409_v28 = vadd.s32 %v7408_v41, %v7404_v2  ;;  %v8180_v29 = vadd.s32 %v15759_v55, %v15752_v58  ;;  %v15839_v52 = vadd.s32 %v7400_v17, %v7381_v43  ;;  %v7502_v32 = vsel %vm7498_vm6, %v15658_v4, %v17303_v59  ;;  %v17305_v55 = vld [vmem:[#allocation161_spill] sm:$0xff]  ;;  %v17307_v4 = vld [vmem:[#allocation151_spill] sm:$0xff] }
 0x81c   : > { %v7517_v13 = vand.u32 65535, %v7513_v50  ;;  %v8048_v31 = vor.u32 4788187, %v8047_v35  ;;  %v8601_v5 = vadd.s32 4294967294, %v8192_v3  ;;  %v8211_v8 = vsel %vm8088_vm14, %v8210_v23, %v8186_v45 }
 0x81d   : > { %v7410_v6 = vadd.s32 536870912, %v7409_v28  ;;  %v15847_v48 = vand.u32 3, %v8075_v26  ;;  %v7503_v58 = vsel %vm7501_vm4, %v17304_v27, 2102212464  ;;  %v15856_v38 = vsel %vm7499_vm8, %v17306_v14, %v17305_v55 }
 0x81e   : > { %v15859_v54 = vmul.u32 %v7518_v49, %v17307_v4  ;;  %v8049_v44 = vand.u32 2147483647, %v8048_v31  ;;  %v8051_v30 = vcvt.s32.f32 %v8044_v18  ;;  %vm8602_vm6 = vcmp.lt.s32.totalorder %v8601_v5, 0 }
 0x81f   : > { %v15861_v45 = vshrl.u32 %v7410_v6, 30  ;;  %v8195_v61 = vsel %vm8602_vm6, 0, %v8601_v5  ;;  %v8213_v34 = vsel %vm15825_vm7, 0, %v8211_v8  ;;  %v7519_v7 = vmul.u32 %v7517_v13, %v17307_v4 }
 0x820   : > { %v7523_v43 = vshll.u32 %v15859_v54, 16  ;;  %v8052_v56 = vmul.f32 %v8051_v30, %v8049_v44  ;;  %v8196_v51 = vsub.s32 32, %v8195_v61  ;;  %v8200_v33 = vsub.s32 4294967266, %v8195_v61  ;;  %v17311_v30 = vld [vmem:[#allocation124_spill] sm:$0xff] }
 0x821   : > { %v15868_v57 = vmul.u32 %v7517_v13, %v17308_v62  ;;  %v8197_v42 = vshll.u32 %v8188_v63, %v8195_v61  ;;  %v7412_v17 = vshll.u32 %v15861_v45, 30  ;;  %vm17310_vm4 = vcmp.lt.s32.totalorder %v17294_v37, 3 }
 0x822   : > { %v7504_v39 = vsel %vm17310_vm4, %v17309_v24, %v7503_v58  ;;  %vm7527_vm2 = vc.u32 %v7519_v7, %v7523_v43  ;;  %v8053_v9 = vxor.u32 2147483648, %v8052_v56  ;;  %v8198_v20 = vshrl.u32 %v8180_v29, %v8196_v51 }
 0x823   : > { %v8201_v60 = vadd.s32 127, %v8200_v33  ;;  %v7528_v0 = vsel %vm7527_vm2, 1, %v16760_v21  ;;  %v8230_v47 = vadd.s32 3, %v8213_v34  ;;  %v15875_v53 = vsub.s32 %v7409_v28, %v7412_v17 }
 0x824   : > { %v7522_v50 = vmul.u32 %v7518_v49, %v17308_v62  ;;  %v7529_v1 = vadd.s32 %v7523_v43, %v7519_v7  ;;  %v8054_v63 = vsel %vm7933_vm10, %v8053_v9, %v8052_v56  ;;  %v8199_v11 = vor.u32 %v8198_v20, %v8197_v42 }
 0x825   : > { %v8202_v2 = vshll.u32 %v8201_v60, 23  ;;  %v7525_v15 = vshll.u32 %v15868_v57, 16  ;;  %v15884_v46 = vsel %vm15794_vm1, %v17288_v10, %v8054_v63  ;;  %vm7414_vm9 = vcmp.lt.s32.totalorder %v15875_v53, 0 }
 0x826   : > { %v7415_v16 = vsub.s32 0, %v15875_v53  ;;  %v7530_v25 = vadd.s32 %v7528_v0, %v7522_v50  ;;  %v8059_v23 = vmul.f32 %v15884_v46, %v15884_v46  ;;  %v7539_v36 = vand.u32 65535, %v15856_v38 }
 0x827   : > { %v8203_v26 = vor.u32 4788187, %v8202_v2  ;;  %vm7531_vm13 = vc.u32 %v7529_v1, %v7525_v15  ;;  %v8206_v41 = vcvt.s32.f32 %v8199_v11  ;;  %v7540_v40 = vshrl.u32 %v15856_v38, 16 }
 0x828   : > { %v7416_v49 = vsel %vm7414_vm9, %v7415_v16, %v15875_v53  ;;  %v7532_v18 = vsel %vm7531_vm13, 1, %v16760_v21  ;;  %v8060_v35 = vmul.f32 -0.001358992, %v8059_v23  ;;  %v8067_v3 = vmul.f32 -0.00019511016, %v8059_v23 }
 0x829   : > { %v8204_v28 = vand.u32 2147483647, %v8203_v26  ;;  %v7417_v29 = vclz %v7416_v49  ;;  %v15894_v59 = vand.u32 3, %v8230_v47  ;;  %v15898_v13 = vsel %vm7499_vm8, %v7502_v32, %v7504_v39 }
 0x82a   : > { %v7524_v31 = vshrl.u32 %v15859_v54, 16  ;;  %v7534_v5 = vadd.s32 %v7532_v18, %v7530_v25  ;;  %v8061_v8 = vadd.f32 0.041655596, %v8060_v35  ;;  %v8068_v6 = vadd.f32 0.008332121, %v8067_v3 }
 0x82b   : > { %v8207_v27 = vmul.f32 %v8206_v41, %v8204_v28  ;;  %v8586_v58 = vadd.s32 4294967294, %v7417_v29  ;;  %v7435_v55 = vsub.s32 4, %v15861_v45  ;;  %v7526_v14 = vshrl.u32 %v15868_v57, 16 }
 0x82c   : > { %v7541_v38 = vmul.u32 %v7539_v36, %v17307_v4  ;;  %v7542_v44 = vmul.u32 %v7540_v40, %v17307_v4  ;;  %vm7313_vm10 = vcmp.lt.s32.totalorder %v17311_v30, 0  ;;  %v8062_v37 = vmul.f32 %v8061_v8, %v8059_v23 }
 0x82d   : > { %v8069_v32 = vmul.f32 %v8068_v6, %v8059_v23  ;;  %v8208_v61 = vxor.u32 2147483648, %v8207_v27  ;;  %vm8587_vm1 = vcmp.lt.s32.totalorder %v8586_v58, 0  ;;  %v7535_v34 = vadd.s32 %v7534_v5, %v7524_v31 }
 0x82e   : > { %v7420_v54 = vsel %vm8587_vm1, 0, %v8586_v58  ;;  %v15907_v7 = vmul.u32 %v7539_v36, %v17308_v62  ;;  %v7545_v43 = vshll.u32 %v7542_v44, 16  ;;  %v8063_v56 = vadd.f32 -0.4999988, %v8062_v37 }
 0x82f   : > { %v8070_v51 = vadd.f32 -0.16666654, %v8069_v32  ;;  %v8209_v33 = vsel %vm8088_vm14, %v8208_v61, %v8207_v27  ;;  %v7421_v57 = vsub.s32 32, %v7420_v54  ;;  %vm8078_vm8 = vcmp.eq.s32.totalorder %v15847_v48, 0 }
 0x830   : > { %vm8081_vm15 = vcmp.eq.s32.totalorder %v15847_v48, 2  ;;  %v15916_v4 = vsel %vm15825_vm7, %v17295_v19, %v8209_v33  ;;  %v7422_v42 = vshll.u32 %v15875_v53, %v7420_v54  ;;  %v7425_v17 = vsub.s32 4294967266, %v7420_v54 }
 0x831   : > { %v7544_v24 = vmul.u32 %v7540_v40, %v17308_v62  ;;  %v8064_v39 = vmul.f32 %v8063_v56, %v8059_v23  ;;  %v8071_v9 = vmul.f32 %v8070_v51, %v8059_v23  ;;  %vm8077_vm3 = vcmp.lt.s32.totalorder %v15847_v48, 2  ;;  %v17316_v51 = vld [vmem:[#allocation145_spill] sm:$0xff] }
 0x832   : > { %v8214_v20 = vmul.f32 %v15916_v4, %v15916_v4  ;;  %v7423_v60 = vshrl.u32 %v15839_v52, %v7421_v57  ;;  %vm8074_vm14 = vweird.f32 %v17288_v10  ;;  %v7426_v0 = vadd.s32 127, %v7425_v17  ;;  %v17315_v10 = vld [vmem:[#allocation121_spill] sm:$0xff] }
 0x833   : > { %v7547_v12 = vshll.u32 %v15907_v7, 16  ;;  %vm7549_vm11 = vc.u32 %v7541_v38, %v7545_v43  ;;  %v7551_v47 = vadd.s32 %v7545_v43, %v7541_v38  ;;  %v8065_v53 = vadd.f32 1.0, %v8064_v39  ;;  %v17317_v39 = vld [vmem:[#allocation107_spill] sm:$0xff] }
 0x834   : > { %v8072_v50 = vadd.f32 1.0, %v8071_v9  ;;  %v8215_v1 = vmul.f32 -0.001358992, %v8214_v20  ;;  %v8222_v62 = vmul.f32 -0.00019511016, %v8214_v20  ;;  %v7424_v63 = vor.u32 %v7423_v60, %v7422_v42  ;;  %v17318_v60 = vld [vmem:[#allocation122_spill] sm:$0xff] }
 0x835   : > { %v7427_v11 = vshll.u32 %v7426_v0, 23  ;;  %v7550_v2 = vsel %vm7549_vm11, 1, %v16760_v21  ;;  %vm7553_vm7 = vc.u32 %v7551_v47, %v7547_v12  ;;  %v8082_v16 = vxor.u32 2147483648, %v8065_v53  ;;  %v17319_v0 = vld [vmem:[#allocation120_spill] sm:$0xff] }
 0x836   : > { %v8073_v15 = vmul.f32 %v8072_v50, %v15884_v46  ;;  %v8216_v52 = vadd.f32 0.041655596, %v8215_v1  ;;  %v8223_v25 = vadd.f32 0.008332121, %v8222_v62  ;;  %v7436_v26 = vsel %vm7313_vm10, %v7435_v55, %v15861_v45 }
 0x837   : > { %v7428_v23 = vor.u32 4788187, %v7427_v11  ;;  %v7552_v36 = vadd.s32 %v7550_v2, %v7544_v24  ;;  %v7554_v41 = vsel %vm7553_vm7, 1, %v16760_v21  ;;  %v15932_v35 = vadd.s32 %v7535_v34, %v7526_v14 }
 0x838   : > { %v8079_v49 = vxor.u32 2147483648, %v8073_v15  ;;  %v8217_v18 = vmul.f32 %v8216_v52, %v8214_v20  ;;  %v8224_v40 = vmul.f32 %v8223_v25, %v8214_v20  ;;  %v7431_v28 = vcvt.s32.f32 %v7424_v63 }
 0x839   : > { %v7429_v3 = vand.u32 2147483647, %v7428_v23  ;;  %v7546_v29 = vshrl.u32 %v7542_v44, 16  ;;  %v7556_v46 = vadd.s32 %v7554_v41, %v7552_v36  ;;  %v8083_v5 = vsel %vm8081_vm15, %v8082_v16, %v8073_v15  ;;  %v17320_v15 = vld [vmem:[#allocation119_spill] sm:$0xff]  ;;  %v17321_v16 = vld [vmem:[#allocation116_spill] sm:$0xff]  ;;  %v17322_v36 = vld [vmem:[#allocation113_spill] sm:$0xff] }
 0x83a   : > { %v8080_v31 = vsel %vm8078_vm8, %v8065_v53, %v8079_v49  ;;  %v8218_v8 = vadd.f32 -0.4999988, %v8217_v18  ;;  %v8225_v45 = vadd.f32 -0.16666654, %v8224_v40  ;;  %v7548_v58 = vshrl.u32 %v15907_v7, 16 }
 0x83b   : > { %v8084_v6 = vsel %vm8077_vm3, %v8080_v31, %v8083_v5  ;;  %v7432_v27 = vmul.f32 %v7431_v28, %v7429_v3  ;;  %v7557_v55 = vadd.s32 %v7556_v46, %v7546_v29  ;;  %v15943_v37 = vadd.s32 %v7551_v47, %v7547_v12  ;;  %v17323_v3 = vld [vmem:[#allocation115_spill] sm:$0xff]  ;;  %v17324_v5 = vld [vmem:[#allocation130_spill] sm:$0xff] }
 0x83c   : > { %v8085_v14 = vsel %vm8074_vm14, nan, %v8084_v6  ;;  %v8219_v38 = vmul.f32 %v8218_v8, %v8214_v20  ;;  %v8226_v44 = vmul.f32 %v8225_v45, %v8214_v20  ;;  %vm8229_vm12 = vweird.f32 %v17295_v19  ;;  %v17325_v8 = vld [vmem:[#allocation128_spill] sm:$0xff]  ;;  %v17326_v19 = vld [vmem:[#allocation126_spill] sm:$0xff] }
 0x83d   : > { %8303 = vmatpush.msra.mxu2 %v8085_v14  ;;  %v17312_v32 = vand.u32 2147483647, %v17311_v30  ;;  %v7433_v48 = vxor.u32 2147483648, %v7432_v27  ;;  %v7558_v54 = vadd.s32 %v7557_v55, %v7548_v58  ;;  %vm8232_vm5 = vcmp.lt.s32.totalorder %v15894_v59, 2 }
 0x83e   : > { %v8220_v34 = vadd.f32 1.0, %v8219_v38  ;;  %v8227_v7 = vadd.f32 1.0, %v8226_v44  ;;  %vm7561_vm6 = vc.u32 %v15932_v35, %v15943_v37  ;;  %vm6880_vm4 = vcmp.lt.s32.totalorder %v17315_v10, 3  ;;  %v17328_v44 = vld [vmem:[#allocation131_spill] sm:$0xff] }
 0x83f   : > { %vm15948_vm0 = vcmp.le.f32.partialorder %v17312_v32, 0.7853982  ;;  %v7434_v43 = vsel %vm7313_vm10, %v7433_v48, %v7432_v27  ;;  %v7559_v33 = vmul.u32 %v17316_v51, %v15898_v13  ;;  %v7562_v57 = vadd.s32 1, %v7558_v54  ;;  %v17329_v32 = vld [vmem:[#allocation127_spill] sm:$0xff] }
 0x840   : > { %v7438_v56 = vsel %vm15948_vm0, 0, %v7436_v26  ;;  %v8228_v42 = vmul.f32 %v8227_v7, %v15916_v4  ;;  %v8237_v17 = vxor.u32 2147483648, %v8220_v34  ;;  %v7437_v24 = vsel %vm15948_vm0, %v17311_v30, %v7434_v43 }
 0x841   : > { %vm6724_vm2 = vcmp.lt.s32.totalorder %v17317_v39, 2  ;;  %vm8233_vm9 = vcmp.eq.s32.totalorder %v15894_v59, 0  ;;  %v7439_v9 = vmul.f32 %v7437_v24, %v7437_v24  ;;  %v7563_v20 = vsel %vm7561_vm6, %v7562_v57, %v7558_v54 }
 0x842   : > { %v6738_v12 = vsel %vm6724_vm2, %v17319_v0, %v17318_v60  ;;  %v8234_v13 = vxor.u32 2147483648, %v8228_v42  ;;  %v7455_v47 = vadd.s32 3, %v7438_v56  ;;  %v7564_v53 = vadd.s32 %v7563_v20, %v7559_v33  ;;  %v17330_v0 = vld [vmem:[#allocation133_spill] sm:$0xff] }
 0x843   : > { %v6742_v4 = vand.u32 65535, %v6738_v12  ;;  %vm8236_vm13 = vcmp.eq.s32.totalorder %v15894_v59, 2  ;;  %v7440_v50 = vmul.f32 -0.001358992, %v7439_v9  ;;  %v7447_v1 = vmul.f32 -0.00019511016, %v7439_v9 }
 0x844   : > { %v6743_v62 = vshrl.u32 %v6738_v12, 16  ;;  %v8235_v63 = vsel %vm8233_vm9, %v8220_v34, %v8234_v13  ;;  %v8238_v11 = vsel %vm8236_vm13, %v8237_v17, %v8228_v42  ;;  %v7565_v2 = vadd.s32 536870912, %v7564_v53 }
 0x845   : > { %v6734_v52 = vsel %vm6724_vm2, %v17321_v16, %v17320_v15  ;;  %v8239_v25 = vsel %vm8232_vm5, %v8235_v63, %v8238_v11  ;;  %v7441_v23 = vadd.f32 0.041655596, %v7440_v50  ;;  %v7448_v26 = vadd.f32 0.008332121, %v7447_v1  ;;  %v17332_v1 = vld [vmem:[#allocation112_spill] sm:$0xff] }
 0x846   : > { %v15980_v41 = vmul.u32 %v6743_v62, %v17322_v36  ;;  %v8240_v49 = vsel %vm8229_vm12, nan, %v8239_v25  ;;  %v7456_v18 = vand.u32 3, %v7455_v47  ;;  %v15984_v40 = vshrl.u32 %v7565_v2, 30 }
 0x847   : > { %v15987_v28 = vmul.u32 %v6742_v4, %v17323_v3  ;;  %8323 = vmatpush.msra.mxu3 %v8240_v49  ;;  %v7442_v29 = vmul.f32 %v7441_v23, %v7439_v9  ;;  %v7449_v46 = vmul.f32 %v7448_v26, %v7439_v9  ;;  %v6744_v59 = vmul.u32 %v6742_v4, %v17322_v36  ;;  %v17331_v4 = vld [vmem:[#allocation102_spill] sm:$0xff] }
 0x848   : > { %v6748_v31 = vshll.u32 %v15980_v41, 16  ;;  %v15995_v45 = vsel %vm6880_vm4, %v17325_v8, %v17324_v5  ;;  %vm17327_vm10 = vcmp.lt.s32.totalorder %v17315_v10, 1  ;;  %v7567_v27 = vshll.u32 %v15984_v40, 30 }
 0x849   : > { %v16001_v6 = vsel %vm17327_vm10, %v17326_v19, %v17325_v8  ;;  %v6765_v58 = vshrl.u32 %v6734_v52, 16  ;;  %v7443_v55 = vadd.f32 -0.4999988, %v7442_v29  ;;  %v7450_v14 = vadd.f32 -0.16666654, %v7449_v46 }
 0x84a   : > { %vm6752_vm1 = vc.u32 %v6744_v59, %v6748_v31  ;;  %v6754_v38 = vadd.s32 %v6748_v31, %v6744_v59  ;;  %v16008_v61 = vsel %vm6880_vm4, %v17329_v32, %v17328_v44  ;;  %v16010_v48 = vsub.s32 %v7564_v53, %v7567_v27 }
 0x84b   : > { %v6750_v54 = vshll.u32 %v15987_v28, 16  ;;  %v6753_v34 = vsel %vm6752_vm1, 1, %v16760_v21  ;;  %v7444_v7 = vmul.f32 %v7443_v55, %v7439_v9  ;;  %v7451_v43 = vmul.f32 %v7450_v14, %v7439_v9 }
 0x84c   : > { %vm7457_vm8 = vcmp.lt.s32.totalorder %v7456_v18, 2  ;;  %v6747_v56 = vmul.u32 %v6743_v62, %v17323_v3  ;;  %vm7454_vm15 = vweird.f32 %v17311_v30  ;;  %vm7569_vm3 = vcmp.lt.s32.totalorder %v16010_v48, 0 }
 0x84d   : > { %v7570_v51 = vsub.s32 0, %v16010_v48  ;;  %vm6756_vm14 = vc.u32 %v6754_v38, %v6750_v54  ;;  %v6764_v33 = vand.u32 65535, %v6734_v52  ;;  %v7445_v57 = vadd.f32 1.0, %v7444_v7  ;;  %v17337_v54 = vld [vmem:[#allocation110_spill] sm:$0xff] }
 0x84e   : > { %v7452_v42 = vadd.f32 1.0, %v7451_v43  ;;  %v6755_v17 = vadd.s32 %v6753_v34, %v6747_v56  ;;  %v6767_v20 = vmul.u32 %v6765_v58, %v17322_v36  ;;  %vm7458_vm11 = vcmp.eq.s32.totalorder %v7456_v18, 0 }
 0x84f   : > { %vm7461_vm7 = vcmp.eq.s32.totalorder %v7456_v18, 2  ;;  %v7571_v9 = vsel %vm7569_vm3, %v7570_v51, %v16010_v48  ;;  %v6757_v60 = vsel %vm6756_vm14, 1, %v16760_v21  ;;  %vm7468_vm12 = vcmp.lt.s32.totalorder %v17330_v0, 0 }
 0x850   : > { %v7453_v12 = vmul.f32 %v7452_v42, %v7437_v24  ;;  %v7462_v13 = vxor.u32 2147483648, %v7445_v57  ;;  %v7560_v47 = vadd.s32 %v15943_v37, %v15932_v35  ;;  %v7572_v53 = vclz %v7571_v9  ;;  %v17342_v42 = vld [vmem:[#allocation129_spill] sm:$0xff] }
 0x851   : > { %v6707_v50 = vshrl.u32 %v16751_v22, %v17331_v4  ;;  %vm17333_vm0 = vcmp.lt.s32.totalorder %v17317_v39, 4  ;;  %v6766_v63 = vmul.u32 %v6764_v33, %v17322_v36  ;;  %v6768_v11 = vmul.u32 %v6764_v33, %v17323_v3 }
 0x852   : > { %v6728_v62 = vsel %vm17333_vm0, %v17332_v1, 2102212464  ;;  %v7459_v2 = vxor.u32 2147483648, %v7453_v12  ;;  %v8589_v15 = vadd.s32 4294967294, %v7572_v53  ;;  %v6759_v16 = vadd.s32 %v6757_v60, %v6755_v17 }
 0x853   : > { %v6770_v24 = vshll.u32 %v6767_v20, 16  ;;  %v7463_v52 = vsel %vm7461_vm7, %v7462_v13, %v7453_v12  ;;  %v7590_v35 = vsub.s32 4, %v15984_v40  ;;  %v6749_v37 = vshrl.u32 %v15980_v41, 16  ;;  %v17334_v41 = vld [vmem:[#allocation84_spill] sm:$0xff] }
 0x854   : > { %v6769_v25 = vmul.u32 %v6765_v58, %v17323_v3  ;;  %v7460_v23 = vsel %vm7458_vm11, %v7445_v57, %v7459_v2  ;;  %vm8590_vm5 = vcmp.lt.s32.totalorder %v8589_v15, 0  ;;  %v6772_v29 = vshll.u32 %v6768_v11, 16  ;;  %v17335_v3 = vld [vmem:[#allocation109_spill] sm:$0xff] }
 0x855   : > { %vm6774_vm6 = vc.u32 %v6766_v63, %v6770_v24  ;;  %v6776_v26 = vadd.s32 %v6770_v24, %v6766_v63  ;;  %v7464_v36 = vsel %vm7457_vm8, %v7460_v23, %v7463_v52  ;;  %v7575_v49 = vsel %vm8590_vm5, 0, %v8589_v15  ;;  %v17346_v24 = vld [vmem:[#allocation104_spill] sm:$0xff] }
 0x856   : > { %v6775_v46 = vsel %vm6774_vm6, 1, %v16760_v21  ;;  %v7465_v59 = vsel %vm7454_vm15, nan, %v7464_v36  ;;  %v7576_v31 = vsub.s32 32, %v7575_v49  ;;  %v7580_v5 = vsub.s32 4294967266, %v7575_v49 }
 0x857   : > { %v6760_v27 = vadd.s32 %v6759_v16, %v6749_v37  ;;  %vm6261_vm9 = vcmp.lt.s32.totalorder %v17334_v41, 4  ;;  %8304 = vmatpush.msra.mxu2 %v7465_v59  ;;  %vm17336_vm13 = vcmp.lt.s32.totalorder %v17317_v39, 1  ;;  %v6751_v18 = vshrl.u32 %v15987_v28, 16 }
 0x858   : > { %v6727_v58 = vsel %vm17336_vm13, %v6707_v50, %v17335_v3  ;;  %v6777_v55 = vadd.s32 %v6775_v46, %v6769_v25  ;;  %vm6778_vm10 = vc.u32 %v6776_v26, %v6772_v29  ;;  %v7577_v14 = vshll.u32 %v16010_v48, %v7575_v49  ;;  %v17348_v3 = vld [vmem:[#allocation89_spill] sm:$0xff] }
 0x859   : > { %v7578_v38 = vshrl.u32 %v7560_v47, %v7576_v31  ;;  %v7581_v44 = vadd.s32 127, %v7580_v5  ;;  %v6779_v30 = vsel %vm6778_vm10, 1, %v16760_v21  ;;  %v7591_v32 = vsel %vm7468_vm12, %v7590_v35, %v15984_v40 }
 0x85a   : > { %vm17338_vm1 = vcmp.lt.s32.totalorder %v17317_v39, 3  ;;  %v6771_v7 = vshrl.u32 %v6767_v20, 16  ;;  %v6781_v43 = vadd.s32 %v6779_v30, %v6777_v55  ;;  %v16053_v51 = vadd.s32 %v6760_v27, %v6751_v18  ;;  %v17347_v27 = vld [vmem:[#allocation90_spill] sm:$0xff] }
 0x85b   : > { %v6729_v34 = vsel %vm17338_vm1, %v17337_v54, %v6728_v62  ;;  %v7579_v56 = vor.u32 %v7578_v38, %v7577_v14  ;;  %v7582_v28 = vshll.u32 %v7581_v44, 23  ;;  %vm6879_vm8 = vcmp.lt.s32.totalorder %v17315_v10, 2  ;;  %v17343_v62 = vld [vmem:[#allocation117_spill] sm:$0xff] }
 0x85c   : > { %v17339_v48 = vand.u32 2147483647, %v17330_v0  ;;  %v6773_v57 = vshrl.u32 %v6768_v11, 16  ;;  %v6782_v40 = vadd.s32 %v6781_v43, %v6771_v7  ;;  %v6889_v17 = vsel %vm6879_vm8, %v17342_v42, %v15995_v45  ;;  %v17344_v11 = vld [vmem:[#allocation118_spill] sm:$0xff]  ;;  %v17350_v42 = vld [vmem:[#allocation123_spill] sm:$0xff] }
 0x85d   : > { %v7583_v20 = vor.u32 4788187, %v7582_v28  ;;  %v6730_v9 = vsel %vm6724_vm2, %v6727_v58, %v6729_v34  ;;  %v16068_v60 = vadd.s32 %v6776_v26, %v6772_v29  ;;  %v6893_v12 = vsel %vm6879_vm8, %v16001_v6, %v16008_v61  ;;  %v17345_v6 = vld [vmem:[#allocation95_spill] sm:$0xff] }
 0x85e   : > { %vm16058_vm15 = vcmp.le.f32.partialorder %v17339_v48, 0.7853982  ;;  %v6783_v47 = vadd.s32 %v6782_v40, %v6773_v57  ;;  %v6897_v53 = vand.u32 65535, %v6893_v12  ;;  %v6898_v4 = vshrl.u32 %v6893_v12, 16 }
 0x85f   : > { %v7593_v13 = vsel %vm16058_vm15, 0, %v7591_v32  ;;  %v7584_v50 = vand.u32 2147483647, %v7583_v20  ;;  %v7586_v1 = vcvt.s32.f32 %v7579_v56  ;;  %vm6786_vm3 = vc.u32 %v16053_v51, %v16068_v60 }
 0x860   : > { %v6920_v39 = vshrl.u32 %v6889_v17, 16  ;;  %v6787_v45 = vadd.s32 1, %v6783_v47  ;;  %v6900_v63 = vmul.u32 %v6898_v4, %v17343_v62  ;;  %v16080_v2 = vmul.u32 %v6897_v53, %v17344_v11 }
 0x861   : > { %v6919_v15 = vand.u32 65535, %v6889_v17  ;;  %v16085_v61 = vsel %vm6261_vm9, %v17345_v6, 920167782  ;;  %v7587_v16 = vmul.f32 %v7586_v1, %v7584_v50  ;;  %v6784_v52 = vmul.u32 %v17346_v24, %v6730_v9  ;;  %v17352_v50 = vld [vmem:[#allocation125_spill] sm:$0xff] }
 0x862   : > { %v6922_v35 = vmul.u32 %v6920_v39, %v17343_v62  ;;  %v7610_v37 = vadd.s32 3, %v7593_v13  ;;  %v6788_v25 = vsel %vm6786_vm3, %v6787_v45, %v6783_v47  ;;  %v6899_v23 = vmul.u32 %v6897_v53, %v17343_v62 }
 0x863   : > { %v6903_v26 = vshll.u32 %v6900_v63, 16  ;;  %v7588_v36 = vxor.u32 2147483648, %v7587_v16  ;;  %v6789_v49 = vadd.s32 %v6788_v25, %v6784_v52  ;;  %v6902_v29 = vmul.u32 %v6898_v4, %v17344_v11 }
 0x864   : > { %v6905_v46 = vshll.u32 %v16080_v2, 16  ;;  %v16093_v31 = vmul.u32 %v6919_v15, %v17344_v11  ;;  %v6925_v5 = vshll.u32 %v6922_v35, 16  ;;  %v17349_v58 = vor.u32 %v17347_v27, %v17348_v3 }
 0x865   : > { %vm6907_vm2 = vc.u32 %v6899_v23, %v6903_v26  ;;  %v6909_v59 = vadd.s32 %v6903_v26, %v6899_v23  ;;  %v7589_v55 = vsel %vm7468_vm12, %v7588_v36, %v7587_v16  ;;  %v6790_v14 = vadd.s32 536870912, %v6789_v49 }
 0x866   : > { %v16100_v18 = vsel %vm6261_vm9, %v17349_v58, 1326507024  ;;  %v6908_v38 = vsel %vm6907_vm2, 1, %v16760_v21  ;;  %v16108_v44 = vsel %vm16058_vm15, %v17330_v0, %v7589_v55  ;;  %v6921_v32 = vmul.u32 %v6919_v15, %v17343_v62 }
 0x867   : > { %v6910_v30 = vadd.s32 %v6908_v38, %v6902_v29  ;;  %vm6911_vm14 = vc.u32 %v6909_v59, %v6905_v46  ;;  %v7594_v54 = vmul.f32 %v16108_v44, %v16108_v44  ;;  %v16113_v34 = vand.u32 3, %v7610_v37  ;;  %v17354_v37 = vld [vmem:[#allocation12_spill] sm:$0xff]  ;;  %v17355_v38 = vld [vmem:[#allocation47_spill] sm:$0xff] }
 0x868   : > { %v16115_v7 = vshrl.u32 %v6790_v14, 30  ;;  %v6912_v43 = vsel %vm6911_vm14, 1, %v16760_v21  ;;  %v6927_v28 = vshll.u32 %v16093_v31, 16  ;;  %vm6929_vm11 = vc.u32 %v6921_v32, %v6925_v5 }
 0x869   : > { %v6914_v56 = vadd.s32 %v6912_v43, %v6910_v30  ;;  %v6931_v48 = vadd.s32 %v6925_v5, %v6921_v32  ;;  %v7595_v33 = vmul.f32 -0.001358992, %v7594_v54  ;;  %v7602_v57 = vmul.f32 -0.00019511016, %v7594_v54  ;;  %v17358_v32 = vld [vmem:[#allocation75_spill] sm:$0xff] }
 0x86a   : > { %v6792_v40 = vshll.u32 %v16115_v7, 30  ;;  %v6862_v17 = vshrl.u32 %v16751_v22, %v17350_v42  ;;  %v6904_v20 = vshrl.u32 %v6900_v63, 16  ;;  %v6924_v9 = vmul.u32 %v6920_v39, %v17344_v11 }
 0x86b   : > { %v6930_v12 = vsel %vm6929_vm11, 1, %v16760_v21  ;;  %vm6933_vm7 = vc.u32 %v6931_v48, %v6927_v28  ;;  %v7596_v13 = vadd.f32 0.041655596, %v7595_v33  ;;  %v7603_v47 = vadd.f32 0.008332121, %v7602_v57 }
 0x86c   : > { %v16124_v53 = vsub.s32 %v6789_v49, %v6792_v40  ;;  %vm17351_vm12 = vcmp.lt.s32.totalorder %v17315_v10, 4  ;;  %vm17353_vm0 = vcmp.lt.s32.totalorder %v17315_v10, 1  ;;  %v6915_v45 = vadd.s32 %v6914_v56, %v6904_v20  ;;  %v17356_v10 = vld [vmem:[#allocation111_spill] sm:$0xff] }
 0x86d   : > { %v6883_v4 = vsel %vm17351_vm12, %v17325_v8, 2102212464  ;;  %v6882_v1 = vsel %vm17353_vm0, %v6862_v17, %v17352_v50  ;;  %v6932_v62 = vadd.s32 %v6930_v12, %v6924_v9  ;;  %v6934_v63 = vsel %vm6933_vm7, 1, %v16760_v21  ;;  %v17359_v17 = vld [vmem:[#allocation74_spill] sm:$0xff]  ;;  %v17360_v20 = vld [vmem:[#allocation71_spill] sm:$0xff] }
 0x86e   : > { %v7597_v39 = vmul.f32 %v7596_v13, %v7594_v54  ;;  %v7604_v11 = vmul.f32 %v7603_v47, %v7594_v54  ;;  %vm6794_vm5 = vcmp.lt.s32.totalorder %v16124_v53, 0  ;;  %v6795_v15 = vsub.s32 0, %v16124_v53 }
 0x86f   : > { %v6884_v16 = vsel %vm6880_vm4, %v17326_v19, %v6883_v4  ;;  %v6906_v8 = vshrl.u32 %v16080_v2, 16  ;;  %v6926_v24 = vshrl.u32 %v6922_v35, 16  ;;  %v6936_v52 = vadd.s32 %v6934_v63, %v6932_v62  ;;  %v17362_v62 = vld [vmem:[#allocation72_spill] sm:$0xff] }
 0x870   : > { %vm6693_vm6 = vcmp.lt.s32.totalorder %v17354_v37, 0  ;;  %v7598_v25 = vadd.f32 -0.4999988, %v7597_v39  ;;  %v7605_v23 = vadd.f32 -0.16666654, %v7604_v11  ;;  %v6796_v26 = vsel %vm6794_vm5, %v6795_v15, %v16124_v53 }
 0x871   : > { %vm7613_vm13 = vcmp.eq.s32.totalorder %v16113_v34, 0  ;;  %vm7616_vm10 = vcmp.eq.s32.totalorder %v16113_v34, 2  ;;  %v6797_v36 = vclz %v6796_v26  ;;  %v16143_v49 = vadd.s32 %v6915_v45, %v6906_v8 }
 0x872   : > { %v6937_v29 = vadd.s32 %v6936_v52, %v6926_v24  ;;  %v7599_v46 = vmul.f32 %v7598_v25, %v7594_v54  ;;  %v7606_v19 = vmul.f32 %v7605_v23, %v7594_v54  ;;  %vm7612_vm4 = vcmp.lt.s32.totalorder %v16113_v34, 2 }
 0x873   : > { %v6885_v2 = vsel %vm6879_vm8, %v6882_v1, %v6884_v16  ;;  %v6928_v35 = vshrl.u32 %v16093_v31, 16  ;;  %vm7609_vm1 = vweird.f32 %v17330_v0  ;;  %v6785_v59 = vadd.s32 %v16068_v60, %v16053_v51  ;;  %v17357_v31 = vld [vmem:[#allocation76_spill] sm:$0xff]  ;;  %v17361_v1 = vld [vmem:[#allocation19_spill] sm:$0xff] }
 0x874   : > { %v8574_v5 = vadd.s32 4294967294, %v6797_v36  ;;  %v6815_v27 = vsub.s32 4, %v16115_v7  ;;  %v16153_v3 = vadd.s32 %v6931_v48, %v6927_v28  ;;  %v7600_v58 = vadd.f32 1.0, %v7599_v46 }
 0x875   : > { %v7607_v55 = vadd.f32 1.0, %v7606_v19  ;;  %v6938_v14 = vadd.s32 %v6937_v29, %v6928_v35  ;;  %vm6104_vm15 = vcmp.lt.s32.totalorder %v17355_v38, 2  ;;  %v6939_v30 = vmul.u32 %v17356_v10, %v6885_v2 }
 0x876   : > { %vm8575_vm3 = vcmp.lt.s32.totalorder %v8574_v5, 0  ;;  %vm6941_vm8 = vc.u32 %v16143_v49, %v16153_v3  ;;  %v6118_v51 = vsel %vm6104_vm15, %v17358_v32, %v17357_v31  ;;  %v7617_v54 = vxor.u32 2147483648, %v7600_v58 }
 0x877   : > { %v7608_v60 = vmul.f32 %v7607_v55, %v16108_v44  ;;  %v6800_v43 = vsel %vm8575_vm3, 0, %v8574_v5  ;;  %v6942_v56 = vadd.s32 1, %v6938_v14  ;;  %vm6258_vm2 = vcmp.lt.s32.totalorder %v17334_v41, 1  ;;  %v17366_v5 = vld [vmem:[#allocation92_spill] sm:$0xff] }
 0x878   : > { %v6801_v28 = vsub.s32 32, %v6800_v43  ;;  %v6805_v48 = vsub.s32 4294967266, %v6800_v43  ;;  %v6816_v33 = vsel %vm6693_vm6, %v6815_v27, %v16115_v7  ;;  %v6122_v57 = vand.u32 65535, %v6118_v51  ;;  %v17367_v27 = vld [vmem:[#allocation91_spill] sm:$0xff] }
 0x879   : > { %v7614_v40 = vxor.u32 2147483648, %v7608_v60  ;;  %v6943_v42 = vsel %vm6941_vm8, %v6942_v56, %v6938_v14  ;;  %v16172_v9 = vsel %vm6104_vm15, %v17360_v20, %v17359_v17  ;;  %v6123_v44 = vshrl.u32 %v6118_v51, 16  ;;  %v17368_v51 = vld [vmem:[#allocation93_spill] sm:$0xff] }
 0x87a   : > { %vm6260_vm14 = vcmp.lt.s32.totalorder %v17334_v41, 3  ;;  %v6802_v12 = vshll.u32 %v16124_v53, %v6800_v43  ;;  %v6803_v13 = vshrl.u32 %v6785_v59, %v6801_v28  ;;  %v6806_v47 = vadd.s32 127, %v6805_v48 }
 0x87b   : > { %v6944_v4 = vadd.s32 %v6943_v42, %v6939_v30  ;;  %v7615_v7 = vsel %vm7613_vm13, %v7600_v58, %v7614_v40  ;;  %v7618_v50 = vsel %vm7616_vm10, %v7617_v54, %v7608_v60  ;;  %v6125_v45 = vmul.u32 %v6123_v44, %v17361_v1 }
 0x87c   : > { %v16182_v63 = vmul.u32 %v6122_v57, %v17362_v62  ;;  %v7619_v39 = vsel %vm7612_vm4, %v7615_v7, %v7618_v50  ;;  %v6804_v11 = vor.u32 %v6803_v13, %v6802_v12  ;;  %v6807_v15 = vshll.u32 %v6806_v47, 23  ;;  %v17372_v47 = vld [vmem:[#allocation68_spill] sm:$0xff] }
 0x87d   : > { %v6945_v53 = vadd.s32 536870912, %v6944_v4  ;;  %v7620_v16 = vsel %vm7609_vm1, nan, %v7619_v39  ;;  %v17363_v8 = vand.u32 2147483647, %v17354_v37  ;;  %v6124_v52 = vmul.u32 %v6122_v57, %v17361_v1 }
 0x87e   : > { %v6128_v25 = vshll.u32 %v6125_v45, 16  ;;  %8324 = vmatpush.msra.mxu3 %v7620_v16  ;;  %v6808_v23 = vor.u32 4788187, %v6807_v15  ;;  %v6127_v36 = vmul.u32 %v6123_v44, %v17362_v62  ;;  %v6130_v0 = vshll.u32 %v16182_v63, 16  ;;  %v17370_v44 = vld [vmem:[#allocation66_spill] sm:$0xff] }
 0x87f   : > { %vm16190_vm11 = vcmp.le.f32.partialorder %v17363_v8, 0.7853982  ;;  %v16197_v26 = vshrl.u32 %v6945_v53, 30  ;;  %v6145_v46 = vshrl.u32 %v16172_v9, 16  ;;  %v6811_v2 = vcvt.s32.f32 %v6804_v11 }
 0x880   : > { %v6818_v34 = vsel %vm16190_vm11, 0, %v6816_v33  ;;  %vm6132_vm7 = vc.u32 %v6124_v52, %v6128_v25  ;;  %v6134_v29 = vadd.s32 %v6128_v25, %v6124_v52  ;;  %v6809_v19 = vand.u32 2147483647, %v6808_v23  ;;  %v17369_v33 = vld [vmem:[#allocation5_spill] sm:$0xff]  ;;  %v17374_v52 = vld [vmem:[#allocation67_spill] sm:$0xff] }
 0x881   : > { %v6947_v35 = vshll.u32 %v16197_v26, 30  ;;  %v6133_v59 = vsel %vm6132_vm7, 1, %v16760_v21  ;;  %v16208_v58 = vsel %vm6258_vm2, %v17367_v27, %v17366_v5  ;;  %v6144_v55 = vand.u32 65535, %v16172_v9 }
 0x882   : > { %vm6136_vm12 = vc.u32 %v6134_v29, %v6130_v0  ;;  %v6147_v14 = vmul.u32 %v6145_v46, %v17361_v1  ;;  %v6812_v10 = vmul.f32 %v6811_v2, %v6809_v19  ;;  %v6835_v30 = vadd.s32 3, %v6818_v34  ;;  %v17376_v0 = vld [vmem:[#allocation43_spill] sm:$0xff] }
 0x883   : > { %v6948_v31 = vsub.s32 %v6944_v4, %v6947_v35  ;;  %v6135_v32 = vadd.s32 %v6133_v59, %v6127_v36  ;;  %v16216_v60 = vsel %vm6260_vm14, %v17368_v51, %v16085_v61  ;;  %v16222_v54 = vsel %vm6258_vm2, %v17366_v5, %v17368_v51 }
 0x884   : > { %v16228_v43 = vsel %vm6260_vm14, %v17345_v6, %v16100_v18  ;;  %v6137_v56 = vsel %vm6136_vm12, 1, %v16760_v21  ;;  %v6813_v28 = vxor.u32 2147483648, %v6812_v10  ;;  %v6940_v48 = vadd.s32 %v16153_v3, %v16143_v49 }
 0x885   : > { %vm6949_vm0 = vcmp.lt.s32.totalorder %v6948_v31, 0  ;;  %v6950_v61 = vsub.s32 0, %v6948_v31  ;;  %v6087_v57 = vshrl.u32 %v16751_v22, %v17369_v33  ;;  %v6146_v40 = vmul.u32 %v6144_v55, %v17361_v1 }
 0x886   : > { %v6148_v42 = vmul.u32 %v6144_v55, %v17362_v62  ;;  %v6150_v17 = vshll.u32 %v6147_v14, 16  ;;  %v6814_v6 = vsel %vm6693_vm6, %v6813_v28, %v6812_v10  ;;  %v16239_v18 = vand.u32 3, %v6835_v30 }
 0x887   : > { %v6951_v20 = vsel %vm6949_vm0, %v6950_v61, %v6948_v31  ;;  %v6139_v9 = vadd.s32 %v6137_v56, %v6135_v32  ;;  %v16244_v49 = vsel %vm16190_vm11, %v17354_v37, %v6814_v6  ;;  %vm17371_vm5 = vcmp.lt.s32.totalorder %v17355_v38, 1 }
 0x888   : > { %v6952_v3 = vclz %v6951_v20  ;;  %v6107_v12 = vsel %vm17371_vm5, %v6087_v57, %v17370_v44  ;;  %vm6154_vm13 = vc.u32 %v6146_v40, %v6150_v17  ;;  %v6819_v13 = vmul.f32 %v16244_v49, %v16244_v49 }
 0x889   : > { %vm17373_vm6 = vcmp.lt.s32.totalorder %v17355_v38, 4  ;;  %v6129_v7 = vshrl.u32 %v6125_v45, 16  ;;  %v6149_v50 = vmul.u32 %v6145_v46, %v17362_v62  ;;  %v6152_v39 = vshll.u32 %v6148_v42, 16 }
 0x88a   : > { %v6108_v4 = vsel %vm17373_vm6, %v17372_v47, 2102212464  ;;  %v8577_v1 = vadd.s32 4294967294, %v6952_v3  ;;  %v6155_v11 = vsel %vm6154_vm13, 1, %v16760_v21  ;;  %v6156_v15 = vadd.s32 %v6150_v17, %v6146_v40 }
 0x88b   : > { %v6820_v53 = vmul.f32 -0.001358992, %v6819_v13  ;;  %v6827_v16 = vmul.f32 -0.00019511016, %v6819_v13  ;;  %v6140_v8 = vadd.s32 %v6139_v9, %v6129_v7  ;;  %v6157_v24 = vadd.s32 %v6155_v11, %v6149_v50  ;;  %v17380_v9 = vld [vmem:[#allocation24_spill] sm:$0xff] }
 0x88c   : > { %vm8578_vm10 = vcmp.lt.s32.totalorder %v8577_v1, 0  ;;  %vm17375_vm4 = vcmp.lt.s32.totalorder %v17355_v38, 3  ;;  %v6131_v23 = vshrl.u32 %v16182_v63, 16  ;;  %vm6158_vm1 = vc.u32 %v6156_v15, %v6152_v39 }
 0x88d   : > { %v6109_v25 = vsel %vm17375_vm4, %v17374_v52, %v6108_v4  ;;  %v6821_v45 = vadd.f32 0.041655596, %v6820_v53  ;;  %v6828_v34 = vadd.f32 0.008332121, %v6827_v16  ;;  %v6955_v62 = vsel %vm8578_vm10, 0, %v8577_v1 }
 0x88e   : > { %v6159_v36 = vsel %vm6158_vm1, 1, %v16760_v21  ;;  %vm6848_vm3 = vcmp.lt.s32.totalorder %v17376_v0, 0  ;;  %v6956_v29 = vsub.s32 32, %v6955_v62  ;;  %v6960_v46 = vsub.s32 4294967266, %v6955_v62 }
 0x88f   : > { %v6151_v19 = vshrl.u32 %v6147_v14, 16  ;;  %v6161_v2 = vadd.s32 %v6159_v36, %v6157_v24  ;;  %v6822_v35 = vmul.f32 %v6821_v45, %v6819_v13  ;;  %v6829_v59 = vmul.f32 %v6828_v34, %v6819_v13 }
 0x890   : > { %v16262_v55 = vadd.s32 %v6140_v8, %v6131_v23  ;;  %v6153_v10 = vshrl.u32 %v6148_v42, 16  ;;  %v6957_v30 = vshll.u32 %v6948_v31, %v6955_v62  ;;  %v6958_v32 = vshrl.u32 %v6940_v48, %v6956_v29 }
 0x891   : > { %v6961_v63 = vadd.s32 127, %v6960_v46  ;;  %v6162_v56 = vadd.s32 %v6161_v2, %v6151_v19  ;;  %v6823_v28 = vadd.f32 -0.4999988, %v6822_v35  ;;  %v6830_v61 = vadd.f32 -0.16666654, %v6829_v59 }
 0x892   : > { %v6110_v33 = vsel %vm6104_vm15, %v6107_v12, %v6109_v25  ;;  %v16266_v57 = vadd.s32 %v6156_v15, %v6152_v39  ;;  %v17377_v40 = vand.u32 2147483647, %v17376_v0  ;;  %v6959_v17 = vor.u32 %v6958_v32, %v6957_v30  ;;  %v17382_v25 = vld [vmem:[#allocation85_spill] sm:$0xff] }
 0x893   : > { %v6962_v6 = vshll.u32 %v6961_v63, 23  ;;  %v6163_v42 = vadd.s32 %v6162_v56, %v6153_v10  ;;  %v6824_v31 = vmul.f32 %v6823_v28, %v6819_v13  ;;  %v6831_v48 = vmul.f32 %v6830_v61, %v6819_v13 }
 0x894   : > { %vm16270_vm8 = vcmp.le.f32.partialorder %v17377_v40, 0.7853982  ;;  %vm6837_vm11 = vcmp.lt.s32.totalorder %v16239_v18, 2  ;;  %v6970_v20 = vsub.s32 4, %v16197_v26  ;;  %vm6166_vm15 = vc.u32 %v16262_v55, %v16266_v57 }
 0x895   : > { %vm6834_vm7 = vweird.f32 %v17354_v37  ;;  %v6963_v38 = vor.u32 4788187, %v6962_v6  ;;  %v6164_v3 = vmul.u32 %v17380_v9, %v6110_v33  ;;  %v6167_v44 = vadd.s32 1, %v6163_v42 }
 0x896   : > { %vm6259_vm12 = vcmp.lt.s32.totalorder %v17334_v41, 2  ;;  %v6825_v12 = vadd.f32 1.0, %v6824_v31  ;;  %v6832_v47 = vadd.f32 1.0, %v6831_v48  ;;  %v6966_v4 = vcvt.s32.f32 %v6959_v17 }
 0x897   : > { %v6273_v13 = vsel %vm6259_vm12, %v16222_v54, %v16228_v43  ;;  %v6964_v7 = vand.u32 2147483647, %v6963_v38  ;;  %v6168_v50 = vsel %vm6166_vm15, %v6167_v44, %v6163_v42  ;;  %v6971_v53 = vsel %vm6848_vm3, %v6970_v20, %v16197_v26  ;;  %v17381_v43 = vld [vmem:[#allocation82_spill] sm:$0xff]  ;;  %v17383_v20 = vld [vmem:[#allocation81_spill] sm:$0xff] }
 0x898   : > { %v6277_v1 = vand.u32 65535, %v6273_v13  ;;  %v6278_v39 = vshrl.u32 %v6273_v13, 16  ;;  %v6833_v11 = vmul.f32 %v6832_v47, %v16244_v49  ;;  %v6842_v15 = vxor.u32 2147483648, %v6825_v12 }
 0x899   : > { %v6169_v16 = vadd.s32 %v6168_v50, %v6164_v3  ;;  %vm6838_vm0 = vcmp.eq.s32.totalorder %v16239_v18, 0  ;;  %v6967_v8 = vmul.f32 %v6966_v4, %v6964_v7  ;;  %v6269_v54 = vsel %vm6259_vm12, %v16208_v58, %v16216_v60 }
 0x89a   : > { %v16295_v24 = vmul.u32 %v6278_v39, %v17381_v43  ;;  %v6839_v52 = vxor.u32 2147483648, %v6833_v11  ;;  %vm6841_vm5 = vcmp.eq.s32.totalorder %v16239_v18, 2  ;;  %v16299_v23 = vmul.u32 %v6277_v1, %v17382_v25 }
 0x89b   : > { %v6170_v49 = vadd.s32 536870912, %v6169_v16  ;;  %v6968_v26 = vxor.u32 2147483648, %v6967_v8  ;;  %v6973_v45 = vsel %vm16270_vm8, 0, %v6971_v53  ;;  %v6279_v34 = vmul.u32 %v6277_v1, %v17381_v43 }
 0x89c   : > { %v6283_v62 = vshll.u32 %v16295_v24, 16  ;;  %v6840_v36 = vsel %vm6838_vm0, %v6825_v12, %v6839_v52  ;;  %v6843_v58 = vsel %vm6841_vm5, %v6842_v15, %v6833_v11  ;;  %v6300_v29 = vshrl.u32 %v6269_v54, 16 }
 0x89d   : > { %v16305_v60 = vshrl.u32 %v6170_v49, 30  ;;  %v6844_v46 = vsel %vm6837_vm11, %v6840_v36, %v6843_v58  ;;  %v6969_v19 = vsel %vm6848_vm3, %v6968_v26, %v6967_v8  ;;  %v6285_v30 = vshll.u32 %v16299_v23, 16 }
 0x89e   : > { %vm6287_vm13 = vc.u32 %v6279_v34, %v6283_v62  ;;  %v6289_v2 = vadd.s32 %v6283_v62, %v6279_v34  ;;  %v6845_v35 = vsel %vm6834_vm7, nan, %v6844_v46  ;;  %v6972_v59 = vsel %vm16270_vm8, %v17376_v0, %v6969_v19 }
 0x89f   : > { %v6172_v10 = vshll.u32 %v16305_v60, 30  ;;  %8305 = vmatpush.msra.mxu2 %v6845_v35  ;;  %v6974_v32 = vmul.f32 %v6972_v59, %v6972_v59  ;;  %v6288_v18 = vsel %vm6287_vm13, 1, %v16760_v21  ;;  %v6282_v56 = vmul.u32 %v6278_v39, %v17382_v25 }
 0x8a0   : > { %vm6291_vm6 = vc.u32 %v6289_v2, %v6285_v30  ;;  %v6299_v28 = vand.u32 65535, %v6269_v54  ;;  %v6990_v33 = vadd.s32 3, %v6973_v45  ;;  %v6302_v40 = vmul.u32 %v6300_v29, %v17381_v43 }
 0x8a1   : > { %v16319_v63 = vsub.s32 %v6169_v16, %v6172_v10  ;;  %v6975_v37 = vmul.f32 -0.001358992, %v6974_v32  ;;  %v6982_v61 = vmul.f32 -0.00019511016, %v6974_v32  ;;  %v6290_v17 = vadd.s32 %v6288_v18, %v6282_v56 }
 0x8a2   : > { %v6292_v31 = vsel %vm6291_vm6, 1, %v16760_v21  ;;  %v6242_v38 = vshrl.u32 %v16751_v22, %v17383_v20  ;;  %v6303_v9 = vmul.u32 %v6299_v28, %v17382_v25  ;;  %v6305_v3 = vshll.u32 %v6302_v40, 16 }
 0x8a3   : > { %vm6174_vm10 = vcmp.lt.s32.totalorder %v16319_v63, 0  ;;  %v6175_v14 = vsub.s32 0, %v16319_v63  ;;  %v6976_v6 = vadd.f32 0.041655596, %v6975_v37  ;;  %v6983_v42 = vadd.f32 0.008332121, %v6982_v61 }
 0x8a4   : > { %v6991_v47 = vand.u32 3, %v6990_v33  ;;  %v6165_v13 = vadd.s32 %v16266_v57, %v16262_v55  ;;  %v6262_v7 = vsel %vm6258_vm2, %v6242_v38, %v17367_v27  ;;  %v6294_v50 = vadd.s32 %v6292_v31, %v6290_v17 }
 0x8a5   : > { %v6176_v48 = vsel %vm6174_vm10, %v6175_v14, %v16319_v63  ;;  %v6977_v44 = vmul.f32 %v6976_v6, %v6974_v32  ;;  %v6984_v12 = vmul.f32 %v6983_v42, %v6974_v32  ;;  %v6301_v1 = vmul.u32 %v6299_v28, %v17381_v43  ;;  %v17384_v6 = vld [vmem:[#allocation77_spill] sm:$0xff] }
 0x8a6   : > { %v6177_v4 = vclz %v6176_v48  ;;  %v6284_v15 = vshrl.u32 %v16295_v24, 16  ;;  %v6304_v53 = vmul.u32 %v6300_v29, %v17382_v25  ;;  %v6307_v16 = vshll.u32 %v6303_v9, 16 }
 0x8a7   : > { %v6978_v39 = vadd.f32 -0.4999988, %v6977_v44  ;;  %v6985_v11 = vadd.f32 -0.16666654, %v6984_v12  ;;  %vm6309_vm4 = vc.u32 %v6301_v1, %v6305_v3  ;;  %v6311_v8 = vadd.s32 %v6305_v3, %v6301_v1 }
 0x8a8   : > { %v8562_v22 = vadd.s32 4294967294, %v6177_v4  ;;  %vm6992_vm1 = vcmp.lt.s32.totalorder %v6991_v47, 2  ;;  %v6310_v55 = vsel %vm6309_vm4, 1, %v16760_v21  ;;  %v6295_v57 = vadd.s32 %v6294_v50, %v6284_v15 }
 0x8a9   : > { %v6979_v54 = vmul.f32 %v6978_v39, %v6974_v32  ;;  %v6986_v52 = vmul.f32 %v6985_v11, %v6974_v32  ;;  %v6312_v49 = vadd.s32 %v6310_v55, %v6304_v53  ;;  %vm6313_vm2 = vc.u32 %v6311_v8, %v6307_v16 }
 0x8aa   : > { %vm8563_vm3 = vcmp.lt.s32.totalorder %v8562_v22, 0  ;;  %v6263_v24 = vsel %vm6261_vm9, %v17368_v51, 2102212464  ;;  %v6286_v34 = vshrl.u32 %v16299_v23, 16  ;;  %v6306_v62 = vshrl.u32 %v6302_v40, 16 }
 0x8ab   : > { %v6180_v27 = vsel %vm8563_vm3, 0, %v8562_v22  ;;  %v6980_v43 = vadd.f32 1.0, %v6979_v54  ;;  %v6987_v26 = vadd.f32 1.0, %v6986_v52  ;;  %v6314_v36 = vsel %vm6313_vm2, 1, %v16760_v21 }
 0x8ac   : > { %v6181_v45 = vsub.s32 32, %v6180_v27  ;;  %v6185_v25 = vsub.s32 4294967266, %v6180_v27  ;;  %v6316_v19 = vadd.s32 %v6314_v36, %v6312_v49  ;;  %v6182_v2 = vshll.u32 %v16319_v63, %v6180_v27 }
 0x8ad   : > { %v6988_v58 = vmul.f32 %v6987_v26, %v6972_v59  ;;  %v6997_v29 = vxor.u32 2147483648, %v6980_v43  ;;  %v6264_v10 = vsel %vm6260_vm14, %v17366_v5, %v6263_v24  ;;  %v6296_v30 = vadd.s32 %v6295_v57, %v6286_v34 }
 0x8ae   : > { %v6183_v46 = vshrl.u32 %v6165_v13, %v6181_v45  ;;  %v6186_v35 = vadd.s32 127, %v6185_v25  ;;  %vm6993_vm8 = vcmp.eq.s32.totalorder %v6991_v47, 0  ;;  %v6308_v32 = vshrl.u32 %v6303_v9, 16  ;;  %v17385_v9 = vld [vmem:[#allocation9_spill] sm:$0xff] }
 0x8af   : > { %v6994_v51 = vxor.u32 2147483648, %v6988_v58  ;;  %v6317_v18 = vadd.s32 %v6316_v19, %v6306_v62  ;;  %vm6996_vm9 = vcmp.eq.s32.totalorder %v6991_v47, 2  ;;  %v6315_v21 = vadd.s32 %v6311_v8, %v6307_v16 }
 0x8b0   : > { %v6184_v23 = vor.u32 %v6183_v46, %v6182_v2  ;;  %v6187_v56 = vshll.u32 %v6186_v35, 23  ;;  %v6998_v28 = vsel %vm6996_vm9, %v6997_v29, %v6988_v58  ;;  %v6265_v37 = vsel %vm6259_vm12, %v6262_v7, %v6264_v10 }
 0x8b1   : > { %v6995_v59 = vsel %vm6993_vm8, %v6980_v43, %v6994_v51  ;;  %v6318_v63 = vadd.s32 %v6317_v18, %v6308_v32  ;;  %vm6989_vm11 = vweird.f32 %v17376_v0  ;;  %vm6321_vm14 = vc.u32 %v6296_v30, %v6315_v21 }
 0x8b2   : > { %v6999_v61 = vsel %vm6992_vm1, %v6995_v59, %v6998_v28  ;;  %v6188_v5 = vor.u32 4788187, %v6187_v56  ;;  %v6191_v17 = vcvt.s32.f32 %v6184_v23  ;;  %v6319_v42 = vmul.u32 %v17384_v6, %v6265_v37  ;;  %v8670_v37 = vld [vmem:[%s16424_s7] sm:$0x7] }
 0x8b3   : > { %v7000_v33 = vsel %vm6989_vm11, nan, %v6999_v61  ;;  %v6322_v40 = vadd.s32 1, %v6318_v63  ;;  %vm6073_vm15 = vcmp.lt.s32.totalorder %v17385_v9, 0  ;;  %v17386_v0 = vand.u32 2147483647, %v17385_v9 }
 0x8b4   : > { %8325 = vmatpush.msra.mxu3 %v7000_v33  ;;  %v6189_v14 = vand.u32 2147483647, %v6188_v5  ;;  %v6195_v47 = vsub.s32 4, %v16305_v60  ;;  %v6320_v62 = vadd.s32 %v6315_v21, %v6296_v30  ;;  %vm6214_vm10 = vweird.f32 %v17385_v9  ;;  %v17390_v5 = vld [vmem:[#allocation30_spill] sm:$0xff] }
 0x8b5   : > { %v6323_v31 = vsel %vm6321_vm14, %v6322_v40, %v6318_v63  ;;  %vm16356_vm7 = vcmp.le.f32.partialorder %v17386_v0, 0.7853982  ;;  %vm17389_vm4 = vcmask 261120   ;;  %vm6228_vm1 = vcmp.lt.s32.totalorder %v17390_v5, 0 }
 0x8b6   : > { %v6192_v48 = vmul.f32 %v6191_v17, %v6189_v14  ;;  %v6324_v20 = vadd.s32 %v6323_v31, %v6319_v42  ;;  %v6196_v11 = vsel %vm6073_vm15, %v6195_v47, %v16305_v60  ;;  %v17391_v33 = vand.u32 2147483647, %v17390_v5  ;;  %vm17392_vm14 = vmmov %vm17389_vm4 }
 0x8b7   : > { %v6198_v16 = vsel %vm16356_vm7, 0, %v6196_v11  ;;  %vm6369_vm11 = vweird.f32 %v17390_v5 }
 0x8b8   : > { %v6193_v38 = vxor.u32 2147483648, %v6192_v48  ;;  %v6325_v41 = vadd.s32 536870912, %v6324_v20  ;;  %v6215_v49 = vadd.s32 3, %v6198_v16  ;;  %vm6227_vm3 = vcmp.le.f32.partialorder %v17391_v33, 0.7853982  ;;  %v8288_v16 = vpop.f32.mrf.mxu1 }
 0x8ba   : > { %v6194_v44 = vsel %vm6073_vm15, %v6193_v38, %v6192_v48  ;;  %v16360_v12 = vshrl.u32 %v6325_v41, 30  ;;  %v6216_v34 = vand.u32 3, %v6215_v49  ;;  %vm8337_vm15 = vcmask 1043456  }
 0x8bb   : > { %v6197_v4 = vsel %vm16356_vm7, %v17385_v9, %v6194_v44 }
 0x8bc   : > { %v6199_v13 = vmul.f32 %v6197_v4, %v6197_v4  ;;  %v6327_v7 = vshll.u32 %v16360_v12, 30  ;;  %vm6218_vm5 = vcmp.eq.s32.totalorder %v6216_v34, 0  ;;  %vm6221_vm13 = vcmp.eq.s32.totalorder %v6216_v34, 2 }
 0x8bd   : > { %vm6217_vm6 = vcmp.lt.s32.totalorder %v6216_v34, 2  ;;  %v6350_v14 = vsub.s32 4, %v16360_v12 }
 0x8be   : > { %v6200_v50 = vmul.f32 -0.001358992, %v6199_v13  ;;  %v6207_v1 = vmul.f32 -0.00019511016, %v6199_v13  ;;  %v6328_v39 = vsub.s32 %v6324_v20, %v6327_v7 }
 0x8bf   : > { %v6351_v48 = vsel %vm6228_vm1, %v6350_v14, %v16360_v12 }
 0x8c0   : > { %v6201_v22 = vadd.f32 0.041655596, %v6200_v50  ;;  %v6208_v15 = vadd.f32 0.008332121, %v6207_v1  ;;  %vm6329_vm12 = vcmp.lt.s32.totalorder %v6328_v39, 0  ;;  %v6330_v53 = vsub.s32 0, %v6328_v39 }
 0x8c1   : > { %v6353_v41 = vsel %vm6227_vm3, 0, %v6351_v48 }
 0x8c2   : > { %v6202_v8 = vmul.f32 %v6201_v22, %v6199_v13  ;;  %v6209_v54 = vmul.f32 %v6208_v15, %v6199_v13  ;;  %v6331_v52 = vsel %vm6329_vm12, %v6330_v53, %v6328_v39  ;;  %v6370_v47 = vadd.s32 3, %v6353_v41 }
 0x8c3   : > { %v6332_v55 = vclz %v6331_v52 }
 0x8c4   : > { %v6203_v27 = vadd.f32 -0.4999988, %v6202_v8  ;;  %v6210_v57 = vadd.f32 -0.16666654, %v6209_v54  ;;  %v6371_v1 = vand.u32 3, %v6370_v47  ;;  %v8246_v54 = vpop.permute.xlu1 %8245 }
 0x8c5   : > { %v8565_v43 = vadd.s32 4294967294, %v6332_v55  ;;  %v8289_v52 = vadd.f32 %v8288_v16, %v8246_v54  ;;  %v8268_v55 = vpop.f32.mrf.mxu0 }
 0x8c6   : > { %v6204_v26 = vmul.f32 %v6203_v27, %v6199_v13  ;;  %v6211_v45 = vmul.f32 %v6210_v57, %v6199_v13  ;;  %vm6373_vm2 = vcmp.eq.s32.totalorder %v6371_v1, 0  ;;  %vm6376_vm8 = vcmp.eq.s32.totalorder %v6371_v1, 2 }
 0x8c7   : > { %vm8566_vm0 = vcmp.lt.s32.totalorder %v8565_v43, 0  ;;  %vm6372_vm9 = vcmp.lt.s32.totalorder %v6371_v1, 2  ;;  %v8335_v27 = vrot.slane %v8289_v52, 4  ;;  %v8269_v57 = vadd.f32 %v8268_v55, %v8246_v54 }
 0x8c8   : > { %v6205_v24 = vadd.f32 1.0, %v6204_v26  ;;  %v6212_v60 = vadd.f32 1.0, %v6211_v45  ;;  %v6335_v25 = vsel %vm8566_vm0, 0, %v8565_v43 }
 0x8c9   : > { %v6336_v36 = vsub.s32 32, %v6335_v25  ;;  %v6340_v58 = vsub.s32 4294967266, %v6335_v25  ;;  %v6337_v19 = vshll.u32 %v6328_v39, %v6335_v25  ;;  %v8338_v49 = vsel %vm8337_vm15, %v8269_v57, %v8335_v27 }
 0x8ca   : > { %v6213_v29 = vmul.f32 %v6212_v60, %v6197_v4  ;;  %v6222_v46 = vxor.u32 2147483648, %v6205_v24  ;;  %8342 = vst [vmem:[%s326_s24] sm:$0x77] %v8338_v49 }
 0x8cb   : > { %v6338_v2 = vshrl.u32 %v6320_v62, %v6336_v36  ;;  %v6341_v35 = vadd.s32 127, %v6340_v58 }
 0x8cc   : > { %v6219_v10 = vxor.u32 2147483648, %v6213_v29  ;;  %v6223_v23 = vsel %vm6221_vm13, %v6222_v46, %v6213_v29 }
 0x8cd   : > { %v6339_v51 = vor.u32 %v6338_v2, %v6337_v19  ;;  %v6342_v32 = vshll.u32 %v6341_v35, 23 }
 0x8ce   : > { %v6220_v18 = vsel %vm6218_vm5, %v6205_v24, %v6219_v10 }
 0x8cf   : > { %v6224_v56 = vsel %vm6217_vm6, %v6220_v18, %v6223_v23  ;;  %v6343_v59 = vor.u32 4788187, %v6342_v32  ;;  %v6346_v28 = vcvt.s32.f32 %v6339_v51 }
 0x8d0   : > { %v6225_v30 = vsel %vm6214_vm10, nan, %v6224_v56 }
 0x8d1   : > { %8306 = vmatpush.msra.mxu2 %v6225_v30  ;;  %v6344_v21 = vand.u32 2147483647, %v6343_v59 }
 0x8d2   : > { %8605 = vmatmul.msk.f32.vlgmr.msra.gmra.mxu2 %vm17389_vm4, %v8670_v37 }
 0x8d3   : > { %v6347_v63 = vmul.f32 %v6346_v28, %v6344_v21 }
 0x8d5   : > { %v6348_v61 = vxor.u32 2147483648, %v6347_v63 }
 0x8d7   : > { %v6349_v40 = vsel %vm6228_vm1, %v6348_v61, %v6347_v63 }
 0x8d8   : > { %v6352_v17 = vsel %vm6227_vm3, %v17390_v5, %v6349_v40 }
 0x8d9   : > { %v6354_v6 = vmul.f32 %v6352_v17, %v6352_v17 }
 0x8db   : > { %v6355_v42 = vmul.f32 -0.001358992, %v6354_v6  ;;  %v6362_v31 = vmul.f32 -0.00019511016, %v6354_v6 }
 0x8dd   : > { %v6356_v20 = vadd.f32 0.041655596, %v6355_v42  ;;  %v6363_v38 = vadd.f32 0.008332121, %v6362_v31 }
 0x8df   : > { %v6357_v9 = vmul.f32 %v6356_v20, %v6354_v6  ;;  %v6364_v0 = vmul.f32 %v6363_v38, %v6354_v6 }
 0x8e1   : > { %v6358_v3 = vadd.f32 -0.4999988, %v6357_v9  ;;  %v6365_v44 = vadd.f32 -0.16666654, %v6364_v0 }
 0x8e3   : > { %v6359_v4 = vmul.f32 %v6358_v3, %v6354_v6  ;;  %v6366_v13 = vmul.f32 %v6365_v44, %v6354_v6 }
 0x8e5   : > { %v6360_v7 = vadd.f32 1.0, %v6359_v4  ;;  %v6367_v50 = vadd.f32 1.0, %v6366_v13 }
 0x8e7   : > { %v6368_v39 = vmul.f32 %v6367_v50, %v6352_v17  ;;  %v6377_v11 = vxor.u32 2147483648, %v6360_v7 }
 0x8e9   : > { %v6374_v22 = vxor.u32 2147483648, %v6368_v39  ;;  %v6378_v15 = vsel %vm6376_vm8, %v6377_v11, %v6368_v39 }
 0x8eb   : > { %v6375_v12 = vsel %vm6373_vm2, %v6360_v7, %v6374_v22 }
 0x8ec   : > { %v6379_v53 = vsel %vm6372_vm9, %v6375_v12, %v6378_v15 }
 0x8ed   : > { %v6380_v8 = vsel %vm6369_vm11, nan, %v6379_v53 }
 0x8ee   : > { %8326 = vmatpush.msra.mxu3 %v6380_v8 }
 0x8ef   : > { %8606 = vmatmul.msk.f32.vlgmr.msra.gmra.mxu3 %vm17392_vm14, %v8670_v37 }
 0x955   : > { %v8308_v43 = vpop.f32.mrf.mxu2 }
 0x956   : > { %v8309_v24 = vadd.f32 %v8308_v43, %v8246_v54 }
 0x972   : > { %v8328_v26 = vpop.f32.mrf.mxu3 }
 0x973   : > { %v8329_v45 = vadd.f32 %v8328_v26, %v8246_v54 }
 0x975   : > { %v8336_v60 = vrot.slane %v8329_v45, 4 }
 0x977   : > { %v8339_v25 = vsel %vm8337_vm15, %v8309_v24, %v8336_v60 }
 0x978   : > { %8343 = vst [vmem:[%s326_s24 + $0x8] sm:$0x77] %v8339_v25 }
 0x979   : > { %8698 = shalt.err (!%p8695_p3)
}
 0x97a   : > { %8613 = dma.vmem_to_hbm [thread:$0]  (%p8831_p5), %s8359_s29, 256, %s8361_s14, %s8345_s16  }
 0x97b PF: > { %p8619_p4 = scmp.ge.s32.totalorder %s8733_s12, 2  ;;  %s8372_s22 = sand.u32 1, %s8721_s30  }
 0x97c   : > { %s8373_s24 = scalar_lea.sflag [#allocation3], %s8372_s22 }
 0x97d   : > { %p8616_p7 = pnand %p8619_p4, %p8835_p6 }
 0x97f   : > { %p8617_p8 = pneg %p8616_p7 }
 0x981   : > { %8716 = dma.done.wait (%p8617_p8), %s8373_s24, 256  }
 0x982   : > { %8718 = vsyncadd (%p8617_p8), %s8373_s24, 4294967040  ;;  %p19_p9 = scmp.ge.s32.totalorder %s8818_s15, 4   ;;  %s17393_s30 = smov %s8725_s10 }
 0x983   : > { %s17394_s10 = smov %s8729_s11  ;;  %s17395_s11 = smov %s8829_s18 }
 0x984   : > { %s17396_s12 = smov %s8818_s15  ;;  %21 = sbr.rel (!%p19_p9) target bundleno = 3 (0x3), region = 91 }
 0x989   :  { %8379 = vsyncpa [#allocation3], 1 }
 0x98a   :  { %8381 = vsyncpa [#allocation3 + $0x1], 1 }

</bundles_post_ra>
